<compile_context>
chip_gen: v7x
topology: tpu7x:2x2x1
jax: 0.10.0
libtpu: 0.0.40
codegen_flags: <defaults>
</compile_context>

<pallas_src>
import functools
import math

import jax
import jax.numpy as jnp
from jax.experimental import pallas as pl
from jax.experimental.pallas import tpu as pltpu

LN_EPS = 1e-5
INV_SQRT2 = 1.0 / math.sqrt(2.0)

# bf16 MXU operands with f32 accumulation. Set to jnp.float32 for exact parity.
MATMUL_DTYPE = jnp.bfloat16

# Above the 16/32 MiB scoped defaults, below v7x's 64 MiB physical VMEM.
_VMEM_LIMIT_BYTES = 48 * 1024 * 1024

_ENC_KEYS = ("wq", "bq", "wk", "bk", "wv", "bv", "wo", "bo",
             "ln1_w", "ln1_b", "ln2_w", "ln2_b", "w1", "b1", "w2", "b2")


# ---------------------------------------------------------------------------
# helpers
# ---------------------------------------------------------------------------
def _mm(a, w):
    """2-D MXU matmul: bf16 (or f32) operands, f32 accumulation."""
    return jnp.dot(a.astype(MATMUL_DTYPE), w.astype(MATMUL_DTYPE),
                   preferred_element_type=jnp.float32)


def _rep_spec(shape):
    """Replicated (weight) block: constant index map, full-array block."""
    n = len(shape)
    return pl.BlockSpec(shape, lambda *_, _n=n: (0,) * _n)


def _enc_specs(enc):
    return [_rep_spec(enc[k].shape) for k in _ENC_KEYS]


def _enc_args(enc):
    return [enc[k] for k in _ENC_KEYS]


def _num_blocks(n, rows_per_unit, min_rows=128):
    """Largest divisor of `n` such that each resulting block still carries
    >= min_rows rows of matmul work (1 if impossible)."""
    best = 1
    for d in range(1, n + 1):
        if n % d == 0 and (n // d) * rows_per_unit >= min_rows:
            best = d
    return best


def _num_t_blocks(t, min_rows=256):
    """Like _num_blocks for the tail's T axis; the block size must stay a
    multiple of 8 (sublane constraint on a (tblk, C) block)."""
    best = 1
    for d in range(1, t + 1):
        if t % d:
            continue
        tb = t // d
        if tb >= min_rows and tb % 8 == 0:
            best = d
    return best


def _compiler_params(n_grid_axes):
    return pltpu.CompilerParams(
        dimension_semantics=("parallel",) * n_grid_axes,
        vmem_limit_bytes=_VMEM_LIMIT_BYTES)


# ---------------------------------------------------------------------------
# shared transformer-encoder-layer compute (norm_first=True, dropout=0, ReLU)
# y: (NB, S, C) f32 — NB independent sequences of length S, resident in VMEM
# ---------------------------------------------------------------------------
def _encoder_layer(y, enc, nheads):
    (wq, bq, wk, bk, wv, bv, wo, bo,
     ln1w, ln1b, ln2w, ln2b, w1, b1, w2, b2) = enc
    NB, S, C = y.shape
    dh = C // nheads
    scale = 1.0 / math.sqrt(dh)
    R = NB * S

    def layer_norm(z, w, b):
        m = jnp.mean(z, axis=-1, keepdims=True)
        v = jnp.mean((z - m) ** 2, axis=-1, keepdims=True)
        return (z - m) * jax.lax.rsqrt(v + LN_EPS) * w + b

    y2 = y.reshape(R, C)

    # --- self-attention (pre-norm) ---
    h = layer_norm(y2, ln1w, ln1b)
    q = (_mm(h, wq) + bq).reshape(NB, S, C)
    k = (_mm(h, wk) + bk).reshape(NB, S, C)
    v = (_mm(h, wv) + bv).reshape(NB, S, C)

    # TODO(synk): dh-wide lane slices per head remain; a head-major activation
    # layout would remove them but needs 4-D relayouts that are riskier to lower.
    heads = []
    for hd in range(nheads):
        lo = hd * dh
        qh = q[:, :, lo:lo + dh] * scale
        kh = k[:, :, lo:lo + dh]
        vh = v[:, :, lo:lo + dh]
        s = jnp.einsum("nqd,nkd->nqk",
                       qh.astype(MATMUL_DTYPE), kh.astype(MATMUL_DTYPE),
                       preferred_element_type=jnp.float32)
        s = s - jnp.max(s, axis=-1, keepdims=True)
        p = jnp.exp(s)
        p = p / jnp.sum(p, axis=-1, keepdims=True)          # exact softmax
        heads.append(jnp.einsum("nqk,nkd->nqd",
                                p.astype(MATMUL_DTYPE), vh.astype(MATMUL_DTYPE),
                                preferred_element_type=jnp.float32))
    o = jnp.concatenate(heads, axis=-1).reshape(R, C)
    y1 = y2 + _mm(o, wo) + bo                               # one full-C out-proj

    # --- feed-forward (pre-norm, ReLU) ---
    h2 = layer_norm(y1, ln2w, ln2b)
    f = jnp.maximum(_mm(h2, w1) + b1, 0.0)
    f = _mm(f, w2) + b2
    return (y1 + f).reshape(NB, S, C)


# ---------------------------------------------------------------------------
# Kernel 1: broadcast diffusion add + time-attention layer (attend over L)
# ---------------------------------------------------------------------------
def _time_kernel(x_ref, dproj_ref, *rest, nheads, apply_layer):
    enc_refs = rest[:-1]
    o_ref = rest[-1]
    y = x_ref[0] + dproj_ref[0, 0]                          # (kblk, L, C) + (1, C)
    if apply_layer:
        y = _encoder_layer(y, [r[...] for r in enc_refs], nheads)
    o_ref[0] = y


def time_block(x_cl, dproj, enc, nheads, apply_layer):
    B, K, L, C = x_cl.shape
    n_k = _num_blocks(K, L)
    kblk = K // n_k
    in_specs = [pl.BlockSpec((1, kblk, L, C), lambda b, kb: (b, kb, 0, 0)),
                pl.BlockSpec((1, 1, 1, C), lambda b, kb: (b, 0, 0, 0))]
    args = [x_cl, dproj]
    if apply_layer:
        in_specs += _enc_specs(enc)
        args += _enc_args(enc)
    return pl.pallas_call(
        functools.partial(_time_kernel, nheads=nheads, apply_layer=apply_layer),
        out_shape=jax.ShapeDtypeStruct((B, K, L, C), jnp.float32),
        grid=(B, n_k),
        in_specs=in_specs,
        out_specs=pl.BlockSpec((1, kblk, L, C), lambda b, kb: (b, kb, 0, 0)),
        compiler_params=_compiler_params(2),
    )(*args)


# ---------------------------------------------------------------------------
# Kernel 2: feature-attention layer (attend over K, batched over L)
# ---------------------------------------------------------------------------
def _feature_kernel(y_ref, *rest, nheads):
    enc_refs = rest[:-1]
    o_ref = rest[-1]
    o_ref[0] = _encoder_layer(y_ref[0], [r[...] for r in enc_refs], nheads)


def feature_block(y_lk, enc, nheads):
    B, L, K, C = y_lk.shape
    n_l = _num_blocks(L, K)
    lblk = L // n_l
    return pl.pallas_call(
        functools.partial(_feature_kernel, nheads=nheads),
        out_shape=jax.ShapeDtypeStruct((B, L, K, C), jnp.float32),
        grid=(B, n_l),
        in_specs=[pl.BlockSpec((1, lblk, K, C), lambda b, lb: (b, lb, 0, 0))]
                 + _enc_specs(enc),
        out_specs=pl.BlockSpec((1, lblk, K, C), lambda b, lb: (b, lb, 0, 0)),
        compiler_params=_compiler_params(2),
    )(y_lk, *_enc_args(enc))


# ---------------------------------------------------------------------------
# Kernel 3: fused tail — mid/cond 1x1 convs + gate + output 1x1 conv + split.
# Weights pre-split into C-wide halves; everything channels-last, no in-kernel
# transposes and no 2C lane slices.
# ---------------------------------------------------------------------------
def _tail_kernel(y_ref, cond_ref, x_ref,
                 mid_wg_ref, mid_wf_ref, mid_bg_ref, mid_bf_ref,
                 cond_wg_ref, cond_wf_ref, cond_bg_ref, cond_bf_ref,
                 out_wr_ref, out_ws_ref, out_br_ref, out_bs_ref,
                 res_ref, skip_ref):
    y = y_ref[0]                                            # (tblk, C)
    cnd = cond_ref[0]                                       # (tblk, Cs)
    gate = (_mm(y, mid_wg_ref[...]) + _mm(cnd, cond_wg_ref[...])
            + mid_bg_ref[...] + cond_bg_ref[...])
    filt = (_mm(y, mid_wf_ref[...]) + _mm(cnd, cond_wf_ref[...])
            + mid_bf_ref[...] + cond_bf_ref[...])
    g = jax.nn.sigmoid(gate) * jnp.tanh(filt)               # (tblk, C) f32
    res_ref[0] = (x_ref[0] + _mm(g, out_wr_ref[...]) + out_br_ref[...]) * INV_SQRT2
    skip_ref[0] = _mm(g, out_ws_ref[...]) + out_bs_ref[...]


def tail_block(y_tl, cond_tl, x_tl, params):
    B, T, C = y_tl.shape
    Cs = cond_tl.shape[-1]
    n_t = _num_t_blocks(T)
    tblk = T // n_t
    act_spec = pl.BlockSpec((1, tblk, C), lambda b, tb: (b, tb, 0))
    return pl.pallas_call(
        _tail_kernel,
        out_shape=(jax.ShapeDtypeStruct((B, T, C), jnp.float32),
                   jax.ShapeDtypeStruct((B, T, C), jnp.float32)),
        grid=(B, n_t),
        in_specs=[act_spec,
                  pl.BlockSpec((1, tblk, Cs), lambda b, tb: (b, tb, 0)),
                  act_spec,
                  _rep_spec((C, C)), _rep_spec((C, C)),
                  _rep_spec((1, C)), _rep_spec((1, C)),
                  _rep_spec((Cs, C)), _rep_spec((Cs, C)),
                  _rep_spec((1, C)), _rep_spec((1, C)),
                  _rep_spec((C, C)), _rep_spec((C, C)),
                  _rep_spec((1, C)), _rep_spec((1, C))],
        out_specs=(act_spec, act_spec),
        compiler_params=_compiler_params(2),
    )(y_tl, cond_tl, x_tl,
      params["mid_w_gate"], params["mid_w_filt"],
      params["mid_b_gate"], params["mid_b_filt"],
      params["cond_w_gate"], params["cond_w_filt"],
      params["cond_b_gate"], params["cond_b_filt"],
      params["out_w_res"], params["out_w_skip"],
      params["out_b_res"], params["out_b_skip"])


# ---------------------------------------------------------------------------
# full ResidualBlock.forward
# ---------------------------------------------------------------------------
def residual_block_forward(x, cond_info, diffusion_emb, params, nheads):
    B, C, K, L = x.shape
    T = K * L
    assert C % nheads == 0, "channels must be divisible by nheads"

    # channels-last view of x (one XLA transpose)
    x_cl = jnp.transpose(x, (0, 2, 3, 1))                   # (B, K, L, C)

    # diffusion projection hoisted to XLA (tiny (B, Dd) @ (Dd, C) matmul)
    dproj = (jnp.dot(diffusion_emb, params["diff_w_t"],
                     preferred_element_type=jnp.float32)
             + params["diff_b"]).reshape(B, 1, 1, C)

    # broadcast diffusion add (+ time attention over L, batched over K)
    y = time_block(x_cl, dproj, params["time"], nheads, apply_layer=(L > 1))

    # feature attention over K, batched over L
    if K > 1:
        y = feature_block(jnp.swapaxes(y, 1, 2), params["feature"], nheads)
        y = jnp.swapaxes(y, 1, 2)                           # (B, K, L, C)

    # fused tail: mid/cond projections + gate + output projection + split
    cond_tl = jnp.transpose(cond_info.reshape(B, -1, T), (0, 2, 1))   # (B, T, Cs)
    res_tl, skip_tl = tail_block(y.reshape(B, T, C), cond_tl,
                                 x_cl.reshape(B, T, C), params)

    res = jnp.transpose(res_tl, (0, 2, 1)).reshape(B, C, K, L)
    skip = jnp.transpose(skip_tl, (0, 2, 1)).reshape(B, C, K, L)
    return res, skip


# ---------------------------------------------------------------------------
# deterministic parameter construction (pre-transposed, pre-split, 2-D biases)
# ---------------------------------------------------------------------------
def init_params(key, side_dim, channels, diff_dim, ff_dim=64):
    C = channels
    keys = iter(jax.random.split(key, 64))

    def nrm(shape, scale=0.1):
        return (scale * jax.random.normal(next(keys), shape)).astype(jnp.float32)

    def enc_params():
        return dict(
            wq=nrm((C, C)), bq=nrm((1, C)),      # = Wq^T, bq  (PyTorch in_proj rows)
            wk=nrm((C, C)), bk=nrm((1, C)),
            wv=nrm((C, C)), bv=nrm((1, C)),
            wo=nrm((C, C)), bo=nrm((1, C)),      # = out_proj.weight^T, bias
            ln1_w=jnp.ones((1, C), jnp.float32), ln1_b=jnp.zeros((1, C), jnp.float32),
            ln2_w=jnp.ones((1, C), jnp.float32), ln2_b=jnp.zeros((1, C), jnp.float32),
            w1=nrm((C, ff_dim)), b1=nrm((1, ff_dim)),   # linear1.weight^T
            w2=nrm((ff_dim, C)), b2=nrm((1, C)),        # linear2.weight^T
        )

    return dict(
        diff_w_t=nrm((diff_dim, C)), diff_b=nrm((1, C)),    # Linear weight^T
        # Conv1d(k=1) weights stored as weight[:, :, 0]^T and pre-split:
        #   mid/cond: gate = first C output channels, filter = last C
        #   out:      residual = first C output channels, skip = last C
        mid_w_gate=nrm((C, C)), mid_w_filt=nrm((C, C)),
        mid_b_gate=nrm((1, C)), mid_b_filt=nrm((1, C)),
        cond_w_gate=nrm((side_dim, C)), cond_w_filt=nrm((side_dim, C)),
        cond_b_gate=nrm((1, C)), cond_b_filt=nrm((1, C)),
        out_w_res=nrm((C, C)), out_w_skip=nrm((C, C)),
        out_b_res=nrm((1, C)), out_b_skip=nrm((1, C)),
        time=enc_params(), feature=enc_params(),
    )


if __name__ == "__main__":
    B, C, K, L = 2, 16, 4, 8
    side_dim, diff_dim, nheads = 8, 32, 4

    key = jax.random.PRNGKey(0)
    kx, kc, kd, kp = jax.random.split(key, 4)
    x = jax.random.normal(kx, (B, C, K, L), jnp.float32)
    cond_info = jax.random.normal(kc, (B, side_dim, K, L), jnp.float32)
    diffusion_emb = jax.random.normal(kd, (B, diff_dim), jnp.float32)
    params = init_params(kp, side_dim, C, diff_dim)

    fwd = jax.jit(functools.partial(residual_block_forward, nheads=nheads))
    res, skip = fwd(x, cond_info, diffusion_emb, params)
    jax.block_until_ready((res, skip))
    assert res.shape == (B, C, K, L) and skip.shape == (B, C, K, L)
    assert bool(jnp.all(jnp.isfinite(res))) and bool(jnp.all(jnp.isfinite(skip)))
    print("KERNEL_OK")
</pallas_src>

<mosaic_0001>
module attributes {stable_mosaic.version = 11 : i64} {
  func.func @_tail_kernel(%arg0: i32, %arg1: i32, %arg2: memref<1x32x16xf32, #tpu.memory_space<vmem>>, %arg3: memref<1x32x8xf32, #tpu.memory_space<vmem>>, %arg4: memref<1x32x16xf32, #tpu.memory_space<vmem>>, %arg5: memref<16x16xf32, #tpu.memory_space<vmem>>, %arg6: memref<16x16xf32, #tpu.memory_space<vmem>>, %arg7: memref<1x16xf32, #tpu.memory_space<vmem>>, %arg8: memref<1x16xf32, #tpu.memory_space<vmem>>, %arg9: memref<8x16xf32, #tpu.memory_space<vmem>>, %arg10: memref<8x16xf32, #tpu.memory_space<vmem>>, %arg11: memref<1x16xf32, #tpu.memory_space<vmem>>, %arg12: memref<1x16xf32, #tpu.memory_space<vmem>>, %arg13: memref<16x16xf32, #tpu.memory_space<vmem>>, %arg14: memref<16x16xf32, #tpu.memory_space<vmem>>, %arg15: memref<1x16xf32, #tpu.memory_space<vmem>>, %arg16: memref<1x16xf32, #tpu.memory_space<vmem>>, %arg17: memref<1x32x16xf32, #tpu.memory_space<vmem>>, %arg18: memref<1x32x16xf32, #tpu.memory_space<vmem>>) attributes {dimension_semantics = [#tpu.dimension_semantics<parallel>, #tpu.dimension_semantics<parallel>], iteration_bounds = array<i64: 2, 1>, scalar_prefetch = 0 : i64, scratch_operands = 0 : i64, tpu.core_type = #tpu.core_type<tc>, window_params = [{transform_indices = @transform_0, window_bounds = array<i64: 1, 32, 16>}, {transform_indices = @transform_1, window_bounds = array<i64: 1, 32, 8>}, {transform_indices = @transform_2, window_bounds = array<i64: 1, 32, 16>}, {pipeline_mode = #tpu.pipeline_mode<synchronous>, transform_indices = @transform_3, window_bounds = array<i64: 16, 16>}, {pipeline_mode = #tpu.pipeline_mode<synchronous>, transform_indices = @transform_4, window_bounds = array<i64: 16, 16>}, {pipeline_mode = #tpu.pipeline_mode<synchronous>, transform_indices = @transform_5, window_bounds = array<i64: 1, 16>}, {pipeline_mode = #tpu.pipeline_mode<synchronous>, transform_indices = @transform_6, window_bounds = array<i64: 1, 16>}, {pipeline_mode = #tpu.pipeline_mode<synchronous>, transform_indices = @transform_7, window_bounds = array<i64: 8, 16>}, {pipeline_mode = #tpu.pipeline_mode<synchronous>, transform_indices = @transform_8, window_bounds = array<i64: 8, 16>}, {pipeline_mode = #tpu.pipeline_mode<synchronous>, transform_indices = @transform_9, window_bounds = array<i64: 1, 16>}, {pipeline_mode = #tpu.pipeline_mode<synchronous>, transform_indices = @transform_10, window_bounds = array<i64: 1, 16>}, {pipeline_mode = #tpu.pipeline_mode<synchronous>, transform_indices = @transform_11, window_bounds = array<i64: 16, 16>}, {pipeline_mode = #tpu.pipeline_mode<synchronous>, transform_indices = @transform_12, window_bounds = array<i64: 16, 16>}, {pipeline_mode = #tpu.pipeline_mode<synchronous>, transform_indices = @transform_13, window_bounds = array<i64: 1, 16>}, {pipeline_mode = #tpu.pipeline_mode<synchronous>, transform_indices = @transform_14, window_bounds = array<i64: 1, 16>}, {transform_indices = @transform_15, window_bounds = array<i64: 1, 32, 16>}, {transform_indices = @transform_16, window_bounds = array<i64: 1, 32, 16>}]} {
    %c0 = arith.constant 0 : index
    %c0_0 = arith.constant 0 : index
    %c0_1 = arith.constant 0 : index
    %0 = vector.load %arg2[%c0, %c0_0, %c0_1] : memref<1x32x16xf32, #tpu.memory_space<vmem>>, vector<1x32x16xf32>
    %1 = vector.shape_cast %0 : vector<1x32x16xf32> to vector<32x16xf32>
    %c0_2 = arith.constant 0 : index
    %c0_3 = arith.constant 0 : index
    %c0_4 = arith.constant 0 : index
    %2 = vector.load %arg3[%c0_2, %c0_3, %c0_4] : memref<1x32x8xf32, #tpu.memory_space<vmem>>, vector<1x32x8xf32>
    %3 = vector.shape_cast %2 : vector<1x32x8xf32> to vector<32x8xf32>
    %c0_5 = arith.constant 0 : index
    %c0_6 = arith.constant 0 : index
    %4 = vector.load %arg5[%c0_5, %c0_6] : memref<16x16xf32, #tpu.memory_space<vmem>>, vector<16x16xf32>
    %5 = arith.truncf %1 : vector<32x16xf32> to vector<32x16xbf16>
    %6 = arith.truncf %4 : vector<16x16xf32> to vector<16x16xbf16>
    %cst = arith.constant dense<0.000000e+00> : vector<32x16xf32>
    %7 = tpu.matmul %5, %6, %cst {dimension_numbers = #tpu.dot_dimension_numbers<[1], [0], [0], [1], [0, 0, 1, 1], [], []>} : vector<32x16xbf16>, vector<16x16xbf16>, vector<32x16xf32> -> vector<32x16xf32>
    %c0_7 = arith.constant 0 : index
    %c0_8 = arith.constant 0 : index
    %8 = vector.load %arg9[%c0_7, %c0_8] : memref<8x16xf32, #tpu.memory_space<vmem>>, vector<8x16xf32>
    %9 = arith.truncf %3 : vector<32x8xf32> to vector<32x8xbf16>
    %10 = arith.truncf %8 : vector<8x16xf32> to vector<8x16xbf16>
    %cst_9 = arith.constant dense<0.000000e+00> : vector<32x16xf32>
    %11 = tpu.matmul %9, %10, %cst_9 {dimension_numbers = #tpu.dot_dimension_numbers<[1], [0], [0], [1], [0, 0, 1, 1], [], []>} : vector<32x8xbf16>, vector<8x16xbf16>, vector<32x16xf32> -> vector<32x16xf32>
    %12 = arith.addf %7, %11 : vector<32x16xf32>
    %c0_10 = arith.constant 0 : index
    %c0_11 = arith.constant 0 : index
    %13 = vector.load %arg7[%c0_10, %c0_11] : memref<1x16xf32, #tpu.memory_space<vmem>>, vector<1x16xf32>
    %14 = vector.broadcast %13 : vector<1x16xf32> to vector<32x16xf32>
    %15 = arith.addf %12, %14 : vector<32x16xf32>
    %c0_12 = arith.constant 0 : index
    %c0_13 = arith.constant 0 : index
    %16 = vector.load %arg11[%c0_12, %c0_13] : memref<1x16xf32, #tpu.memory_space<vmem>>, vector<1x16xf32>
    %17 = vector.broadcast %16 : vector<1x16xf32> to vector<32x16xf32>
    %18 = arith.addf %15, %17 : vector<32x16xf32>
    %c0_14 = arith.constant 0 : index
    %c0_15 = arith.constant 0 : index
    %19 = vector.load %arg6[%c0_14, %c0_15] : memref<16x16xf32, #tpu.memory_space<vmem>>, vector<16x16xf32>
    %20 = arith.truncf %1 : vector<32x16xf32> to vector<32x16xbf16>
    %21 = arith.truncf %19 : vector<16x16xf32> to vector<16x16xbf16>
    %cst_16 = arith.constant dense<0.000000e+00> : vector<32x16xf32>
    %22 = tpu.matmul %20, %21, %cst_16 {dimension_numbers = #tpu.dot_dimension_numbers<[1], [0], [0], [1], [0, 0, 1, 1], [], []>} : vector<32x16xbf16>, vector<16x16xbf16>, vector<32x16xf32> -> vector<32x16xf32>
    %c0_17 = arith.constant 0 : index
    %c0_18 = arith.constant 0 : index
    %23 = vector.load %arg10[%c0_17, %c0_18] : memref<8x16xf32, #tpu.memory_space<vmem>>, vector<8x16xf32>
    %24 = arith.truncf %3 : vector<32x8xf32> to vector<32x8xbf16>
    %25 = arith.truncf %23 : vector<8x16xf32> to vector<8x16xbf16>
    %cst_19 = arith.constant dense<0.000000e+00> : vector<32x16xf32>
    %26 = tpu.matmul %24, %25, %cst_19 {dimension_numbers = #tpu.dot_dimension_numbers<[1], [0], [0], [1], [0, 0, 1, 1], [], []>} : vector<32x8xbf16>, vector<8x16xbf16>, vector<32x16xf32> -> vector<32x16xf32>
    %27 = arith.addf %22, %26 : vector<32x16xf32>
    %c0_20 = arith.constant 0 : index
    %c0_21 = arith.constant 0 : index
    %28 = vector.load %arg8[%c0_20, %c0_21] : memref<1x16xf32, #tpu.memory_space<vmem>>, vector<1x16xf32>
    %29 = vector.broadcast %28 : vector<1x16xf32> to vector<32x16xf32>
    %30 = arith.addf %27, %29 : vector<32x16xf32>
    %c0_22 = arith.constant 0 : index
    %c0_23 = arith.constant 0 : index
    %31 = vector.load %arg12[%c0_22, %c0_23] : memref<1x16xf32, #tpu.memory_space<vmem>>, vector<1x16xf32>
    %32 = vector.broadcast %31 : vector<1x16xf32> to vector<32x16xf32>
    %33 = arith.addf %30, %32 : vector<32x16xf32>
    %34 = arith.negf %18 : vector<32x16xf32>
    %35 = math.exp %34 : vector<32x16xf32>
    %cst_24 = arith.constant 1.000000e+00 : f32
    %36 = vector.broadcast %cst_24 : f32 to vector<32x16xf32>
    %37 = arith.addf %36, %35 : vector<32x16xf32>
    %38 = arith.divf %36, %37 : vector<32x16xf32>
    %39 = math.tanh %33 : vector<32x16xf32>
    %40 = arith.mulf %38, %39 : vector<32x16xf32>
    %c0_25 = arith.constant 0 : index
    %c0_26 = arith.constant 0 : index
    %c0_27 = arith.constant 0 : index
    %41 = vector.load %arg4[%c0_25, %c0_26, %c0_27] : memref<1x32x16xf32, #tpu.memory_space<vmem>>, vector<1x32x16xf32>
    %42 = vector.shape_cast %41 : vector<1x32x16xf32> to vector<32x16xf32>
    %c0_28 = arith.constant 0 : index
    %c0_29 = arith.constant 0 : index
    %43 = vector.load %arg13[%c0_28, %c0_29] : memref<16x16xf32, #tpu.memory_space<vmem>>, vector<16x16xf32>
    %44 = arith.truncf %40 : vector<32x16xf32> to vector<32x16xbf16>
    %45 = arith.truncf %43 : vector<16x16xf32> to vector<16x16xbf16>
    %cst_30 = arith.constant dense<0.000000e+00> : vector<32x16xf32>
    %46 = tpu.matmul %44, %45, %cst_30 {dimension_numbers = #tpu.dot_dimension_numbers<[1], [0], [0], [1], [0, 0, 1, 1], [], []>} : vector<32x16xbf16>, vector<16x16xbf16>, vector<32x16xf32> -> vector<32x16xf32>
    %47 = arith.addf %42, %46 : vector<32x16xf32>
    %c0_31 = arith.constant 0 : index
    %c0_32 = arith.constant 0 : index
    %48 = vector.load %arg15[%c0_31, %c0_32] : memref<1x16xf32, #tpu.memory_space<vmem>>, vector<1x16xf32>
    %49 = vector.broadcast %48 : vector<1x16xf32> to vector<32x16xf32>
    %50 = arith.addf %47, %49 : vector<32x16xf32>
    %cst_33 = arith.constant 0.707106769 : f32
    %51 = vector.broadcast %cst_33 : f32 to vector<32x16xf32>
    %52 = arith.mulf %50, %51 : vector<32x16xf32>
    %c0_34 = arith.constant 0 : index
    %c0_35 = arith.constant 0 : index
    %c0_36 = arith.constant 0 : index
    %53 = vector.load %arg17[%c0_34, %c0_35, %c0_36] : memref<1x32x16xf32, #tpu.memory_space<vmem>>, vector<1x32x16xf32>
    %54 = vector.shape_cast %53 : vector<1x32x16xf32> to vector<32x16xf32>
    %55 = vector.shape_cast %52 : vector<32x16xf32> to vector<1x32x16xf32>
    tpu.vector_store %arg17[%c0_34, %c0_35, %c0_36], %55 {strides = array<i32>} : memref<1x32x16xf32, #tpu.memory_space<vmem>>, vector<1x32x16xf32>,
    %c0_37 = arith.constant 0 : index
    %c0_38 = arith.constant 0 : index
    %56 = vector.load %arg14[%c0_37, %c0_38] : memref<16x16xf32, #tpu.memory_space<vmem>>, vector<16x16xf32>
    %57 = arith.truncf %40 : vector<32x16xf32> to vector<32x16xbf16>
    %58 = arith.truncf %56 : vector<16x16xf32> to vector<16x16xbf16>
    %cst_39 = arith.constant dense<0.000000e+00> : vector<32x16xf32>
    %59 = tpu.matmul %57, %58, %cst_39 {dimension_numbers = #tpu.dot_dimension_numbers<[1], [0], [0], [1], [0, 0, 1, 1], [], []>} : vector<32x16xbf16>, vector<16x16xbf16>, vector<32x16xf32> -> vector<32x16xf32>
    %c0_40 = arith.constant 0 : index
    %c0_41 = arith.constant 0 : index
    %60 = vector.load %arg16[%c0_40, %c0_41] : memref<1x16xf32, #tpu.memory_space<vmem>>, vector<1x16xf32>
    %61 = vector.broadcast %60 : vector<1x16xf32> to vector<32x16xf32>
    %62 = arith.addf %59, %61 : vector<32x16xf32>
    %c0_42 = arith.constant 0 : index
    %c0_43 = arith.constant 0 : index
    %c0_44 = arith.constant 0 : index
    %63 = vector.load %arg18[%c0_42, %c0_43, %c0_44] : memref<1x32x16xf32, #tpu.memory_space<vmem>>, vector<1x32x16xf32>
    %64 = vector.shape_cast %63 : vector<1x32x16xf32> to vector<32x16xf32>
    %65 = vector.shape_cast %62 : vector<32x16xf32> to vector<1x32x16xf32>
    tpu.vector_store %arg18[%c0_42, %c0_43, %c0_44], %65 {strides = array<i32>} : memref<1x32x16xf32, #tpu.memory_space<vmem>>, vector<1x32x16xf32>,
    return
  }
  func.func @transform_0(%arg0: i32, %arg1: i32) -> (i32, i32, i32) {
    %c0_i32 = arith.constant 0 : i32
    %c0_i32_0 = arith.constant 0 : i32
    return %arg0, %arg1, %c0_i32 : i32, i32, i32
  }
  func.func @transform_1(%arg0: i32, %arg1: i32) -> (i32, i32, i32) {
    %c0_i32 = arith.constant 0 : i32
    %c0_i32_0 = arith.constant 0 : i32
    return %arg0, %arg1, %c0_i32 : i32, i32, i32
  }
  func.func @transform_2(%arg0: i32, %arg1: i32) -> (i32, i32, i32) {
    %c0_i32 = arith.constant 0 : i32
    %c0_i32_0 = arith.constant 0 : i32
    return %arg0, %arg1, %c0_i32 : i32, i32, i32
  }
  func.func @transform_3(%arg0: i32, %arg1: i32) -> (i32, i32) {
    %c0_i32 = arith.constant 0 : i32
    %c0_i32_0 = arith.constant 0 : i32
    %c0_i32_1 = arith.constant 0 : i32
    return %c0_i32, %c0_i32_0 : i32, i32
  }
  func.func @transform_4(%arg0: i32, %arg1: i32) -> (i32, i32) {
    %c0_i32 = arith.constant 0 : i32
    %c0_i32_0 = arith.constant 0 : i32
    %c0_i32_1 = arith.constant 0 : i32
    return %c0_i32, %c0_i32_0 : i32, i32
  }
  func.func @transform_5(%arg0: i32, %arg1: i32) -> (i32, i32) {
    %c0_i32 = arith.constant 0 : i32
    %c0_i32_0 = arith.constant 0 : i32
    %c0_i32_1 = arith.constant 0 : i32
    return %c0_i32, %c0_i32_0 : i32, i32
  }
  func.func @transform_6(%arg0: i32, %arg1: i32) -> (i32, i32) {
    %c0_i32 = arith.constant 0 : i32
    %c0_i32_0 = arith.constant 0 : i32
    %c0_i32_1 = arith.constant 0 : i32
    return %c0_i32, %c0_i32_0 : i32, i32
  }
  func.func @transform_7(%arg0: i32, %arg1: i32) -> (i32, i32) {
    %c0_i32 = arith.constant 0 : i32
    %c0_i32_0 = arith.constant 0 : i32
    %c0_i32_1 = arith.constant 0 : i32
    return %c0_i32, %c0_i32_0 : i32, i32
  }
  func.func @transform_8(%arg0: i32, %arg1: i32) -> (i32, i32) {
    %c0_i32 = arith.constant 0 : i32
    %c0_i32_0 = arith.constant 0 : i32
    %c0_i32_1 = arith.constant 0 : i32
    return %c0_i32, %c0_i32_0 : i32, i32
  }
  func.func @transform_9(%arg0: i32, %arg1: i32) -> (i32, i32) {
    %c0_i32 = arith.constant 0 : i32
    %c0_i32_0 = arith.constant 0 : i32
    %c0_i32_1 = arith.constant 0 : i32
    return %c0_i32, %c0_i32_0 : i32, i32
  }
  func.func @transform_10(%arg0: i32, %arg1: i32) -> (i32, i32) {
    %c0_i32 = arith.constant 0 : i32
    %c0_i32_0 = arith.constant 0 : i32
    %c0_i32_1 = arith.constant 0 : i32
    return %c0_i32, %c0_i32_0 : i32, i32
  }
  func.func @transform_11(%arg0: i32, %arg1: i32) -> (i32, i32) {
    %c0_i32 = arith.constant 0 : i32
    %c0_i32_0 = arith.constant 0 : i32
    %c0_i32_1 = arith.constant 0 : i32
    return %c0_i32, %c0_i32_0 : i32, i32
  }
  func.func @transform_12(%arg0: i32, %arg1: i32) -> (i32, i32) {
    %c0_i32 = arith.constant 0 : i32
    %c0_i32_0 = arith.constant 0 : i32
    %c0_i32_1 = arith.constant 0 : i32
    return %c0_i32, %c0_i32_0 : i32, i32
  }
  func.func @transform_13(%arg0: i32, %arg1: i32) -> (i32, i32) {
    %c0_i32 = arith.constant 0 : i32
    %c0_i32_0 = arith.constant 0 : i32
    %c0_i32_1 = arith.constant 0 : i32
    return %c0_i32, %c0_i32_0 : i32, i32
  }
  func.func @transform_14(%arg0: i32, %arg1: i32) -> (i32, i32) {
    %c0_i32 = arith.constant 0 : i32
    %c0_i32_0 = arith.constant 0 : i32
    %c0_i32_1 = arith.constant 0 : i32
    return %c0_i32, %c0_i32_0 : i32, i32
  }
  func.func @transform_15(%arg0: i32, %arg1: i32) -> (i32, i32, i32) {
    %c0_i32 = arith.constant 0 : i32
    %c0_i32_0 = arith.constant 0 : i32
    return %arg0, %arg1, %c0_i32 : i32, i32, i32
  }
  func.func @transform_16(%arg0: i32, %arg1: i32) -> (i32, i32, i32) {
    %c0_i32 = arith.constant 0 : i32
    %c0_i32_0 = arith.constant 0 : i32
    return %arg0, %arg1, %c0_i32 : i32, i32, i32
  }
}

module attributes {stable_mosaic.version = 11 : i64} {
  func.func @_time_kernel(%arg0: i32, %arg1: i32, %arg2: memref<1x4x8x16xf32, #tpu.memory_space<vmem>>, %arg3: memref<1x1x1x16xf32, #tpu.memory_space<vmem>>, %arg4: memref<16x16xf32, #tpu.memory_space<vmem>>, %arg5: memref<1x16xf32, #tpu.memory_space<vmem>>, %arg6: memref<16x16xf32, #tpu.memory_space<vmem>>, %arg7: memref<1x16xf32, #tpu.memory_space<vmem>>, %arg8: memref<16x16xf32, #tpu.memory_space<vmem>>, %arg9: memref<1x16xf32, #tpu.memory_space<vmem>>, %arg10: memref<16x16xf32, #tpu.memory_space<vmem>>, %arg11: memref<1x16xf32, #tpu.memory_space<vmem>>, %arg12: memref<1x16xf32, #tpu.memory_space<vmem>>, %arg13: memref<1x16xf32, #tpu.memory_space<vmem>>, %arg14: memref<1x16xf32, #tpu.memory_space<vmem>>, %arg15: memref<1x16xf32, #tpu.memory_space<vmem>>, %arg16: memref<16x64xf32, #tpu.memory_space<vmem>>, %arg17: memref<1x64xf32, #tpu.memory_space<vmem>>, %arg18: memref<64x16xf32, #tpu.memory_space<vmem>>, %arg19: memref<1x16xf32, #tpu.memory_space<vmem>>, %arg20: memref<1x4x8x16xf32, #tpu.memory_space<vmem>>) attributes {dimension_semantics = [#tpu.dimension_semantics<parallel>, #tpu.dimension_semantics<parallel>], iteration_bounds = array<i64: 2, 1>, scalar_prefetch = 0 : i64, scratch_operands = 0 : i64, tpu.core_type = #tpu.core_type<tc>, window_params = [{transform_indices = @transform_0, window_bounds = array<i64: 1, 4, 8, 16>}, {transform_indices = @transform_1, window_bounds = array<i64: 1, 1, 1, 16>}, {pipeline_mode = #tpu.pipeline_mode<synchronous>, transform_indices = @transform_2, window_bounds = array<i64: 16, 16>}, {pipeline_mode = #tpu.pipeline_mode<synchronous>, transform_indices = @transform_3, window_bounds = array<i64: 1, 16>}, {pipeline_mode = #tpu.pipeline_mode<synchronous>, transform_indices = @transform_4, window_bounds = array<i64: 16, 16>}, {pipeline_mode = #tpu.pipeline_mode<synchronous>, transform_indices = @transform_5, window_bounds = array<i64: 1, 16>}, {pipeline_mode = #tpu.pipeline_mode<synchronous>, transform_indices = @transform_6, window_bounds = array<i64: 16, 16>}, {pipeline_mode = #tpu.pipeline_mode<synchronous>, transform_indices = @transform_7, window_bounds = array<i64: 1, 16>}, {pipeline_mode = #tpu.pipeline_mode<synchronous>, transform_indices = @transform_8, window_bounds = array<i64: 16, 16>}, {pipeline_mode = #tpu.pipeline_mode<synchronous>, transform_indices = @transform_9, window_bounds = array<i64: 1, 16>}, {pipeline_mode = #tpu.pipeline_mode<synchronous>, transform_indices = @transform_10, window_bounds = array<i64: 1, 16>}, {pipeline_mode = #tpu.pipeline_mode<synchronous>, transform_indices = @transform_11, window_bounds = array<i64: 1, 16>}, {pipeline_mode = #tpu.pipeline_mode<synchronous>, transform_indices = @transform_12, window_bounds = array<i64: 1, 16>}, {pipeline_mode = #tpu.pipeline_mode<synchronous>, transform_indices = @transform_13, window_bounds = array<i64: 1, 16>}, {pipeline_mode = #tpu.pipeline_mode<synchronous>, transform_indices = @transform_14, window_bounds = array<i64: 16, 64>}, {pipeline_mode = #tpu.pipeline_mode<synchronous>, transform_indices = @transform_15, window_bounds = array<i64: 1, 64>}, {pipeline_mode = #tpu.pipeline_mode<synchronous>, transform_indices = @transform_16, window_bounds = array<i64: 64, 16>}, {pipeline_mode = #tpu.pipeline_mode<synchronous>, transform_indices = @transform_17, window_bounds = array<i64: 1, 16>}, {transform_indices = @transform_18, window_bounds = array<i64: 1, 4, 8, 16>}]} {
    %c0 = arith.constant 0 : index
    %c0_0 = arith.constant 0 : index
    %c0_1 = arith.constant 0 : index
    %c0_2 = arith.constant 0 : index
    %0 = vector.load %arg2[%c0, %c0_0, %c0_1, %c0_2] : memref<1x4x8x16xf32, #tpu.memory_space<vmem>>, vector<1x4x8x16xf32>
    %1 = vector.shape_cast %0 : vector<1x4x8x16xf32> to vector<4x8x16xf32>
    %c0_3 = arith.constant 0 : index
    %c0_4 = arith.constant 0 : index
    %c0_5 = arith.constant 0 : index
    %c0_6 = arith.constant 0 : index
    %2 = vector.load %arg3[%c0_3, %c0_4, %c0_5, %c0_6] : memref<1x1x1x16xf32, #tpu.memory_space<vmem>>, vector<1x1x1x16xf32>
    %3 = vector.shape_cast %2 : vector<1x1x1x16xf32> to vector<1x16xf32>
    %4 = vector.shape_cast %3 : vector<1x16xf32> to vector<1x1x16xf32>
    %5 = vector.broadcast %4 : vector<1x1x16xf32> to vector<4x8x16xf32>
    %6 = arith.addf %1, %5 : vector<4x8x16xf32>
    %c0_7 = arith.constant 0 : index
    %c0_8 = arith.constant 0 : index
    %7 = vector.load %arg4[%c0_7, %c0_8] : memref<16x16xf32, #tpu.memory_space<vmem>>, vector<16x16xf32>
    %c0_9 = arith.constant 0 : index
    %c0_10 = arith.constant 0 : index
    %8 = vector.load %arg5[%c0_9, %c0_10] : memref<1x16xf32, #tpu.memory_space<vmem>>, vector<1x16xf32>
    %c0_11 = arith.constant 0 : index
    %c0_12 = arith.constant 0 : index
    %9 = vector.load %arg6[%c0_11, %c0_12] : memref<16x16xf32, #tpu.memory_space<vmem>>, vector<16x16xf32>
    %c0_13 = arith.constant 0 : index
    %c0_14 = arith.constant 0 : index
    %10 = vector.load %arg7[%c0_13, %c0_14] : memref<1x16xf32, #tpu.memory_space<vmem>>, vector<1x16xf32>
    %c0_15 = arith.constant 0 : index
    %c0_16 = arith.constant 0 : index
    %11 = vector.load %arg8[%c0_15, %c0_16] : memref<16x16xf32, #tpu.memory_space<vmem>>, vector<16x16xf32>
    %c0_17 = arith.constant 0 : index
    %c0_18 = arith.constant 0 : index
    %12 = vector.load %arg9[%c0_17, %c0_18] : memref<1x16xf32, #tpu.memory_space<vmem>>, vector<1x16xf32>
    %c0_19 = arith.constant 0 : index
    %c0_20 = arith.constant 0 : index
    %13 = vector.load %arg10[%c0_19, %c0_20] : memref<16x16xf32, #tpu.memory_space<vmem>>, vector<16x16xf32>
    %c0_21 = arith.constant 0 : index
    %c0_22 = arith.constant 0 : index
    %14 = vector.load %arg11[%c0_21, %c0_22] : memref<1x16xf32, #tpu.memory_space<vmem>>, vector<1x16xf32>
    %c0_23 = arith.constant 0 : index
    %c0_24 = arith.constant 0 : index
    %15 = vector.load %arg12[%c0_23, %c0_24] : memref<1x16xf32, #tpu.memory_space<vmem>>, vector<1x16xf32>
    %c0_25 = arith.constant 0 : index
    %c0_26 = arith.constant 0 : index
    %16 = vector.load %arg13[%c0_25, %c0_26] : memref<1x16xf32, #tpu.memory_space<vmem>>, vector<1x16xf32>
    %c0_27 = arith.constant 0 : index
    %c0_28 = arith.constant 0 : index
    %17 = vector.load %arg14[%c0_27, %c0_28] : memref<1x16xf32, #tpu.memory_space<vmem>>, vector<1x16xf32>
    %c0_29 = arith.constant 0 : index
    %c0_30 = arith.constant 0 : index
    %18 = vector.load %arg15[%c0_29, %c0_30] : memref<1x16xf32, #tpu.memory_space<vmem>>, vector<1x16xf32>
    %c0_31 = arith.constant 0 : index
    %c0_32 = arith.constant 0 : index
    %19 = vector.load %arg16[%c0_31, %c0_32] : memref<16x64xf32, #tpu.memory_space<vmem>>, vector<16x64xf32>
    %c0_33 = arith.constant 0 : index
    %c0_34 = arith.constant 0 : index
    %20 = vector.load %arg17[%c0_33, %c0_34] : memref<1x64xf32, #tpu.memory_space<vmem>>, vector<1x64xf32>
    %c0_35 = arith.constant 0 : index
    %c0_36 = arith.constant 0 : index
    %21 = vector.load %arg18[%c0_35, %c0_36] : memref<64x16xf32, #tpu.memory_space<vmem>>, vector<64x16xf32>
    %c0_37 = arith.constant 0 : index
    %c0_38 = arith.constant 0 : index
    %22 = vector.load %arg19[%c0_37, %c0_38] : memref<1x16xf32, #tpu.memory_space<vmem>>, vector<1x16xf32>
    %23 = vector.shape_cast %6 : vector<4x8x16xf32> to vector<32x16xf32>
    %cst = arith.constant dense<0.000000e+00> : vector<32xf32>
    %24 = vector.multi_reduction <add>, %23, %cst [1] : vector<32x16xf32> to vector<32xf32>
    %25 = vector.shape_cast %24 : vector<32xf32> to vector<32x1xf32>
    %cst_39 = arith.constant 1.600000e+01 : f32
    %26 = vector.broadcast %cst_39 : f32 to vector<32x1xf32>
    %27 = arith.divf %25, %26 : vector<32x1xf32>
    %28 = vector.broadcast %27 : vector<32x1xf32> to vector<32x16xf32>
    %29 = arith.subf %23, %28 : vector<32x16xf32>
    %30 = arith.mulf %29, %29 : vector<32x16xf32>
    %cst_40 = arith.constant dense<0.000000e+00> : vector<32xf32>
    %31 = vector.multi_reduction <add>, %30, %cst_40 [1] : vector<32x16xf32> to vector<32xf32>
    %32 = vector.shape_cast %31 : vector<32xf32> to vector<32x1xf32>
    %cst_41 = arith.constant 1.600000e+01 : f32
    %33 = vector.broadcast %cst_41 : f32 to vector<32x1xf32>
    %34 = arith.divf %32, %33 : vector<32x1xf32>
    %35 = vector.broadcast %27 : vector<32x1xf32> to vector<32x16xf32>
    %36 = arith.subf %23, %35 : vector<32x16xf32>
    %cst_42 = arith.constant 9.99999974E-6 : f32
    %37 = vector.broadcast %cst_42 : f32 to vector<32x1xf32>
    %38 = arith.addf %34, %37 : vector<32x1xf32>
    %39 = math.rsqrt %38 : vector<32x1xf32>
    %40 = vector.broadcast %39 : vector<32x1xf32> to vector<32x16xf32>
    %41 = arith.mulf %36, %40 : vector<32x16xf32>
    %42 = vector.broadcast %15 : vector<1x16xf32> to vector<32x16xf32>
    %43 = arith.mulf %41, %42 : vector<32x16xf32>
    %44 = vector.broadcast %16 : vector<1x16xf32> to vector<32x16xf32>
    %45 = arith.addf %43, %44 : vector<32x16xf32>
    %46 = arith.truncf %45 : vector<32x16xf32> to vector<32x16xbf16>
    %47 = arith.truncf %7 : vector<16x16xf32> to vector<16x16xbf16>
    %cst_43 = arith.constant dense<0.000000e+00> : vector<32x16xf32>
    %48 = tpu.matmul %46, %47, %cst_43 {dimension_numbers = #tpu.dot_dimension_numbers<[1], [0], [0], [1], [0, 0, 1, 1], [], []>} : vector<32x16xbf16>, vector<16x16xbf16>, vector<32x16xf32> -> vector<32x16xf32>
    %49 = vector.broadcast %8 : vector<1x16xf32> to vector<32x16xf32>
    %50 = arith.addf %48, %49 : vector<32x16xf32>
    %51 = vector.shape_cast %50 : vector<32x16xf32> to vector<4x8x16xf32>
    %52 = arith.truncf %45 : vector<32x16xf32> to vector<32x16xbf16>
    %53 = arith.truncf %9 : vector<16x16xf32> to vector<16x16xbf16>
    %cst_44 = arith.constant dense<0.000000e+00> : vector<32x16xf32>
    %54 = tpu.matmul %52, %53, %cst_44 {dimension_numbers = #tpu.dot_dimension_numbers<[1], [0], [0], [1], [0, 0, 1, 1], [], []>} : vector<32x16xbf16>, vector<16x16xbf16>, vector<32x16xf32> -> vector<32x16xf32>
    %55 = vector.broadcast %10 : vector<1x16xf32> to vector<32x16xf32>
    %56 = arith.addf %54, %55 : vector<32x16xf32>
    %57 = vector.shape_cast %56 : vector<32x16xf32> to vector<4x8x16xf32>
    %58 = arith.truncf %45 : vector<32x16xf32> to vector<32x16xbf16>
    %59 = arith.truncf %11 : vector<16x16xf32> to vector<16x16xbf16>
    %cst_45 = arith.constant dense<0.000000e+00> : vector<32x16xf32>
    %60 = tpu.matmul %58, %59, %cst_45 {dimension_numbers = #tpu.dot_dimension_numbers<[1], [0], [0], [1], [0, 0, 1, 1], [], []>} : vector<32x16xbf16>, vector<16x16xbf16>, vector<32x16xf32> -> vector<32x16xf32>
    %61 = vector.broadcast %12 : vector<1x16xf32> to vector<32x16xf32>
    %62 = arith.addf %60, %61 : vector<32x16xf32>
    %63 = vector.shape_cast %62 : vector<32x16xf32> to vector<4x8x16xf32>
    %64 = vector.extract_strided_slice %51 {offsets = [0, 0, 0], sizes = [4, 8, 4], strides = [1, 1, 1]} : vector<4x8x16xf32> to vector<4x8x4xf32>
    %cst_46 = arith.constant 5.000000e-01 : f32
    %65 = vector.broadcast %cst_46 : f32 to vector<4x8x4xf32>
    %66 = arith.mulf %64, %65 : vector<4x8x4xf32>
    %67 = vector.extract_strided_slice %57 {offsets = [0, 0, 0], sizes = [4, 8, 4], strides = [1, 1, 1]} : vector<4x8x16xf32> to vector<4x8x4xf32>
    %68 = vector.extract_strided_slice %63 {offsets = [0, 0, 0], sizes = [4, 8, 4], strides = [1, 1, 1]} : vector<4x8x16xf32> to vector<4x8x4xf32>
    %69 = arith.truncf %66 : vector<4x8x4xf32> to vector<4x8x4xbf16>
    %70 = arith.truncf %67 : vector<4x8x4xf32> to vector<4x8x4xbf16>
    "tpu.trace_start"() <{level = 10 : i32, message = "nqd,nkd->nqk"}> : () -> ()
    %cst_47 = arith.constant dense<0.000000e+00> : vector<4x8x8xf32>
    %71 = tpu.matmul %69, %70, %cst_47 {dimension_numbers = #tpu.dot_dimension_numbers<[2], [2], [1], [1], [0, 0, 0, 1, 1, 1], [0], [0]>} : vector<4x8x4xbf16>, vector<4x8x4xbf16>, vector<4x8x8xf32> -> vector<4x8x8xf32>
    "tpu.trace_stop"() : () -> ()
    %cst_48 = arith.constant dense<0xFF800000> : vector<4x8xf32>
    %72 = vector.multi_reduction <maximumf>, %71, %cst_48 [2] : vector<4x8x8xf32> to vector<4x8xf32>
    %73 = vector.shape_cast %72 : vector<4x8xf32> to vector<4x8x1xf32>
    %74 = vector.broadcast %73 : vector<4x8x1xf32> to vector<4x8x8xf32>
    %75 = arith.subf %71, %74 : vector<4x8x8xf32>
    %76 = math.exp %75 : vector<4x8x8xf32>
    %cst_49 = arith.constant dense<0.000000e+00> : vector<4x8xf32>
    %77 = vector.multi_reduction <add>, %76, %cst_49 [2] : vector<4x8x8xf32> to vector<4x8xf32>
    %78 = vector.shape_cast %77 : vector<4x8xf32> to vector<4x8x1xf32>
    %79 = vector.broadcast %78 : vector<4x8x1xf32> to vector<4x8x8xf32>
    %80 = arith.divf %76, %79 : vector<4x8x8xf32>
    %81 = arith.truncf %80 : vector<4x8x8xf32> to vector<4x8x8xbf16>
    %82 = arith.truncf %68 : vector<4x8x4xf32> to vector<4x8x4xbf16>
    "tpu.trace_start"() <{level = 10 : i32, message = "nqk,nkd->nqd"}> : () -> ()
    %cst_50 = arith.constant dense<0.000000e+00> : vector<4x8x4xf32>
    %83 = tpu.matmul %81, %82, %cst_50 {dimension_numbers = #tpu.dot_dimension_numbers<[2], [1], [1], [2], [0, 0, 0, 1, 1, 2], [0], [0]>} : vector<4x8x8xbf16>, vector<4x8x4xbf16>, vector<4x8x4xf32> -> vector<4x8x4xf32>
    "tpu.trace_stop"() : () -> ()
    %84 = vector.extract_strided_slice %51 {offsets = [0, 0, 4], sizes = [4, 8, 4], strides = [1, 1, 1]} : vector<4x8x16xf32> to vector<4x8x4xf32>
    %cst_51 = arith.constant 5.000000e-01 : f32
    %85 = vector.broadcast %cst_51 : f32 to vector<4x8x4xf32>
    %86 = arith.mulf %84, %85 : vector<4x8x4xf32>
    %87 = vector.extract_strided_slice %57 {offsets = [0, 0, 4], sizes = [4, 8, 4], strides = [1, 1, 1]} : vector<4x8x16xf32> to vector<4x8x4xf32>
    %88 = vector.extract_strided_slice %63 {offsets = [0, 0, 4], sizes = [4, 8, 4], strides = [1, 1, 1]} : vector<4x8x16xf32> to vector<4x8x4xf32>
    %89 = arith.truncf %86 : vector<4x8x4xf32> to vector<4x8x4xbf16>
    %90 = arith.truncf %87 : vector<4x8x4xf32> to vector<4x8x4xbf16>
    "tpu.trace_start"() <{level = 10 : i32, message = "nqd,nkd->nqk"}> : () -> ()
    %cst_52 = arith.constant dense<0.000000e+00> : vector<4x8x8xf32>
    %91 = tpu.matmul %89, %90, %cst_52 {dimension_numbers = #tpu.dot_dimension_numbers<[2], [2], [1], [1], [0, 0, 0, 1, 1, 1], [0], [0]>} : vector<4x8x4xbf16>, vector<4x8x4xbf16>, vector<4x8x8xf32> -> vector<4x8x8xf32>
    "tpu.trace_stop"() : () -> ()
    %cst_53 = arith.constant dense<0xFF800000> : vector<4x8xf32>
    %92 = vector.multi_reduction <maximumf>, %91, %cst_53 [2] : vector<4x8x8xf32> to vector<4x8xf32>
    %93 = vector.shape_cast %92 : vector<4x8xf32> to vector<4x8x1xf32>
    %94 = vector.broadcast %93 : vector<4x8x1xf32> to vector<4x8x8xf32>
    %95 = arith.subf %91, %94 : vector<4x8x8xf32>
    %96 = math.exp %95 : vector<4x8x8xf32>
    %cst_54 = arith.constant dense<0.000000e+00> : vector<4x8xf32>
    %97 = vector.multi_reduction <add>, %96, %cst_54 [2] : vector<4x8x8xf32> to vector<4x8xf32>
    %98 = vector.shape_cast %97 : vector<4x8xf32> to vector<4x8x1xf32>
    %99 = vector.broadcast %98 : vector<4x8x1xf32> to vector<4x8x8xf32>
    %100 = arith.divf %96, %99 : vector<4x8x8xf32>
    %101 = arith.truncf %100 : vector<4x8x8xf32> to vector<4x8x8xbf16>
    %102 = arith.truncf %88 : vector<4x8x4xf32> to vector<4x8x4xbf16>
    "tpu.trace_start"() <{level = 10 : i32, message = "nqk,nkd->nqd"}> : () -> ()
    %cst_55 = arith.constant dense<0.000000e+00> : vector<4x8x4xf32>
    %103 = tpu.matmul %101, %102, %cst_55 {dimension_numbers = #tpu.dot_dimension_numbers<[2], [1], [1], [2], [0, 0, 0, 1, 1, 2], [0], [0]>} : vector<4x8x8xbf16>, vector<4x8x4xbf16>, vector<4x8x4xf32> -> vector<4x8x4xf32>
    "tpu.trace_stop"() : () -> ()
    %104 = vector.extract_strided_slice %51 {offsets = [0, 0, 8], sizes = [4, 8, 4], strides = [1, 1, 1]} : vector<4x8x16xf32> to vector<4x8x4xf32>
    %cst_56 = arith.constant 5.000000e-01 : f32
    %105 = vector.broadcast %cst_56 : f32 to vector<4x8x4xf32>
    %106 = arith.mulf %104, %105 : vector<4x8x4xf32>
    %107 = vector.extract_strided_slice %57 {offsets = [0, 0, 8], sizes = [4, 8, 4], strides = [1, 1, 1]} : vector<4x8x16xf32> to vector<4x8x4xf32>
    %108 = vector.extract_strided_slice %63 {offsets = [0, 0, 8], sizes = [4, 8, 4], strides = [1, 1, 1]} : vector<4x8x16xf32> to vector<4x8x4xf32>
    %109 = arith.truncf %106 : vector<4x8x4xf32> to vector<4x8x4xbf16>
    %110 = arith.truncf %107 : vector<4x8x4xf32> to vector<4x8x4xbf16>
    "tpu.trace_start"() <{level = 10 : i32, message = "nqd,nkd->nqk"}> : () -> ()
    %cst_57 = arith.constant dense<0.000000e+00> : vector<4x8x8xf32>
    %111 = tpu.matmul %109, %110, %cst_57 {dimension_numbers = #tpu.dot_dimension_numbers<[2], [2], [1], [1], [0, 0, 0, 1, 1, 1], [0], [0]>} : vector<4x8x4xbf16>, vector<4x8x4xbf16>, vector<4x8x8xf32> -> vector<4x8x8xf32>
    "tpu.trace_stop"() : () -> ()
    %cst_58 = arith.constant dense<0xFF800000> : vector<4x8xf32>
    %112 = vector.multi_reduction <maximumf>, %111, %cst_58 [2] : vector<4x8x8xf32> to vector<4x8xf32>
    %113 = vector.shape_cast %112 : vector<4x8xf32> to vector<4x8x1xf32>
    %114 = vector.broadcast %113 : vector<4x8x1xf32> to vector<4x8x8xf32>
    %115 = arith.subf %111, %114 : vector<4x8x8xf32>
    %116 = math.exp %115 : vector<4x8x8xf32>
    %cst_59 = arith.constant dense<0.000000e+00> : vector<4x8xf32>
    %117 = vector.multi_reduction <add>, %116, %cst_59 [2] : vector<4x8x8xf32> to vector<4x8xf32>
    %118 = vector.shape_cast %117 : vector<4x8xf32> to vector<4x8x1xf32>
    %119 = vector.broadcast %118 : vector<4x8x1xf32> to vector<4x8x8xf32>
    %120 = arith.divf %116, %119 : vector<4x8x8xf32>
    %121 = arith.truncf %120 : vector<4x8x8xf32> to vector<4x8x8xbf16>
    %122 = arith.truncf %108 : vector<4x8x4xf32> to vector<4x8x4xbf16>
    "tpu.trace_start"() <{level = 10 : i32, message = "nqk,nkd->nqd"}> : () -> ()
    %cst_60 = arith.constant dense<0.000000e+00> : vector<4x8x4xf32>
    %123 = tpu.matmul %121, %122, %cst_60 {dimension_numbers = #tpu.dot_dimension_numbers<[2], [1], [1], [2], [0, 0, 0, 1, 1, 2], [0], [0]>} : vector<4x8x8xbf16>, vector<4x8x4xbf16>, vector<4x8x4xf32> -> vector<4x8x4xf32>
    "tpu.trace_stop"() : () -> ()
    %124 = vector.extract_strided_slice %51 {offsets = [0, 0, 12], sizes = [4, 8, 4], strides = [1, 1, 1]} : vector<4x8x16xf32> to vector<4x8x4xf32>
    %cst_61 = arith.constant 5.000000e-01 : f32
    %125 = vector.broadcast %cst_61 : f32 to vector<4x8x4xf32>
    %126 = arith.mulf %124, %125 : vector<4x8x4xf32>
    %127 = vector.extract_strided_slice %57 {offsets = [0, 0, 12], sizes = [4, 8, 4], strides = [1, 1, 1]} : vector<4x8x16xf32> to vector<4x8x4xf32>
    %128 = vector.extract_strided_slice %63 {offsets = [0, 0, 12], sizes = [4, 8, 4], strides = [1, 1, 1]} : vector<4x8x16xf32> to vector<4x8x4xf32>
    %129 = arith.truncf %126 : vector<4x8x4xf32> to vector<4x8x4xbf16>
    %130 = arith.truncf %127 : vector<4x8x4xf32> to vector<4x8x4xbf16>
    "tpu.trace_start"() <{level = 10 : i32, message = "nqd,nkd->nqk"}> : () -> ()
    %cst_62 = arith.constant dense<0.000000e+00> : vector<4x8x8xf32>
    %131 = tpu.matmul %129, %130, %cst_62 {dimension_numbers = #tpu.dot_dimension_numbers<[2], [2], [1], [1], [0, 0, 0, 1, 1, 1], [0], [0]>} : vector<4x8x4xbf16>, vector<4x8x4xbf16>, vector<4x8x8xf32> -> vector<4x8x8xf32>
    "tpu.trace_stop"() : () -> ()
    %cst_63 = arith.constant dense<0xFF800000> : vector<4x8xf32>
    %132 = vector.multi_reduction <maximumf>, %131, %cst_63 [2] : vector<4x8x8xf32> to vector<4x8xf32>
    %133 = vector.shape_cast %132 : vector<4x8xf32> to vector<4x8x1xf32>
    %134 = vector.broadcast %133 : vector<4x8x1xf32> to vector<4x8x8xf32>
    %135 = arith.subf %131, %134 : vector<4x8x8xf32>
    %136 = math.exp %135 : vector<4x8x8xf32>
    %cst_64 = arith.constant dense<0.000000e+00> : vector<4x8xf32>
    %137 = vector.multi_reduction <add>, %136, %cst_64 [2] : vector<4x8x8xf32> to vector<4x8xf32>
    %138 = vector.shape_cast %137 : vector<4x8xf32> to vector<4x8x1xf32>
    %139 = vector.broadcast %138 : vector<4x8x1xf32> to vector<4x8x8xf32>
    %140 = arith.divf %136, %139 : vector<4x8x8xf32>
    %141 = arith.truncf %140 : vector<4x8x8xf32> to vector<4x8x8xbf16>
    %142 = arith.truncf %128 : vector<4x8x4xf32> to vector<4x8x4xbf16>
    "tpu.trace_start"() <{level = 10 : i32, message = "nqk,nkd->nqd"}> : () -> ()
    %cst_65 = arith.constant dense<0.000000e+00> : vector<4x8x4xf32>
    %143 = tpu.matmul %141, %142, %cst_65 {dimension_numbers = #tpu.dot_dimension_numbers<[2], [1], [1], [2], [0, 0, 0, 1, 1, 2], [0], [0]>} : vector<4x8x8xbf16>, vector<4x8x4xbf16>, vector<4x8x4xf32> -> vector<4x8x4xf32>
    "tpu.trace_stop"() : () -> ()
    %144 = tpu.concatenate %83, %103, %123, %143 in 2 : vector<4x8x4xf32>, vector<4x8x4xf32>, vector<4x8x4xf32>, vector<4x8x4xf32> -> vector<4x8x16xf32>
    %145 = vector.shape_cast %144 : vector<4x8x16xf32> to vector<32x16xf32>
    %146 = arith.truncf %145 : vector<32x16xf32> to vector<32x16xbf16>
    %147 = arith.truncf %13 : vector<16x16xf32> to vector<16x16xbf16>
    %cst_66 = arith.constant dense<0.000000e+00> : vector<32x16xf32>
    %148 = tpu.matmul %146, %147, %cst_66 {dimension_numbers = #tpu.dot_dimension_numbers<[1], [0], [0], [1], [0, 0, 1, 1], [], []>} : vector<32x16xbf16>, vector<16x16xbf16>, vector<32x16xf32> -> vector<32x16xf32>
    %149 = arith.addf %23, %148 : vector<32x16xf32>
    %150 = vector.broadcast %14 : vector<1x16xf32> to vector<32x16xf32>
    %151 = arith.addf %149, %150 : vector<32x16xf32>
    %cst_67 = arith.constant dense<0.000000e+00> : vector<32xf32>
    %152 = vector.multi_reduction <add>, %151, %cst_67 [1] : vector<32x16xf32> to vector<32xf32>
    %153 = vector.shape_cast %152 : vector<32xf32> to vector<32x1xf32>
    %cst_68 = arith.constant 1.600000e+01 : f32
    %154 = vector.broadcast %cst_68 : f32 to vector<32x1xf32>
    %155 = arith.divf %153, %154 : vector<32x1xf32>
    %156 = vector.broadcast %155 : vector<32x1xf32> to vector<32x16xf32>
    %157 = arith.subf %151, %156 : vector<32x16xf32>
    %158 = arith.mulf %157, %157 : vector<32x16xf32>
    %cst_69 = arith.constant dense<0.000000e+00> : vector<32xf32>
    %159 = vector.multi_reduction <add>, %158, %cst_69 [1] : vector<32x16xf32> to vector<32xf32>
    %160 = vector.shape_cast %159 : vector<32xf32> to vector<32x1xf32>
    %cst_70 = arith.constant 1.600000e+01 : f32
    %161 = vector.broadcast %cst_70 : f32 to vector<32x1xf32>
    %162 = arith.divf %160, %161 : vector<32x1xf32>
    %163 = vector.broadcast %155 : vector<32x1xf32> to vector<32x16xf32>
    %164 = arith.subf %151, %163 : vector<32x16xf32>
    %cst_71 = arith.constant 9.99999974E-6 : f32
    %165 = vector.broadcast %cst_71 : f32 to vector<32x1xf32>
    %166 = arith.addf %162, %165 : vector<32x1xf32>
    %167 = math.rsqrt %166 : vector<32x1xf32>
    %168 = vector.broadcast %167 : vector<32x1xf32> to vector<32x16xf32>
    %169 = arith.mulf %164, %168 : vector<32x16xf32>
    %170 = vector.broadcast %17 : vector<1x16xf32> to vector<32x16xf32>
    %171 = arith.mulf %169, %170 : vector<32x16xf32>
    %172 = vector.broadcast %18 : vector<1x16xf32> to vector<32x16xf32>
    %173 = arith.addf %171, %172 : vector<32x16xf32>
    %174 = arith.truncf %173 : vector<32x16xf32> to vector<32x16xbf16>
    %175 = arith.truncf %19 : vector<16x64xf32> to vector<16x64xbf16>
    %cst_72 = arith.constant dense<0.000000e+00> : vector<32x64xf32>
    %176 = tpu.matmul %174, %175, %cst_72 {dimension_numbers = #tpu.dot_dimension_numbers<[1], [0], [0], [1], [0, 0, 1, 1], [], []>} : vector<32x16xbf16>, vector<16x64xbf16>, vector<32x64xf32> -> vector<32x64xf32>
    %177 = vector.broadcast %20 : vector<1x64xf32> to vector<32x64xf32>
    %178 = arith.addf %176, %177 : vector<32x64xf32>
    %cst_73 = arith.constant 0.000000e+00 : f32
    %179 = vector.broadcast %cst_73 : f32 to vector<32x64xf32>
    %180 = arith.maximumf %178, %179 : vector<32x64xf32>
    %181 = arith.truncf %180 : vector<32x64xf32> to vector<32x64xbf16>
    %182 = arith.truncf %21 : vector<64x16xf32> to vector<64x16xbf16>
    %cst_74 = arith.constant dense<0.000000e+00> : vector<32x16xf32>
    %183 = tpu.matmul %181, %182, %cst_74 {dimension_numbers = #tpu.dot_dimension_numbers<[1], [0], [0], [1], [0, 0, 1, 1], [], []>} : vector<32x64xbf16>, vector<64x16xbf16>, vector<32x16xf32> -> vector<32x16xf32>
    %184 = vector.broadcast %22 : vector<1x16xf32> to vector<32x16xf32>
    %185 = arith.addf %183, %184 : vector<32x16xf32>
    %186 = arith.addf %151, %185 : vector<32x16xf32>
    %187 = vector.shape_cast %186 : vector<32x16xf32> to vector<4x8x16xf32>
    %c0_75 = arith.constant 0 : index
    %c0_76 = arith.constant 0 : index
    %c0_77 = arith.constant 0 : index
    %c0_78 = arith.constant 0 : index
    %188 = vector.load %arg20[%c0_75, %c0_76, %c0_77, %c0_78] : memref<1x4x8x16xf32, #tpu.memory_space<vmem>>, vector<1x4x8x16xf32>
    %189 = vector.shape_cast %188 : vector<1x4x8x16xf32> to vector<4x8x16xf32>
    %190 = vector.shape_cast %187 : vector<4x8x16xf32> to vector<1x4x8x16xf32>
    tpu.vector_store %arg20[%c0_75, %c0_76, %c0_77, %c0_78], %190 {strides = array<i32>} : memref<1x4x8x16xf32, #tpu.memory_space<vmem>>, vector<1x4x8x16xf32>,
    return
  }
  func.func @transform_0(%arg0: i32, %arg1: i32) -> (i32, i32, i32, i32) {
    %c0_i32 = arith.constant 0 : i32
    %c0_i32_0 = arith.constant 0 : i32
    %c0_i32_1 = arith.constant 0 : i32
    return %arg0, %arg1, %c0_i32, %c0_i32_0 : i32, i32, i32, i32
  }
  func.func @transform_1(%arg0: i32, %arg1: i32) -> (i32, i32, i32, i32) {
    %c0_i32 = arith.constant 0 : i32
    %c0_i32_0 = arith.constant 0 : i32
    %c0_i32_1 = arith.constant 0 : i32
    %c0_i32_2 = arith.constant 0 : i32
    return %arg0, %c0_i32, %c0_i32_0, %c0_i32_1 : i32, i32, i32, i32
  }
  func.func @transform_2(%arg0: i32, %arg1: i32) -> (i32, i32) {
    %c0_i32 = arith.constant 0 : i32
    %c0_i32_0 = arith.constant 0 : i32
    %c0_i32_1 = arith.constant 0 : i32
    return %c0_i32, %c0_i32_0 : i32, i32
  }
  func.func @transform_3(%arg0: i32, %arg1: i32) -> (i32, i32) {
    %c0_i32 = arith.constant 0 : i32
    %c0_i32_0 = arith.constant 0 : i32
    %c0_i32_1 = arith.constant 0 : i32
    return %c0_i32, %c0_i32_0 : i32, i32
  }
  func.func @transform_4(%arg0: i32, %arg1: i32) -> (i32, i32) {
    %c0_i32 = arith.constant 0 : i32
    %c0_i32_0 = arith.constant 0 : i32
    %c0_i32_1 = arith.constant 0 : i32
    return %c0_i32, %c0_i32_0 : i32, i32
  }
  func.func @transform_5(%arg0: i32, %arg1: i32) -> (i32, i32) {
    %c0_i32 = arith.constant 0 : i32
    %c0_i32_0 = arith.constant 0 : i32
    %c0_i32_1 = arith.constant 0 : i32
    return %c0_i32, %c0_i32_0 : i32, i32
  }
  func.func @transform_6(%arg0: i32, %arg1: i32) -> (i32, i32) {
    %c0_i32 = arith.constant 0 : i32
    %c0_i32_0 = arith.constant 0 : i32
    %c0_i32_1 = arith.constant 0 : i32
    return %c0_i32, %c0_i32_0 : i32, i32
  }
  func.func @transform_7(%arg0: i32, %arg1: i32) -> (i32, i32) {
    %c0_i32 = arith.constant 0 : i32
    %c0_i32_0 = arith.constant 0 : i32
    %c0_i32_1 = arith.constant 0 : i32
    return %c0_i32, %c0_i32_0 : i32, i32
  }
  func.func @transform_8(%arg0: i32, %arg1: i32) -> (i32, i32) {
    %c0_i32 = arith.constant 0 : i32
    %c0_i32_0 = arith.constant 0 : i32
    %c0_i32_1 = arith.constant 0 : i32
    return %c0_i32, %c0_i32_0 : i32, i32
  }
  func.func @transform_9(%arg0: i32, %arg1: i32) -> (i32, i32) {
    %c0_i32 = arith.constant 0 : i32
    %c0_i32_0 = arith.constant 0 : i32
    %c0_i32_1 = arith.constant 0 : i32
    return %c0_i32, %c0_i32_0 : i32, i32
  }
  func.func @transform_10(%arg0: i32, %arg1: i32) -> (i32, i32) {
    %c0_i32 = arith.constant 0 : i32
    %c0_i32_0 = arith.constant 0 : i32
    %c0_i32_1 = arith.constant 0 : i32
    return %c0_i32, %c0_i32_0 : i32, i32
  }
  func.func @transform_11(%arg0: i32, %arg1: i32) -> (i32, i32) {
    %c0_i32 = arith.constant 0 : i32
    %c0_i32_0 = arith.constant 0 : i32
    %c0_i32_1 = arith.constant 0 : i32
    return %c0_i32, %c0_i32_0 : i32, i32
  }
  func.func @transform_12(%arg0: i32, %arg1: i32) -> (i32, i32) {
    %c0_i32 = arith.constant 0 : i32
    %c0_i32_0 = arith.constant 0 : i32
    %c0_i32_1 = arith.constant 0 : i32
    return %c0_i32, %c0_i32_0 : i32, i32
  }
  func.func @transform_13(%arg0: i32, %arg1: i32) -> (i32, i32) {
    %c0_i32 = arith.constant 0 : i32
    %c0_i32_0 = arith.constant 0 : i32
    %c0_i32_1 = arith.constant 0 : i32
    return %c0_i32, %c0_i32_0 : i32, i32
  }
  func.func @transform_14(%arg0: i32, %arg1: i32) -> (i32, i32) {
    %c0_i32 = arith.constant 0 : i32
    %c0_i32_0 = arith.constant 0 : i32
    %c0_i32_1 = arith.constant 0 : i32
    return %c0_i32, %c0_i32_0 : i32, i32
  }
  func.func @transform_15(%arg0: i32, %arg1: i32) -> (i32, i32) {
    %c0_i32 = arith.constant 0 : i32
    %c0_i32_0 = arith.constant 0 : i32
    %c0_i32_1 = arith.constant 0 : i32
    return %c0_i32, %c0_i32_0 : i32, i32
  }
  func.func @transform_16(%arg0: i32, %arg1: i32) -> (i32, i32) {
    %c0_i32 = arith.constant 0 : i32
    %c0_i32_0 = arith.constant 0 : i32
    %c0_i32_1 = arith.constant 0 : i32
    return %c0_i32, %c0_i32_0 : i32, i32
  }
  func.func @transform_17(%arg0: i32, %arg1: i32) -> (i32, i32) {
    %c0_i32 = arith.constant 0 : i32
    %c0_i32_0 = arith.constant 0 : i32
    %c0_i32_1 = arith.constant 0 : i32
    return %c0_i32, %c0_i32_0 : i32, i32
  }
  func.func @transform_18(%arg0: i32, %arg1: i32) -> (i32, i32, i32, i32) {
    %c0_i32 = arith.constant 0 : i32
    %c0_i32_0 = arith.constant 0 : i32
    %c0_i32_1 = arith.constant 0 : i32
    return %arg0, %arg1, %c0_i32, %c0_i32_0 : i32, i32, i32, i32
  }
}

module attributes {stable_mosaic.version = 11 : i64} {
  func.func @_feature_kernel(%arg0: i32, %arg1: i32, %arg2: memref<1x8x4x16xf32, #tpu.memory_space<vmem>>, %arg3: memref<16x16xf32, #tpu.memory_space<vmem>>, %arg4: memref<1x16xf32, #tpu.memory_space<vmem>>, %arg5: memref<16x16xf32, #tpu.memory_space<vmem>>, %arg6: memref<1x16xf32, #tpu.memory_space<vmem>>, %arg7: memref<16x16xf32, #tpu.memory_space<vmem>>, %arg8: memref<1x16xf32, #tpu.memory_space<vmem>>, %arg9: memref<16x16xf32, #tpu.memory_space<vmem>>, %arg10: memref<1x16xf32, #tpu.memory_space<vmem>>, %arg11: memref<1x16xf32, #tpu.memory_space<vmem>>, %arg12: memref<1x16xf32, #tpu.memory_space<vmem>>, %arg13: memref<1x16xf32, #tpu.memory_space<vmem>>, %arg14: memref<1x16xf32, #tpu.memory_space<vmem>>, %arg15: memref<16x64xf32, #tpu.memory_space<vmem>>, %arg16: memref<1x64xf32, #tpu.memory_space<vmem>>, %arg17: memref<64x16xf32, #tpu.memory_space<vmem>>, %arg18: memref<1x16xf32, #tpu.memory_space<vmem>>, %arg19: memref<1x8x4x16xf32, #tpu.memory_space<vmem>>) attributes {dimension_semantics = [#tpu.dimension_semantics<parallel>, #tpu.dimension_semantics<parallel>], iteration_bounds = array<i64: 2, 1>, scalar_prefetch = 0 : i64, scratch_operands = 0 : i64, tpu.core_type = #tpu.core_type<tc>, window_params = [{transform_indices = @transform_0, window_bounds = array<i64: 1, 8, 4, 16>}, {pipeline_mode = #tpu.pipeline_mode<synchronous>, transform_indices = @transform_1, window_bounds = array<i64: 16, 16>}, {pipeline_mode = #tpu.pipeline_mode<synchronous>, transform_indices = @transform_2, window_bounds = array<i64: 1, 16>}, {pipeline_mode = #tpu.pipeline_mode<synchronous>, transform_indices = @transform_3, window_bounds = array<i64: 16, 16>}, {pipeline_mode = #tpu.pipeline_mode<synchronous>, transform_indices = @transform_4, window_bounds = array<i64: 1, 16>}, {pipeline_mode = #tpu.pipeline_mode<synchronous>, transform_indices = @transform_5, window_bounds = array<i64: 16, 16>}, {pipeline_mode = #tpu.pipeline_mode<synchronous>, transform_indices = @transform_6, window_bounds = array<i64: 1, 16>}, {pipeline_mode = #tpu.pipeline_mode<synchronous>, transform_indices = @transform_7, window_bounds = array<i64: 16, 16>}, {pipeline_mode = #tpu.pipeline_mode<synchronous>, transform_indices = @transform_8, window_bounds = array<i64: 1, 16>}, {pipeline_mode = #tpu.pipeline_mode<synchronous>, transform_indices = @transform_9, window_bounds = array<i64: 1, 16>}, {pipeline_mode = #tpu.pipeline_mode<synchronous>, transform_indices = @transform_10, window_bounds = array<i64: 1, 16>}, {pipeline_mode = #tpu.pipeline_mode<synchronous>, transform_indices = @transform_11, window_bounds = array<i64: 1, 16>}, {pipeline_mode = #tpu.pipeline_mode<synchronous>, transform_indices = @transform_12, window_bounds = array<i64: 1, 16>}, {pipeline_mode = #tpu.pipeline_mode<synchronous>, transform_indices = @transform_13, window_bounds = array<i64: 16, 64>}, {pipeline_mode = #tpu.pipeline_mode<synchronous>, transform_indices = @transform_14, window_bounds = array<i64: 1, 64>}, {pipeline_mode = #tpu.pipeline_mode<synchronous>, transform_indices = @transform_15, window_bounds = array<i64: 64, 16>}, {pipeline_mode = #tpu.pipeline_mode<synchronous>, transform_indices = @transform_16, window_bounds = array<i64: 1, 16>}, {transform_indices = @transform_17, window_bounds = array<i64: 1, 8, 4, 16>}]} {
    %c0 = arith.constant 0 : index
    %c0_0 = arith.constant 0 : index
    %c0_1 = arith.constant 0 : index
    %c0_2 = arith.constant 0 : index
    %0 = vector.load %arg2[%c0, %c0_0, %c0_1, %c0_2] : memref<1x8x4x16xf32, #tpu.memory_space<vmem>>, vector<1x8x4x16xf32>
    %1 = vector.shape_cast %0 : vector<1x8x4x16xf32> to vector<8x4x16xf32>
    %c0_3 = arith.constant 0 : index
    %c0_4 = arith.constant 0 : index
    %2 = vector.load %arg3[%c0_3, %c0_4] : memref<16x16xf32, #tpu.memory_space<vmem>>, vector<16x16xf32>
    %c0_5 = arith.constant 0 : index
    %c0_6 = arith.constant 0 : index
    %3 = vector.load %arg4[%c0_5, %c0_6] : memref<1x16xf32, #tpu.memory_space<vmem>>, vector<1x16xf32>
    %c0_7 = arith.constant 0 : index
    %c0_8 = arith.constant 0 : index
    %4 = vector.load %arg5[%c0_7, %c0_8] : memref<16x16xf32, #tpu.memory_space<vmem>>, vector<16x16xf32>
    %c0_9 = arith.constant 0 : index
    %c0_10 = arith.constant 0 : index
    %5 = vector.load %arg6[%c0_9, %c0_10] : memref<1x16xf32, #tpu.memory_space<vmem>>, vector<1x16xf32>
    %c0_11 = arith.constant 0 : index
    %c0_12 = arith.constant 0 : index
    %6 = vector.load %arg7[%c0_11, %c0_12] : memref<16x16xf32, #tpu.memory_space<vmem>>, vector<16x16xf32>
    %c0_13 = arith.constant 0 : index
    %c0_14 = arith.constant 0 : index
    %7 = vector.load %arg8[%c0_13, %c0_14] : memref<1x16xf32, #tpu.memory_space<vmem>>, vector<1x16xf32>
    %c0_15 = arith.constant 0 : index
    %c0_16 = arith.constant 0 : index
    %8 = vector.load %arg9[%c0_15, %c0_16] : memref<16x16xf32, #tpu.memory_space<vmem>>, vector<16x16xf32>
    %c0_17 = arith.constant 0 : index
    %c0_18 = arith.constant 0 : index
    %9 = vector.load %arg10[%c0_17, %c0_18] : memref<1x16xf32, #tpu.memory_space<vmem>>, vector<1x16xf32>
    %c0_19 = arith.constant 0 : index
    %c0_20 = arith.constant 0 : index
    %10 = vector.load %arg11[%c0_19, %c0_20] : memref<1x16xf32, #tpu.memory_space<vmem>>, vector<1x16xf32>
    %c0_21 = arith.constant 0 : index
    %c0_22 = arith.constant 0 : index
    %11 = vector.load %arg12[%c0_21, %c0_22] : memref<1x16xf32, #tpu.memory_space<vmem>>, vector<1x16xf32>
    %c0_23 = arith.constant 0 : index
    %c0_24 = arith.constant 0 : index
    %12 = vector.load %arg13[%c0_23, %c0_24] : memref<1x16xf32, #tpu.memory_space<vmem>>, vector<1x16xf32>
    %c0_25 = arith.constant 0 : index
    %c0_26 = arith.constant 0 : index
    %13 = vector.load %arg14[%c0_25, %c0_26] : memref<1x16xf32, #tpu.memory_space<vmem>>, vector<1x16xf32>
    %c0_27 = arith.constant 0 : index
    %c0_28 = arith.constant 0 : index
    %14 = vector.load %arg15[%c0_27, %c0_28] : memref<16x64xf32, #tpu.memory_space<vmem>>, vector<16x64xf32>
    %c0_29 = arith.constant 0 : index
    %c0_30 = arith.constant 0 : index
    %15 = vector.load %arg16[%c0_29, %c0_30] : memref<1x64xf32, #tpu.memory_space<vmem>>, vector<1x64xf32>
    %c0_31 = arith.constant 0 : index
    %c0_32 = arith.constant 0 : index
    %16 = vector.load %arg17[%c0_31, %c0_32] : memref<64x16xf32, #tpu.memory_space<vmem>>, vector<64x16xf32>
    %c0_33 = arith.constant 0 : index
    %c0_34 = arith.constant 0 : index
    %17 = vector.load %arg18[%c0_33, %c0_34] : memref<1x16xf32, #tpu.memory_space<vmem>>, vector<1x16xf32>
    %18 = vector.shape_cast %1 : vector<8x4x16xf32> to vector<32x16xf32>
    %cst = arith.constant dense<0.000000e+00> : vector<32xf32>
    %19 = vector.multi_reduction <add>, %18, %cst [1] : vector<32x16xf32> to vector<32xf32>
    %20 = vector.shape_cast %19 : vector<32xf32> to vector<32x1xf32>
    %cst_35 = arith.constant 1.600000e+01 : f32
    %21 = vector.broadcast %cst_35 : f32 to vector<32x1xf32>
    %22 = arith.divf %20, %21 : vector<32x1xf32>
    %23 = vector.broadcast %22 : vector<32x1xf32> to vector<32x16xf32>
    %24 = arith.subf %18, %23 : vector<32x16xf32>
    %25 = arith.mulf %24, %24 : vector<32x16xf32>
    %cst_36 = arith.constant dense<0.000000e+00> : vector<32xf32>
    %26 = vector.multi_reduction <add>, %25, %cst_36 [1] : vector<32x16xf32> to vector<32xf32>
    %27 = vector.shape_cast %26 : vector<32xf32> to vector<32x1xf32>
    %cst_37 = arith.constant 1.600000e+01 : f32
    %28 = vector.broadcast %cst_37 : f32 to vector<32x1xf32>
    %29 = arith.divf %27, %28 : vector<32x1xf32>
    %30 = vector.broadcast %22 : vector<32x1xf32> to vector<32x16xf32>
    %31 = arith.subf %18, %30 : vector<32x16xf32>
    %cst_38 = arith.constant 9.99999974E-6 : f32
    %32 = vector.broadcast %cst_38 : f32 to vector<32x1xf32>
    %33 = arith.addf %29, %32 : vector<32x1xf32>
    %34 = math.rsqrt %33 : vector<32x1xf32>
    %35 = vector.broadcast %34 : vector<32x1xf32> to vector<32x16xf32>
    %36 = arith.mulf %31, %35 : vector<32x16xf32>
    %37 = vector.broadcast %10 : vector<1x16xf32> to vector<32x16xf32>
    %38 = arith.mulf %36, %37 : vector<32x16xf32>
    %39 = vector.broadcast %11 : vector<1x16xf32> to vector<32x16xf32>
    %40 = arith.addf %38, %39 : vector<32x16xf32>
    %41 = arith.truncf %40 : vector<32x16xf32> to vector<32x16xbf16>
    %42 = arith.truncf %2 : vector<16x16xf32> to vector<16x16xbf16>
    %cst_39 = arith.constant dense<0.000000e+00> : vector<32x16xf32>
    %43 = tpu.matmul %41, %42, %cst_39 {dimension_numbers = #tpu.dot_dimension_numbers<[1], [0], [0], [1], [0, 0, 1, 1], [], []>} : vector<32x16xbf16>, vector<16x16xbf16>, vector<32x16xf32> -> vector<32x16xf32>
    %44 = vector.broadcast %3 : vector<1x16xf32> to vector<32x16xf32>
    %45 = arith.addf %43, %44 : vector<32x16xf32>
    %46 = vector.shape_cast %45 : vector<32x16xf32> to vector<8x4x16xf32>
    %47 = arith.truncf %40 : vector<32x16xf32> to vector<32x16xbf16>
    %48 = arith.truncf %4 : vector<16x16xf32> to vector<16x16xbf16>
    %cst_40 = arith.constant dense<0.000000e+00> : vector<32x16xf32>
    %49 = tpu.matmul %47, %48, %cst_40 {dimension_numbers = #tpu.dot_dimension_numbers<[1], [0], [0], [1], [0, 0, 1, 1], [], []>} : vector<32x16xbf16>, vector<16x16xbf16>, vector<32x16xf32> -> vector<32x16xf32>
    %50 = vector.broadcast %5 : vector<1x16xf32> to vector<32x16xf32>
    %51 = arith.addf %49, %50 : vector<32x16xf32>
    %52 = vector.shape_cast %51 : vector<32x16xf32> to vector<8x4x16xf32>
    %53 = arith.truncf %40 : vector<32x16xf32> to vector<32x16xbf16>
    %54 = arith.truncf %6 : vector<16x16xf32> to vector<16x16xbf16>
    %cst_41 = arith.constant dense<0.000000e+00> : vector<32x16xf32>
    %55 = tpu.matmul %53, %54, %cst_41 {dimension_numbers = #tpu.dot_dimension_numbers<[1], [0], [0], [1], [0, 0, 1, 1], [], []>} : vector<32x16xbf16>, vector<16x16xbf16>, vector<32x16xf32> -> vector<32x16xf32>
    %56 = vector.broadcast %7 : vector<1x16xf32> to vector<32x16xf32>
    %57 = arith.addf %55, %56 : vector<32x16xf32>
    %58 = vector.shape_cast %57 : vector<32x16xf32> to vector<8x4x16xf32>
    %59 = vector.extract_strided_slice %46 {offsets = [0, 0, 0], sizes = [8, 4, 4], strides = [1, 1, 1]} : vector<8x4x16xf32> to vector<8x4x4xf32>
    %cst_42 = arith.constant 5.000000e-01 : f32
    %60 = vector.broadcast %cst_42 : f32 to vector<8x4x4xf32>
    %61 = arith.mulf %59, %60 : vector<8x4x4xf32>
    %62 = vector.extract_strided_slice %52 {offsets = [0, 0, 0], sizes = [8, 4, 4], strides = [1, 1, 1]} : vector<8x4x16xf32> to vector<8x4x4xf32>
    %63 = vector.extract_strided_slice %58 {offsets = [0, 0, 0], sizes = [8, 4, 4], strides = [1, 1, 1]} : vector<8x4x16xf32> to vector<8x4x4xf32>
    %64 = arith.truncf %61 : vector<8x4x4xf32> to vector<8x4x4xbf16>
    %65 = arith.truncf %62 : vector<8x4x4xf32> to vector<8x4x4xbf16>
    "tpu.trace_start"() <{level = 10 : i32, message = "nqd,nkd->nqk"}> : () -> ()
    %cst_43 = arith.constant dense<0.000000e+00> : vector<8x4x4xf32>
    %66 = tpu.matmul %64, %65, %cst_43 {dimension_numbers = #tpu.dot_dimension_numbers<[2], [2], [1], [1], [0, 0, 0, 1, 1, 1], [0], [0]>} : vector<8x4x4xbf16>, vector<8x4x4xbf16>, vector<8x4x4xf32> -> vector<8x4x4xf32>
    "tpu.trace_stop"() : () -> ()
    %cst_44 = arith.constant dense<0xFF800000> : vector<8x4xf32>
    %67 = vector.multi_reduction <maximumf>, %66, %cst_44 [2] : vector<8x4x4xf32> to vector<8x4xf32>
    %68 = vector.shape_cast %67 : vector<8x4xf32> to vector<8x4x1xf32>
    %69 = vector.broadcast %68 : vector<8x4x1xf32> to vector<8x4x4xf32>
    %70 = arith.subf %66, %69 : vector<8x4x4xf32>
    %71 = math.exp %70 : vector<8x4x4xf32>
    %cst_45 = arith.constant dense<0.000000e+00> : vector<8x4xf32>
    %72 = vector.multi_reduction <add>, %71, %cst_45 [2] : vector<8x4x4xf32> to vector<8x4xf32>
    %73 = vector.shape_cast %72 : vector<8x4xf32> to vector<8x4x1xf32>
    %74 = vector.broadcast %73 : vector<8x4x1xf32> to vector<8x4x4xf32>
    %75 = arith.divf %71, %74 : vector<8x4x4xf32>
    %76 = arith.truncf %75 : vector<8x4x4xf32> to vector<8x4x4xbf16>
    %77 = arith.truncf %63 : vector<8x4x4xf32> to vector<8x4x4xbf16>
    "tpu.trace_start"() <{level = 10 : i32, message = "nqk,nkd->nqd"}> : () -> ()
    %cst_46 = arith.constant dense<0.000000e+00> : vector<8x4x4xf32>
    %78 = tpu.matmul %76, %77, %cst_46 {dimension_numbers = #tpu.dot_dimension_numbers<[2], [1], [1], [2], [0, 0, 0, 1, 1, 2], [0], [0]>} : vector<8x4x4xbf16>, vector<8x4x4xbf16>, vector<8x4x4xf32> -> vector<8x4x4xf32>
    "tpu.trace_stop"() : () -> ()
    %79 = vector.extract_strided_slice %46 {offsets = [0, 0, 4], sizes = [8, 4, 4], strides = [1, 1, 1]} : vector<8x4x16xf32> to vector<8x4x4xf32>
    %cst_47 = arith.constant 5.000000e-01 : f32
    %80 = vector.broadcast %cst_47 : f32 to vector<8x4x4xf32>
    %81 = arith.mulf %79, %80 : vector<8x4x4xf32>
    %82 = vector.extract_strided_slice %52 {offsets = [0, 0, 4], sizes = [8, 4, 4], strides = [1, 1, 1]} : vector<8x4x16xf32> to vector<8x4x4xf32>
    %83 = vector.extract_strided_slice %58 {offsets = [0, 0, 4], sizes = [8, 4, 4], strides = [1, 1, 1]} : vector<8x4x16xf32> to vector<8x4x4xf32>
    %84 = arith.truncf %81 : vector<8x4x4xf32> to vector<8x4x4xbf16>
    %85 = arith.truncf %82 : vector<8x4x4xf32> to vector<8x4x4xbf16>
    "tpu.trace_start"() <{level = 10 : i32, message = "nqd,nkd->nqk"}> : () -> ()
    %cst_48 = arith.constant dense<0.000000e+00> : vector<8x4x4xf32>
    %86 = tpu.matmul %84, %85, %cst_48 {dimension_numbers = #tpu.dot_dimension_numbers<[2], [2], [1], [1], [0, 0, 0, 1, 1, 1], [0], [0]>} : vector<8x4x4xbf16>, vector<8x4x4xbf16>, vector<8x4x4xf32> -> vector<8x4x4xf32>
    "tpu.trace_stop"() : () -> ()
    %cst_49 = arith.constant dense<0xFF800000> : vector<8x4xf32>
    %87 = vector.multi_reduction <maximumf>, %86, %cst_49 [2] : vector<8x4x4xf32> to vector<8x4xf32>
    %88 = vector.shape_cast %87 : vector<8x4xf32> to vector<8x4x1xf32>
    %89 = vector.broadcast %88 : vector<8x4x1xf32> to vector<8x4x4xf32>
    %90 = arith.subf %86, %89 : vector<8x4x4xf32>
    %91 = math.exp %90 : vector<8x4x4xf32>
    %cst_50 = arith.constant dense<0.000000e+00> : vector<8x4xf32>
    %92 = vector.multi_reduction <add>, %91, %cst_50 [2] : vector<8x4x4xf32> to vector<8x4xf32>
    %93 = vector.shape_cast %92 : vector<8x4xf32> to vector<8x4x1xf32>
    %94 = vector.broadcast %93 : vector<8x4x1xf32> to vector<8x4x4xf32>
    %95 = arith.divf %91, %94 : vector<8x4x4xf32>
    %96 = arith.truncf %95 : vector<8x4x4xf32> to vector<8x4x4xbf16>
    %97 = arith.truncf %83 : vector<8x4x4xf32> to vector<8x4x4xbf16>
    "tpu.trace_start"() <{level = 10 : i32, message = "nqk,nkd->nqd"}> : () -> ()
    %cst_51 = arith.constant dense<0.000000e+00> : vector<8x4x4xf32>
    %98 = tpu.matmul %96, %97, %cst_51 {dimension_numbers = #tpu.dot_dimension_numbers<[2], [1], [1], [2], [0, 0, 0, 1, 1, 2], [0], [0]>} : vector<8x4x4xbf16>, vector<8x4x4xbf16>, vector<8x4x4xf32> -> vector<8x4x4xf32>
    "tpu.trace_stop"() : () -> ()
    %99 = vector.extract_strided_slice %46 {offsets = [0, 0, 8], sizes = [8, 4, 4], strides = [1, 1, 1]} : vector<8x4x16xf32> to vector<8x4x4xf32>
    %cst_52 = arith.constant 5.000000e-01 : f32
    %100 = vector.broadcast %cst_52 : f32 to vector<8x4x4xf32>
    %101 = arith.mulf %99, %100 : vector<8x4x4xf32>
    %102 = vector.extract_strided_slice %52 {offsets = [0, 0, 8], sizes = [8, 4, 4], strides = [1, 1, 1]} : vector<8x4x16xf32> to vector<8x4x4xf32>
    %103 = vector.extract_strided_slice %58 {offsets = [0, 0, 8], sizes = [8, 4, 4], strides = [1, 1, 1]} : vector<8x4x16xf32> to vector<8x4x4xf32>
    %104 = arith.truncf %101 : vector<8x4x4xf32> to vector<8x4x4xbf16>
    %105 = arith.truncf %102 : vector<8x4x4xf32> to vector<8x4x4xbf16>
    "tpu.trace_start"() <{level = 10 : i32, message = "nqd,nkd->nqk"}> : () -> ()
    %cst_53 = arith.constant dense<0.000000e+00> : vector<8x4x4xf32>
    %106 = tpu.matmul %104, %105, %cst_53 {dimension_numbers = #tpu.dot_dimension_numbers<[2], [2], [1], [1], [0, 0, 0, 1, 1, 1], [0], [0]>} : vector<8x4x4xbf16>, vector<8x4x4xbf16>, vector<8x4x4xf32> -> vector<8x4x4xf32>
    "tpu.trace_stop"() : () -> ()
    %cst_54 = arith.constant dense<0xFF800000> : vector<8x4xf32>
    %107 = vector.multi_reduction <maximumf>, %106, %cst_54 [2] : vector<8x4x4xf32> to vector<8x4xf32>
    %108 = vector.shape_cast %107 : vector<8x4xf32> to vector<8x4x1xf32>
    %109 = vector.broadcast %108 : vector<8x4x1xf32> to vector<8x4x4xf32>
    %110 = arith.subf %106, %109 : vector<8x4x4xf32>
    %111 = math.exp %110 : vector<8x4x4xf32>
    %cst_55 = arith.constant dense<0.000000e+00> : vector<8x4xf32>
    %112 = vector.multi_reduction <add>, %111, %cst_55 [2] : vector<8x4x4xf32> to vector<8x4xf32>
    %113 = vector.shape_cast %112 : vector<8x4xf32> to vector<8x4x1xf32>
    %114 = vector.broadcast %113 : vector<8x4x1xf32> to vector<8x4x4xf32>
    %115 = arith.divf %111, %114 : vector<8x4x4xf32>
    %116 = arith.truncf %115 : vector<8x4x4xf32> to vector<8x4x4xbf16>
    %117 = arith.truncf %103 : vector<8x4x4xf32> to vector<8x4x4xbf16>
    "tpu.trace_start"() <{level = 10 : i32, message = "nqk,nkd->nqd"}> : () -> ()
    %cst_56 = arith.constant dense<0.000000e+00> : vector<8x4x4xf32>
    %118 = tpu.matmul %116, %117, %cst_56 {dimension_numbers = #tpu.dot_dimension_numbers<[2], [1], [1], [2], [0, 0, 0, 1, 1, 2], [0], [0]>} : vector<8x4x4xbf16>, vector<8x4x4xbf16>, vector<8x4x4xf32> -> vector<8x4x4xf32>
    "tpu.trace_stop"() : () -> ()
    %119 = vector.extract_strided_slice %46 {offsets = [0, 0, 12], sizes = [8, 4, 4], strides = [1, 1, 1]} : vector<8x4x16xf32> to vector<8x4x4xf32>
    %cst_57 = arith.constant 5.000000e-01 : f32
    %120 = vector.broadcast %cst_57 : f32 to vector<8x4x4xf32>
    %121 = arith.mulf %119, %120 : vector<8x4x4xf32>
    %122 = vector.extract_strided_slice %52 {offsets = [0, 0, 12], sizes = [8, 4, 4], strides = [1, 1, 1]} : vector<8x4x16xf32> to vector<8x4x4xf32>
    %123 = vector.extract_strided_slice %58 {offsets = [0, 0, 12], sizes = [8, 4, 4], strides = [1, 1, 1]} : vector<8x4x16xf32> to vector<8x4x4xf32>
    %124 = arith.truncf %121 : vector<8x4x4xf32> to vector<8x4x4xbf16>
    %125 = arith.truncf %122 : vector<8x4x4xf32> to vector<8x4x4xbf16>
    "tpu.trace_start"() <{level = 10 : i32, message = "nqd,nkd->nqk"}> : () -> ()
    %cst_58 = arith.constant dense<0.000000e+00> : vector<8x4x4xf32>
    %126 = tpu.matmul %124, %125, %cst_58 {dimension_numbers = #tpu.dot_dimension_numbers<[2], [2], [1], [1], [0, 0, 0, 1, 1, 1], [0], [0]>} : vector<8x4x4xbf16>, vector<8x4x4xbf16>, vector<8x4x4xf32> -> vector<8x4x4xf32>
    "tpu.trace_stop"() : () -> ()
    %cst_59 = arith.constant dense<0xFF800000> : vector<8x4xf32>
    %127 = vector.multi_reduction <maximumf>, %126, %cst_59 [2] : vector<8x4x4xf32> to vector<8x4xf32>
    %128 = vector.shape_cast %127 : vector<8x4xf32> to vector<8x4x1xf32>
    %129 = vector.broadcast %128 : vector<8x4x1xf32> to vector<8x4x4xf32>
    %130 = arith.subf %126, %129 : vector<8x4x4xf32>
    %131 = math.exp %130 : vector<8x4x4xf32>
    %cst_60 = arith.constant dense<0.000000e+00> : vector<8x4xf32>
    %132 = vector.multi_reduction <add>, %131, %cst_60 [2] : vector<8x4x4xf32> to vector<8x4xf32>
    %133 = vector.shape_cast %132 : vector<8x4xf32> to vector<8x4x1xf32>
    %134 = vector.broadcast %133 : vector<8x4x1xf32> to vector<8x4x4xf32>
    %135 = arith.divf %131, %134 : vector<8x4x4xf32>
    %136 = arith.truncf %135 : vector<8x4x4xf32> to vector<8x4x4xbf16>
    %137 = arith.truncf %123 : vector<8x4x4xf32> to vector<8x4x4xbf16>
    "tpu.trace_start"() <{level = 10 : i32, message = "nqk,nkd->nqd"}> : () -> ()
    %cst_61 = arith.constant dense<0.000000e+00> : vector<8x4x4xf32>
    %138 = tpu.matmul %136, %137, %cst_61 {dimension_numbers = #tpu.dot_dimension_numbers<[2], [1], [1], [2], [0, 0, 0, 1, 1, 2], [0], [0]>} : vector<8x4x4xbf16>, vector<8x4x4xbf16>, vector<8x4x4xf32> -> vector<8x4x4xf32>
    "tpu.trace_stop"() : () -> ()
    %139 = tpu.concatenate %78, %98, %118, %138 in 2 : vector<8x4x4xf32>, vector<8x4x4xf32>, vector<8x4x4xf32>, vector<8x4x4xf32> -> vector<8x4x16xf32>
    %140 = vector.shape_cast %139 : vector<8x4x16xf32> to vector<32x16xf32>
    %141 = arith.truncf %140 : vector<32x16xf32> to vector<32x16xbf16>
    %142 = arith.truncf %8 : vector<16x16xf32> to vector<16x16xbf16>
    %cst_62 = arith.constant dense<0.000000e+00> : vector<32x16xf32>
    %143 = tpu.matmul %141, %142, %cst_62 {dimension_numbers = #tpu.dot_dimension_numbers<[1], [0], [0], [1], [0, 0, 1, 1], [], []>} : vector<32x16xbf16>, vector<16x16xbf16>, vector<32x16xf32> -> vector<32x16xf32>
    %144 = arith.addf %18, %143 : vector<32x16xf32>
    %145 = vector.broadcast %9 : vector<1x16xf32> to vector<32x16xf32>
    %146 = arith.addf %144, %145 : vector<32x16xf32>
    %cst_63 = arith.constant dense<0.000000e+00> : vector<32xf32>
    %147 = vector.multi_reduction <add>, %146, %cst_63 [1] : vector<32x16xf32> to vector<32xf32>
    %148 = vector.shape_cast %147 : vector<32xf32> to vector<32x1xf32>
    %cst_64 = arith.constant 1.600000e+01 : f32
    %149 = vector.broadcast %cst_64 : f32 to vector<32x1xf32>
    %150 = arith.divf %148, %149 : vector<32x1xf32>
    %151 = vector.broadcast %150 : vector<32x1xf32> to vector<32x16xf32>
    %152 = arith.subf %146, %151 : vector<32x16xf32>
    %153 = arith.mulf %152, %152 : vector<32x16xf32>
    %cst_65 = arith.constant dense<0.000000e+00> : vector<32xf32>
    %154 = vector.multi_reduction <add>, %153, %cst_65 [1] : vector<32x16xf32> to vector<32xf32>
    %155 = vector.shape_cast %154 : vector<32xf32> to vector<32x1xf32>
    %cst_66 = arith.constant 1.600000e+01 : f32
    %156 = vector.broadcast %cst_66 : f32 to vector<32x1xf32>
    %157 = arith.divf %155, %156 : vector<32x1xf32>
    %158 = vector.broadcast %150 : vector<32x1xf32> to vector<32x16xf32>
    %159 = arith.subf %146, %158 : vector<32x16xf32>
    %cst_67 = arith.constant 9.99999974E-6 : f32
    %160 = vector.broadcast %cst_67 : f32 to vector<32x1xf32>
    %161 = arith.addf %157, %160 : vector<32x1xf32>
    %162 = math.rsqrt %161 : vector<32x1xf32>
    %163 = vector.broadcast %162 : vector<32x1xf32> to vector<32x16xf32>
    %164 = arith.mulf %159, %163 : vector<32x16xf32>
    %165 = vector.broadcast %12 : vector<1x16xf32> to vector<32x16xf32>
    %166 = arith.mulf %164, %165 : vector<32x16xf32>
    %167 = vector.broadcast %13 : vector<1x16xf32> to vector<32x16xf32>
    %168 = arith.addf %166, %167 : vector<32x16xf32>
    %169 = arith.truncf %168 : vector<32x16xf32> to vector<32x16xbf16>
    %170 = arith.truncf %14 : vector<16x64xf32> to vector<16x64xbf16>
    %cst_68 = arith.constant dense<0.000000e+00> : vector<32x64xf32>
    %171 = tpu.matmul %169, %170, %cst_68 {dimension_numbers = #tpu.dot_dimension_numbers<[1], [0], [0], [1], [0, 0, 1, 1], [], []>} : vector<32x16xbf16>, vector<16x64xbf16>, vector<32x64xf32> -> vector<32x64xf32>
    %172 = vector.broadcast %15 : vector<1x64xf32> to vector<32x64xf32>
    %173 = arith.addf %171, %172 : vector<32x64xf32>
    %cst_69 = arith.constant 0.000000e+00 : f32
    %174 = vector.broadcast %cst_69 : f32 to vector<32x64xf32>
    %175 = arith.maximumf %173, %174 : vector<32x64xf32>
    %176 = arith.truncf %175 : vector<32x64xf32> to vector<32x64xbf16>
    %177 = arith.truncf %16 : vector<64x16xf32> to vector<64x16xbf16>
    %cst_70 = arith.constant dense<0.000000e+00> : vector<32x16xf32>
    %178 = tpu.matmul %176, %177, %cst_70 {dimension_numbers = #tpu.dot_dimension_numbers<[1], [0], [0], [1], [0, 0, 1, 1], [], []>} : vector<32x64xbf16>, vector<64x16xbf16>, vector<32x16xf32> -> vector<32x16xf32>
    %179 = vector.broadcast %17 : vector<1x16xf32> to vector<32x16xf32>
    %180 = arith.addf %178, %179 : vector<32x16xf32>
    %181 = arith.addf %146, %180 : vector<32x16xf32>
    %182 = vector.shape_cast %181 : vector<32x16xf32> to vector<8x4x16xf32>
    %c0_71 = arith.constant 0 : index
    %c0_72 = arith.constant 0 : index
    %c0_73 = arith.constant 0 : index
    %c0_74 = arith.constant 0 : index
    %183 = vector.load %arg19[%c0_71, %c0_72, %c0_73, %c0_74] : memref<1x8x4x16xf32, #tpu.memory_space<vmem>>, vector<1x8x4x16xf32>
    %184 = vector.shape_cast %183 : vector<1x8x4x16xf32> to vector<8x4x16xf32>
    %185 = vector.shape_cast %182 : vector<8x4x16xf32> to vector<1x8x4x16xf32>
    tpu.vector_store %arg19[%c0_71, %c0_72, %c0_73, %c0_74], %185 {strides = array<i32>} : memref<1x8x4x16xf32, #tpu.memory_space<vmem>>, vector<1x8x4x16xf32>,
    return
  }
  func.func @transform_0(%arg0: i32, %arg1: i32) -> (i32, i32, i32, i32) {
    %c0_i32 = arith.constant 0 : i32
    %c0_i32_0 = arith.constant 0 : i32
    %c0_i32_1 = arith.constant 0 : i32
    return %arg0, %arg1, %c0_i32, %c0_i32_0 : i32, i32, i32, i32
  }
  func.func @transform_1(%arg0: i32, %arg1: i32) -> (i32, i32) {
    %c0_i32 = arith.constant 0 : i32
    %c0_i32_0 = arith.constant 0 : i32
    %c0_i32_1 = arith.constant 0 : i32
    return %c0_i32, %c0_i32_0 : i32, i32
  }
  func.func @transform_2(%arg0: i32, %arg1: i32) -> (i32, i32) {
    %c0_i32 = arith.constant 0 : i32
    %c0_i32_0 = arith.constant 0 : i32
    %c0_i32_1 = arith.constant 0 : i32
    return %c0_i32, %c0_i32_0 : i32, i32
  }
  func.func @transform_3(%arg0: i32, %arg1: i32) -> (i32, i32) {
    %c0_i32 = arith.constant 0 : i32
    %c0_i32_0 = arith.constant 0 : i32
    %c0_i32_1 = arith.constant 0 : i32
    return %c0_i32, %c0_i32_0 : i32, i32
  }
  func.func @transform_4(%arg0: i32, %arg1: i32) -> (i32, i32) {
    %c0_i32 = arith.constant 0 : i32
    %c0_i32_0 = arith.constant 0 : i32
    %c0_i32_1 = arith.constant 0 : i32
    return %c0_i32, %c0_i32_0 : i32, i32
  }
  func.func @transform_5(%arg0: i32, %arg1: i32) -> (i32, i32) {
    %c0_i32 = arith.constant 0 : i32
    %c0_i32_0 = arith.constant 0 : i32
    %c0_i32_1 = arith.constant 0 : i32
    return %c0_i32, %c0_i32_0 : i32, i32
  }
  func.func @transform_6(%arg0: i32, %arg1: i32) -> (i32, i32) {
    %c0_i32 = arith.constant 0 : i32
    %c0_i32_0 = arith.constant 0 : i32
    %c0_i32_1 = arith.constant 0 : i32
    return %c0_i32, %c0_i32_0 : i32, i32
  }
  func.func @transform_7(%arg0: i32, %arg1: i32) -> (i32, i32) {
    %c0_i32 = arith.constant 0 : i32
    %c0_i32_0 = arith.constant 0 : i32
    %c0_i32_1 = arith.constant 0 : i32
    return %c0_i32, %c0_i32_0 : i32, i32
  }
  func.func @transform_8(%arg0: i32, %arg1: i32) -> (i32, i32) {
    %c0_i32 = arith.constant 0 : i32
    %c0_i32_0 = arith.constant 0 : i32
    %c0_i32_1 = arith.constant 0 : i32
    return %c0_i32, %c0_i32_0 : i32, i32
  }
  func.func @transform_9(%arg0: i32, %arg1: i32) -> (i32, i32) {
    %c0_i32 = arith.constant 0 : i32
    %c0_i32_0 = arith.constant 0 : i32
    %c0_i32_1 = arith.constant 0 : i32
    return %c0_i32, %c0_i32_0 : i32, i32
  }
  func.func @transform_10(%arg0: i32, %arg1: i32) -> (i32, i32) {
    %c0_i32 = arith.constant 0 : i32
    %c0_i32_0 = arith.constant 0 : i32
    %c0_i32_1 = arith.constant 0 : i32
    return %c0_i32, %c0_i32_0 : i32, i32
  }
  func.func @transform_11(%arg0: i32, %arg1: i32) -> (i32, i32) {
    %c0_i32 = arith.constant 0 : i32
    %c0_i32_0 = arith.constant 0 : i32
    %c0_i32_1 = arith.constant 0 : i32
    return %c0_i32, %c0_i32_0 : i32, i32
  }
  func.func @transform_12(%arg0: i32, %arg1: i32) -> (i32, i32) {
    %c0_i32 = arith.constant 0 : i32
    %c0_i32_0 = arith.constant 0 : i32
    %c0_i32_1 = arith.constant 0 : i32
    return %c0_i32, %c0_i32_0 : i32, i32
  }
  func.func @transform_13(%arg0: i32, %arg1: i32) -> (i32, i32) {
    %c0_i32 = arith.constant 0 : i32
    %c0_i32_0 = arith.constant 0 : i32
    %c0_i32_1 = arith.constant 0 : i32
    return %c0_i32, %c0_i32_0 : i32, i32
  }
  func.func @transform_14(%arg0: i32, %arg1: i32) -> (i32, i32) {
    %c0_i32 = arith.constant 0 : i32
    %c0_i32_0 = arith.constant 0 : i32
    %c0_i32_1 = arith.constant 0 : i32
    return %c0_i32, %c0_i32_0 : i32, i32
  }
  func.func @transform_15(%arg0: i32, %arg1: i32) -> (i32, i32) {
    %c0_i32 = arith.constant 0 : i32
    %c0_i32_0 = arith.constant 0 : i32
    %c0_i32_1 = arith.constant 0 : i32
    return %c0_i32, %c0_i32_0 : i32, i32
  }
  func.func @transform_16(%arg0: i32, %arg1: i32) -> (i32, i32) {
    %c0_i32 = arith.constant 0 : i32
    %c0_i32_0 = arith.constant 0 : i32
    %c0_i32_1 = arith.constant 0 : i32
    return %c0_i32, %c0_i32_0 : i32, i32
  }
  func.func @transform_17(%arg0: i32, %arg1: i32) -> (i32, i32, i32, i32) {
    %c0_i32 = arith.constant 0 : i32
    %c0_i32_0 = arith.constant 0 : i32
    %c0_i32_1 = arith.constant 0 : i32
    return %arg0, %arg1, %c0_i32, %c0_i32_0 : i32, i32, i32, i32
  }
}

</mosaic_0001>

<bundles_post_ra>
// kernel: residual_block_forward.5
= control target key start
LH: loop header
LB: loop body
LE: loop exit
PB: predicated region body
PF: predicated region fallthrough
CT: control target
= control target key end

     0   :  { %s1945_s0 = inlined_call_operand.vmem [shape: f32[2,32,16], index: 0, kind: input, shape index: {}]   ;;  %s1946_s1 = inlined_call_operand.vmem [shape: f32[2,32,8], index: 1, kind: input, shape index: {}]   ;;  %s1947_s2 = inlined_call_operand.vmem [shape: f32[2,32,16], index: 2, kind: input, shape index: {}]   ;;  %s1948_s3 = inlined_call_operand.vmem [shape: f32[16,16], index: 3, kind: input, shape index: {}]   ;;  %s1949_s4 = inlined_call_operand.vmem [shape: f32[16,16], index: 4, kind: input, shape index: {}]   ;;  %s1950_s5 = inlined_call_operand.vmem [shape: f32[1,16], index: 5, kind: input, shape index: {}]   ;;  %s1951_s6 = inlined_call_operand.vmem [shape: f32[1,16], index: 6, kind: input, shape index: {}]   ;;  %s1952_s7 = inlined_call_operand.vmem [shape: f32[8,16], index: 7, kind: input, shape index: {}]   ;;  %s1953_s8 = inlined_call_operand.vmem [shape: f32[8,16], index: 8, kind: input, shape index: {}]   ;;  %s1954_s9 = inlined_call_operand.vmem [shape: f32[1,16], index: 9, kind: input, shape index: {}]   ;;  %s1955_s10 = inlined_call_operand.vmem [shape: f32[1,16], index: 10, kind: input, shape index: {}]   ;;  %s1956_s11 = inlined_call_operand.vmem [shape: f32[16,16], index: 11, kind: input, shape index: {}]   ;;  %s1957_s12 = inlined_call_operand.vmem [shape: f32[16,16], index: 12, kind: input, shape index: {}]   ;;  %s1958_s13 = inlined_call_operand.vmem [shape: f32[1,16], index: 13, kind: input, shape index: {}]   ;;  %s1959_s14 = inlined_call_operand.vmem [shape: f32[1,16], index: 14, kind: input, shape index: {}]   ;;  %s1960_s15 = inlined_call_operand.hbm [shape: f32[2,32,16], index: 15, kind: output, shape index: {0}]   ;;  %s1961_s16 = inlined_call_operand.hbm [shape: f32[2,32,16], index: 16, kind: output, shape index: {1}]  }
   0x1   :  { %1966 = sst [smem:[#allocation12_spill]] %s1945_s0 }
   0x2   :  { %1967 = sst [smem:[#allocation13_spill]] %s1946_s1 }
   0x3   :  { %1968 = sst [smem:[#allocation14_spill]] %s1947_s2 }
   0x4   :  { %1969 = sst [smem:[#allocation15_spill]] %s1952_s7 }
   0x5   :  { %22 = vsyncpa [#allocation3], 0 }
   0x6   :  { %24 = vsyncpa [#allocation3 + $0x1], 0 }
   0x7   :  { %25 = vsyncpa [#allocation5], 0 }
   0x8   :  { %27 = vsyncpa [#allocation5 + $0x1], 0  ;;  %s1691_s21 = smov 0   ;;  %s1693_s22 = smov 0  }
   0x9   :  { %s1695_s23 = smov 0   ;;  %s1697_s24 = smov 0  }
   0xa   :  { %s1699_s25 = smov 0   ;;  %s1701_s26 = smov 0  }
   0xb LB: > { %1970 = sst [smem:[#allocation8_spill]] %s1588_s23  ;;  %s1292_s27 = sadd.s32 4294967295, %s1600_s26   ;;  %s1600_s26 = sphi %s1701_s26, %s33_s26   ;;  %s1596_s25 = sphi %s1699_s25, %s1987_s25   ;;  %s1592_s24 = sphi %s1697_s24, %s1986_s24   ;;  %s1588_s23 = sphi %s1695_s23, %s1985_s23   ;;  %s1584_s22 = sphi %s1693_s22, %s1989_s22   ;;  %s1580_s21 = sphi %s1691_s21, %s1988_s21  }
   0xc   : > { %1971 = sst [smem:[#allocation9_spill]] %s1596_s25  ;;  %s1293_s28 = sadd.s32 4294967294, %s1600_s26  }
   0xd   : > { %s45_s29 = sadd.s32 1, %s1596_s25  ;;  %s390_s30 = sadd.s32 1, %s1588_s23 }
   0xe   : > { %p47_p0 = scmp.ge.s32.totalorder %s45_s29, 2  ;;  %p400_p1 = scmp.ne.s32.totalorder %s1588_s23, %s1584_s22 }
   0xf   : > { %p401_p2 = scmp.eq.s32.totalorder %s1292_s27, 1  ;;  %p406_p3 = scmp.ne.s32.totalorder %s1584_s22, %s1580_s21 }
  0x10   : > { %s1991_s29 = smov (%p47_p0, %s45_s29), 0  ;;  %p407_p5 = scmp.eq.s32.totalorder %s1293_s28, 1 }
  0x11   : > { %1972 = sst [smem:[#allocation10_spill]] %s1991_s29  ;;  %p1731_p4 = por %p401_p2, %p400_p1 }
  0x12   : > { %s385_s17 = ssub.s32 %s1596_s25, %s1991_s29  ;;  %p1296_p6 = scmp.ge.s32.totalorder %s1600_s26, 1 }
  0x13   : > { %p388_p7 = scmp.eq.s32.totalorder %s385_s17, 0  ;;  %p1738_p8 = por %p407_p5, %p406_p3 }
  0x14   : > { %p528_p9 = scmp.lt.s32.totalorder %s1600_s26, 3 }
  0x15   : > { %s1744_s19 = scalar_select %p388_p7, %s1588_s23, %s390_s30  }
  0x16   : > { %p529_p10 = pnand %p1296_p6, %p528_p9 }
  0x17   : > { %1975 = sst [smem:[#allocation11_spill]] %s1744_s19  ;;  %s1976_s7 = sld [smem:[#allocation15_spill]] (!%p529_p10)  ;;  %vm662_vm0 = vcmask (!%p529_p10), 1043456   ;;  %v796_v1 = vld [vmem:[%s1953_s8] sm:$0xff] (!%p529_p10)  ;;  %v647_v5 = vld [vmem:[%s1948_s3 + $0x8] sm:$0xff] (!%p529_p10)  ;;  %vm655_vm1 = vcmask (!%p529_p10), 64512  }
  0x18   : > { %532 = sbr.rel (%p529_p10) target bundleno = 560 (0x230), region = 80  ;;  %p606_p11 = scmp.lt.s32.totalorder (!%p529_p10), %s1592_s24, 1  ;;  %v646_v2 = vld [vmem:[%s1948_s3] sm:$0xff] (!%p529_p10)  ;;  %v797_v4 = vpack.c.bf16 (!%p529_p10), %v796_v1, %v796_v1  ;;  %v794_v7 = vld [vmem:[%s1949_s4 + $0x8] sm:$0xff] (!%p529_p10)  ;;  %vm715_vm2 = vcmask (!%p529_p10), 130048  }
  0x19   : > { %v793_v6 = vld [vmem:[%s1949_s4] sm:$0xff] (!%p529_p10)  ;;  %v650_v8 = vpack.c.bf16 (!%p529_p10), %v647_v5, %v646_v2  ;;  %s1977_s17 = sld [smem:[#allocation12_spill]] (!%p529_p10)  ;;  %s1978_s1 = sld [smem:[#allocation13_spill]] (!%p529_p10)  ;;  %v958_v25 = vld [vmem:[%s1956_s11 + $0x8] sm:$0xff] (!%p529_p10) }
  0x1a   : > { %v795_v9 = vpack.c.bf16 (!%p529_p10), %v794_v7, %v793_v6  ;;  %1403 = vmatprep.subr.msk.bf16.mxu1 (!%p529_p10), %vm662_vm0, %v797_v4  ;;  %v799_v11 = vsel (!%p529_p10), %vm662_vm0, %v797_v4, 0  ;;  %v957_v24 = vld [vmem:[%s1956_s11] sm:$0xff] (!%p529_p10)  ;;  %v1041_v28 = vld [vmem:[%s1957_s12 + $0x8] sm:$0xff] (!%p529_p10)  ;;  %s1979_s2 = sld [smem:[#allocation14_spill]] (!%p529_p10) }
  0x1b   : > { %1371 = vmatpush3.bf16.msra.mxu1 (!%p529_p10), %v799_v11  ;;  %v1040_v26 = vld [vmem:[%s1957_s12] sm:$0xff] (!%p529_p10)  ;;  %v961_v27 = vpack.c.bf16 (!%p529_p10), %v958_v25, %v957_v24 }
  0x1c   : > { %1376 = vmatprep.subr.bf16.mxu1 (!%p529_p10), %v795_v9  ;;  %v1042_v29 = vpack.c.bf16 (!%p529_p10), %v1041_v28, %v1040_v26  ;;  %v1309_v30 = vld [vmem:[%s1950_s5] ss:$0 sm:$0xff] (!%p529_p10) }
  0x1d   : > { %v651_v0 = vld [vmem:[%s1976_s7] sm:$0xff] (!%p529_p10) }
  0x1e   : > { %v654_v3 = vpack.c.bf16 (!%p529_p10), %v651_v0, %v651_v0  ;;  %v1310_v32 = vld [vmem:[%s1954_s9] ss:$0 sm:$0xff] (!%p529_p10) }
  0x1f   : > { %s607_s29 = scalar_select %p606_p11, %s1592_s24, 1  ;;  %v1315_v48 = vld [vmem:[%s1951_s6] ss:$0 sm:$0xff] }
  0x20   : > { %1402 = vmatprep.subr.msk.bf16.mxu0 %vm662_vm0, %v654_v3  ;;  %v664_v10 = vsel %vm662_vm0, %v654_v3, 0  ;;  %v1316_v54 = vld [vmem:[%s1955_s10] ss:$0 sm:$0xff] }
  0x21   : > { %1359 = vmatpush3.bf16.msra.mxu0 %v664_v10  ;;  %s1766_s25 = sshll.u32 %s607_s29, 5  ;;  %v1323_v24 = vld [vmem:[%s1958_s13] ss:$0 sm:$0xff] }
  0x22   : > { %s613_s30 = scalar_lea.vmem %s1977_s17, %s1766_s25  ;;  %s623_s23 = scalar_lea.vmem %s1978_s1, %s1766_s25  ;;  %1364 = vmatprep.subr.bf16.mxu0 %v650_v8 }
  0x23   : > { %v642_v12 = vld [vmem:[%s623_s23] sm:$0xff]  ;;  %v643_v13 = vld [vmem:[%s623_s23 + $0x8] sm:$0xff]  ;;  %v644_v14 = vld [vmem:[%s623_s23 + $0x10] sm:$0xff]  ;;  %s633_s29 = scalar_lea.vmem %s1979_s2, %s1766_s25 }
  0x24   : > { %v652_v15 = vpack.c.bf16 %v643_v13, %v642_v12  ;;  %v645_v16 = vld [vmem:[%s623_s23 + $0x18] sm:$0xff]  ;;  %v638_v17 = vld [vmem:[%s613_s30] sm:$0xff]  ;;  %v639_v18 = vld [vmem:[%s613_s30 + $0x8] sm:$0xff]  ;;  %s1965_s23 = sshll.u32 %s1592_s24, 9 }
  0x25   : > { %v653_v19 = vpack.c.bf16 %v645_v16, %v644_v14  ;;  %v648_v20 = vpack.c.bf16 %v639_v18, %v638_v17  ;;  %v640_v21 = vld [vmem:[%s613_s30 + $0x10] sm:$0xff]  ;;  %v641_v22 = vld [vmem:[%s613_s30 + $0x18] sm:$0xff]  ;;  %s1809_s30 = sand.u32 1, %s1584_s22   ;;  %s1839_s28 = scalar_lea.hbm %s1961_s16, %s1965_s23 }
  0x26   : > { %1360 = vmatprep.mubr.msk.bf16.mxu0 %vm655_vm1, %v652_v15  ;;  %1372 = vmatprep.mubr.msk.bf16.mxu1 %vm655_vm1, %v652_v15  ;;  %v649_v23 = vpack.c.bf16 %v641_v22, %v640_v21  ;;  %s1297_s19 = sshll.u32 %s1809_s30, 5  ;;  %v1324_v21 = vld [vmem:[%s1959_s14] ss:$0 sm:$0xff]  ;;  %v956_v26 = vld [vmem:[%s633_s29 + $0x18] sm:$0xff] }
  0x27   : > { %1361 = vmatmul.mubr.msk.bf16.vlgmr.msra.gmra.mrb[0].mxu0 %vm655_vm1, %v653_v19  ;;  %1373 = vmatmul.mubr.msk.bf16.vlgmr.msra.gmra.mrb[0].mxu1 %vm655_vm1, %v653_v19  ;;  %v953_v22 = vld [vmem:[%s633_s29] sm:$0xff]  ;;  %s1824_s1 = scalar_lea.vmem [#allocation4], %s1297_s19  ;;  %s1845_s17 = scalar_lea.vmem [#allocation2], %s1297_s19 }
  0x28   : > { %1365 = vmatpush3.bf16.msra.mxu0 %v650_v8  ;;  %1377 = vmatpush3.bf16.msra.mxu1 %v795_v9  ;;  %s1142_s25 = sshll.u32 %s1824_s1, 4  ;;  %s1830_s25 = int_to_ptr.vmem [resolvable:$true] %s1142_s25 }
  0x29   : > { %1366 = vmatprep.mubr.msk.bf16.mxu0 %vm715_vm2, %v648_v20  ;;  %1378 = vmatprep.mubr.msk.bf16.mxu1 %vm715_vm2, %v648_v20  ;;  %v955_v20 = vld [vmem:[%s633_s29 + $0x10] sm:$0xff]  ;;  %s1490_s27 = scalar_lea.vmem %s1830_s25, 512 }
  0x2a   : > { %1382 = vmatprep.subr.bf16.mxu0 %v961_v27  ;;  %1388 = vmatprep.subr.bf16.mxu1 %v1042_v29  ;;  %p1491_p12 = scmp.ne.s32.totalorder %s1830_s25, %s1490_s27 }
  0x2c   : > { %p1492_p13 = pnand %p1491_p12, %p1731_p4 }
  0x2e   : > { %p1493_p0 = pneg %p1492_p13 }
  0x33   : > { %1367 = vmatmul.mubr.msk.bf16.vlgmr.msra.gmra.mrb[0].mxu0 %vm715_vm2, %v649_v23  ;;  %1379 = vmatmul.mubr.msk.bf16.vlgmr.msra.gmra.mrb[0].mxu1 %vm715_vm2, %v649_v23 }
  0x34   : > { %1383 = vmatpush3.bf16.msra.mxu0 %v961_v27  ;;  %1389 = vmatpush3.bf16.msra.mxu1 %v1042_v29 }
 0x106   : > { %v1368_v31 = vpop.f32.mrb[0].mxu0  ;;  %v1380_v33 = vpop.f32.mrb[0].mxu1 }
 0x107   : > { %v780_v34 = vadd.f32 %v1368_v31, %v1309_v30  ;;  %v756_v35 = vpop.f32.mrb[1].mxu0  ;;  %v884_v36 = vpop.f32.mrb[1].mxu1  ;;  %v908_v53 = vadd.f32 %v1380_v33, %v1315_v48  ;;  %v954_v31 = vld [vmem:[%s633_s29 + $0x8] sm:$0xff]  ;;  %s1602_s29 = smov [#allocation4]  }
 0x108   : > { %v778_v37 = vadd.f32 %v1309_v30, %v756_v35  ;;  %v1369_v38 = vpop.f32.mrb[2].mxu0  ;;  %v1381_v39 = vpop.f32.mrb[2].mxu1  ;;  %v906_v55 = vadd.f32 %v1315_v48, %v884_v36  ;;  %s1494_s19 = sshll.u32 %s1602_s29, 4  ;;  %s1495_s19 = int_to_ptr.vmem [resolvable:$false] %s1494_s19 }
 0x109   : > { %v791_v40 = vadd.f32 %v1310_v32, %v780_v34  ;;  %v781_v41 = vadd.f32 %v1369_v38, %v1309_v30  ;;  %v759_v42 = vpop.f32.mrb[3].mxu0  ;;  %v887_v43 = vpop.f32.mrb[3].mxu1  ;;  %v909_v56 = vadd.f32 %v1381_v39, %v1315_v48  ;;  %v919_v57 = vadd.f32 %v1316_v54, %v908_v53  ;;  %s1496_s23 = scalar_lea.vmem %s1495_s19, 1024  ;;  %p1497_p1 = scmp.lt.s32.totalorder %s1830_s25, %s1495_s19 }
 0x10a   : > { %v789_v44 = vadd.f32 %v1310_v32, %v778_v37  ;;  %v779_v45 = vadd.f32 %v1309_v30, %v759_v42  ;;  %v917_v58 = vadd.f32 %v1316_v54, %v906_v55  ;;  %v907_v60 = vadd.f32 %v1315_v48, %v887_v43  ;;  %p1498_p2 = scmp.lt.s32.totalorder %s1496_s23, %s1490_s27 }
 0x10b   : > { %v1319_v46 = vmul.f32 -1.442695, %v791_v40  ;;  %v792_v47 = vadd.f32 %v1310_v32, %v781_v41  ;;  %v920_v59 = vadd.f32 %v1316_v54, %v909_v56 }
 0x10c   : > { %v1317_v49 = vmul.f32 -1.442695, %v789_v44  ;;  %v790_v50 = vadd.f32 %v1310_v32, %v779_v45  ;;  %v918_v2 = vadd.f32 %v1316_v54, %v907_v60  ;;  %p1499_p3 = por %p1498_p2, %p1497_p1 }
 0x10d   : > { %1466 = vpow2.f32 %v1319_v46  ;;  %v1320_v51 = vmul.f32 -1.442695, %v792_v47 }
 0x10e   : > { %1468 = vpow2.f32 %v1317_v49  ;;  %v1318_v52 = vmul.f32 -1.442695, %v790_v50  ;;  %p1500_p5 = pnand %p1499_p3, %p1493_p0 }
 0x10f   : > { %1470 = vpow2.f32 %v1320_v51 }
 0x110   : > { %1472 = vpow2.f32 %v1318_v52 }
 0x111   : > { %1474 = vtanh.f32 %v919_v57 }
 0x112   : > { %1476 = vtanh.f32 %v917_v58 }
 0x113   : > { %1478 = vtanh.f32 %v920_v59 }
 0x117   : > { %v1467_v61 = vpop.eup %1466 }
 0x118   : > { %v1469_v62 = vpop.eup %1468  ;;  %v935_v63 = vadd.f32 1.0, %v1467_v61 }
 0x119   : > { %v1471_v0 = vpop.eup %1470  ;;  %v933_v1 = vadd.f32 1.0, %v1469_v62 }
 0x11a   : > { %1480 = vrcp.f32 %v935_v63  ;;  %v936_v3 = vadd.f32 1.0, %v1471_v0  ;;  %v1473_v4 = vpop.eup %1472 }
 0x11b   : > { %1482 = vrcp.f32 %v933_v1  ;;  %v934_v5 = vadd.f32 1.0, %v1473_v4  ;;  %v1475_v6 = vpop.eup %1474 }
 0x11c   : > { %1484 = vrcp.f32 %v936_v3  ;;  %v1477_v7 = vpop.eup %1476 }
 0x11d   : > { %1486 = vtanh.f32 %v918_v2  ;;  %v1479_v8 = vpop.eup %1478 }
 0x11e   : > { %1488 = vrcp.f32 %v934_v5 }
 0x124   : > { %v1481_v9 = vpop.eup %1480 }
 0x125   : > { %v1483_v10 = vpop.eup %1482  ;;  %v951_v11 = vmul.f32 %v1481_v9, %v1475_v6 }
 0x126   : > { %v1485_v12 = vpop.eup %1484  ;;  %v949_v13 = vmul.f32 %v1483_v10, %v1477_v7 }
 0x127   : > { %v1487_v14 = vpop.eup %1486  ;;  %v952_v15 = vmul.f32 %v1485_v12, %v1479_v8 }
 0x128   : > { %v1489_v16 = vpop.eup %1488 }
 0x129   : > { %v950_v17 = vmul.f32 %v1489_v16, %v1487_v14  ;;  %v960_v18 = vpack.c.bf16 %v952_v15, %v951_v11 }
 0x12b   : > { %v959_v19 = vpack.c.bf16 %v950_v17, %v949_v13 }
 0x12d   : > { %1384 = vmatprep.mubr.msk.bf16.mxu0 %vm715_vm2, %v959_v19  ;;  %1390 = vmatprep.mubr.msk.bf16.mxu1 %vm715_vm2, %v959_v19 }
 0x12e   : > { %1385 = vmatmul.mubr.msk.bf16.vlgmr.msra.gmra.mrb[4].mxu0 %vm715_vm2, %v960_v18  ;;  %1391 = vmatmul.mubr.msk.bf16.vlgmr.msra.gmra.mrb[4].mxu1 %vm715_vm2, %v960_v18 }
 0x201   : > { %v1386_v23 = vpop.f32.mrb[4].mxu0  ;;  %v1392_v25 = vpop.f32.mrb[4].mxu1 }
 0x202   : > { %v1019_v27 = vadd.f32 %v1386_v23, %v955_v20  ;;  %v1093_v28 = vadd.f32 %v1392_v25, %v1324_v21  ;;  %v1002_v29 = vpop.f32.mrb[5].mxu0  ;;  %v1084_v30 = vpop.f32.mrb[5].mxu1 }
 0x203   : > { %v1017_v32 = vadd.f32 %v1002_v29, %v953_v22  ;;  %v1085_v33 = vadd.f32 %v1324_v21, %v1084_v30  ;;  %v1387_v34 = vpop.f32.mrb[6].mxu0  ;;  %v1393_v35 = vpop.f32.mrb[6].mxu1 }
 0x204   : > { %v1030_v36 = vadd.f32 %v1323_v24, %v1019_v27  ;;  %1101 = vst.msk [vmem:[%s1824_s1 + $0x10] sm:$0xff] %vm715_vm2, %v1093_v28  ;;  %v1020_v37 = vadd.f32 %v1387_v34, %v956_v26  ;;  %v1096_v38 = vadd.f32 %v1393_v35, %v1324_v21  ;;  %v1005_v39 = vpop.f32.mrb[7].mxu0  ;;  %v1087_v40 = vpop.f32.mrb[7].mxu1 }
 0x205   : > { %v1028_v41 = vadd.f32 %v1323_v24, %v1017_v32  ;;  %1099 = vst.msk [vmem:[%s1824_s1] sm:$0xff] %vm715_vm2, %v1085_v33  ;;  %v1018_v42 = vadd.f32 %v1005_v39, %v954_v31  ;;  %v1088_v43 = vadd.f32 %v1324_v21, %v1087_v40 }
 0x206   : > { %v1034_v44 = vmul.f32 0.70710677, %v1030_v36  ;;  %v1031_v45 = vadd.f32 %v1323_v24, %v1020_v37  ;;  %1102 = vst.msk [vmem:[%s1824_s1 + $0x18] sm:$0xff] %vm715_vm2, %v1096_v38 }
 0x207   : > { %v1032_v46 = vmul.f32 0.70710677, %v1028_v41  ;;  %v1029_v47 = vadd.f32 %v1323_v24, %v1018_v42  ;;  %1100 = vst.msk [vmem:[%s1824_s1 + $0x8] sm:$0xff] %vm715_vm2, %v1088_v43 }
 0x208   : > { %1038 = vst.msk [vmem:[%s1845_s17 + $0x10] sm:$0xff] %vm715_vm2, %v1034_v44  ;;  %v1035_v48 = vmul.f32 0.70710677, %v1031_v45 }
 0x209   : > { %1503 = shalt.err (!%p1500_p5)
}
 0x20a   : > { %s1504_s1 = scalar_lea.hbm %s1839_s28, 512  ;;  %s1508_s29 = scalar_lea.hbm %s1961_s16, 1024 }
 0x20b   : > { %p1505_p6 = scmp.ne.s32.totalorder %s1839_s28, %s1504_s1  ;;  %p1509_p10 = scmp.lt.u32.totalorder %s1839_s28, %s1961_s16 }
 0x20c   : > { %p1510_p11 = scmp.lt.u32.totalorder %s1508_s29, %s1504_s1  ;;  %p1512_p13 = scmp.lt.u32.totalorder %s1504_s1, %s1839_s28 }
 0x20d   : > { %p1506_p7 = pnand %p1505_p6, %p1731_p4 }
 0x20e   : > { %p1511_p12 = por %p1510_p11, %p1509_p10 }
 0x20f   : > { %p1507_p9 = pneg %p1506_p7 }
 0x210   : > { %p1513_p0 = por %p1512_p13, %p1511_p12 }
 0x212   : > { %p1514_p1 = pnand %p1513_p0, %p1507_p9 }
 0x214   : > { %1517 = shalt.err (!%p1514_p1)
}
 0x215   : > { %s1603_s23 = smov 128   ;;  %s1604_s2 = smov 8   ;;  %1036 = vst.msk [vmem:[%s1845_s17] sm:$0xff] %vm715_vm2, %v1032_v46  ;;  %v1033_v49 = vmul.f32 0.70710677, %v1029_v47  ;;  %1039 = vst.msk [vmem:[%s1845_s17 + $0x18] sm:$0xff] %vm715_vm2, %v1035_v48 }
 0x216   : > { %s1980_s20 = scalar_lea.sflag [#allocation5], %s1809_s30  ;;  %s1981_s7 = sshll.u32 %s1592_s24, 9 }
 0x217   : > { %1405 = dma.vmem_to_hbm [thread:$0]  (%p1731_p4), %s1830_s25, 512, %s1839_s28, %s1980_s20, %s1603_s23, %s1603_s23, %s1604_s2  }
 0x218   : > { %s1886_s29 = scalar_lea.hbm %s1960_s15, %s1981_s7  ;;  %s1982_s19 = sshll.u32 %s1845_s17, 4  ;;  %1037 = vst.msk [vmem:[%s1845_s17 + $0x8] sm:$0xff] %vm715_vm2, %v1033_v49  ;;  %s1890_s19 = int_to_ptr.vmem [resolvable:$true] %s1982_s19 }
 0x219   : > { %s1518_s28 = scalar_lea.vmem %s1890_s19, 512  ;;  %s1605_s24 = smov [#allocation2]  }
 0x21a   : > { %p1519_p2 = scmp.ne.s32.totalorder %s1890_s19, %s1518_s28  ;;  %s1522_s20 = sshll.u32 %s1605_s24, 4  ;;  %s1523_s20 = int_to_ptr.vmem [resolvable:$false] %s1522_s20 }
 0x21b   : > { %s1524_s7 = scalar_lea.vmem %s1523_s20, 1024  ;;  %p1525_p6 = scmp.lt.s32.totalorder %s1890_s19, %s1523_s20 }
 0x21c   : > { %p1520_p3 = pnand %p1519_p2, %p1731_p4  ;;  %p1526_p7 = scmp.lt.s32.totalorder %s1524_s7, %s1518_s28 }
 0x21e   : > { %p1521_p5 = pneg %p1520_p3  ;;  %p1527_p9 = por %p1526_p7, %p1525_p6 }
 0x220   : > { %p1528_p10 = pnand %p1527_p9, %p1521_p5 }
 0x222   : > { %1531 = shalt.err (!%p1528_p10)
}
 0x223   : > { %s1532_s17 = scalar_lea.hbm %s1886_s29, 512  ;;  %s1536_s24 = scalar_lea.hbm %s1960_s15, 1024 }
 0x224   : > { %p1533_p11 = scmp.ne.s32.totalorder %s1886_s29, %s1532_s17  ;;  %p1537_p0 = scmp.lt.u32.totalorder %s1886_s29, %s1960_s15 }
 0x225   : > { %p1538_p1 = scmp.lt.u32.totalorder %s1536_s24, %s1532_s17  ;;  %p1540_p3 = scmp.lt.u32.totalorder %s1532_s17, %s1886_s29 }
 0x226   : > { %p1534_p12 = pnand %p1533_p11, %p1731_p4 }
 0x227   : > { %p1539_p2 = por %p1538_p1, %p1537_p0 }
 0x228   : > { %p1535_p13 = pneg %p1534_p12 }
 0x229   : > { %p1541_p5 = por %p1540_p3, %p1539_p2 }
 0x22b   : > { %p1542_p6 = pnand %p1541_p5, %p1535_p13 }
 0x22d   : > { %1545 = shalt.err (!%p1542_p6)
}
 0x22e   : > { %s1983_s28 = scalar_lea.sflag [#allocation3], %s1809_s30 }
 0x22f   : > { %1404 = dma.vmem_to_hbm [thread:$0]  (%p1731_p4), %s1890_s19, 512, %s1886_s29, %s1983_s28, %s1603_s23, %s1603_s23, %s1604_s2  }
 0x230 PF: > { %p1415_p7 = scmp.ge.s32.totalorder %s1600_s26, 2  ;;  %s1157_s25 = sand.u32 1, %s1580_s21  }
 0x231   : > { %s1158_s7 = scalar_lea.sflag [#allocation3], %s1157_s25 }
 0x232   : > { %p1409_p9 = pnand %p1415_p7, %p1738_p8 }
 0x234   : > { %1571 = dma.done.wait (!%p1409_p9), %s1158_s7, 512  }
 0x235   : > { %1573 = vsyncadd (!%p1409_p9), %s1158_s7, 4294966784  ;;  %s1167_s0 = scalar_lea.sflag [#allocation5], %s1157_s25 }
 0x236   : > { %1575 = dma.done.wait (!%p1409_p9), %s1167_s0, 512  }
 0x237   : > { %1577 = vsyncadd (!%p1409_p9), %s1167_s0, 4294966784  ;;  %s33_s26 = sadd.s32 1, %s1600_s26   ;;  %s1984_s30 = sld [smem:[#allocation8_spill]] }
 0x238   : > { %p30_p10 = scmp.ge.s32.totalorder %s33_s26, 4   ;;  %s1985_s23 = sld [smem:[#allocation11_spill]] }
 0x239   : > { %s1986_s24 = sld [smem:[#allocation9_spill]]  ;;  %s1987_s25 = sld [smem:[#allocation10_spill]] }
 0x23a   : > { %s1988_s21 = smov %s1584_s22  ;;  %32 = sbr.rel (!%p30_p10) target bundleno = 11 (0xb), region = 138 }
 0x23d   : > { %s1989_s22 = smov %s1984_s30 }
 0x241   :  { %1172 = vsyncpa [#allocation3], 1 }
 0x242   :  { %1174 = vsyncpa [#allocation3 + $0x1], 1 }
 0x243   :  { %1175 = vsyncpa [#allocation5], 1 }
 0x244   :  { %1177 = vsyncpa [#allocation5 + $0x1], 1 }

// kernel: residual_block_forward.3
= control target key start
LH: loop header
LB: loop body
LE: loop exit
PB: predicated region body
PF: predicated region fallthrough
CT: control target
= control target key end

     0   :  { %s3791_s27 = smov 0   ;;  %s3793_s28 = smov 0   ;;  %s4345_s0 = inlined_call_operand.vmem [shape: f32[2,4,8,16], index: 0, kind: input, shape index: {}]   ;;  %s4346_s1 = inlined_call_operand.vmem [shape: f32[2,1,1,16], index: 1, kind: input, shape index: {}]   ;;  %s4347_s2 = inlined_call_operand.vmem [shape: f32[16,16], index: 2, kind: input, shape index: {}]   ;;  %s4348_s3 = inlined_call_operand.vmem [shape: f32[1,16], index: 3, kind: input, shape index: {}]   ;;  %s4349_s4 = inlined_call_operand.vmem [shape: f32[16,16], index: 4, kind: input, shape index: {}]   ;;  %s4350_s5 = inlined_call_operand.vmem [shape: f32[1,16], index: 5, kind: input, shape index: {}]   ;;  %s4351_s6 = inlined_call_operand.vmem [shape: f32[16,16], index: 6, kind: input, shape index: {}]   ;;  %s4352_s7 = inlined_call_operand.vmem [shape: f32[1,16], index: 7, kind: input, shape index: {}]   ;;  %s4353_s8 = inlined_call_operand.vmem [shape: f32[16,16], index: 8, kind: input, shape index: {}]   ;;  %s4354_s9 = inlined_call_operand.vmem [shape: f32[1,16], index: 9, kind: input, shape index: {}]   ;;  %s4355_s10 = inlined_call_operand.vmem [shape: f32[1,16], index: 10, kind: input, shape index: {}]   ;;  %s4356_s11 = inlined_call_operand.vmem [shape: f32[1,16], index: 11, kind: input, shape index: {}]   ;;  %s4357_s12 = inlined_call_operand.vmem [shape: f32[1,16], index: 12, kind: input, shape index: {}]   ;;  %s4358_s13 = inlined_call_operand.vmem [shape: f32[1,16], index: 13, kind: input, shape index: {}]   ;;  %s4359_s14 = inlined_call_operand.vmem [shape: f32[16,64], index: 14, kind: input, shape index: {}]   ;;  %s4360_s15 = inlined_call_operand.vmem [shape: f32[1,64], index: 15, kind: input, shape index: {}]   ;;  %s4361_s16 = inlined_call_operand.vmem [shape: f32[64,16], index: 16, kind: input, shape index: {}]   ;;  %s4362_s17 = inlined_call_operand.vmem [shape: f32[1,16], index: 17, kind: input, shape index: {}]   ;;  %s4363_s18 = inlined_call_operand.vmem [shape: f32[2,4,8,16], index: 18, kind: output, shape index: {}]  }
   0x1   :  { %4366 = sst [smem:[#allocation2_spill]] %s4345_s0  ;;  %s3795_s29 = smov 0  }
   0x2   :  { %4367 = sst [smem:[#allocation3_spill]] %s4346_s1 }
   0x3   :  { %4368 = sst [smem:[#allocation4_spill]] %s4347_s2 }
   0x4 LB: > { %s40_s30 = sadd.s32 1, %s3682_s28  ;;  %p3139_p0 = scmp.ge.s32.totalorder %s3686_s29, 1  ;;  %s3686_s29 = sphi %s3795_s29, %s28_s29   ;;  %s3682_s28 = sphi %s3793_s28, %s4374_s28   ;;  %s3678_s27 = sphi %s3791_s27, %s4373_s27  }
   0x5   : > { %p42_p1 = scmp.ge.s32.totalorder %s40_s30, 2  ;;  %p541_p2 = scmp.lt.s32.totalorder %s3686_s29, 3 }
   0x7   : > { %s4376_s30 = smov (%p42_p1, %s40_s30), 0  ;;  %p542_p3 = pnand %p3139_p0, %p541_p2 }
   0x8   : > { %p607_p4 = scmp.lt.s32.totalorder (!%p542_p3), %s3678_s27, 1  ;;  %s4369_s20 = sld [smem:[#allocation3_spill]] (!%p542_p3)  ;;  %vm673_vm0 = vcmask (!%p542_p3), 130048   ;;  %v648_v36 = vld [vmem:[%s4349_s4] sm:$0xff] (!%p542_p3)  ;;  %v649_v37 = vld [vmem:[%s4349_s4 + $0x8] sm:$0xff] (!%p542_p3)  ;;  %vm3689_vm1 = vmmov (!%p542_p3), 0  }
   0x9   : > { %545 = sbr.rel (%p542_p3) target bundleno = 4244 (0x1094), region = 92  ;;  %s4370_s23 = sld [smem:[#allocation2_spill]] (!%p542_p3)  ;;  %v811_v38 = vpack.c.bf16 (!%p542_p3), %v649_v37, %v648_v36  ;;  %v651_v39 = vld [vmem:[%s4351_s6] sm:$0xff] (!%p542_p3)  ;;  %v652_v40 = vld [vmem:[%s4351_s6 + $0x8] sm:$0xff] (!%p542_p3)  ;;  %vm935_vm2 = vcmask (!%p542_p3), 31744   ;;  %vm1176_vm3 = vcmask (!%p542_p3), 1043456  }
   0xa   : > { %s4371_s19 = sld [smem:[#allocation4_spill]] (!%p542_p3)  ;;  %v867_v41 = vpack.c.bf16 (!%p542_p3), %v652_v40, %v651_v39  ;;  %v3145_v56 = vld [vmem:[%s4355_s10] ss:$0 sm:$0xff] (!%p542_p3)  ;;  %vm1120_vm4 = vcmask (!%p542_p3), 64512   ;;  %s3691_s22 = smov (!%p542_p3), 120   ;;  %vm2746_vm5 = vcmask (!%p542_p3), 97280  }
   0xb   : > { %3294 = vmatprep.subr.bf16.mxu1 (!%p542_p3), %v811_v38  ;;  %v3146_v62 = vld [vmem:[%s4356_s11] ss:$0 sm:$0xff] (!%p542_p3)  ;;  %s3692_s2 = smov (!%p542_p3), 116   ;;  %vm2975_vm6 = vcmask (!%p542_p3), 523264  }
   0xc   : > { %3295 = vmatpush3.bf16.msra.mxu1 (!%p542_p3), %v811_v38 }
  0x10   : > { %s4378_s27 = smov (!%p607_p4, %s3678_s27), 1  ;;  %v645_v33 = vld [vmem:[%s4371_s19] sm:$0xff]  ;;  %v646_v34 = vld [vmem:[%s4371_s19 + $0x8] sm:$0xff] }
  0x11   : > { %s4365_s0 = sshll.u32 %s4378_s27, 5  ;;  %s618_s21 = scalar_lea.vmem %s4369_s20, %s4378_s27  ;;  %v749_v35 = vpack.c.bf16 %v646_v34, %v645_v33  ;;  %v3153_v33 = vld [vmem:[%s4352_s7] ss:$0 sm:$0xff] }
  0x12   : > { %s614_s24 = scalar_lea.vmem %s4370_s23, %s4365_s0  ;;  %v3144_v0 = vld [vmem:[%s618_s21] ss:$0 sm:$0xff]  ;;  %s3690_s21 = smov 124  }
  0x13   : > { %v630_v1 = vld [vmem:[%s614_s24] sm:$0xff]  ;;  %v632_v2 = vld [vmem:[%s614_s24 + $0x10] sm:$0xff]  ;;  %v631_v3 = vld [vmem:[%s614_s24 + $0x8] sm:$0xff]  ;;  %3288 = vmatprep.subr.bf16.mxu0 %v749_v35  ;;  %s3693_s23 = smov 4  }
  0x14   : > { %v3821_v4 = vadd.f32 %v3144_v0, %v630_v1  ;;  %v3823_v5 = vadd.f32 %v3144_v0, %v632_v2  ;;  %v3825_v6 = vadd.f32 %v3144_v0, %v631_v3  ;;  %v633_v7 = vld [vmem:[%s614_s24 + $0x18] sm:$0xff]  ;;  %3289 = vmatpush3.bf16.msra.mxu0 %v749_v35  ;;  %s3694_s24 = smov 8  }
  0x15   : > { %v3827_v8 = vadd.f32 %v3144_v0, %v633_v7  ;;  %3300 = vmatprep.subr.bf16.mxu0 %v867_v41 }
  0x16   : > { %v674_v9 = vsel %vm673_vm0, %v3821_v4, 0.0  ;;  %v680_v10 = vsel %vm673_vm0, %v3823_v5, 0.0  ;;  %v677_v11 = vsel %vm673_vm0, %v3825_v6, 0.0 }
  0x17   : > { %675 = vadd.xlane.f32.xlu0 %v674_v9  ;;  %681 = vadd.xlane.f32.xlu1 %v680_v10  ;;  %v683_v12 = vsel %vm673_vm0, %v3827_v8, 0.0 }
  0x1b   : > { %678 = vadd.xlane.f32.xlu0 %v677_v11  ;;  %684 = vadd.xlane.f32.xlu1 %v683_v12 }
  0xa4   : > { %v676_v13 = vpop.xlane.xlu0 %675  ;;  %v682_v14 = vpop.xlane.xlu1 %681 }
  0xa5   : > { %v687_v15 = vmul.f32 0.0625, %v676_v13  ;;  %v689_v16 = vmul.f32 0.0625, %v682_v14  ;;  %v3688_v14 = vmov 0.0  }
  0xa6   : > { %3306 = vmatprep.subr.bf16.mxu1 %v3688_v14 }
  0xa7   : > { %v691_v17 = vsub.f32 %v3821_v4, %v687_v15  ;;  %v693_v18 = vsub.f32 %v3823_v5, %v689_v16  ;;  %v3150_v15 = vld [vmem:[%s4350_s5] ss:$0 sm:$0xff] }
  0xa8   : > { %v679_v19 = vpop.xlane.xlu0 %678  ;;  %v685_v20 = vpop.xlane.xlu1 %684 }
  0xa9   : > { %v688_v21 = vmul.f32 0.0625, %v679_v19  ;;  %v690_v22 = vmul.f32 0.0625, %v685_v20  ;;  %v695_v23 = vmul.f32 %v691_v17, %v691_v17  ;;  %v697_v24 = vmul.f32 %v693_v18, %v693_v18 }
  0xab   : > { %v692_v25 = vsub.f32 %v3825_v6, %v688_v21  ;;  %v694_v26 = vsub.f32 %v3827_v8, %v690_v22  ;;  %v699_v27 = vsel %vm673_vm0, %v695_v23, 0.0  ;;  %v705_v28 = vsel %vm673_vm0, %v697_v24, 0.0 }
  0xac   : > { %700 = vadd.xlane.f32.xlu0 %v699_v27 }
  0xad   : > { %v696_v29 = vmul.f32 %v692_v25, %v692_v25  ;;  %v698_v30 = vmul.f32 %v694_v26, %v694_v26 }
  0xaf   : > { %v702_v31 = vsel %vm673_vm0, %v696_v29, 0.0  ;;  %v708_v32 = vsel %vm673_vm0, %v698_v30, 0.0 }
  0xb0   : > { %706 = vadd.xlane.f32.xlu0 %v705_v28  ;;  %703 = vadd.xlane.f32.xlu1 %v702_v31 }
  0xb4   : > { %709 = vadd.xlane.f32.xlu1 %v708_v32 }
 0x139   : > { %v701_v42 = vpop.xlane.xlu0 %700 }
 0x13a   : > { %v711_v43 = vmul.f32 0.0625, %v701_v42 }
 0x13c   : > { %v715_v44 = vadd.f32 1e-05, %v711_v43 }
 0x13d   : > { %v704_v45 = vpop.xlane.xlu1 %703  ;;  %v707_v46 = vpop.xlane.xlu0 %706 }
 0x13e   : > { %3584 = vrsqrt.f32 %v715_v44  ;;  %v712_v47 = vmul.f32 0.0625, %v704_v45  ;;  %v713_v48 = vmul.f32 0.0625, %v707_v46 }
 0x140   : > { %v716_v49 = vadd.f32 1e-05, %v712_v47  ;;  %v717_v50 = vadd.f32 1e-05, %v713_v48 }
 0x141   : > { %v710_v51 = vpop.xlane.xlu1 %709 }
 0x142   : > { %3586 = vrsqrt.f32 %v716_v49  ;;  %v714_v52 = vmul.f32 0.0625, %v710_v51 }
 0x143   : > { %3588 = vrsqrt.f32 %v717_v50 }
 0x144   : > { %v718_v53 = vadd.f32 1e-05, %v714_v52 }
 0x146   : > { %3590 = vrsqrt.f32 %v718_v53 }
 0x148   : > { %v3585_v54 = vpop.eup %3584 }
 0x149   : > { %v723_v55 = vmul.f32 %v3585_v54, %v691_v17 }
 0x14b   : > { %v733_v60 = vmul.f32 %v3145_v56, %v723_v55 }
 0x14c   : > { %v3587_v57 = vpop.eup %3586 }
 0x14d   : > { %v3589_v58 = vpop.eup %3588  ;;  %v724_v59 = vmul.f32 %v3587_v57, %v692_v25  ;;  %v743_v2 = vadd.f32 %v3146_v62, %v733_v60 }
 0x14e   : > { %v725_v61 = vmul.f32 %v3589_v58, %v693_v18  ;;  %v3147_v18 = vld [vmem:[%s4348_s3] ss:$0 sm:$0xff] }
 0x14f   : > { %v734_v63 = vmul.f32 %v3145_v56, %v724_v59 }
 0x150   : > { %v3591_v0 = vpop.eup %3590  ;;  %v735_v7 = vmul.f32 %v3145_v56, %v725_v61 }
 0x151   : > { %v726_v1 = vmul.f32 %v3591_v0, %v694_v26  ;;  %v744_v3 = vadd.f32 %v3146_v62, %v734_v63 }
 0x152   : > { %v745_v11 = vadd.f32 %v3146_v62, %v735_v7 }
 0x153   : > { %v747_v9 = vpack.c.bf16 %v744_v3, %v743_v2  ;;  %v736_v10 = vmul.f32 %v3145_v56, %v726_v1 }
 0x155   : > { %3290 = vmatprep.mubr.msk.bf16.mxu0 %vm673_vm0, %v747_v9  ;;  %3296 = vmatprep.mubr.msk.bf16.mxu1 %vm673_vm0, %v747_v9  ;;  %v746_v12 = vadd.f32 %v3146_v62, %v736_v10 }
 0x157   : > { %v748_v13 = vpack.c.bf16 %v746_v12, %v745_v11 }
 0x159   : > { %3291 = vmatmul.mubr.msk.bf16.vlgmr.msra.gmra.mrb[0].mxu0 %vm673_vm0, %v748_v13  ;;  %3297 = vmatmul.mubr.msk.bf16.vlgmr.msra.gmra.mrb[0].mxu1 %vm673_vm0, %v748_v13 }
 0x15a   : > { %3302 = vmatprep.mubr.msk.bf16.mxu0 %vm673_vm0, %v747_v9  ;;  %3301 = vmatpush3.bf16.msra.mxu0 %v867_v41 }
 0x15b   : > { %3312 = vmatprep.subr.bf16.mxu0 %v3688_v14  ;;  %3308 = vmatprep.mubr.msk.bf16.mxu1 %vm3689_vm1, %v3688_v14 }
 0x161   : > { %3303 = vmatmul.mubr.msk.bf16.vlgmr.msra.gmra.mrb[4].mxu0 %vm673_vm0, %v748_v13 }
 0x162   : > { %3314 = vmatprep.mubr.msk.bf16.mxu0 %vm3689_vm1, %v3688_v14 }
 0x22c   : > { %v3292_v16 = vpop.f32.mrb[0].mxu0  ;;  %v3298_v17 = vpop.f32.mrb[0].mxu1 }
 0x22d   : > { %v796_v19 = vpop.f32.mrb[1].mxu0  ;;  %v852_v20 = vpop.f32.mrb[1].mxu1  ;;  %v861_v29 = vadd.f32 %v3298_v17, %v3150_v15  ;;  %v805_v45 = vadd.f32 %v3292_v16, %v3147_v18 }
 0x22e   : > { %v853_v21 = vadd.f32 %v3150_v15, %v852_v20  ;;  %v3293_v22 = vpop.f32.mrb[2].mxu0  ;;  %v3299_v23 = vpop.f32.mrb[2].mxu1  ;;  %v797_v26 = vadd.f32 %v3147_v18, %v796_v19 }
 0x22f   : > { %v799_v24 = vpop.f32.mrb[3].mxu0  ;;  %v855_v25 = vpop.f32.mrb[3].mxu1  ;;  %v864_v35 = vadd.f32 %v3299_v23, %v3150_v15  ;;  %v3901_v40 = vpack.c.bf16 %v861_v29, %v861_v29  ;;  %v808_v48 = vadd.f32 %v3293_v22, %v3147_v18  ;;  %v925_v52 = vmul.f32 0.5, %v805_v45 }
 0x230   : > { %v3887_v27 = vpack.c.bf16 %v853_v21, %v853_v21  ;;  %v856_v28 = vadd.f32 %v3150_v15, %v855_v25  ;;  %v800_v30 = vadd.f32 %v3147_v18, %v799_v24  ;;  %v923_v34 = vmul.f32 0.5, %v797_v26 }
 0x231   : > { %v3908_v47 = vpack.c.bf16 %v864_v35, %v864_v35  ;;  %v1032_v51 = vsel %vm935_vm2, %v3901_v40, 0  ;;  %v926_v55 = vmul.f32 0.5, %v808_v48  ;;  %v3928_v57 = vpack.c.bf16 %v925_v52, %v925_v52 }
 0x232   : > { %v3889_v31 = vpack.c.bf16 %v856_v28, %v856_v28  ;;  %v940_v32 = vsel %vm935_vm2, %v3887_v27, 0  ;;  %v924_v41 = vmul.f32 0.5, %v800_v30  ;;  %v3906_v46 = vpack.c.bf16 %v923_v34, %v923_v34 }
 0x233   : > { %3307 = vmatpush3.bf16.xpose.msra.mxu1 %v940_v32  ;;  %v1078_v54 = vsel %vm935_vm2, %v3908_v47, 0  ;;  %v3932_v59 = vpack.c.bf16 %v926_v55, %v926_v55 }
 0x234   : > { %v3304_v36 = vpop.f32.mrb[4].mxu0  ;;  %v986_v37 = vsel %vm935_vm2, %v3889_v31, 0  ;;  %3318 = vmatprep.subr.bf16.mxu1 %v3688_v14  ;;  %v3910_v49 = vpack.c.bf16 %v924_v41, %v924_v41 }
 0x235   : > { %v3899_v38 = vadd.f32 %v3304_v36, %v3153_v33  ;;  %v908_v39 = vpop.f32.mrb[5].mxu0  ;;  %3313 = vmatpush3.bf16.xpose.msra.mxu0 %v986_v37 }
 0x236   : > { %v3305_v42 = vpop.f32.mrb[6].mxu0  ;;  %3324 = vmatprep.subr.bf16.mxu0 %v3688_v14  ;;  %v909_v50 = vadd.f32 %v3153_v33, %v908_v39 }
 0x237   : > { %v3904_v43 = vadd.f32 %v3305_v42, %v3153_v33  ;;  %v911_v44 = vpop.f32.mrb[7].mxu0  ;;  %v3974_v55 = vpack.c.bf16 %v3899_v38, %v3899_v38 }
 0x238   : > { %v912_v53 = vadd.f32 %v3153_v33, %v911_v44  ;;  %v3925_v56 = vpack.c.bf16 %v909_v50, %v909_v50 }
 0x23a   : > { %3309 = vmatmul.mubr.msk.bf16.vlgmr.msra.gmra.mrb[4].mxu1 %vm935_vm2, %v3906_v46  ;;  %v3930_v58 = vpack.c.bf16 %v912_v53, %v912_v53  ;;  %v1178_v60 = vsel %vm1176_vm3, %v3925_v56, 0 }
 0x23b   : > { %3319 = vmatpush3.bf16.xpose.msra.mxu1 %v1032_v51  ;;  %3320 = vmatprep.mubr.msk.bf16.mxu1 %vm3689_vm1, %v3688_v14 }
 0x23c   : > { %3315 = vmatmul.mubr.msk.bf16.vlgmr.msra.gmra.mrb[8].mxu0 %vm935_vm2, %v3910_v49  ;;  %3330 = vmatprep.subr.bf16.mxu1 %v3688_v14  ;;  %v1224_v61 = vsel %vm1176_vm3, %v3930_v58, 0 }
 0x23d   : > { %3325 = vmatpush3.bf16.xpose.msra.mxu0 %v1078_v54  ;;  %3326 = vmatprep.mubr.msk.bf16.mxu0 %vm3689_vm1, %v3688_v14 }
 0x23e   : > { %3336 = vmatprep.subr.bf16.mxu0 %v3688_v14 }
 0x242   : > { %3321 = vmatmul.mubr.msk.bf16.vlgmr.msra.gmra.mrb[8].mxu1 %vm935_vm2, %v3928_v57 }
 0x243   : > { %3331 = vmatpush3.bf16.msra.mxu1 %v1178_v60  ;;  %3332 = vmatprep.mubr.msk.bf16.mxu1 %vm3689_vm1, %v3688_v14 }
 0x244   : > { %3327 = vmatmul.mubr.msk.bf16.vlgmr.msra.gmra.mrb[12].mxu0 %vm935_vm2, %v3932_v59  ;;  %3342 = vmatprep.subr.bf16.mxu1 %v3688_v14 }
 0x245   : > { %3337 = vmatpush3.bf16.msra.mxu0 %v1224_v61  ;;  %3338 = vmatprep.mubr.msk.bf16.mxu0 %vm3689_vm1, %v3688_v14 }
 0x246   : > { %3348 = vmatprep.subr.bf16.mxu0 %v3688_v14 }
 0x30d   : > { %v976_v62 = vpop.f32.mrb[4].mxu1 }
 0x30e   : > { %v3310_v63 = vpop.f32.mrb[5].mxu1  ;;  %v1121_v0 = vsel %vm1120_vm4, %v976_v62, -inf }
 0x30f   : > { %v1022_v1 = vpop.f32.mrb[8].mxu0  ;;  %1122 = vmax.xlane.f32.xlu0 %v1121_v0  ;;  %v979_v2 = vpop.f32.mrb[6].mxu1 }
 0x310   : > { %v3311_v3 = vpop.f32.mrb[7].mxu1  ;;  %v3316_v7 = vpop.f32.mrb[9].mxu0  ;;  %v1124_v9 = vsel %vm1120_vm4, %v1022_v1, -inf }
 0x311   : > { %1125 = vmax.xlane.f32.xlu1 %v1124_v9  ;;  %v1025_v10 = vpop.f32.mrb[10].mxu0 }
 0x312   : > { %v3317_v11 = vpop.f32.mrb[11].mxu0 }
 0x315   : > { %v1068_v12 = vpop.f32.mrb[8].mxu1 }
 0x316   : > { %v3322_v13 = vpop.f32.mrb[9].mxu1  ;;  %v1127_v15 = vsel %vm1120_vm4, %v1068_v12, -inf }
 0x317   : > { %v1114_v16 = vpop.f32.mrb[12].mxu0  ;;  %1128 = vmax.xlane.f32.xlu0 %v1127_v15  ;;  %v1071_v17 = vpop.f32.mrb[10].mxu1 }
 0x318   : > { %v3323_v18 = vpop.f32.mrb[11].mxu1  ;;  %v3328_v19 = vpop.f32.mrb[13].mxu0  ;;  %v1130_v20 = vsel %vm1120_vm4, %v1114_v16, -inf }
 0x319   : > { %1131 = vmax.xlane.f32.xlu1 %v1130_v20  ;;  %v1117_v21 = vpop.f32.mrb[14].mxu0 }
 0x31a   : > { %v3329_v22 = vpop.f32.mrb[15].mxu0 }
 0x39c   : > { %v1123_v23 = vpop.xlane.xlu0 %1122 }
 0x39d   : > { %v1133_v24 = vsub.f32 %v976_v62, %v1123_v23  ;;  %v3978_v62 = vpack.c.bf16 %v3904_v43, %v3904_v43 }
 0x39e   : > { %v1126_v25 = vpop.xlane.xlu1 %1125 }
 0x39f   : > { %v1137_v26 = vmul.f32 1.442695, %v1133_v24  ;;  %v1134_v28 = vsub.f32 %v1022_v1, %v1126_v25  ;;  %v1270_v1 = vsel %vm1176_vm3, %v3974_v55, 0  ;;  %v1316_v38 = vsel %vm1176_vm3, %v3978_v62, 0 }
 0x3a1   : > { %3592 = vpow2.f32 %v1137_v26  ;;  %v1139_v29 = vmul.f32 1.442695, %v1134_v28 }
 0x3a3   : > { %3594 = vpow2.f32 %v1139_v29 }
 0x3a4   : > { %v1129_v30 = vpop.xlane.xlu0 %1128 }
 0x3a5   : > { %v1135_v32 = vsub.f32 %v1068_v12, %v1129_v30 }
 0x3a6   : > { %v1132_v42 = vpop.xlane.xlu1 %1131 }
 0x3a7   : > { %v1141_v33 = vmul.f32 1.442695, %v1135_v32  ;;  %v1136_v44 = vsub.f32 %v1114_v16, %v1132_v42 }
 0x3a9   : > { %3596 = vpow2.f32 %v1141_v33  ;;  %v1143_v45 = vmul.f32 1.442695, %v1136_v44 }
 0x3ab   : > { %v3593_v34 = vpop.eup %3592  ;;  %3598 = vpow2.f32 %v1143_v45 }
 0x3ac   : > { %v1145_v35 = vsel %vm1120_vm4, %v3593_v34, 0.0 }
 0x3ad   : > { %v3595_v36 = vpop.eup %3594  ;;  %1146 = vadd.xlane.f32.xlu0 %v1145_v35 }
 0x3ae   : > { %v1148_v37 = vsel %vm1120_vm4, %v3595_v36, 0.0 }
 0x3af   : > { %1149 = vadd.xlane.f32.xlu1 %v1148_v37 }
 0x3b3   : > { %v3597_v39 = vpop.eup %3596 }
 0x3b4   : > { %v1151_v41 = vsel %vm1120_vm4, %v3597_v39, 0.0 }
 0x3b5   : > { %1152 = vadd.xlane.f32.xlu0 %v1151_v41  ;;  %v3599_v48 = vpop.eup %3598 }
 0x3b6   : > { %v1154_v50 = vsel %vm1120_vm4, %v3599_v48, 0.0 }
 0x3c0   : > { %1414 = vrot.lane.b32.xlu1 %v3889_v31, %s3690_s21 }
 0x3c4   : > { %1359 = vrot.lane.b32.xlu1 %v3906_v46, %s3690_s21 }
 0x3cb   : > { %1362 = vrot.lane.b32.xlu0 %v3887_v27, %s3690_s21 }
 0x3cf   : > { %1466 = vrot.lane.b32.xlu0 %v3901_v40, %s3690_s21 }
 0x3d3   : > { %1463 = vrot.lane.b32.xlu0 %v3928_v57, %s3690_s21 }
 0x3e8   : > { %1155 = vadd.xlane.f32.xlu1 %v1154_v50 }
 0x3f9   : > { %1411 = vrot.lane.b32.xlu1 %v3910_v49, %s3690_s21 }
 0x3fd   : > { %1518 = vrot.lane.b32.xlu1 %v3908_v47, %s3690_s21 }
 0x401   : > { %1515 = vrot.lane.b32.xlu1 %v3932_v59, %s3690_s21 }
 0x43a   : > { %v1147_v51 = vpop.xlane.xlu0 %1146 }
 0x43b   : > { %3600 = vrcp.f32 %v1147_v51 }
 0x43c   : > { %v1150_v52 = vpop.xlane.xlu1 %1149 }
 0x43d   : > { %3602 = vrcp.f32 %v1150_v52 }
 0x440   : > { %v1415_v11 = vpop.permute.xlu1 %1414 }
 0x441   : > { %v1420_v22 = vsel %vm935_vm2, %v1415_v11, 0 }
 0x442   : > { %v1153_v53 = vpop.xlane.xlu0 %1152 }
 0x443   : > { %3604 = vrcp.f32 %v1153_v53 }
 0x444   : > { %v1360_v13 = vpop.permute.xlu1 %1359 }
 0x445   : > { %v3601_v54 = vpop.eup %3600 }
 0x446   : > { %v1158_v60 = vmul.f32 %v3601_v54, %v3593_v34  ;;  %v1363_v7 = vpop.permute.xlu0 %1362 }
 0x447   : > { %v3603_v61 = vpop.eup %3602  ;;  %v1368_v10 = vsel %vm935_vm2, %v1363_v7, 0 }
 0x448   : > { %v1160_v63 = vmul.f32 %v3603_v61, %v3595_v36  ;;  %v1165_v0 = vpack.c.bf16 %v1158_v60, %v1158_v60 }
 0x44a   : > { %3333 = vmatmul.mubr.msk.bf16.vlgmr.msra.gmra.mrb[12].mxu1 %vm1120_vm4, %v1165_v0  ;;  %v1166_v2 = vpack.c.bf16 %v1160_v63, %v1160_v63  ;;  %v1467_v12 = vpop.permute.xlu0 %1466 }
 0x44b   : > { %3343 = vmatpush3.bf16.msra.mxu1 %v1270_v1  ;;  %3344 = vmatprep.mubr.msk.bf16.mxu1 %vm3689_vm1, %v3688_v14  ;;  %v1472_v15 = vsel %vm935_vm2, %v1467_v12, 0 }
 0x44c   : > { %3339 = vmatmul.mubr.msk.bf16.vlgmr.msra.gmra.mrb[16].mxu0 %vm1120_vm4, %v1166_v2  ;;  %3354 = vmatprep.subr.bf16.mxu1 %v3688_v14 }
 0x44d   : > { %v3605_v43 = vpop.eup %3604  ;;  %3349 = vmatpush3.bf16.msra.mxu0 %v1316_v38  ;;  %3350 = vmatprep.mubr.msk.bf16.mxu0 %vm3689_vm1, %v3688_v14 }
 0x44e   : > { %v1162_v3 = vmul.f32 %v3605_v43, %v3597_v39  ;;  %3360 = vmatprep.subr.bf16.mxu0 %v3688_v14  ;;  %v1464_v16 = vpop.permute.xlu0 %1463 }
 0x450   : > { %v1167_v9 = vpack.c.bf16 %v1162_v3, %v1162_v3 }
 0x452   : > { %3345 = vmatmul.mubr.msk.bf16.vlgmr.msra.gmra.mrb[16].mxu1 %vm1120_vm4, %v1167_v9 }
 0x453   : > { %3356 = vmatprep.mubr.msk.bf16.mxu1 %vm3689_vm1, %v3688_v14 }
 0x454   : > { %3355 = vmatpush3.bf16.xpose.msra.mxu1 %v1368_v10 }
 0x455   : > { %3366 = vmatprep.subr.bf16.mxu1 %v3688_v14 }
 0x45b   : > { %3357 = vmatmul.mubr.msk.bf16.vlgmr.msra.gmra.mrb[20].mxu1 %vm935_vm2, %v1360_v13 }
 0x45c   : > { %3367 = vmatpush3.bf16.xpose.msra.mxu1 %v1472_v15  ;;  %3368 = vmatprep.mubr.msk.bf16.mxu1 %vm3689_vm1, %v3688_v14 }
 0x45d   : > { %3378 = vmatprep.subr.bf16.mxu1 %v3688_v14 }
 0x463   : > { %3369 = vmatmul.mubr.msk.bf16.vlgmr.msra.gmra.mrb[24].mxu1 %vm935_vm2, %v1464_v16 }
 0x464   : > { %3380 = vmatprep.mubr.msk.bf16.mxu1 %vm3689_vm1, %v3688_v14 }
 0x475   : > { %v1156_v17 = vpop.xlane.xlu1 %1155 }
 0x476   : > { %3606 = vrcp.f32 %v1156_v17 }
 0x479   : > { %v1412_v21 = vpop.permute.xlu1 %1411 }
 0x47d   : > { %v1519_v23 = vpop.permute.xlu1 %1518 }
 0x47e   : > { %v1524_v24 = vsel %vm935_vm2, %v1519_v23, 0 }
 0x480   : > { %v3607_v18 = vpop.eup %3606 }
 0x481   : > { %v1164_v19 = vmul.f32 %v3607_v18, %v3599_v48  ;;  %v1516_v25 = vpop.permute.xlu1 %1515 }
 0x483   : > { %v1168_v20 = vpack.c.bf16 %v1164_v19, %v1164_v19 }
 0x485   : > { %3351 = vmatmul.mubr.msk.bf16.vlgmr.msra.gmra.mrb[20].mxu0 %vm1120_vm4, %v1168_v20 }
 0x486   : > { %3361 = vmatpush3.bf16.xpose.msra.mxu0 %v1420_v22  ;;  %3362 = vmatprep.mubr.msk.bf16.mxu0 %vm3689_vm1, %v3688_v14 }
 0x487   : > { %3372 = vmatprep.subr.bf16.mxu0 %v3688_v14 }
 0x48d   : > { %3363 = vmatmul.mubr.msk.bf16.vlgmr.msra.gmra.mrb[24].mxu0 %vm935_vm2, %v1412_v21 }
 0x48e   : > { %3373 = vmatpush3.bf16.xpose.msra.mxu0 %v1524_v24  ;;  %3374 = vmatprep.mubr.msk.bf16.mxu0 %vm3689_vm1, %v3688_v14 }
 0x48f   : > { %3384 = vmatprep.subr.bf16.mxu0 %v3688_v14 }
 0x495   : > { %3375 = vmatmul.mubr.msk.bf16.vlgmr.msra.gmra.mrb[28].mxu0 %vm935_vm2, %v1516_v25 }
 0x496   : > { %3386 = vmatprep.mubr.msk.bf16.mxu0 %vm3689_vm1, %v3688_v14 }
 0x51d   : > { %v4018_v26 = vpop.f32.mrb[12].mxu1 }
 0x51e   : > { %v3334_v28 = vpop.f32.mrb[13].mxu1 }
 0x51f   : > { %v1217_v29 = vpop.f32.mrb[14].mxu1  ;;  %v4020_v30 = vpop.f32.mrb[16].mxu0 }
 0x520   : > { %v3335_v32 = vpop.f32.mrb[15].mxu1  ;;  %v3340_v33 = vpop.f32.mrb[17].mxu0 }
 0x521   : > { %v1263_v34 = vpop.f32.mrb[18].mxu0 }
 0x522   : > { %v3341_v35 = vpop.f32.mrb[19].mxu0 }
 0x525   : > { %v4022_v36 = vpop.f32.mrb[16].mxu1 }
 0x526   : > { %v3346_v37 = vpop.f32.mrb[17].mxu1 }
 0x527   : > { %v1309_v39 = vpop.f32.mrb[18].mxu1 }
 0x528   : > { %v3347_v41 = vpop.f32.mrb[19].mxu1 }
 0x52e   : > { %v1404_v42 = vpop.f32.mrb[20].mxu1 }
 0x52f   : > { %v3358_v44 = vpop.f32.mrb[21].mxu1  ;;  %v1566_v45 = vsel %vm1120_vm4, %v1404_v42, -inf }
 0x530   : > { %1567 = vmax.xlane.f32.xlu0 %v1566_v45  ;;  %v1407_v48 = vpop.f32.mrb[22].mxu1 }
 0x531   : > { %v3359_v50 = vpop.f32.mrb[23].mxu1 }
 0x536   : > { %v1508_v51 = vpop.f32.mrb[24].mxu1 }
 0x537   : > { %v3370_v52 = vpop.f32.mrb[25].mxu1  ;;  %v1572_v53 = vsel %vm1120_vm4, %v1508_v51, -inf }
 0x538   : > { %1573 = vmax.xlane.f32.xlu0 %v1572_v53  ;;  %v1511_v54 = vpop.f32.mrb[26].mxu1 }
 0x539   : > { %v3371_v60 = vpop.f32.mrb[27].mxu1 }
 0x558   : > { %v4026_v61 = vpop.f32.mrb[20].mxu0 }
 0x559   : > { %v3352_v63 = vpop.f32.mrb[21].mxu0 }
 0x55a   : > { %v1355_v0 = vpop.f32.mrb[22].mxu0 }
 0x55b   : > { %v3353_v1 = vpop.f32.mrb[23].mxu0 }
 0x560   : > { %v1456_v2 = vpop.f32.mrb[24].mxu0 }
 0x561   : > { %v3364_v38 = vpop.f32.mrb[25].mxu0  ;;  %v1569_v43 = vsel %vm1120_vm4, %v1456_v2, -inf }
 0x562   : > { %1570 = vmax.xlane.f32.xlu1 %v1569_v43  ;;  %v1459_v3 = vpop.f32.mrb[26].mxu0 }
 0x563   : > { %v3365_v7 = vpop.f32.mrb[27].mxu0 }
 0x568   : > { %v1560_v9 = vpop.f32.mrb[28].mxu0 }
 0x569   : > { %v3376_v10 = vpop.f32.mrb[29].mxu0  ;;  %v1575_v11 = vsel %vm1120_vm4, %v1560_v9, -inf }
 0x56a   : > { %v1563_v12 = vpop.f32.mrb[30].mxu0  ;;  %1576 = vmax.xlane.f32.xlu0 %v1575_v11 }
 0x56b   : > { %v3377_v13 = vpop.f32.mrb[31].mxu0 }
 0x573   : > { %1664 = vrot.lane.b32.xlu1 %v3930_v58, %s3690_s21 }
 0x577   : > { %1713 = vrot.lane.b32.xlu1 %v3974_v55, %s3690_s21 }
 0x57b   : > { %1762 = vrot.lane.b32.xlu1 %v3978_v62, %s3690_s21 }
 0x5bd   : > { %v1568_v15 = vpop.xlane.xlu0 %1567 }
 0x5be   : > { %v1578_v16 = vsub.f32 %v1404_v42, %v1568_v15 }
 0x5c0   : > { %v1582_v17 = vmul.f32 1.442695, %v1578_v16 }
 0x5c2   : > { %3608 = vpow2.f32 %v1582_v17 }
 0x5c5   : > { %v1574_v20 = vpop.xlane.xlu0 %1573 }
 0x5c6   : > { %v1580_v21 = vsub.f32 %v1508_v51, %v1574_v20 }
 0x5c8   : > { %v1586_v24 = vmul.f32 1.442695, %v1580_v21 }
 0x5cc   : > { %v3609_v18 = vpop.eup %3608 }
 0x5cd   : > { %v1590_v19 = vsel %vm1120_vm4, %v3609_v18, 0.0 }
 0x5ce   : > { %1591 = vadd.xlane.f32.xlu0 %v1590_v19 }
 0x5e4   : > { %1615 = vrot.lane.b32.xlu0 %v3925_v56, %s3690_s21  ;;  %s3695_s21 = smov 12  }
 0x5ef   : > { %v1571_v22 = vpop.xlane.xlu1 %1570 }
 0x5f0   : > { %v1579_v23 = vsub.f32 %v1456_v2, %v1571_v22 }
 0x5f2   : > { %v1584_v25 = vmul.f32 1.442695, %v1579_v23 }
 0x5f3   : > { %v1665_v28 = vpop.permute.xlu1 %1664 }
 0x5f4   : > { %3610 = vpow2.f32 %v1584_v25  ;;  %v1670_v29 = vsel %vm1176_vm3, %v1665_v28, 0 }
 0x5f5   : > { %3612 = vpow2.f32 %v1586_v24  ;;  %3385 = vmatpush3.bf16.msra.mxu0 %v1670_v29 }
 0x5f6   : > { %3396 = vmatprep.subr.bf16.mxu0 %v3688_v14 }
 0x5f7   : > { %v1577_v37 = vpop.xlane.xlu0 %1576  ;;  %v1714_v53 = vpop.permute.xlu1 %1713 }
 0x5f8   : > { %v1581_v39 = vsub.f32 %v1560_v9, %v1577_v37  ;;  %v1719_v60 = vsel %vm1176_vm3, %v1714_v53, 0 }
 0x5fa   : > { %v1588_v41 = vmul.f32 1.442695, %v1581_v39 }
 0x5fb   : > { %v1763_v63 = vpop.permute.xlu1 %1762 }
 0x5fc   : > { %3614 = vpow2.f32 %v1588_v41  ;;  %v1768_v10 = vsel %vm1176_vm3, %v1763_v63, 0 }
 0x5fe   : > { %v3611_v32 = vpop.eup %3610 }
 0x5ff   : > { %v3613_v33 = vpop.eup %3612  ;;  %v1593_v34 = vsel %vm1120_vm4, %v3611_v32, 0.0 }
 0x600   : > { %1594 = vadd.xlane.f32.xlu1 %v1593_v34  ;;  %v1596_v35 = vsel %vm1120_vm4, %v3613_v33, 0.0 }
 0x603   : > { %1597 = vadd.xlane.f32.xlu0 %v1596_v35 }
 0x606   : > { %v3615_v42 = vpop.eup %3614 }
 0x607   : > { %v1599_v44 = vsel %vm1120_vm4, %v3615_v42, 0.0 }
 0x611   : > { %1862 = vrot.lane.b32.xlu1 %v3889_v31, %s3691_s22 }
 0x619   : > { %1812 = vrot.lane.b32.xlu0 %v3887_v27, %s3691_s22 }
 0x61d   : > { %1810 = vrot.lane.b32.xlu0 %v3906_v46, %s3691_s22 }
 0x621   : > { %1912 = vrot.lane.b32.xlu0 %v3901_v40, %s3691_s22 }
 0x625   : > { %1910 = vrot.lane.b32.xlu0 %v3928_v57, %s3691_s22 }
 0x635   : > { %1600 = vadd.xlane.f32.xlu1 %v1599_v44 }
 0x646   : > { %1860 = vrot.lane.b32.xlu1 %v3910_v49, %s3691_s22 }
 0x64a   : > { %1962 = vrot.lane.b32.xlu1 %v3908_v47, %s3691_s22 }
 0x64e   : > { %1960 = vrot.lane.b32.xlu1 %v3932_v59, %s3691_s22 }
 0x65b   : > { %v1592_v45 = vpop.xlane.xlu0 %1591 }
 0x65c   : > { %3616 = vrcp.f32 %v1592_v45 }
 0x65f   : > { %v1616_v48 = vpop.permute.xlu0 %1615 }
 0x660   : > { %v1621_v50 = vsel %vm1176_vm3, %v1616_v48, 0 }
 0x661   : > { %3379 = vmatpush3.bf16.msra.mxu1 %v1621_v50 }
 0x662   : > { %3390 = vmatprep.subr.bf16.mxu1 %v3688_v14 }
 0x666   : > { %v3617_v51 = vpop.eup %3616 }
 0x667   : > { %v1603_v52 = vmul.f32 %v3617_v51, %v3609_v18 }
 0x669   : > { %v1610_v54 = vpack.c.bf16 %v1603_v52, %v1603_v52 }
 0x66b   : > { %3381 = vmatmul.mubr.msk.bf16.vlgmr.msra.gmra.mrb[28].mxu1 %vm1120_vm4, %v1610_v54 }
 0x66c   : > { %3391 = vmatpush3.bf16.msra.mxu1 %v1719_v60  ;;  %3392 = vmatprep.mubr.msk.bf16.mxu1 %vm3689_vm1, %v3688_v14 }
 0x66d   : > { %3402 = vmatprep.subr.bf16.mxu1 %v3688_v14 }
 0x68d   : > { %v1595_v0 = vpop.xlane.xlu1 %1594 }
 0x68e   : > { %3618 = vrcp.f32 %v1595_v0 }
 0x690   : > { %v1598_v1 = vpop.xlane.xlu0 %1597 }
 0x691   : > { %3620 = vrcp.f32 %v1598_v1  ;;  %v1863_v18 = vpop.permute.xlu1 %1862 }
 0x692   : > { %v1868_v24 = vsel %vm935_vm2, %v1863_v18, 0 }
 0x694   : > { %v1813_v43 = vpop.permute.xlu0 %1812 }
 0x695   : > { %v1818_v13 = vsel %vm935_vm2, %v1813_v43, 0 }
 0x698   : > { %v3619_v2 = vpop.eup %3618  ;;  %v1811_v12 = vpop.permute.xlu0 %1810 }
 0x699   : > { %v1605_v38 = vmul.f32 %v3619_v2, %v3611_v32 }
 0x69b   : > { %v3621_v3 = vpop.eup %3620  ;;  %v1611_v7 = vpack.c.bf16 %v1605_v38, %v1605_v38 }
 0x69c   : > { %v1607_v9 = vmul.f32 %v3621_v3, %v3613_v33  ;;  %v1913_v15 = vpop.permute.xlu0 %1912 }
 0x69d   : > { %3387 = vmatmul.mubr.msk.bf16.vlgmr.msra.gmra.mrb[32].mxu0 %vm1120_vm4, %v1611_v7  ;;  %v1918_v16 = vsel %vm935_vm2, %v1913_v15, 0 }
 0x69e   : > { %3397 = vmatpush3.bf16.msra.mxu0 %v1768_v10  ;;  %v1612_v11 = vpack.c.bf16 %v1607_v9, %v1607_v9  ;;  %3398 = vmatprep.mubr.msk.bf16.mxu0 %vm3689_vm1, %v3688_v14 }
 0x69f   : > { %3408 = vmatprep.subr.bf16.mxu0 %v3688_v14 }
 0x6a0   : > { %3393 = vmatmul.mubr.msk.bf16.vlgmr.msra.gmra.mrb[32].mxu1 %vm1120_vm4, %v1612_v11  ;;  %v1911_v17 = vpop.permute.xlu0 %1910 }
 0x6a1   : > { %3403 = vmatpush3.bf16.xpose.msra.mxu1 %v1818_v13  ;;  %3404 = vmatprep.mubr.msk.bf16.mxu1 %vm3689_vm1, %v3688_v14 }
 0x6a2   : > { %3414 = vmatprep.subr.bf16.mxu1 %v3688_v14 }
 0x6a8   : > { %3405 = vmatmul.mubr.msk.bf16.vlgmr.msra.gmra.mrb[36].mxu1 %vm935_vm2, %v1811_v12 }
 0x6a9   : > { %3415 = vmatpush3.bf16.xpose.msra.mxu1 %v1918_v16  ;;  %3416 = vmatprep.mubr.msk.bf16.mxu1 %vm3689_vm1, %v3688_v14 }
 0x6aa   : > { %3426 = vmatprep.subr.bf16.mxu1 %v3688_v14 }
 0x6b0   : > { %3417 = vmatmul.mubr.msk.bf16.vlgmr.msra.gmra.mrb[40].mxu1 %vm935_vm2, %v1911_v17 }
 0x6b1   : > { %3428 = vmatprep.mubr.msk.bf16.mxu1 %vm3689_vm1, %v3688_v14 }
 0x6c2   : > { %v1601_v19 = vpop.xlane.xlu1 %1600 }
 0x6c3   : > { %3622 = vrcp.f32 %v1601_v19 }
 0x6c6   : > { %v1861_v23 = vpop.permute.xlu1 %1860 }
 0x6ca   : > { %v1963_v25 = vpop.permute.xlu1 %1962 }
 0x6cb   : > { %v1968_v28 = vsel %vm935_vm2, %v1963_v25, 0 }
 0x6cd   : > { %v3623_v20 = vpop.eup %3622 }
 0x6ce   : > { %v1609_v21 = vmul.f32 %v3623_v20, %v3615_v42  ;;  %v1961_v29 = vpop.permute.xlu1 %1960 }
 0x6d0   : > { %v1613_v22 = vpack.c.bf16 %v1609_v21, %v1609_v21 }
 0x6d2   : > { %3399 = vmatmul.mubr.msk.bf16.vlgmr.msra.gmra.mrb[36].mxu0 %vm1120_vm4, %v1613_v22 }
 0x6d3   : > { %3409 = vmatpush3.bf16.xpose.msra.mxu0 %v1868_v24  ;;  %3410 = vmatprep.mubr.msk.bf16.mxu0 %vm3689_vm1, %v3688_v14 }
 0x6d4   : > { %3420 = vmatprep.subr.bf16.mxu0 %v3688_v14 }
 0x6da   : > { %3411 = vmatmul.mubr.msk.bf16.vlgmr.msra.gmra.mrb[40].mxu0 %vm935_vm2, %v1861_v23 }
 0x6db   : > { %3421 = vmatpush3.bf16.xpose.msra.mxu0 %v1968_v28  ;;  %3422 = vmatprep.mubr.msk.bf16.mxu0 %vm3689_vm1, %v3688_v14 }
 0x6dc   : > { %3432 = vmatprep.subr.bf16.mxu0 %v3688_v14 }
 0x6e2   : > { %3423 = vmatmul.mubr.msk.bf16.vlgmr.msra.gmra.mrb[44].mxu0 %vm935_vm2, %v1961_v29 }
 0x6e3   : > { %3434 = vmatprep.mubr.msk.bf16.mxu0 %vm3689_vm1, %v3688_v14 }
 0x73e   : > { %v4098_v32 = vpop.f32.mrb[28].mxu1 }
 0x73f   : > { %v3382_v33 = vpop.f32.mrb[29].mxu1 }
 0x740   : > { %v1660_v34 = vpop.f32.mrb[30].mxu1 }
 0x741   : > { %v3383_v35 = vpop.f32.mrb[31].mxu1 }
 0x770   : > { %v4100_v37 = vpop.f32.mrb[32].mxu0 }
 0x771   : > { %v3554_v39 = vpack.i.bf16 %v4100_v37, %v4098_v32  ;;  %v3388_v41 = vpop.f32.mrb[33].mxu0 }
 0x772   : > { %v1709_v42 = vpop.f32.mrb[34].mxu0 }
 0x773   : > { %v4104_v44 = vpop.f32.mrb[32].mxu1  ;;  %v3389_v45 = vpop.f32.mrb[35].mxu0 }
 0x774   : > { %v3394_v48 = vpop.f32.mrb[33].mxu1 }
 0x775   : > { %v1758_v50 = vpop.f32.mrb[34].mxu1 }
 0x776   : > { %v3395_v51 = vpop.f32.mrb[35].mxu1 }
 0x77b   : > { %v1854_v52 = vpop.f32.mrb[36].mxu1 }
 0x77c   : > { %v3406_v53 = vpop.f32.mrb[37].mxu1  ;;  %v2010_v54 = vsel %vm1120_vm4, %v1854_v52, -inf }
 0x77d   : > { %2011 = vmax.xlane.f32.xlu0 %v2010_v54  ;;  %v1857_v60 = vpop.f32.mrb[38].mxu1 }
 0x77e   : > { %v3407_v63 = vpop.f32.mrb[39].mxu1 }
 0x783   : > { %v1954_v0 = vpop.f32.mrb[40].mxu1 }
 0x784   : > { %v3418_v1 = vpop.f32.mrb[41].mxu1  ;;  %v2016_v2 = vsel %vm1120_vm4, %v1954_v0, -inf }
 0x785   : > { %2017 = vmax.xlane.f32.xlu0 %v2016_v2  ;;  %v1957_v38 = vpop.f32.mrb[42].mxu1 }
 0x786   : > { %v3419_v43 = vpop.f32.mrb[43].mxu1 }
 0x7a5   : > { %v4108_v3 = vpop.f32.mrb[36].mxu0 }
 0x7a6   : > { %v3559_v7 = vpack.i.bf16 %v4108_v3, %v4104_v44  ;;  %v3400_v9 = vpop.f32.mrb[37].mxu0 }
 0x7a7   : > { %v1807_v10 = vpop.f32.mrb[38].mxu0 }
 0x7a8   : > { %v3401_v11 = vpop.f32.mrb[39].mxu0 }
 0x7ad   : > { %v1904_v12 = vpop.f32.mrb[40].mxu0 }
 0x7ae   : > { %v3412_v13 = vpop.f32.mrb[41].mxu0  ;;  %v2013_v15 = vsel %vm1120_vm4, %v1904_v12, -inf }
 0x7af   : > { %2014 = vmax.xlane.f32.xlu1 %v2013_v15  ;;  %v1907_v16 = vpop.f32.mrb[42].mxu0 }
 0x7b0   : > { %v3413_v17 = vpop.f32.mrb[43].mxu0 }
 0x7b5   : > { %v2004_v18 = vpop.f32.mrb[44].mxu0 }
 0x7b6   : > { %v3424_v19 = vpop.f32.mrb[45].mxu0  ;;  %v2019_v20 = vsel %vm1120_vm4, %v2004_v18, -inf }
 0x7b7   : > { %v2007_v21 = vpop.f32.mrb[46].mxu0  ;;  %2020 = vmax.xlane.f32.xlu0 %v2019_v20 }
 0x7b8   : > { %v3425_v22 = vpop.f32.mrb[47].mxu0 }
 0x7c0   : > { %2106 = vrot.lane.b32.xlu1 %v3930_v58, %s3691_s22 }
 0x7c4   : > { %2154 = vrot.lane.b32.xlu1 %v3974_v55, %s3691_s22 }
 0x7c8   : > { %2202 = vrot.lane.b32.xlu1 %v3978_v62, %s3691_s22 }
 0x80a   : > { %v2012_v23 = vpop.xlane.xlu0 %2011 }
 0x80b   : > { %v2022_v24 = vsub.f32 %v1854_v52, %v2012_v23 }
 0x80d   : > { %v2026_v25 = vmul.f32 1.442695, %v2022_v24 }
 0x80f   : > { %3624 = vpow2.f32 %v2026_v25 }
 0x812   : > { %v2018_v33 = vpop.xlane.xlu0 %2017 }
 0x813   : > { %v2024_v34 = vsub.f32 %v1954_v0, %v2018_v33 }
 0x815   : > { %v2030_v42 = vmul.f32 1.442695, %v2024_v34 }
 0x819   : > { %v3625_v28 = vpop.eup %3624 }
 0x81a   : > { %v2034_v29 = vsel %vm1120_vm4, %v3625_v28, 0.0 }
 0x81b   : > { %2035 = vadd.xlane.f32.xlu0 %v2034_v29 }
 0x831   : > { %2058 = vrot.lane.b32.xlu0 %v3925_v56, %s3691_s22  ;;  %s4372_s22 = sshll.u32 %s4378_s27, 5 }
 0x83c   : > { %v2015_v35 = vpop.xlane.xlu1 %2014 }
 0x83d   : > { %v2023_v41 = vsub.f32 %v1904_v12, %v2015_v35 }
 0x83f   : > { %v2028_v45 = vmul.f32 1.442695, %v2023_v41 }
 0x840   : > { %v2107_v48 = vpop.permute.xlu1 %2106 }
 0x841   : > { %3626 = vpow2.f32 %v2028_v45  ;;  %v2112_v50 = vsel %vm1176_vm3, %v2107_v48, 0 }
 0x842   : > { %3628 = vpow2.f32 %v2030_v42  ;;  %3433 = vmatpush3.bf16.msra.mxu0 %v2112_v50 }
 0x843   : > { %3444 = vmatprep.subr.bf16.mxu0 %v3688_v14 }
 0x844   : > { %v2021_v60 = vpop.xlane.xlu0 %2020  ;;  %v2155_v38 = vpop.permute.xlu1 %2154 }
 0x845   : > { %v2025_v63 = vsub.f32 %v2004_v18, %v2021_v60 }
 0x847   : > { %v2032_v0 = vmul.f32 1.442695, %v2025_v63 }
 0x849   : > { %3630 = vpow2.f32 %v2032_v0 }
 0x84b   : > { %v3627_v51 = vpop.eup %3626 }
 0x84c   : > { %v3629_v52 = vpop.eup %3628  ;;  %v2037_v53 = vsel %vm1120_vm4, %v3627_v51, 0.0 }
 0x84d   : > { %2038 = vadd.xlane.f32.xlu1 %v2037_v53  ;;  %v2040_v54 = vsel %vm1120_vm4, %v3629_v52, 0.0 }
 0x850   : > { %2041 = vadd.xlane.f32.xlu0 %v2040_v54 }
 0x853   : > { %v3631_v1 = vpop.eup %3630 }
 0x854   : > { %v2043_v2 = vsel %vm1120_vm4, %v3631_v1, 0.0 }
 0x85e   : > { %2302 = vrot.lane.b32.xlu1 %v3889_v31, %s3692_s2 }
 0x866   : > { %2252 = vrot.lane.b32.xlu0 %v3887_v27, %s3692_s2 }
 0x86a   : > { %2250 = vrot.lane.b32.xlu0 %v3906_v46, %s3692_s2 }
 0x86e   : > { %2352 = vrot.lane.b32.xlu0 %v3901_v40, %s3692_s2 }
 0x872   : > { %2350 = vrot.lane.b32.xlu0 %v3928_v57, %s3692_s2 }
 0x882   : > { %2044 = vadd.xlane.f32.xlu1 %v2043_v2 }
 0x893   : > { %2300 = vrot.lane.b32.xlu1 %v3910_v49, %s3692_s2  ;;  %v2160_v49 = vsel %vm1176_vm3, %v2155_v38, 0 }
 0x897   : > { %2402 = vrot.lane.b32.xlu1 %v3908_v47, %s3692_s2  ;;  %v2203_v47 = vpop.permute.xlu1 %2202 }
 0x898   : > { %v2208_v17 = vsel %vm1176_vm3, %v2203_v47, 0 }
 0x89b   : > { %2400 = vrot.lane.b32.xlu1 %v3932_v59, %s3692_s2 }
 0x8a8   : > { %v2036_v27 = vpop.xlane.xlu0 %2035 }
 0x8a9   : > { %3632 = vrcp.f32 %v2036_v27 }
 0x8ac   : > { %v2059_v31 = vpop.permute.xlu0 %2058 }
 0x8ad   : > { %v2064_v40 = vsel %vm1176_vm3, %v2059_v31, 0 }
 0x8ae   : > { %3427 = vmatpush3.bf16.msra.mxu1 %v2064_v40 }
 0x8af   : > { %3438 = vmatprep.subr.bf16.mxu1 %v3688_v14 }
 0x8b3   : > { %v3633_v46 = vpop.eup %3632 }
 0x8b4   : > { %v2047_v57 = vmul.f32 %v3633_v46, %v3625_v28 }
 0x8b6   : > { %v2054_v43 = vpack.c.bf16 %v2047_v57, %v2047_v57 }
 0x8b8   : > { %3429 = vmatmul.mubr.msk.bf16.vlgmr.msra.gmra.mrb[44].mxu1 %vm1120_vm4, %v2054_v43 }
 0x8b9   : > { %3439 = vmatpush3.bf16.msra.mxu1 %v2160_v49  ;;  %3440 = vmatprep.mubr.msk.bf16.mxu1 %vm3689_vm1, %v3688_v14 }
 0x8ba   : > { %3450 = vmatprep.subr.bf16.mxu1 %v3688_v14 }
 0x8da   : > { %v2039_v59 = vpop.xlane.xlu1 %2038 }
 0x8db   : > { %3634 = vrcp.f32 %v2039_v59 }
 0x8dd   : > { %v2042_v9 = vpop.xlane.xlu0 %2041 }
 0x8de   : > { %3636 = vrcp.f32 %v2042_v9  ;;  %v2303_v24 = vpop.permute.xlu1 %2302 }
 0x8df   : > { %v2308_v35 = vsel %vm935_vm2, %v2303_v24, 0 }
 0x8e1   : > { %v2253_v12 = vpop.permute.xlu0 %2252 }
 0x8e2   : > { %v2258_v20 = vsel %vm935_vm2, %v2253_v12, 0 }
 0x8e5   : > { %v3635_v10 = vpop.eup %3634  ;;  %v2251_v19 = vpop.permute.xlu0 %2250 }
 0x8e6   : > { %v2049_v11 = vmul.f32 %v3635_v10, %v3627_v51 }
 0x8e8   : > { %v3637_v13 = vpop.eup %3636  ;;  %v2055_v15 = vpack.c.bf16 %v2049_v11, %v2049_v11 }
 0x8e9   : > { %v2051_v16 = vmul.f32 %v3637_v13, %v3629_v52  ;;  %v2353_v21 = vpop.permute.xlu0 %2352 }
 0x8ea   : > { %3435 = vmatmul.mubr.msk.bf16.vlgmr.msra.gmra.mrb[48].mxu0 %vm1120_vm4, %v2055_v15  ;;  %v2358_v22 = vsel %vm935_vm2, %v2353_v21, 0 }
 0x8eb   : > { %3445 = vmatpush3.bf16.msra.mxu0 %v2208_v17  ;;  %v2056_v18 = vpack.c.bf16 %v2051_v16, %v2051_v16  ;;  %3446 = vmatprep.mubr.msk.bf16.mxu0 %vm3689_vm1, %v3688_v14 }
 0x8ec   : > { %3456 = vmatprep.subr.bf16.mxu0 %v3688_v14 }
 0x8ed   : > { %3441 = vmatmul.mubr.msk.bf16.vlgmr.msra.gmra.mrb[48].mxu1 %vm1120_vm4, %v2056_v18  ;;  %v2351_v23 = vpop.permute.xlu0 %2350 }
 0x8ee   : > { %3451 = vmatpush3.bf16.xpose.msra.mxu1 %v2258_v20  ;;  %3452 = vmatprep.mubr.msk.bf16.mxu1 %vm3689_vm1, %v3688_v14 }
 0x8ef   : > { %3462 = vmatprep.subr.bf16.mxu1 %v3688_v14 }
 0x8f5   : > { %3453 = vmatmul.mubr.msk.bf16.vlgmr.msra.gmra.mrb[52].mxu1 %vm935_vm2, %v2251_v19 }
 0x8f6   : > { %3463 = vmatpush3.bf16.xpose.msra.mxu1 %v2358_v22  ;;  %3464 = vmatprep.mubr.msk.bf16.mxu1 %vm3689_vm1, %v3688_v14 }
 0x8f7   : > { %3474 = vmatprep.subr.bf16.mxu1 %v3688_v14 }
 0x8fd   : > { %3465 = vmatmul.mubr.msk.bf16.vlgmr.msra.gmra.mrb[56].mxu1 %vm935_vm2, %v2351_v23 }
 0x8fe   : > { %3476 = vmatprep.mubr.msk.bf16.mxu1 %vm3689_vm1, %v3688_v14 }
 0x90f   : > { %v2045_v25 = vpop.xlane.xlu1 %2044 }
 0x910   : > { %3638 = vrcp.f32 %v2045_v25 }
 0x913   : > { %v2301_v34 = vpop.permute.xlu1 %2300 }
 0x917   : > { %v2403_v41 = vpop.permute.xlu1 %2402 }
 0x918   : > { %v2408_v42 = vsel %vm935_vm2, %v2403_v41, 0 }
 0x91a   : > { %v3639_v28 = vpop.eup %3638 }
 0x91b   : > { %v2053_v29 = vmul.f32 %v3639_v28, %v3631_v1  ;;  %v2401_v45 = vpop.permute.xlu1 %2400 }
 0x91d   : > { %v2057_v33 = vpack.c.bf16 %v2053_v29, %v2053_v29 }
 0x91f   : > { %3447 = vmatmul.mubr.msk.bf16.vlgmr.msra.gmra.mrb[52].mxu0 %vm1120_vm4, %v2057_v33 }
 0x920   : > { %3457 = vmatpush3.bf16.xpose.msra.mxu0 %v2308_v35  ;;  %3458 = vmatprep.mubr.msk.bf16.mxu0 %vm3689_vm1, %v3688_v14 }
 0x921   : > { %3468 = vmatprep.subr.bf16.mxu0 %v3688_v14 }
 0x927   : > { %3459 = vmatmul.mubr.msk.bf16.vlgmr.msra.gmra.mrb[56].mxu0 %vm935_vm2, %v2301_v34 }
 0x928   : > { %3469 = vmatpush3.bf16.xpose.msra.mxu0 %v2408_v42  ;;  %3470 = vmatprep.mubr.msk.bf16.mxu0 %vm3689_vm1, %v3688_v14 }
 0x929   : > { %3480 = vmatprep.subr.bf16.mxu0 %v3688_v14 }
 0x92f   : > { %3471 = vmatmul.mubr.msk.bf16.vlgmr.msra.gmra.mrb[60].mxu0 %vm935_vm2, %v2401_v45 }
 0x930   : > { %3482 = vmatprep.mubr.msk.bf16.mxu0 %vm3689_vm1, %v3688_v14 }
 0x98b   : > { %v4182_v48 = vpop.f32.mrb[44].mxu1 }
 0x98c   : > { %v3430_v50 = vpop.f32.mrb[45].mxu1 }
 0x98d   : > { %v2103_v51 = vpop.f32.mrb[46].mxu1 }
 0x98e   : > { %v3431_v52 = vpop.f32.mrb[47].mxu1 }
 0x9bd   : > { %v2148_v53 = vpop.f32.mrb[48].mxu0 }
 0x9be   : > { %v3564_v54 = vpack.i.bf16 %v2148_v53, %v4182_v48  ;;  %v3436_v60 = vpop.f32.mrb[49].mxu0 }
 0x9bf   : > { %v2151_v63 = vpop.f32.mrb[50].mxu0 }
 0x9c0   : > { %v4185_v0 = vpop.f32.mrb[48].mxu1  ;;  %v3437_v1 = vpop.f32.mrb[51].mxu0 }
 0x9c1   : > { %v3442_v2 = vpop.f32.mrb[49].mxu1 }
 0x9c2   : > { %v2199_v27 = vpop.f32.mrb[50].mxu1 }
 0x9c3   : > { %v3443_v31 = vpop.f32.mrb[51].mxu1 }
 0x9c8   : > { %v2294_v40 = vpop.f32.mrb[52].mxu1 }
 0x9c9   : > { %v3454_v46 = vpop.f32.mrb[53].mxu1  ;;  %v2450_v57 = vsel %vm1120_vm4, %v2294_v40, -inf }
 0x9ca   : > { %2451 = vmax.xlane.f32.xlu0 %v2450_v57  ;;  %v2297_v38 = vpop.f32.mrb[54].mxu1 }
 0x9cb   : > { %v3455_v43 = vpop.f32.mrb[55].mxu1 }
 0x9d0   : > { %v2394_v49 = vpop.f32.mrb[56].mxu1 }
 0x9d1   : > { %v3466_v47 = vpop.f32.mrb[57].mxu1  ;;  %v2456_v59 = vsel %vm1120_vm4, %v2394_v49, -inf }
 0x9d2   : > { %2457 = vmax.xlane.f32.xlu0 %v2456_v59  ;;  %v2397_v9 = vpop.f32.mrb[58].mxu1 }
 0x9d3   : > { %v3467_v10 = vpop.f32.mrb[59].mxu1 }
 0x9f2   : > { %v2244_v11 = vpop.f32.mrb[52].mxu0 }
 0x9f3   : > { %v3569_v12 = vpack.i.bf16 %v2244_v11, %v4185_v0  ;;  %v3448_v13 = vpop.f32.mrb[53].mxu0 }
 0x9f4   : > { %v2247_v15 = vpop.f32.mrb[54].mxu0 }
 0x9f5   : > { %v3449_v16 = vpop.f32.mrb[55].mxu0 }
 0x9fa   : > { %v2344_v17 = vpop.f32.mrb[56].mxu0 }
 0x9fb   : > { %v3460_v18 = vpop.f32.mrb[57].mxu0  ;;  %v2453_v19 = vsel %vm1120_vm4, %v2344_v17, -inf }
 0x9fc   : > { %2454 = vmax.xlane.f32.xlu1 %v2453_v19  ;;  %v2347_v20 = vpop.f32.mrb[58].mxu0 }
 0x9fd   : > { %v3461_v21 = vpop.f32.mrb[59].mxu0  ;;  %v654_v20 = vld [vmem:[%s4353_s8] sm:$0xff] }
 0xa02   : > { %v2444_v22 = vpop.f32.mrb[60].mxu0 }
 0xa03   : > { %v3472_v23 = vpop.f32.mrb[61].mxu0  ;;  %v2459_v24 = vsel %vm1120_vm4, %v2444_v22, -inf }
 0xa04   : > { %v2447_v25 = vpop.f32.mrb[62].mxu0  ;;  %2460 = vmax.xlane.f32.xlu0 %v2459_v24 }
 0xa05   : > { %v3473_v28 = vpop.f32.mrb[63].mxu0 }
 0xa57   : > { %v2452_v29 = vpop.xlane.xlu0 %2451 }
 0xa58   : > { %v2462_v33 = vsub.f32 %v2294_v40, %v2452_v29 }
 0xa5a   : > { %v2466_v34 = vmul.f32 1.442695, %v2462_v33 }
 0xa5c   : > { %3640 = vpow2.f32 %v2466_v34 }
 0xa5f   : > { %v2458_v35 = vpop.xlane.xlu0 %2457 }
 0xa60   : > { %v2464_v41 = vsub.f32 %v2394_v49, %v2458_v35 }
 0xa62   : > { %v2470_v42 = vmul.f32 1.442695, %v2464_v41 }
 0xa64   : > { %3642 = vpow2.f32 %v2470_v42 }
 0xa66   : > { %v3641_v45 = vpop.eup %3640 }
 0xa67   : > { %v2474_v48 = vsel %vm1120_vm4, %v3641_v45, 0.0 }
 0xa68   : > { %2475 = vadd.xlane.f32.xlu0 %v2474_v48 }
 0xa6e   : > { %v3643_v50 = vpop.eup %3642 }
 0xa6f   : > { %v2480_v51 = vsel %vm1120_vm4, %v3643_v50, 0.0 }
 0xa70   : > { %2481 = vadd.xlane.f32.xlu0 %v2480_v51 }
 0xa86   : > { %2498 = vrot.lane.b32.xlu0 %v3925_v56, %s3692_s2 }
 0xa89   : > { %v2455_v52 = vpop.xlane.xlu1 %2454 }
 0xa8a   : > { %v2463_v53 = vsub.f32 %v2344_v17, %v2455_v52  ;;  %3555 = vrot.lane.b32.xlu0 %v3554_v39, %s3693_s23 }
 0xa8c   : > { %v2468_v60 = vmul.f32 1.442695, %v2463_v53 }
 0xa8e   : > { %3644 = vpow2.f32 %v2468_v60  ;;  %3565 = vrot.lane.b32.xlu0 %v3564_v54, %s3694_s24 }
 0xa91   : > { %v2461_v56 = vpop.xlane.xlu0 %2460 }
 0xa92   : > { %v2465_v1 = vsub.f32 %v2444_v22, %v2461_v56 }
 0xa94   : > { %v2472_v2 = vmul.f32 1.442695, %v2465_v1 }
 0xa96   : > { %3646 = vpow2.f32 %v2472_v2 }
 0xa98   : > { %v3645_v63 = vpop.eup %3644 }
 0xa99   : > { %v2477_v0 = vsel %vm1120_vm4, %v3645_v63, 0.0 }
 0xa9a   : > { %2478 = vadd.xlane.f32.xlu1 %v2477_v0 }
 0xaa0   : > { %v3647_v32 = vpop.eup %3646 }
 0xaa1   : > { %v2483_v37 = vsel %vm1120_vm4, %v3647_v32, 0.0 }
 0xaab   : > { %2546 = vrot.lane.b32.xlu1 %v3930_v58, %s3692_s2 }
 0xaaf   : > { %2594 = vrot.lane.b32.xlu1 %v3974_v55, %s3692_s2 }
 0xad3   : > { %2484 = vadd.xlane.f32.xlu1 %v2483_v37 }
 0xae4   : > { %2642 = vrot.lane.b32.xlu1 %v3978_v62, %s3692_s2 }
 0xae8   : > { %3560 = vrot.lane.b32.xlu1 %v3559_v7, %s3693_s23 }
 0xaec   : > { %3570 = vrot.lane.b32.xlu1 %v3569_v12, %s3694_s24  ;;  %s627_s24 = scalar_lea.vmem %s4363_s18, %s4372_s22 }
 0xaf5   : > { %v2476_v58 = vpop.xlane.xlu0 %2475 }
 0xaf6   : > { %3648 = vrcp.f32 %v2476_v58 }
 0xafd   : > { %v2482_v39 = vpop.xlane.xlu0 %2481 }
 0xafe   : > { %3650 = vrcp.f32 %v2482_v39 }
 0xb00   : > { %v3649_v55 = vpop.eup %3648 }
 0xb01   : > { %v2487_v54 = vmul.f32 %v3649_v55, %v3641_v45  ;;  %v2499_v27 = vpop.permute.xlu0 %2498 }
 0xb02   : > { %v2504_v31 = vsel %vm1176_vm3, %v2499_v27, 0 }
 0xb03   : > { %3475 = vmatpush3.bf16.msra.mxu1 %v2504_v31  ;;  %v2494_v40 = vpack.c.bf16 %v2487_v54, %v2487_v54 }
 0xb04   : > { %3486 = vmatprep.subr.bf16.mxu1 %v3688_v14 }
 0xb05   : > { %v3556_v51 = vpop.permute.xlu0 %3555 }
 0xb06   : > { %3477 = vmatmul.mubr.msk.bf16.vlgmr.msra.gmra.mrb[60].mxu1 %vm1120_vm4, %v2494_v40  ;;  %v3558_v53 = vunpack.i.h.bf16 %v3556_v51  ;;  %v3557_v60 = vunpack.i.l.bf16 %v3556_v51 }
 0xb07   : > { %3488 = vmatprep.mubr.msk.bf16.mxu1 %vm3689_vm1, %v3688_v14 }
 0xb08   : > { %v3651_v44 = vpop.eup %3650  ;;  %v2739_v1 = vsel %vm935_vm2, %v4020_v30, %v3558_v53  ;;  %v2738_v2 = vsel %vm935_vm2, %v4018_v26, %v3557_v60 }
 0xb09   : > { %v2491_v46 = vmul.f32 %v3651_v44, %v3643_v50  ;;  %v3566_v52 = vpop.permute.xlu0 %3565 }
 0xb0a   : > { %v3567_v0 = vunpack.i.l.bf16 %v3566_v52 }
 0xb0b   : > { %v2496_v49 = vpack.c.bf16 %v2491_v46, %v2491_v46 }
 0xb0c   : > { %v2742_v58 = vsel %vm1120_vm4, %v2738_v2, %v3567_v0  ;;  %v661_v0 = vld [vmem:[%s4359_s14] sm:$0xff] }
 0xb0d   : > { %v664_v2 = vld [vmem:[%s4361_s16] sm:$0xff] }
 0xb27   : > { %v2479_v62 = vpop.xlane.xlu1 %2478 }
 0xb28   : > { %3652 = vrcp.f32 %v2479_v62 }
 0xb2b   : > { %v2547_v3 = vpop.permute.xlu1 %2546 }
 0xb2c   : > { %v2552_v7 = vsel %vm1176_vm3, %v2547_v3, 0 }
 0xb2d   : > { %3481 = vmatpush3.bf16.msra.mxu0 %v2552_v7 }
 0xb2e   : > { %3492 = vmatprep.subr.bf16.mxu0 %v3688_v14 }
 0xb2f   : > { %v2595_v57 = vpop.permute.xlu1 %2594 }
 0xb30   : > { %v2600_v38 = vsel %vm1176_vm3, %v2595_v57, 0 }
 0xb31   : > { %3487 = vmatpush3.bf16.msra.mxu1 %v2600_v38 }
 0xb32   : > { %v3653_v43 = vpop.eup %3652 }
 0xb33   : > { %v2489_v47 = vmul.f32 %v3653_v43, %v3645_v63  ;;  %v3568_v63 = vunpack.i.h.bf16 %v3566_v52 }
 0xb34   : > { %3489 = vmatmul.mubr.msk.bf16.vlgmr.msra.gmra.mrb[64].mxu1 %vm1120_vm4, %v2496_v49 }
 0xb35   : > { %v2495_v59 = vpack.c.bf16 %v2489_v47, %v2489_v47  ;;  %v2743_v39 = vsel %vm1120_vm4, %v2739_v1, %v3568_v63 }
 0xb37   : > { %3483 = vmatmul.mubr.msk.bf16.vlgmr.msra.gmra.mrb[64].mxu0 %vm1120_vm4, %v2495_v59 }
 0xb38   : > { %3494 = vmatprep.mubr.msk.bf16.mxu0 %vm3689_vm1, %v3688_v14  ;;  %v655_v14 = vld [vmem:[%s4353_s8 + $0x8] sm:$0xff] }
 0xb39   : > { %v2753_v21 = vpack.c.bf16 %v655_v14, %v654_v20 }
 0xb3b   : > { %3498 = vmatprep.subr.bf16.mxu1 %v2753_v21 }
 0xb3c   : > { %3499 = vmatpush3.bf16.msra.mxu1 %v2753_v21 }
 0xb60   : > { %v2485_v9 = vpop.xlane.xlu1 %2484 }
 0xb61   : > { %3654 = vrcp.f32 %v2485_v9 }
 0xb64   : > { %v2643_v10 = vpop.permute.xlu1 %2642 }
 0xb65   : > { %v2648_v11 = vsel %vm1176_vm3, %v2643_v10, 0 }
 0xb66   : > { %3493 = vmatpush3.bf16.msra.mxu0 %v2648_v11 }
 0xb68   : > { %v3561_v31 = vpop.permute.xlu1 %3560 }
 0xb69   : > { %v3563_v62 = vunpack.i.h.bf16 %v3561_v31  ;;  %v3562_v30 = vunpack.i.l.bf16 %v3561_v31 }
 0xb6b   : > { %v3655_v12 = vpop.eup %3654  ;;  %v2741_v7 = vsel %vm935_vm2, %v4026_v61, %v3563_v62  ;;  %v2740_v46 = vsel %vm935_vm2, %v4022_v36, %v3562_v30  ;;  %v3190_v61 = vld [vmem:[%s4354_s9] ss:$0 sm:$0xff] }
 0xb6c   : > { %v2493_v13 = vmul.f32 %v3655_v12, %v3647_v32  ;;  %v3571_v40 = vpop.permute.xlu1 %3570 }
 0xb6d   : > { %v3573_v44 = vunpack.i.h.bf16 %v3571_v40  ;;  %v3572_v3 = vunpack.i.l.bf16 %v3571_v40 }
 0xb6e   : > { %v2497_v15 = vpack.c.bf16 %v2493_v13, %v2493_v13 }
 0xb6f   : > { %v2744_v43 = vsel %vm1120_vm4, %v2740_v46, %v3572_v3  ;;  %v2745_v49 = vsel %vm1120_vm4, %v2741_v7, %v3573_v44 }
 0xb70   : > { %3495 = vmatmul.mubr.msk.bf16.vlgmr.msra.gmra.mrb[68].mxu0 %vm1120_vm4, %v2497_v15 }
 0xbd9   : > { %v2540_v16 = vpop.f32.mrb[60].mxu1 }
 0xbda   : > { %v3478_v17 = vpop.f32.mrb[61].mxu1 }
 0xbdb   : > { %v2543_v18 = vpop.f32.mrb[62].mxu1 }
 0xbdc   : > { %v3479_v19 = vpop.f32.mrb[63].mxu1 }
 0xc07   : > { %v2636_v22 = vpop.f32.mrb[64].mxu1 }
 0xc08   : > { %v3490_v23 = vpop.f32.mrb[65].mxu1 }
 0xc09   : > { %v2639_v24 = vpop.f32.mrb[66].mxu1 }
 0xc0a   : > { %v2588_v25 = vpop.f32.mrb[64].mxu0  ;;  %v3491_v28 = vpop.f32.mrb[67].mxu1 }
 0xc0b   : > { %v3574_v29 = vpack.i.bf16 %v2588_v25, %v2540_v16  ;;  %v3484_v33 = vpop.f32.mrb[65].mxu0 }
 0xc0c   : > { %v2591_v34 = vpop.f32.mrb[66].mxu0 }
 0xc0d   : > { %v3485_v35 = vpop.f32.mrb[67].mxu0  ;;  %3575 = vrot.lane.b32.xlu0 %v3574_v29, %s3695_s21 }
 0xc43   : > { %v2684_v41 = vpop.f32.mrb[68].mxu0 }
 0xc44   : > { %v3579_v42 = vpack.i.bf16 %v2684_v41, %v2636_v22  ;;  %v3496_v45 = vpop.f32.mrb[69].mxu0 }
 0xc45   : > { %v2687_v48 = vpop.f32.mrb[70].mxu0 }
 0xc46   : > { %v3497_v50 = vpop.f32.mrb[71].mxu0  ;;  %3580 = vrot.lane.b32.xlu1 %v3579_v42, %s3695_s21 }
 0xc7f   : > { %v3576_v56 = vpop.permute.xlu0 %3575 }
 0xc80   : > { %v3578_v32 = vunpack.i.h.bf16 %v3576_v56  ;;  %v3577_v37 = vunpack.i.l.bf16 %v3576_v56  ;;  %v662_v56 = vld [vmem:[%s4359_s14 + $0x8] sm:$0xff] }
 0xc81   : > { %v2897_v1 = vpack.c.bf16 %v662_v56, %v661_v0 }
 0xc82   : > { %v2748_v55 = vsel %vm2746_vm5, %v2743_v39, %v3578_v32  ;;  %v2747_v54 = vsel %vm2746_vm5, %v2742_v58, %v3577_v37  ;;  %v665_v32 = vld [vmem:[%s4361_s16 + $0x8] sm:$0xff]  ;;  %v666_v37 = vld [vmem:[%s4361_s16 + $0x10] sm:$0xff]  ;;  %v667_v39 = vld [vmem:[%s4361_s16 + $0x18] sm:$0xff] }
 0xc83   : > { %v2751_v27 = vpack.c.bf16 %v2748_v55, %v2747_v54  ;;  %3504 = vmatprep.subr.bf16.mxu0 %v2897_v1  ;;  %v2965_v58 = vpack.c.bf16 %v665_v32, %v664_v2  ;;  %v2966_v55 = vpack.c.bf16 %v667_v39, %v666_v37 }
 0xc84   : > { %3505 = vmatpush3.bf16.msra.mxu0 %v2897_v1  ;;  %v3196_v1 = vld [vmem:[%s4362_s17] ss:$0 sm:$0xff] }
 0xc85   : > { %3500 = vmatprep.mubr.msk.bf16.mxu1 %vm673_vm0, %v2751_v27  ;;  %3510 = vmatprep.subr.bf16.mxu1 %v2965_v58 }
 0xcb8   : > { %v3581_v26 = vpop.permute.xlu1 %3580 }
 0xcb9   : > { %v3583_v57 = vunpack.i.h.bf16 %v3581_v26  ;;  %v3582_v38 = vunpack.i.l.bf16 %v3581_v26 }
 0xcbb   : > { %v2750_v47 = vsel %vm2746_vm5, %v2745_v49, %v3583_v57  ;;  %v2749_v59 = vsel %vm2746_vm5, %v2744_v43, %v3582_v38  ;;  %v3191_v43 = vld [vmem:[%s4357_s12] ss:$0 sm:$0xff] }
 0xcbc   : > { %v2752_v9 = vpack.c.bf16 %v2750_v47, %v2749_v59 }
 0xcbe   : > { %3501 = vmatmul.mubr.msk.bf16.vlgmr.msra.gmra.mrb[68].mxu1 %vm673_vm0, %v2752_v9 }
 0xcbf   : > { %3511 = vmatpush3.bf16.msra.mxu1 %v2965_v58 }
 0xcc0   : > { %3512 = vmatprep.subr.bf16.mxu1 %v2966_v55 }
 0xcc3   : > { %3513 = vmatpush3.bf16.msra.mxu1 %v2966_v55 }
 0xd91   : > { %v3502_v10 = vpop.f32.mrb[68].mxu1 }
 0xd92   : > { %v2794_v11 = vpop.f32.mrb[69].mxu1  ;;  %v2811_v36 = vadd.f32 %v3502_v10, %v3823_v5 }
 0xd93   : > { %v2809_v12 = vadd.f32 %v2794_v11, %v3821_v4  ;;  %v3503_v13 = vpop.f32.mrb[70].mxu1 }
 0xd94   : > { %v2797_v15 = vpop.f32.mrb[71].mxu1  ;;  %v4256_v18 = vadd.f32 %v3190_v61, %v2811_v36  ;;  %v2812_v19 = vadd.f32 %v3503_v13, %v3827_v8 }
 0xd95   : > { %v4253_v16 = vadd.f32 %v3190_v61, %v2809_v12  ;;  %v2810_v17 = vadd.f32 %v2797_v15, %v3825_v6 }
 0xd96   : > { %v4265_v4 = vadd.f32 %v3190_v61, %v2812_v19  ;;  %v2829_v21 = vsel %vm673_vm0, %v4256_v18, 0.0 }
 0xd97   : > { %v4259_v20 = vadd.f32 %v3190_v61, %v2810_v17  ;;  %v2823_v14 = vsel %vm673_vm0, %v4253_v16, 0.0  ;;  %v3192_v61 = vld [vmem:[%s4358_s13] ss:$0 sm:$0xff] }
 0xd98   : > { %2824 = vadd.xlane.f32.xlu0 %v2823_v14  ;;  %v2832_v6 = vsel %vm673_vm0, %v4265_v4, 0.0 }
 0xd99   : > { %v2826_v5 = vsel %vm673_vm0, %v4259_v20, 0.0 }
 0xd9a   : > { %2827 = vadd.xlane.f32.xlu1 %v2826_v5 }
 0xd9c   : > { %2830 = vadd.xlane.f32.xlu0 %v2829_v21 }
 0xda0   : > { %2833 = vadd.xlane.f32.xlu0 %v2832_v6 }
 0xe25   : > { %v2825_v8 = vpop.xlane.xlu0 %2824 }
 0xe26   : > { %v2835_v22 = vmul.f32 0.0625, %v2825_v8 }
 0xe27   : > { %v2828_v23 = vpop.xlane.xlu1 %2827 }
 0xe28   : > { %v2839_v24 = vsub.f32 %v4253_v16, %v2835_v22  ;;  %v2836_v25 = vmul.f32 0.0625, %v2828_v23  ;;  %v668_v22 = vld [vmem:[%s4361_s16 + $0x20] sm:$0xff]  ;;  %v669_v23 = vld [vmem:[%s4361_s16 + $0x28] sm:$0xff] }
 0xe29   : > { %v2831_v28 = vpop.xlane.xlu0 %2830 }
 0xe2a   : > { %v2840_v29 = vsub.f32 %v4259_v20, %v2836_v25  ;;  %v2837_v33 = vmul.f32 0.0625, %v2831_v28  ;;  %v2843_v34 = vmul.f32 %v2839_v24, %v2839_v24  ;;  %v670_v25 = vld [vmem:[%s4361_s16 + $0x30] sm:$0xff]  ;;  %v671_v28 = vld [vmem:[%s4361_s16 + $0x38] sm:$0xff] }
 0xe2c   : > { %v2841_v35 = vsub.f32 %v4256_v18, %v2837_v33  ;;  %v2847_v41 = vsel %vm673_vm0, %v2843_v34, 0.0  ;;  %v2844_v42 = vmul.f32 %v2840_v29, %v2840_v29  ;;  %v3193_v33 = vld [vmem:[%s4360_s15] ss:$0 sm:$0xff] }
 0xe2d   : > { %2848 = vadd.xlane.f32.xlu0 %v2847_v41  ;;  %v2834_v45 = vpop.xlane.xlu0 %2833 }
 0xe2e   : > { %v2838_v48 = vmul.f32 0.0625, %v2834_v45  ;;  %v2850_v50 = vsel %vm673_vm0, %v2844_v42, 0.0  ;;  %v2845_v51 = vmul.f32 %v2841_v35, %v2841_v35 }
 0xe2f   : > { %2851 = vadd.xlane.f32.xlu1 %v2850_v50 }
 0xe30   : > { %v2842_v52 = vsub.f32 %v4265_v4, %v2838_v48  ;;  %v2853_v53 = vsel %vm673_vm0, %v2845_v51, 0.0 }
 0xe31   : > { %2854 = vadd.xlane.f32.xlu0 %v2853_v53 }
 0xe32   : > { %v2846_v60 = vmul.f32 %v2842_v52, %v2842_v52 }
 0xe34   : > { %v2856_v63 = vsel %vm673_vm0, %v2846_v60, 0.0 }
 0xe35   : > { %2857 = vadd.xlane.f32.xlu1 %v2856_v63 }
 0xeba   : > { %v2849_v54 = vpop.xlane.xlu0 %2848 }
 0xebb   : > { %v2859_v27 = vmul.f32 0.0625, %v2849_v54 }
 0xebc   : > { %v2852_v31 = vpop.xlane.xlu1 %2851 }
 0xebd   : > { %v2863_v40 = vadd.f32 1e-05, %v2859_v27  ;;  %v2860_v62 = vmul.f32 0.0625, %v2852_v31 }
 0xebe   : > { %v2855_v30 = vpop.xlane.xlu0 %2854 }
 0xebf   : > { %3656 = vrsqrt.f32 %v2863_v40  ;;  %v2864_v44 = vadd.f32 1e-05, %v2860_v62  ;;  %v2861_v3 = vmul.f32 0.0625, %v2855_v30 }
 0xec1   : > { %3658 = vrsqrt.f32 %v2864_v44  ;;  %v2865_v26 = vadd.f32 1e-05, %v2861_v3 }
 0xec2   : > { %v2858_v7 = vpop.xlane.xlu1 %2857 }
 0xec3   : > { %3660 = vrsqrt.f32 %v2865_v26  ;;  %v2862_v46 = vmul.f32 0.0625, %v2858_v7 }
 0xec5   : > { %v2866_v57 = vadd.f32 1e-05, %v2862_v46 }
 0xec7   : > { %3662 = vrsqrt.f32 %v2866_v57 }
 0xec9   : > { %v3657_v38 = vpop.eup %3656 }
 0xeca   : > { %v2871_v49 = vmul.f32 %v3657_v38, %v2839_v24  ;;  %v2967_v24 = vpack.c.bf16 %v669_v23, %v668_v22 }
 0xecb   : > { %v3659_v47 = vpop.eup %3658 }
 0xecc   : > { %v2872_v59 = vmul.f32 %v3659_v47, %v2840_v29  ;;  %v2881_v9 = vmul.f32 %v3191_v43, %v2871_v49  ;;  %3514 = vmatprep.subr.bf16.mxu1 %v2967_v24  ;;  %v2968_v29 = vpack.c.bf16 %v671_v28, %v670_v25 }
 0xecd   : > { %v3661_v10 = vpop.eup %3660  ;;  %3515 = vmatpush3.bf16.msra.mxu1 %v2967_v24 }
 0xece   : > { %v2873_v11 = vmul.f32 %v3661_v10, %v2841_v35  ;;  %v2882_v36 = vmul.f32 %v3191_v43, %v2872_v59  ;;  %v2891_v12 = vadd.f32 %v3192_v61, %v2881_v9  ;;  %3516 = vmatprep.subr.bf16.mxu1 %v2968_v29 }
 0xed0   : > { %v2892_v13 = vadd.f32 %v3192_v61, %v2882_v36  ;;  %v2883_v17 = vmul.f32 %v3191_v43, %v2873_v11 }
 0xed1   : > { %v3663_v15 = vpop.eup %3662  ;;  %3517 = vmatpush3.bf16.msra.mxu1 %v2968_v29 }
 0xed2   : > { %v2874_v19 = vmul.f32 %v3663_v15, %v2842_v52  ;;  %v2895_v14 = vpack.c.bf16 %v2892_v13, %v2891_v12  ;;  %v2893_v21 = vadd.f32 %v3192_v61, %v2883_v17 }
 0xed4   : > { %v2884_v5 = vmul.f32 %v3191_v43, %v2874_v19  ;;  %3506 = vmatprep.mubr.msk.bf16.mxu0 %vm673_vm0, %v2895_v14 }
 0xed6   : > { %v2894_v6 = vadd.f32 %v3192_v61, %v2884_v5 }
 0xed8   : > { %v2896_v8 = vpack.c.bf16 %v2894_v6, %v2893_v21 }
 0xeda   : > { %3507 = vmatmul.mubr.msk.bf16.vlgmr.msra.gmra.mrb[72].mxu0 %vm673_vm0, %v2896_v8 }
 0xfad   : > { %v3508_v34 = vpop.f32.mrb[72].mxu0 }
 0xfae   : > { %v2953_v35 = vadd.f32 %v3508_v34, %v3193_v33  ;;  %v2944_v41 = vpop.f32.mrb[73].mxu0 }
 0xfaf   : > { %v2945_v42 = vadd.f32 %v3193_v33, %v2944_v41  ;;  %v3509_v45 = vpop.f32.mrb[74].mxu0 }
 0xfb0   : > { %v2956_v48 = vadd.f32 %v3509_v45, %v3193_v33  ;;  %v2947_v50 = vpop.f32.mrb[75].mxu0  ;;  %v2961_v52 = vmax.f32 %v2953_v35, 0.0 }
 0xfb1   : > { %v2948_v51 = vadd.f32 %v3193_v33, %v2947_v50  ;;  %v2959_v60 = vmax.f32 %v2945_v42, 0.0 }
 0xfb2   : > { %v2962_v53 = vmax.f32 %v2956_v48, 0.0 }
 0xfb3   : > { %v2960_v63 = vmax.f32 %v2948_v51, 0.0 }
 0xfb4   : > { %v2964_v0 = vpack.c.bf16 %v2962_v53, %v2961_v52 }
 0xfb5   : > { %v2963_v56 = vpack.c.bf16 %v2960_v63, %v2959_v60 }
 0xfb7   : > { %3518 = vmatprep.mubr.msk.bf16.mxu1 %vm2975_vm6, %v2963_v56 }
 0xfb8   : > { %3519 = vmatmul.mubr.msk.bf16.vlgmr.msra.gmra.mrb[72].mxu1 %vm2975_vm6, %v2964_v0 }
0x108b   : > { %v3520_v2 = vpop.f32.mrb[72].mxu1 }
0x108c   : > { %v3025_v32 = vadd.f32 %v3520_v2, %v3196_v1  ;;  %v3016_v37 = vpop.f32.mrb[73].mxu1 }
0x108d   : > { %v3017_v58 = vadd.f32 %v3196_v1, %v3016_v37  ;;  %v3521_v39 = vpop.f32.mrb[74].mxu1 }
0x108e   : > { %v3033_v55 = vadd.f32 %v3025_v32, %v4256_v18  ;;  %v3028_v54 = vadd.f32 %v3521_v39, %v3196_v1  ;;  %v3019_v27 = vpop.f32.mrb[75].mxu1 }
0x108f   : > { %v3031_v31 = vadd.f32 %v3017_v58, %v4253_v16  ;;  %v3020_v40 = vadd.f32 %v3196_v1, %v3019_v27 }
0x1090   : > { %3037 = vst.msk [vmem:[%s627_s24 + $0x10] sm:$0xff] %vm673_vm0, %v3033_v55  ;;  %v3034_v62 = vadd.f32 %v3028_v54, %v4265_v4 }
0x1091   : > { %3035 = vst.msk [vmem:[%s627_s24] sm:$0xff] %vm673_vm0, %v3031_v31  ;;  %v3032_v30 = vadd.f32 %v3020_v40, %v4259_v20 }
0x1092   : > { %3038 = vst.msk [vmem:[%s627_s24 + $0x18] sm:$0xff] %vm673_vm0, %v3034_v62 }
0x1093   : > { %3036 = vst.msk [vmem:[%s627_s24 + $0x8] sm:$0xff] %vm673_vm0, %v3032_v30 }
0x1094 PF: > { %s28_s29 = sadd.s32 1, %s3686_s29   ;;  %s4373_s27 = smov %s3682_s28 }
0x1095   : > { %p25_p5 = scmp.ge.s32.totalorder %s28_s29, 4   ;;  %s4374_s28 = smov %s4376_s30 }
0x1097   :  { %27 = sbr.rel (!%p25_p5) target bundleno = 4 (0x4), region = 125 }

// kernel: residual_block_forward.4
= control target key start
LH: loop header
LB: loop body
LE: loop exit
PB: predicated region body
PF: predicated region fallthrough
CT: control target
= control target key end

     0   :  { %s6402_s24 = smov 0   ;;  %s6404_s25 = smov 0   ;;  %s7670_s0 = inlined_call_operand.vmem [shape: f32[2,8,4,16], index: 0, kind: input, shape index: {}]   ;;  %s7671_s1 = inlined_call_operand.vmem [shape: f32[16,16], index: 1, kind: input, shape index: {}]   ;;  %s7672_s2 = inlined_call_operand.vmem [shape: f32[1,16], index: 2, kind: input, shape index: {}]   ;;  %s7673_s3 = inlined_call_operand.vmem [shape: f32[16,16], index: 3, kind: input, shape index: {}]   ;;  %s7674_s4 = inlined_call_operand.vmem [shape: f32[1,16], index: 4, kind: input, shape index: {}]   ;;  %s7675_s5 = inlined_call_operand.vmem [shape: f32[16,16], index: 5, kind: input, shape index: {}]   ;;  %s7676_s6 = inlined_call_operand.vmem [shape: f32[1,16], index: 6, kind: input, shape index: {}]   ;;  %s7677_s7 = inlined_call_operand.vmem [shape: f32[16,16], index: 7, kind: input, shape index: {}]   ;;  %s7678_s8 = inlined_call_operand.vmem [shape: f32[1,16], index: 8, kind: input, shape index: {}]   ;;  %s7679_s9 = inlined_call_operand.vmem [shape: f32[1,16], index: 9, kind: input, shape index: {}]   ;;  %s7680_s10 = inlined_call_operand.vmem [shape: f32[1,16], index: 10, kind: input, shape index: {}]   ;;  %s7681_s11 = inlined_call_operand.vmem [shape: f32[1,16], index: 11, kind: input, shape index: {}]   ;;  %s7682_s12 = inlined_call_operand.vmem [shape: f32[1,16], index: 12, kind: input, shape index: {}]   ;;  %s7683_s13 = inlined_call_operand.vmem [shape: f32[16,64], index: 13, kind: input, shape index: {}]   ;;  %s7684_s14 = inlined_call_operand.vmem [shape: f32[1,64], index: 14, kind: input, shape index: {}]   ;;  %s7685_s15 = inlined_call_operand.vmem [shape: f32[64,16], index: 15, kind: input, shape index: {}]   ;;  %s7686_s16 = inlined_call_operand.vmem [shape: f32[1,16], index: 16, kind: input, shape index: {}]   ;;  %s7687_s17 = inlined_call_operand.vmem [shape: f32[2,8,4,16], index: 17, kind: output, shape index: {}]  }
   0x1   :  { %7692 = sst [smem:[#allocation2_spill]] %s7670_s0  ;;  %s6406_s26 = smov 0  }
   0x2   :  { %7693 = sst [smem:[#allocation3_spill]] %s7671_s1 }
   0x3 LB: > { %s39_s27 = sadd.s32 1, %s6296_s25  ;;  %p5418_p0 = scmp.ge.s32.totalorder %s6300_s26, 1  ;;  %s6300_s26 = sphi %s6406_s26, %s27_s26   ;;  %s6296_s25 = sphi %s6404_s25, %s7699_s25   ;;  %s6292_s24 = sphi %s6402_s24, %s7698_s24  }
   0x4   : > { %p41_p1 = scmp.ge.s32.totalorder %s39_s27, 2  ;;  %p508_p2 = scmp.lt.s32.totalorder %s6300_s26, 3 }
   0x6   : > { %s7701_s27 = smov (%p41_p1, %s39_s27), 0  ;;  %p509_p3 = pnand %p5418_p0, %p508_p2 }
   0x7   : > { %p569_p4 = scmp.lt.s32.totalorder (!%p509_p3), %s6292_s24, 1  ;;  %s7694_s30 = sld [smem:[#allocation2_spill]] (!%p509_p3)  ;;  %vm641_vm0 = vcmask (!%p509_p3), 130048   ;;  %v6302_v16 = vmov (!%p509_p3), 839922192   ;;  %v666_v18 = vlaneseq (!%p509_p3)  ;;  %vm6305_vm1 = vmmov (!%p509_p3), 0  }
   0x8   : > { %512 = sbr.rel (%p509_p3) target bundleno = 4417 (0x1141), region = 88  ;;  %v664_v17 = vunpack.c.l.s4 (!%p509_p3), %v6302_v16  ;;  %v6303_v19 = vmov (!%p509_p3), 1985246804   ;;  %s7695_s20 = sld [smem:[#allocation3_spill]] (!%p509_p3)  ;;  %vm1143_vm2 = vcmask (!%p509_p3), 31744   ;;  %vm1620_vm3 = vcmask (!%p509_p3), 1041408  }
   0x9   : > { %v671_v20 = vunpack.c.l.s4 (!%p509_p3), %v6303_v19  ;;  %v667_v22 = vshrl.u32 (!%p509_p3), %v666_v18, 7  ;;  %vm1512_vm4 = vcmask (!%p509_p3), 27648   ;;  %s6306_s0 = smov (!%p509_p3), 124   ;;  %s6308_s19 = smov (!%p509_p3), 116   ;;  %vm4754_vm5 = vcmask (!%p509_p3), 64512  }
   0xa   : > { %v665_v21 = vunpack.c.0.s8 (!%p509_p3), %v664_v17  ;;  %s6309_s1 = smov (!%p509_p3), 4   ;;  %s6310_s21 = smov (!%p509_p3), 8   ;;  %vm4763_vm6 = vcmask (!%p509_p3), 97280   ;;  %vm5242_vm7 = vcmask (!%p509_p3), 523264   ;;  %vm5318_vm8 = vcmask (!%p509_p3), 125952  }
   0xb   : > { %v672_v23 = vunpack.c.0.s8 (!%p509_p3), %v671_v20  ;;  %s6311_s22 = smov (!%p509_p3), 12  }
   0xc   : > { %v6442_v24 = vsub.s32 (!%p509_p3), %v665_v21, %v667_v22 }
   0xd   : > { %v6444_v25 = vsub.s32 (!%p509_p3), %v672_v23, %v667_v22  ;;  %v5423_v23 = vld [vmem:[%s7679_s9] ss:$0 sm:$0xff] (!%p509_p3) }
   0xf   : > { %s7703_s24 = smov (!%p569_p4, %s6292_s24), 1 }
  0x10   : > { %s7691_s28 = sshll.u32 %s7703_s24, 5 }
  0x11   : > { %s6428_s18 = scalar_lea.vmem %s7694_s30, %s7691_s28  ;;  %s6307_s30 = smov 120  }
  0x12   : > { %v589_v0 = vld [vmem:[%s6428_s18] sm:$0xf]  ;;  %v590_v1 = vld [vmem:[%s6428_s18 + $0x4] sm:$0xf]  ;;  %v593_v2 = vld [vmem:[%s6428_s18 + $0x10] sm:$0xf] }
  0x13   : > { %v633_v3 = vcombine.low %v589_v0, %v590_v1  ;;  %v594_v4 = vld [vmem:[%s6428_s18 + $0x14] sm:$0xf]  ;;  %v591_v5 = vld [vmem:[%s6428_s18 + $0x8] sm:$0xf]  ;;  %v592_v6 = vld [vmem:[%s6428_s18 + $0xc] sm:$0xf] }
  0x14   : > { %v635_v7 = vcombine.low %v593_v2, %v594_v4  ;;  %v634_v8 = vcombine.low %v591_v5, %v592_v6  ;;  %v595_v9 = vld [vmem:[%s6428_s18 + $0x18] sm:$0xf]  ;;  %v596_v10 = vld [vmem:[%s6428_s18 + $0x1c] sm:$0xf] }
  0x15   : > { %v642_v11 = vsel %vm641_vm0, %v633_v3, 0.0  ;;  %v636_v12 = vcombine.low %v595_v9, %v596_v10  ;;  %v598_v3 = vld [vmem:[%s7695_s20 + $0x8] sm:$0xff] }
  0x16   : > { %643 = vadd.xlane.f32.xlu0 %v642_v11  ;;  %v648_v13 = vsel %vm641_vm0, %v635_v7, 0.0  ;;  %v645_v14 = vsel %vm641_vm0, %v634_v8, 0.0  ;;  %v603_v8 = vld [vmem:[%s7675_s5] sm:$0xff] }
  0x17   : > { %649 = vadd.xlane.f32.xlu1 %v648_v13  ;;  %v651_v15 = vsel %vm641_vm0, %v636_v12, 0.0 }
  0x1a   : > { %646 = vadd.xlane.f32.xlu0 %v645_v14 }
  0x1b   : > { %652 = vadd.xlane.f32.xlu1 %v651_v15 }
  0xa3   : > { %v644_v26 = vpop.xlane.xlu0 %643 }
  0xa4   : > { %v655_v27 = vmul.f32 0.0625, %v644_v26  ;;  %v650_v28 = vpop.xlane.xlu1 %649 }
  0xa5   : > { %v657_v29 = vmul.f32 0.0625, %v650_v28 }
  0xa6   : > { %v669_v30 = vrot.slane %v655_v27, %v6442_v24  ;;  %v676_v31 = vrot.slane %v655_v27, %v6444_v25 }
  0xa7   : > { %v697_v32 = vrot.slane %v657_v29, %v6442_v24  ;;  %v704_v33 = vrot.slane %v657_v29, %v6444_v25  ;;  %v647_v34 = vpop.xlane.xlu0 %646  ;;  %v5424_v29 = vld [vmem:[%s7680_s10] ss:$0 sm:$0xff] }
  0xa8   : > { %v6450_v35 = vsub.f32 %v589_v0, %v669_v30  ;;  %v6452_v36 = vsub.f32 %v590_v1, %v676_v31  ;;  %v656_v37 = vmul.f32 0.0625, %v647_v34  ;;  %v653_v38 = vpop.xlane.xlu1 %652  ;;  %v865_v30 = vcombine.high %v5423_v23, %v5423_v23 }
  0xa9   : > { %v6454_v39 = vsub.f32 %v593_v2, %v697_v32  ;;  %v6456_v40 = vsub.f32 %v594_v4, %v704_v33  ;;  %v658_v41 = vmul.f32 0.0625, %v653_v38  ;;  %v597_v2 = vld [vmem:[%s7695_s20] sm:$0xff]  ;;  %v881_v34 = vcombine.high %v5424_v29, %v5424_v29 }
  0xaa   : > { %v683_v42 = vrot.slane %v656_v37, %v6442_v24  ;;  %v690_v43 = vrot.slane %v656_v37, %v6444_v25  ;;  %v735_v44 = vmul.f32 %v6450_v35, %v6450_v35  ;;  %v736_v45 = vmul.f32 %v6452_v36, %v6452_v36 }
  0xab   : > { %v711_v46 = vrot.slane %v658_v41, %v6442_v24  ;;  %v718_v47 = vrot.slane %v658_v41, %v6444_v25  ;;  %v739_v48 = vmul.f32 %v6454_v39, %v6454_v39  ;;  %v740_v49 = vmul.f32 %v6456_v40, %v6456_v40 }
  0xac   : > { %v6470_v50 = vsub.f32 %v591_v5, %v683_v42  ;;  %v6472_v51 = vsub.f32 %v592_v6, %v690_v43  ;;  %v751_v52 = vcombine.low %v735_v44, %v736_v45  ;;  %v909_v4 = vpack.c.bf16 %v598_v3, %v597_v2  ;;  %v600_v5 = vld [vmem:[%s7673_s3] sm:$0xff]  ;;  %v601_v6 = vld [vmem:[%s7673_s3 + $0x8] sm:$0xff] }
  0xad   : > { %v6474_v53 = vsub.f32 %v595_v9, %v711_v46  ;;  %v6476_v54 = vsub.f32 %v596_v10, %v718_v47  ;;  %v753_v55 = vcombine.low %v739_v48, %v740_v49  ;;  %v983_v7 = vpack.c.bf16 %v601_v6, %v600_v5  ;;  %v604_v9 = vld [vmem:[%s7675_s5 + $0x8] sm:$0xff] }
  0xae   : > { %v759_v56 = vsel %vm641_vm0, %v751_v52, 0.0  ;;  %v737_v57 = vmul.f32 %v6470_v50, %v6470_v50  ;;  %v738_v58 = vmul.f32 %v6472_v51, %v6472_v51  ;;  %5662 = vmatprep.subr.bf16.mxu0 %v909_v4  ;;  %v6508_v10 = vpack.c.bf16 %v604_v9, %v603_v8 }
  0xaf   : > { %760 = vadd.xlane.f32.xlu0 %v759_v56  ;;  %v741_v59 = vmul.f32 %v6474_v53, %v6474_v53  ;;  %v742_v60 = vmul.f32 %v6476_v54, %v6476_v54  ;;  %v765_v61 = vsel %vm641_vm0, %v753_v55, 0.0  ;;  %5663 = vmatpush3.bf16.msra.mxu0 %v909_v4 }
  0xb0   : > { %v752_v62 = vcombine.low %v737_v57, %v738_v58  ;;  %5668 = vmatprep.subr.bf16.mxu1 %v983_v7  ;;  %5674 = vmatprep.subr.bf16.mxu0 %v6508_v10 }
  0xb1   : > { %v754_v63 = vcombine.low %v741_v59, %v742_v60  ;;  %5669 = vmatpush3.bf16.msra.mxu1 %v983_v7 }
  0xb2   : > { %v762_v0 = vsel %vm641_vm0, %v752_v62, 0.0 }
  0xb3   : > { %766 = vadd.xlane.f32.xlu0 %v765_v61  ;;  %763 = vadd.xlane.f32.xlu1 %v762_v0  ;;  %v768_v1 = vsel %vm641_vm0, %v754_v63, 0.0 }
  0xb7   : > { %769 = vadd.xlane.f32.xlu1 %v768_v1 }
 0x13c   : > { %v761_v11 = vpop.xlane.xlu0 %760 }
 0x13d   : > { %v771_v12 = vmul.f32 0.0625, %v761_v11 }
 0x13f   : > { %v775_v13 = vadd.f32 1e-05, %v771_v12 }
 0x140   : > { %v764_v14 = vpop.xlane.xlu1 %763  ;;  %v767_v15 = vpop.xlane.xlu0 %766 }
 0x141   : > { %6126 = vrsqrt.f32 %v775_v13  ;;  %v772_v16 = vmul.f32 0.0625, %v764_v14  ;;  %v773_v17 = vmul.f32 0.0625, %v767_v15 }
 0x143   : > { %v776_v18 = vadd.f32 1e-05, %v772_v16  ;;  %v777_v19 = vadd.f32 1e-05, %v773_v17  ;;  %v6554_v16 = vld [vmem:[%s7672_s2] ss:$0 sm:$0xff] }
 0x144   : > { %v770_v20 = vpop.xlane.xlu1 %769 }
 0x145   : > { %6128 = vrsqrt.f32 %v776_v18  ;;  %v774_v21 = vmul.f32 0.0625, %v770_v20 }
 0x146   : > { %6130 = vrsqrt.f32 %v777_v19 }
 0x147   : > { %v778_v22 = vadd.f32 1e-05, %v774_v21 }
 0x149   : > { %6132 = vrsqrt.f32 %v778_v22 }
 0x14b   : > { %v6127_v26 = vpop.eup %6126 }
 0x14c   : > { %v793_v27 = vrot.slane %v6127_v26, %v6442_v24  ;;  %v800_v28 = vrot.slane %v6127_v26, %v6444_v25 }
 0x14e   : > { %v851_v31 = vmul.f32 %v793_v27, %v6450_v35  ;;  %v852_v32 = vmul.f32 %v800_v28, %v6452_v36  ;;  %v5431_v27 = vld [vmem:[%s7676_s6] ss:$0 sm:$0xff] }
 0x14f   : > { %v6129_v33 = vpop.eup %6128 }
 0x150   : > { %v6131_v37 = vpop.eup %6130  ;;  %v807_v38 = vrot.slane %v6129_v33, %v6442_v24  ;;  %v814_v41 = vrot.slane %v6129_v33, %v6444_v25  ;;  %v867_v42 = vmul.f32 %v5423_v23, %v851_v31  ;;  %v868_v43 = vmul.f32 %v865_v30, %v852_v32 }
 0x151   : > { %v821_v44 = vrot.slane %v6131_v37, %v6442_v24  ;;  %v828_v45 = vrot.slane %v6131_v37, %v6444_v25 }
 0x152   : > { %v853_v46 = vmul.f32 %v807_v38, %v6470_v50  ;;  %v854_v47 = vmul.f32 %v814_v41, %v6472_v51  ;;  %v883_v48 = vadd.f32 %v5424_v29, %v867_v42  ;;  %v884_v36 = vadd.f32 %v881_v34, %v868_v43 }
 0x153   : > { %v6133_v35 = vpop.eup %6132  ;;  %v855_v49 = vmul.f32 %v821_v44, %v6454_v39  ;;  %v856_v52 = vmul.f32 %v828_v45, %v6456_v40 }
 0x154   : > { %v835_v55 = vrot.slane %v6133_v35, %v6442_v24  ;;  %v842_v56 = vrot.slane %v6133_v35, %v6444_v25  ;;  %v869_v57 = vmul.f32 %v5423_v23, %v853_v46  ;;  %v870_v58 = vmul.f32 %v865_v30, %v854_v47 }
 0x155   : > { %v871_v59 = vmul.f32 %v5423_v23, %v855_v49  ;;  %v872_v60 = vmul.f32 %v865_v30, %v856_v52  ;;  %v899_v63 = vcombine.low %v883_v48, %v884_v36 }
 0x156   : > { %v885_v61 = vadd.f32 %v5424_v29, %v869_v57  ;;  %v886_v62 = vadd.f32 %v881_v34, %v870_v58  ;;  %v857_v50 = vmul.f32 %v835_v55, %v6474_v53  ;;  %v858_v51 = vmul.f32 %v842_v56, %v6476_v54  ;;  %v5428_v54 = vld [vmem:[%s7674_s4] ss:$0 sm:$0xff] }
 0x157   : > { %v887_v0 = vadd.f32 %v5424_v29, %v871_v59  ;;  %v888_v40 = vadd.f32 %v881_v34, %v872_v60  ;;  %v7689_v53 = vmov 0.0  }
 0x158   : > { %v900_v1 = vcombine.low %v885_v61, %v886_v62  ;;  %v873_v39 = vmul.f32 %v5423_v23, %v857_v50  ;;  %v874_v2 = vmul.f32 %v865_v30, %v858_v51  ;;  %5680 = vmatprep.subr.bf16.mxu1 %v7689_v53 }
 0x159   : > { %v901_v6 = vcombine.low %v887_v0, %v888_v40 }
 0x15a   : > { %v907_v3 = vpack.c.bf16 %v900_v1, %v899_v63  ;;  %v889_v4 = vadd.f32 %v5424_v29, %v873_v39  ;;  %v890_v5 = vadd.f32 %v881_v34, %v874_v2 }
 0x15c   : > { %5664 = vmatprep.mubr.msk.bf16.mxu0 %vm641_vm0, %v907_v3  ;;  %5670 = vmatprep.mubr.msk.bf16.mxu1 %vm641_vm0, %v907_v3  ;;  %v902_v7 = vcombine.low %v889_v4, %v890_v5 }
 0x15e   : > { %v908_v8 = vpack.c.bf16 %v902_v7, %v901_v6 }
 0x160   : > { %5665 = vmatmul.mubr.msk.bf16.vlgmr.msra.gmra.mrb[0].mxu0 %vm641_vm0, %v908_v8  ;;  %5671 = vmatmul.mubr.msk.bf16.vlgmr.msra.gmra.mrb[0].mxu1 %vm641_vm0, %v908_v8 }
 0x161   : > { %5676 = vmatprep.mubr.msk.bf16.mxu0 %vm641_vm0, %v907_v3  ;;  %5675 = vmatpush3.bf16.msra.mxu0 %v6508_v10 }
 0x162   : > { %5686 = vmatprep.subr.bf16.mxu0 %v7689_v53  ;;  %5682 = vmatprep.mubr.msk.bf16.mxu1 %vm6305_vm1, %v7689_v53 }
 0x168   : > { %5677 = vmatmul.mubr.msk.bf16.vlgmr.msra.gmra.mrb[4].mxu0 %vm641_vm0, %v908_v8 }
 0x169   : > { %5688 = vmatprep.mubr.msk.bf16.mxu0 %vm6305_vm1, %v7689_v53 }
 0x233   : > { %v5666_v9 = vpop.f32.mrb[0].mxu0  ;;  %v5672_v10 = vpop.f32.mrb[0].mxu1 }
 0x234   : > { %v956_v11 = vpop.f32.mrb[1].mxu0  ;;  %v1024_v12 = vpop.f32.mrb[1].mxu1  ;;  %v1033_v46 = vadd.f32 %v5672_v10, %v5428_v54  ;;  %v965_v57 = vadd.f32 %v5666_v9, %v6554_v16 }
 0x235   : > { %v1025_v13 = vadd.f32 %v5428_v54, %v1024_v12  ;;  %v6549_v14 = vpop.f32.mrb[2].mxu0  ;;  %v5673_v15 = vpop.f32.mrb[2].mxu1  ;;  %v957_v20 = vadd.f32 %v6554_v16, %v956_v11 }
 0x236   : > { %v959_v17 = vpop.f32.mrb[3].mxu0  ;;  %v1027_v18 = vpop.f32.mrb[3].mxu1  ;;  %v1045_v52 = vcombine.high %v1033_v46, %v1033_v46  ;;  %v6599_v58 = vpack.c.bf16 %v1033_v46, %v1033_v46  ;;  %v1036_v61 = vadd.f32 %v5673_v15, %v5428_v54  ;;  %v977_v50 = vcombine.high %v965_v57, %v965_v57 }
 0x237   : > { %v1043_v19 = vcombine.high %v1025_v13, %v1025_v13  ;;  %v6557_v21 = vpack.c.bf16 %v1025_v13, %v1025_v13  ;;  %v1028_v23 = vadd.f32 %v5428_v54, %v1027_v18  ;;  %v975_v29 = vcombine.high %v957_v20, %v957_v20 }
 0x238   : > { %v1119_v34 = vmul.f32 0.5, %v957_v20  ;;  %v960_v44 = vadd.f32 %v6554_v16, %v959_v17  ;;  %v6602_v60 = vpack.c.bf16 %v1045_v52, %v1045_v52  ;;  %v1332_v63 = vsel %vm1143_vm2, %v6599_v58, 0 }
 0x239   : > { %v6559_v22 = vpack.c.bf16 %v1043_v19, %v1043_v19  ;;  %v1148_v30 = vsel %vm1143_vm2, %v6557_v21, 0  ;;  %v1044_v37 = vcombine.high %v1028_v23, %v1028_v23  ;;  %v1120_v43 = vmul.f32 0.5, %v975_v29 }
 0x23a   : > { %5681 = vmatpush3.bf16.xpose.msra.mxu1 %v1148_v30  ;;  %v6576_v45 = vpack.c.bf16 %v1028_v23, %v1028_v23  ;;  %v6579_v47 = vpack.c.bf16 %v1119_v34, %v1119_v34  ;;  %v976_v36 = vcombine.high %v960_v44, %v960_v44  ;;  %v1121_v55 = vmul.f32 0.5, %v960_v44 }
 0x23b   : > { %v5678_v26 = vpop.f32.mrb[4].mxu0  ;;  %v1194_v38 = vsel %vm1143_vm2, %v6559_v22, 0  ;;  %5692 = vmatprep.subr.bf16.mxu1 %v7689_v53  ;;  %v6581_v35 = vpack.c.bf16 %v1044_v37, %v1044_v37  ;;  %v6583_v48 = vpack.c.bf16 %v1120_v43, %v1120_v43  ;;  %v1123_v0 = vmul.f32 0.5, %v965_v57 }
 0x23c   : > { %v1092_v28 = vpop.f32.mrb[5].mxu0  ;;  %v6566_v32 = vadd.f32 %v5678_v26, %v5431_v27  ;;  %5687 = vmatpush3.bf16.xpose.msra.mxu0 %v1194_v38  ;;  %v1240_v49 = vsel %vm1143_vm2, %v6576_v45, 0  ;;  %v1122_v59 = vmul.f32 0.5, %v976_v36  ;;  %v6604_v62 = vpack.c.bf16 %v1121_v55, %v1121_v55 }
 0x23d   : > { %v5679_v31 = vpop.f32.mrb[6].mxu0  ;;  %5698 = vmatprep.subr.bf16.mxu0 %v7689_v53  ;;  %v1286_v56 = vsel %vm1143_vm2, %v6581_v35, 0  ;;  %v1046_v1 = vcombine.high %v1036_v61, %v1036_v61  ;;  %v1378_v39 = vsel %vm1143_vm2, %v6602_v60, 0  ;;  %v1124_v2 = vmul.f32 0.5, %v977_v50 }
 0x23e   : > { %v1095_v33 = vpop.f32.mrb[7].mxu0  ;;  %v6570_v41 = vadd.f32 %v5679_v31, %v5431_v27  ;;  %v6606_v51 = vpack.c.bf16 %v1122_v59, %v1122_v59  ;;  %v968_v40 = vadd.f32 %v6549_v14, %v6554_v16  ;;  %v6623_v3 = vpack.c.bf16 %v1036_v61, %v1036_v61 }
 0x23f   : > { %v6573_v42 = vadd.f32 %v5431_v27, %v1095_v33  ;;  %v6626_v4 = vpack.c.bf16 %v1123_v0, %v1123_v0  ;;  %v6628_v5 = vpack.c.bf16 %v1046_v1, %v1046_v1  ;;  %v1093_v6 = vadd.f32 %v5431_v27, %v1092_v28 }
 0x240   : > { %v6630_v7 = vpack.c.bf16 %v1124_v2, %v1124_v2  ;;  %v978_v8 = vcombine.high %v968_v40, %v968_v40  ;;  %v1424_v54 = vsel %vm1143_vm2, %v6623_v3, 0  ;;  %v1125_v9 = vmul.f32 0.5, %v968_v40 }
 0x241   : > { %5683 = vmatmul.mubr.msk.bf16.vlgmr.msra.gmra.mrb[4].mxu1 %vm1143_vm2, %v6579_v47  ;;  %v1111_v10 = vcombine.high %v1093_v6, %v1093_v6  ;;  %v1470_v11 = vsel %vm1143_vm2, %v6628_v5, 0  ;;  %v6645_v13 = vpack.c.bf16 %v1093_v6, %v1093_v6 }
 0x242   : > { %5693 = vmatpush3.bf16.xpose.msra.mxu1 %v1240_v49  ;;  %5694 = vmatprep.mubr.msk.bf16.mxu1 %vm6305_vm1, %v7689_v53  ;;  %v1126_v12 = vmul.f32 0.5, %v978_v8  ;;  %v6648_v14 = vpack.c.bf16 %v1125_v9, %v1125_v9 }
 0x243   : > { %5689 = vmatmul.mubr.msk.bf16.vlgmr.msra.gmra.mrb[8].mxu0 %vm1143_vm2, %v6583_v48  ;;  %5704 = vmatprep.subr.bf16.mxu1 %v7689_v53  ;;  %v6650_v15 = vpack.c.bf16 %v1111_v10, %v1111_v10  ;;  %v1622_v17 = vsel %vm1620_vm3, %v6645_v13, 0 }
 0x244   : > { %5699 = vmatpush3.bf16.xpose.msra.mxu0 %v1286_v56  ;;  %5700 = vmatprep.mubr.msk.bf16.mxu0 %vm6305_vm1, %v7689_v53  ;;  %v6652_v16 = vpack.c.bf16 %v1126_v12, %v1126_v12 }
 0x245   : > { %5710 = vmatprep.subr.bf16.mxu0 %v7689_v53  ;;  %v1668_v18 = vsel %vm1620_vm3, %v6650_v15, 0 }
 0x249   : > { %5695 = vmatmul.mubr.msk.bf16.vlgmr.msra.gmra.mrb[8].mxu1 %vm1143_vm2, %v6604_v62 }
 0x24a   : > { %5705 = vmatpush3.bf16.xpose.msra.mxu1 %v1332_v63  ;;  %5706 = vmatprep.mubr.msk.bf16.mxu1 %vm6305_vm1, %v7689_v53 }
 0x24b   : > { %5701 = vmatmul.mubr.msk.bf16.vlgmr.msra.gmra.mrb[12].mxu0 %vm1143_vm2, %v6606_v51  ;;  %5716 = vmatprep.subr.bf16.mxu1 %v7689_v53 }
 0x24c   : > { %5711 = vmatpush3.bf16.xpose.msra.mxu0 %v1378_v39  ;;  %5712 = vmatprep.mubr.msk.bf16.mxu0 %vm6305_vm1, %v7689_v53 }
 0x24d   : > { %5722 = vmatprep.subr.bf16.mxu0 %v7689_v53 }
 0x251   : > { %5707 = vmatmul.mubr.msk.bf16.vlgmr.msra.gmra.mrb[12].mxu1 %vm1143_vm2, %v6626_v4 }
 0x252   : > { %5717 = vmatpush3.bf16.xpose.msra.mxu1 %v1424_v54  ;;  %5718 = vmatprep.mubr.msk.bf16.mxu1 %vm6305_vm1, %v7689_v53 }
 0x253   : > { %5713 = vmatmul.mubr.msk.bf16.vlgmr.msra.gmra.mrb[16].mxu0 %vm1143_vm2, %v6630_v7  ;;  %5728 = vmatprep.subr.bf16.mxu1 %v7689_v53 }
 0x254   : > { %5723 = vmatpush3.bf16.xpose.msra.mxu0 %v1470_v11  ;;  %5724 = vmatprep.mubr.msk.bf16.mxu0 %vm6305_vm1, %v7689_v53 }
 0x255   : > { %5734 = vmatprep.subr.bf16.mxu0 %v7689_v53 }
 0x259   : > { %5719 = vmatmul.mubr.msk.bf16.vlgmr.msra.gmra.mrb[16].mxu1 %vm1143_vm2, %v6648_v14 }
 0x25a   : > { %5729 = vmatpush3.bf16.msra.mxu1 %v1622_v17  ;;  %5730 = vmatprep.mubr.msk.bf16.mxu1 %vm6305_vm1, %v7689_v53 }
 0x25b   : > { %5725 = vmatmul.mubr.msk.bf16.vlgmr.msra.gmra.mrb[20].mxu0 %vm1143_vm2, %v6652_v16  ;;  %5740 = vmatprep.subr.bf16.mxu1 %v7689_v53 }
 0x25c   : > { %5735 = vmatpush3.bf16.msra.mxu0 %v1668_v18  ;;  %5736 = vmatprep.mubr.msk.bf16.mxu0 %vm6305_vm1, %v7689_v53 }
 0x25d   : > { %5746 = vmatprep.subr.bf16.mxu0 %v7689_v53 }
 0x314   : > { %v1184_v19 = vpop.f32.mrb[4].mxu1 }
 0x315   : > { %v5684_v20 = vpop.f32.mrb[5].mxu1  ;;  %v1513_v23 = vsel %vm1512_vm4, %v1184_v19, -inf }
 0x316   : > { %1514 = vmax.xlane.f32.xlu0 %v1513_v23  ;;  %v1187_v26 = vpop.f32.mrb[6].mxu1  ;;  %v1230_v27 = vpop.f32.mrb[8].mxu0 }
 0x317   : > { %v5685_v28 = vpop.f32.mrb[7].mxu1  ;;  %v5690_v29 = vpop.f32.mrb[9].mxu0  ;;  %v1516_v30 = vsel %vm1512_vm4, %v1230_v27, -inf }
 0x318   : > { %1517 = vmax.xlane.f32.xlu1 %v1516_v30  ;;  %v1233_v31 = vpop.f32.mrb[10].mxu0 }
 0x319   : > { %v5691_v33 = vpop.f32.mrb[11].mxu0 }
 0x31c   : > { %v1276_v34 = vpop.f32.mrb[8].mxu1 }
 0x31d   : > { %v5696_v37 = vpop.f32.mrb[9].mxu1  ;;  %v1519_v38 = vsel %vm1512_vm4, %v1276_v34, -inf }
 0x31e   : > { %1520 = vmax.xlane.f32.xlu0 %v1519_v38  ;;  %v1279_v43 = vpop.f32.mrb[10].mxu1  ;;  %v1322_v44 = vpop.f32.mrb[12].mxu0 }
 0x31f   : > { %v5697_v46 = vpop.f32.mrb[11].mxu1  ;;  %v5702_v36 = vpop.f32.mrb[13].mxu0  ;;  %v1522_v49 = vsel %vm1512_vm4, %v1322_v44, -inf }
 0x320   : > { %1523 = vmax.xlane.f32.xlu1 %v1522_v49  ;;  %v1325_v52 = vpop.f32.mrb[14].mxu0 }
 0x321   : > { %v5703_v55 = vpop.f32.mrb[15].mxu0 }
 0x324   : > { %v1368_v56 = vpop.f32.mrb[12].mxu1 }
 0x325   : > { %v5708_v57 = vpop.f32.mrb[13].mxu1  ;;  %v1525_v59 = vsel %vm1512_vm4, %v1368_v56, -inf }
 0x326   : > { %1526 = vmax.xlane.f32.xlu0 %v1525_v59  ;;  %v1371_v61 = vpop.f32.mrb[14].mxu1  ;;  %v1414_v50 = vpop.f32.mrb[16].mxu0 }
 0x327   : > { %v5709_v63 = vpop.f32.mrb[15].mxu1  ;;  %v5714_v0 = vpop.f32.mrb[17].mxu0  ;;  %v1528_v1 = vsel %vm1512_vm4, %v1414_v50, -inf }
 0x328   : > { %1529 = vmax.xlane.f32.xlu1 %v1528_v1  ;;  %v1417_v39 = vpop.f32.mrb[18].mxu0 }
 0x329   : > { %v5715_v2 = vpop.f32.mrb[19].mxu0 }
 0x32c   : > { %v1460_v40 = vpop.f32.mrb[16].mxu1 }
 0x32d   : > { %v5720_v6 = vpop.f32.mrb[17].mxu1  ;;  %v1531_v8 = vsel %vm1512_vm4, %v1460_v40, -inf }
 0x32e   : > { %1532 = vmax.xlane.f32.xlu0 %v1531_v8  ;;  %v1463_v54 = vpop.f32.mrb[18].mxu1  ;;  %v6675_v9 = vpop.f32.mrb[20].mxu0 }
 0x32f   : > { %v5721_v10 = vpop.f32.mrb[19].mxu1  ;;  %v5726_v11 = vpop.f32.mrb[21].mxu0  ;;  %v1534_v12 = vsel %vm1512_vm4, %v6675_v9, -inf }
 0x330   : > { %1535 = vmax.xlane.f32.xlu1 %v1534_v12  ;;  %v1509_v17 = vpop.f32.mrb[22].mxu0 }
 0x331   : > { %v5727_v18 = vpop.f32.mrb[23].mxu0 }
 0x3a3   : > { %v1515_v20 = vpop.xlane.xlu0 %1514 }
 0x3a4   : > { %v1537_v23 = vsub.f32 %v1184_v19, %v1515_v20  ;;  %v1112_v20 = vcombine.high %v6573_v42, %v6573_v42 }
 0x3a5   : > { %v1518_v26 = vpop.xlane.xlu1 %1517 }
 0x3a6   : > { %v1545_v28 = vmul.f32 1.442695, %v1537_v23  ;;  %v1538_v29 = vsub.f32 %v1230_v27, %v1518_v26  ;;  %v6752_v23 = vpack.c.bf16 %v6573_v42, %v6573_v42  ;;  %v6756_v26 = vpack.c.bf16 %v1112_v20, %v1112_v20 }
 0x3a8   : > { %6134 = vpow2.f32 %v1545_v28  ;;  %v1547_v30 = vmul.f32 1.442695, %v1538_v29 }
 0x3aa   : > { %6136 = vpow2.f32 %v1547_v30 }
 0x3ab   : > { %v1521_v31 = vpop.xlane.xlu0 %1520 }
 0x3ac   : > { %v1539_v33 = vsub.f32 %v1276_v34, %v1521_v31 }
 0x3ad   : > { %v1524_v37 = vpop.xlane.xlu1 %1523 }
 0x3ae   : > { %v1549_v38 = vmul.f32 1.442695, %v1539_v33  ;;  %v1540_v43 = vsub.f32 %v1322_v44, %v1524_v37 }
 0x3b0   : > { %6138 = vpow2.f32 %v1549_v38  ;;  %v1551_v46 = vmul.f32 1.442695, %v1540_v43 }
 0x3b2   : > { %v6679_v36 = vpop.eup %6134  ;;  %6140 = vpow2.f32 %v1551_v46  ;;  %v1714_v46 = vsel %vm1620_vm3, %v6752_v23, 0 }
 0x3b3   : > { %v1527_v49 = vpop.xlane.xlu0 %1526  ;;  %v1561_v19 = vsel %vm1512_vm4, %v6679_v36, 0.0 }
 0x3b4   : > { %v6683_v52 = vpop.eup %6136  ;;  %v1541_v27 = vsub.f32 %v1368_v56, %v1527_v49  ;;  %1562 = vadd.xlane.f32.xlu0 %v1561_v19 }
 0x3b5   : > { %v1530_v55 = vpop.xlane.xlu1 %1529  ;;  %v1564_v34 = vsel %vm1512_vm4, %v6683_v52, 0.0 }
 0x3b6   : > { %v1553_v57 = vmul.f32 1.442695, %v1541_v27  ;;  %v1542_v59 = vsub.f32 %v1414_v50, %v1530_v55  ;;  %1565 = vadd.xlane.f32.xlu1 %v1564_v34  ;;  %v1113_v27 = vcombine.high %v6566_v32, %v6566_v32  ;;  %v6777_v34 = vpack.c.bf16 %v6566_v32, %v6566_v32 }
 0x3b7   : > { %v1114_v32 = vcombine.high %v6570_v41, %v6570_v41 }
 0x3b8   : > { %6142 = vpow2.f32 %v1553_v57  ;;  %v1555_v44 = vmul.f32 1.442695, %v1542_v59 }
 0x3ba   : > { %v6687_v61 = vpop.eup %6138  ;;  %6144 = vpow2.f32 %v1555_v44  ;;  %v6781_v44 = vpack.c.bf16 %v1113_v27, %v1113_v27 }
 0x3bb   : > { %v1533_v63 = vpop.xlane.xlu0 %1532  ;;  %v1567_v0 = vsel %vm1512_vm4, %v6687_v61, 0.0 }
 0x3bc   : > { %v6691_v1 = vpop.eup %6140  ;;  %v1543_v56 = vsub.f32 %v1460_v40, %v1533_v63  ;;  %1568 = vadd.xlane.f32.xlu0 %v1567_v0 }
 0x3bd   : > { %v1570_v39 = vsel %vm1512_vm4, %v6691_v1, 0.0  ;;  %v1536_v11 = vpop.xlane.xlu1 %1535 }
 0x3be   : > { %v1557_v2 = vmul.f32 1.442695, %v1543_v56  ;;  %1571 = vadd.xlane.f32.xlu1 %v1570_v39  ;;  %v1544_v12 = vsub.f32 %v6675_v9, %v1536_v11  ;;  %v1806_v56 = vsel %vm1620_vm3, %v6777_v34, 0 }
 0x3c0   : > { %6146 = vpow2.f32 %v1557_v2  ;;  %v1559_v17 = vmul.f32 1.442695, %v1544_v12  ;;  %v6803_v12 = vpack.c.bf16 %v1114_v32, %v1114_v32 }
 0x3c2   : > { %v6695_v50 = vpop.eup %6142  ;;  %6148 = vpow2.f32 %v1559_v17 }
 0x3c3   : > { %v1573_v6 = vsel %vm1512_vm4, %v6695_v50, 0.0 }
 0x3c4   : > { %v6699_v8 = vpop.eup %6144  ;;  %1574 = vadd.xlane.f32.xlu0 %v1573_v6  ;;  %v6799_v6 = vpack.c.bf16 %v6570_v41, %v6570_v41 }
 0x3c5   : > { %v1576_v54 = vsel %vm1512_vm4, %v6699_v8, 0.0 }
 0x3c6   : > { %1577 = vadd.xlane.f32.xlu1 %v1576_v54  ;;  %v1898_v20 = vsel %vm1620_vm3, %v6799_v6, 0 }
 0x3ca   : > { %v6703_v40 = vpop.eup %6146 }
 0x3cb   : > { %v1579_v10 = vsel %vm1512_vm4, %v6703_v40, 0.0 }
 0x3cc   : > { %1580 = vadd.xlane.f32.xlu0 %v1579_v10  ;;  %v6726_v18 = vpop.eup %6148 }
 0x3cd   : > { %v1582_v9 = vsel %vm1512_vm4, %v6726_v18, 0.0 }
 0x3d7   : > { %2042 = vrot.lane.b32.xlu1 %v6559_v22, %s6306_s0 }
 0x3db   : > { %1987 = vrot.lane.b32.xlu1 %v6579_v47, %s6306_s0 }
 0x3e2   : > { %1990 = vrot.lane.b32.xlu0 %v6557_v21, %s6306_s0 }
 0x3e6   : > { %2094 = vrot.lane.b32.xlu0 %v6576_v45, %s6306_s0 }
 0x3ea   : > { %2091 = vrot.lane.b32.xlu0 %v6604_v62, %s6306_s0 }
 0x3ee   : > { %2198 = vrot.lane.b32.xlu0 %v6599_v58, %s6306_s0 }
 0x3f2   : > { %2195 = vrot.lane.b32.xlu0 %v6626_v4, %s6306_s0 }
 0x3f6   : > { %2302 = vrot.lane.b32.xlu0 %v6623_v3, %s6306_s0 }
 0x3fa   : > { %2299 = vrot.lane.b32.xlu0 %v6648_v14, %s6306_s0 }
 0x3fe   : > { %2499 = vrot.lane.b32.xlu0 %v6645_v13, %s6306_s0 }
 0x3ff   : > { %1583 = vadd.xlane.f32.xlu1 %v1582_v9 }
 0x410   : > { %2039 = vrot.lane.b32.xlu1 %v6583_v48, %s6306_s0 }
 0x414   : > { %2146 = vrot.lane.b32.xlu1 %v6581_v35, %s6306_s0 }
 0x418   : > { %2143 = vrot.lane.b32.xlu1 %v6606_v51, %s6306_s0 }
 0x41c   : > { %2250 = vrot.lane.b32.xlu1 %v6602_v60, %s6306_s0 }
 0x420   : > { %2247 = vrot.lane.b32.xlu1 %v6630_v7, %s6306_s0 }
 0x424   : > { %2354 = vrot.lane.b32.xlu1 %v6628_v5, %s6306_s0 }
 0x428   : > { %2351 = vrot.lane.b32.xlu1 %v6652_v16, %s6306_s0 }
 0x42c   : > { %2548 = vrot.lane.b32.xlu1 %v6650_v15, %s6306_s0 }
 0x430   : > { %2597 = vrot.lane.b32.xlu1 %v6752_v23, %s6306_s0 }
 0x434   : > { %2646 = vrot.lane.b32.xlu1 %v6756_v26, %s6306_s0 }
 0x441   : > { %v1563_v28 = vpop.xlane.xlu0 %1562 }
 0x442   : > { %6150 = vrcp.f32 %v1563_v28 }
 0x443   : > { %v1566_v29 = vpop.xlane.xlu1 %1565 }
 0x444   : > { %6152 = vrcp.f32 %v1566_v29 }
 0x449   : > { %v1569_v30 = vpop.xlane.xlu0 %1568 }
 0x44a   : > { %6154 = vrcp.f32 %v1569_v30 }
 0x44b   : > { %v1572_v31 = vpop.xlane.xlu1 %1571 }
 0x44c   : > { %v6151_v33 = vpop.eup %6150  ;;  %6156 = vrcp.f32 %v1572_v31 }
 0x44d   : > { %v1586_v42 = vmul.f32 %v6151_v33, %v6679_v36  ;;  %v1760_v36 = vsel %vm1620_vm3, %v6756_v26, 0 }
 0x44e   : > { %v6153_v37 = vpop.eup %6152 }
 0x44f   : > { %v1601_v38 = vpack.c.bf16 %v1586_v42, %v1586_v42  ;;  %v1588_v43 = vmul.f32 %v6153_v37, %v6683_v52 }
 0x451   : > { %5731 = vmatmul.mubr.msk.bf16.vlgmr.msra.gmra.mrb[20].mxu1 %vm1143_vm2, %v1601_v38  ;;  %v1575_v49 = vpop.xlane.xlu0 %1574  ;;  %v1602_v19 = vpack.c.bf16 %v1588_v43, %v1588_v43 }
 0x452   : > { %5741 = vmatpush3.bf16.msra.mxu1 %v1714_v46  ;;  %6158 = vrcp.f32 %v1575_v49  ;;  %5742 = vmatprep.mubr.msk.bf16.mxu1 %vm6305_vm1, %v7689_v53 }
 0x453   : > { %5737 = vmatmul.mubr.msk.bf16.vlgmr.msra.gmra.mrb[24].mxu0 %vm1143_vm2, %v1602_v19  ;;  %v1578_v52 = vpop.xlane.xlu1 %1577  ;;  %5752 = vmatprep.subr.bf16.mxu1 %v7689_v53 }
 0x454   : > { %v6155_v55 = vpop.eup %6154  ;;  %5747 = vmatpush3.bf16.msra.mxu0 %v1760_v36  ;;  %6160 = vrcp.f32 %v1578_v52  ;;  %5748 = vmatprep.mubr.msk.bf16.mxu0 %vm6305_vm1, %v7689_v53 }
 0x455   : > { %v1590_v57 = vmul.f32 %v6155_v55, %v6687_v61  ;;  %5758 = vmatprep.subr.bf16.mxu0 %v7689_v53  ;;  %v1852_v61 = vsel %vm1620_vm3, %v6781_v44, 0 }
 0x456   : > { %v6157_v59 = vpop.eup %6156 }
 0x457   : > { %v1603_v63 = vpack.c.bf16 %v1590_v57, %v1590_v57  ;;  %v1592_v0 = vmul.f32 %v6157_v59, %v6691_v1  ;;  %v2043_v42 = vpop.permute.xlu1 %2042 }
 0x459   : > { %5743 = vmatmul.mubr.msk.bf16.vlgmr.msra.gmra.mrb[24].mxu1 %vm1143_vm2, %v1603_v63  ;;  %v1581_v39 = vpop.xlane.xlu0 %1580  ;;  %v1604_v2 = vpack.c.bf16 %v1592_v0, %v1592_v0 }
 0x45a   : > { %5753 = vmatpush3.bf16.msra.mxu1 %v1806_v56  ;;  %6162 = vrcp.f32 %v1581_v39  ;;  %5754 = vmatprep.mubr.msk.bf16.mxu1 %vm6305_vm1, %v7689_v53 }
 0x45b   : > { %5749 = vmatmul.mubr.msk.bf16.vlgmr.msra.gmra.mrb[28].mxu0 %vm1143_vm2, %v1604_v2  ;;  %5764 = vmatprep.subr.bf16.mxu1 %v7689_v53  ;;  %v1988_v38 = vpop.permute.xlu1 %1987  ;;  %v2048_v2 = vsel %vm1143_vm2, %v2043_v42, 0 }
 0x45c   : > { %v6159_v1 = vpop.eup %6158  ;;  %5759 = vmatpush3.bf16.msra.mxu0 %v1852_v61  ;;  %5760 = vmatprep.mubr.msk.bf16.mxu0 %vm6305_vm1, %v7689_v53 }
 0x45d   : > { %v1991_v54 = vpop.permute.xlu0 %1990  ;;  %v1594_v10 = vmul.f32 %v6159_v1, %v6695_v50  ;;  %5770 = vmatprep.subr.bf16.mxu0 %v7689_v53  ;;  %v1944_v50 = vsel %vm1620_vm3, %v6803_v12, 0 }
 0x45e   : > { %v6161_v11 = vpop.eup %6160  ;;  %v1996_v33 = vsel %vm1143_vm2, %v1991_v54, 0 }
 0x45f   : > { %v1605_v17 = vpack.c.bf16 %v1594_v10, %v1594_v10  ;;  %v1596_v9 = vmul.f32 %v6161_v11, %v6699_v8 }
 0x461   : > { %5755 = vmatmul.mubr.msk.bf16.vlgmr.msra.gmra.mrb[28].mxu1 %vm1143_vm2, %v1605_v17  ;;  %v1606_v28 = vpack.c.bf16 %v1596_v9, %v1596_v9  ;;  %v2095_v41 = vpop.permute.xlu0 %2094 }
 0x462   : > { %5765 = vmatpush3.bf16.msra.mxu1 %v1898_v20  ;;  %5766 = vmatprep.mubr.msk.bf16.mxu1 %vm6305_vm1, %v7689_v53  ;;  %v2100_v43 = vsel %vm1143_vm2, %v2095_v41, 0 }
 0x463   : > { %5761 = vmatmul.mubr.msk.bf16.vlgmr.msra.gmra.mrb[32].mxu0 %vm1143_vm2, %v1606_v28  ;;  %5776 = vmatprep.subr.bf16.mxu1 %v7689_v53 }
 0x464   : > { %v6163_v29 = vpop.eup %6162  ;;  %5771 = vmatpush3.bf16.msra.mxu0 %v1944_v50  ;;  %5772 = vmatprep.mubr.msk.bf16.mxu0 %vm6305_vm1, %v7689_v53 }
 0x465   : > { %v1598_v8 = vmul.f32 %v6163_v29, %v6703_v40  ;;  %5782 = vmatprep.subr.bf16.mxu0 %v7689_v53  ;;  %v2092_v31 = vpop.permute.xlu0 %2091 }
 0x467   : > { %v1607_v30 = vpack.c.bf16 %v1598_v8, %v1598_v8 }
 0x469   : > { %5767 = vmatmul.mubr.msk.bf16.vlgmr.msra.gmra.mrb[32].mxu1 %vm1143_vm2, %v1607_v30  ;;  %v2199_v37 = vpop.permute.xlu0 %2198 }
 0x46a   : > { %5778 = vmatprep.mubr.msk.bf16.mxu1 %vm6305_vm1, %v7689_v53  ;;  %v2204_v46 = vsel %vm1143_vm2, %v2199_v37, 0 }
 0x46b   : > { %5777 = vmatpush3.bf16.xpose.msra.mxu1 %v1996_v33 }
 0x46c   : > { %5788 = vmatprep.subr.bf16.mxu1 %v7689_v53 }
 0x46d   : > { %v2196_v40 = vpop.permute.xlu0 %2195 }
 0x471   : > { %v2303_v49 = vpop.permute.xlu0 %2302 }
 0x472   : > { %5779 = vmatmul.mubr.msk.bf16.vlgmr.msra.gmra.mrb[36].mxu1 %vm1143_vm2, %v1988_v38  ;;  %v2308_v27 = vsel %vm1143_vm2, %v2303_v49, 0 }
 0x473   : > { %5789 = vmatpush3.bf16.xpose.msra.mxu1 %v2100_v43  ;;  %5790 = vmatprep.mubr.msk.bf16.mxu1 %vm6305_vm1, %v7689_v53 }
 0x474   : > { %5800 = vmatprep.subr.bf16.mxu1 %v7689_v53 }
 0x475   : > { %v2300_v19 = vpop.permute.xlu0 %2299 }
 0x479   : > { %v2500_v36 = vpop.permute.xlu0 %2499 }
 0x47a   : > { %5791 = vmatmul.mubr.msk.bf16.vlgmr.msra.gmra.mrb[40].mxu1 %vm1143_vm2, %v2092_v31  ;;  %v2505_v52 = vsel %vm1620_vm3, %v2500_v36, 0 }
 0x47b   : > { %5801 = vmatpush3.bf16.xpose.msra.mxu1 %v2204_v46  ;;  %5802 = vmatprep.mubr.msk.bf16.mxu1 %vm6305_vm1, %v7689_v53 }
 0x47c   : > { %5812 = vmatprep.subr.bf16.mxu1 %v7689_v53 }
 0x482   : > { %5803 = vmatmul.mubr.msk.bf16.vlgmr.msra.gmra.mrb[44].mxu1 %vm1143_vm2, %v2196_v40 }
 0x483   : > { %5813 = vmatpush3.bf16.xpose.msra.mxu1 %v2308_v27  ;;  %5814 = vmatprep.mubr.msk.bf16.mxu1 %vm6305_vm1, %v7689_v53 }
 0x484   : > { %5824 = vmatprep.subr.bf16.mxu1 %v7689_v53 }
 0x48a   : > { %5815 = vmatmul.mubr.msk.bf16.vlgmr.msra.gmra.mrb[48].mxu1 %vm1143_vm2, %v2300_v19 }
 0x48b   : > { %5825 = vmatpush3.bf16.msra.mxu1 %v2505_v52  ;;  %5826 = vmatprep.mubr.msk.bf16.mxu1 %vm6305_vm1, %v7689_v53 }
 0x48c   : > { %v1584_v55 = vpop.xlane.xlu1 %1583  ;;  %5836 = vmatprep.subr.bf16.mxu1 %v7689_v53 }
 0x48d   : > { %6164 = vrcp.f32 %v1584_v55 }
 0x490   : > { %v2040_v57 = vpop.permute.xlu1 %2039 }
 0x494   : > { %v2147_v59 = vpop.permute.xlu1 %2146 }
 0x495   : > { %v2152_v61 = vsel %vm1143_vm2, %v2147_v59, 0 }
 0x497   : > { %v6165_v63 = vpop.eup %6164 }
 0x498   : > { %v1600_v0 = vmul.f32 %v6165_v63, %v6726_v18  ;;  %v2144_v39 = vpop.permute.xlu1 %2143 }
 0x49a   : > { %v1608_v56 = vpack.c.bf16 %v1600_v0, %v1600_v0 }
 0x49c   : > { %5773 = vmatmul.mubr.msk.bf16.vlgmr.msra.gmra.mrb[36].mxu0 %vm1143_vm2, %v1608_v56  ;;  %v2251_v32 = vpop.permute.xlu1 %2250 }
 0x49d   : > { %5783 = vmatpush3.bf16.xpose.msra.mxu0 %v2048_v2  ;;  %5784 = vmatprep.mubr.msk.bf16.mxu0 %vm6305_vm1, %v7689_v53  ;;  %v2256_v1 = vsel %vm1143_vm2, %v2251_v32, 0 }
 0x49e   : > { %5794 = vmatprep.subr.bf16.mxu0 %v7689_v53 }
 0x4a0   : > { %v2248_v18 = vpop.permute.xlu1 %2247 }
 0x4a4   : > { %5785 = vmatmul.mubr.msk.bf16.vlgmr.msra.gmra.mrb[40].mxu0 %vm1143_vm2, %v2040_v57  ;;  %v2355_v54 = vpop.permute.xlu1 %2354 }
 0x4a5   : > { %5795 = vmatpush3.bf16.xpose.msra.mxu0 %v2152_v61  ;;  %5796 = vmatprep.mubr.msk.bf16.mxu0 %vm6305_vm1, %v7689_v53  ;;  %v2360_v11 = vsel %vm1143_vm2, %v2355_v54, 0 }
 0x4a6   : > { %5806 = vmatprep.subr.bf16.mxu0 %v7689_v53 }
 0x4a8   : > { %v2352_v10 = vpop.permute.xlu1 %2351 }
 0x4ac   : > { %5797 = vmatmul.mubr.msk.bf16.vlgmr.msra.gmra.mrb[44].mxu0 %vm1143_vm2, %v2144_v39  ;;  %v2549_v17 = vpop.permute.xlu1 %2548 }
 0x4ad   : > { %5807 = vmatpush3.bf16.xpose.msra.mxu0 %v2256_v1  ;;  %5808 = vmatprep.mubr.msk.bf16.mxu0 %vm6305_vm1, %v7689_v53  ;;  %v2554_v9 = vsel %vm1620_vm3, %v2549_v17, 0 }
 0x4ae   : > { %5818 = vmatprep.subr.bf16.mxu0 %v7689_v53 }
 0x4b4   : > { %5809 = vmatmul.mubr.msk.bf16.vlgmr.msra.gmra.mrb[48].mxu0 %vm1143_vm2, %v2248_v18 }
 0x4b5   : > { %5819 = vmatpush3.bf16.xpose.msra.mxu0 %v2360_v11  ;;  %5820 = vmatprep.mubr.msk.bf16.mxu0 %vm6305_vm1, %v7689_v53 }
 0x4b6   : > { %5830 = vmatprep.subr.bf16.mxu0 %v7689_v53 }
 0x4bc   : > { %5821 = vmatmul.mubr.msk.bf16.vlgmr.msra.gmra.mrb[52].mxu0 %vm1143_vm2, %v2352_v10 }
 0x4bd   : > { %5831 = vmatpush3.bf16.msra.mxu0 %v2554_v9  ;;  %5832 = vmatprep.mubr.msk.bf16.mxu0 %vm6305_vm1, %v7689_v53 }
 0x4be   : > { %5842 = vmatprep.subr.bf16.mxu0 %v7689_v53 }
 0x524   : > { %v6870_v20 = vpop.f32.mrb[20].mxu1 }
 0x525   : > { %v5732_v28 = vpop.f32.mrb[21].mxu1 }
 0x526   : > { %v1661_v41 = vpop.f32.mrb[22].mxu1  ;;  %v6872_v50 = vpop.f32.mrb[24].mxu0 }
 0x527   : > { %v5733_v29 = vpop.f32.mrb[23].mxu1  ;;  %v5738_v8 = vpop.f32.mrb[25].mxu0 }
 0x528   : > { %v1707_v30 = vpop.f32.mrb[26].mxu0 }
 0x529   : > { %v5739_v31 = vpop.f32.mrb[27].mxu0 }
 0x52c   : > { %v6874_v33 = vpop.f32.mrb[24].mxu1 }
 0x52d   : > { %v5744_v42 = vpop.f32.mrb[25].mxu1 }
 0x52e   : > { %v1753_v37 = vpop.f32.mrb[26].mxu1  ;;  %v6876_v38 = vpop.f32.mrb[28].mxu0 }
 0x52f   : > { %v5745_v43 = vpop.f32.mrb[27].mxu1  ;;  %v5750_v40 = vpop.f32.mrb[29].mxu0 }
 0x530   : > { %v1799_v46 = vpop.f32.mrb[30].mxu0 }
 0x531   : > { %v5751_v49 = vpop.f32.mrb[31].mxu0 }
 0x534   : > { %v6878_v19 = vpop.f32.mrb[28].mxu1 }
 0x535   : > { %v5756_v27 = vpop.f32.mrb[29].mxu1 }
 0x536   : > { %v1845_v36 = vpop.f32.mrb[30].mxu1  ;;  %v6880_v52 = vpop.f32.mrb[32].mxu0 }
 0x537   : > { %v5757_v55 = vpop.f32.mrb[31].mxu1  ;;  %v5762_v57 = vpop.f32.mrb[33].mxu0 }
 0x538   : > { %v1891_v59 = vpop.f32.mrb[34].mxu0 }
 0x539   : > { %v5763_v63 = vpop.f32.mrb[35].mxu0 }
 0x53c   : > { %v6882_v0 = vpop.f32.mrb[32].mxu1 }
 0x53d   : > { %v5768_v56 = vpop.f32.mrb[33].mxu1 }
 0x53e   : > { %v1937_v39 = vpop.f32.mrb[34].mxu1 }
 0x53f   : > { %v5769_v2 = vpop.f32.mrb[35].mxu1 }
 0x545   : > { %v2032_v32 = vpop.f32.mrb[36].mxu1 }
 0x546   : > { %v5780_v61 = vpop.f32.mrb[37].mxu1  ;;  %v2402_v18 = vsel %vm1512_vm4, %v2032_v32, -inf }
 0x547   : > { %2403 = vmax.xlane.f32.xlu0 %v2402_v18  ;;  %v2035_v1 = vpop.f32.mrb[38].mxu1 }
 0x548   : > { %v5781_v54 = vpop.f32.mrb[39].mxu1 }
 0x54d   : > { %v2136_v10 = vpop.f32.mrb[40].mxu1 }
 0x54e   : > { %v5792_v11 = vpop.f32.mrb[41].mxu1  ;;  %v2408_v17 = vsel %vm1512_vm4, %v2136_v10, -inf }
 0x54f   : > { %2409 = vmax.xlane.f32.xlu0 %v2408_v17  ;;  %v2139_v9 = vpop.f32.mrb[42].mxu1 }
 0x550   : > { %v5793_v28 = vpop.f32.mrb[43].mxu1 }
 0x555   : > { %v6886_v41 = vpop.f32.mrb[44].mxu1 }
 0x556   : > { %v5804_v29 = vpop.f32.mrb[45].mxu1  ;;  %v2414_v1 = vsel %vm1512_vm4, %v6886_v41, -inf }
 0x557   : > { %v2243_v8 = vpop.f32.mrb[46].mxu1 }
 0x558   : > { %v5805_v30 = vpop.f32.mrb[47].mxu1 }
 0x55d   : > { %v6888_v31 = vpop.f32.mrb[48].mxu1 }
 0x55e   : > { %v5816_v42 = vpop.f32.mrb[49].mxu1  ;;  %v2420_v17 = vsel %vm1512_vm4, %v6888_v31, -inf }
 0x55f   : > { %v2347_v37 = vpop.f32.mrb[50].mxu1 }
 0x560   : > { %v5817_v43 = vpop.f32.mrb[51].mxu1 }
 0x56f   : > { %v6890_v40 = vpop.f32.mrb[36].mxu0 }
 0x570   : > { %v5774_v46 = vpop.f32.mrb[37].mxu0 }
 0x571   : > { %v1983_v49 = vpop.f32.mrb[38].mxu0 }
 0x572   : > { %v5775_v27 = vpop.f32.mrb[39].mxu0 }
 0x577   : > { %v2084_v36 = vpop.f32.mrb[40].mxu0 }
 0x578   : > { %v5786_v55 = vpop.f32.mrb[41].mxu0  ;;  %v2405_v57 = vsel %vm1512_vm4, %v2084_v36, -inf }
 0x579   : > { %2406 = vmax.xlane.f32.xlu1 %v2405_v57  ;;  %v2087_v59 = vpop.f32.mrb[42].mxu0 }
 0x57a   : > { %v5787_v63 = vpop.f32.mrb[43].mxu0 }
 0x57f   : > { %v2188_v56 = vpop.f32.mrb[44].mxu0 }
 0x580   : > { %v5798_v39 = vpop.f32.mrb[45].mxu0  ;;  %v2411_v2 = vsel %vm1512_vm4, %v2188_v56, -inf }
 0x581   : > { %2412 = vmax.xlane.f32.xlu0 %v2411_v2  ;;  %v2191_v61 = vpop.f32.mrb[46].mxu0 }
 0x582   : > { %v5799_v18 = vpop.f32.mrb[47].mxu0 }
 0x583   : > { %v2598_v18 = vpop.permute.xlu1 %2597 }
 0x585   : > { %2415 = vmax.xlane.f32.xlu0 %v2414_v1 }
 0x587   : > { %v2292_v54 = vpop.f32.mrb[48].mxu0 }
 0x588   : > { %v5810_v11 = vpop.f32.mrb[49].mxu0  ;;  %v2417_v9 = vsel %vm1512_vm4, %v2292_v54, -inf }
 0x589   : > { %2421 = vmax.xlane.f32.xlu0 %v2420_v17  ;;  %2418 = vmax.xlane.f32.xlu1 %v2417_v9  ;;  %v2295_v28 = vpop.f32.mrb[50].mxu0 }
 0x58a   : > { %v5811_v29 = vpop.f32.mrb[51].mxu0 }
 0x58f   : > { %v6899_v8 = vpop.f32.mrb[52].mxu0 }
 0x590   : > { %v5822_v30 = vpop.f32.mrb[53].mxu0  ;;  %v2423_v43 = vsel %vm1512_vm4, %v6899_v8, -inf }
 0x591   : > { %v2399_v42 = vpop.f32.mrb[54].mxu0 }
 0x592   : > { %v5823_v37 = vpop.f32.mrb[55].mxu0 }
 0x59a   : > { %2744 = vrot.lane.b32.xlu1 %v6781_v44, %s6306_s0 }
 0x59f   : > { %2695 = vrot.lane.b32.xlu0 %v6777_v34, %s6306_s0 }
 0x5be   : > { %2424 = vmax.xlane.f32.xlu1 %v2423_v43 }
 0x5d4   : > { %v2404_v46 = vpop.xlane.xlu0 %2403 }
 0x5d5   : > { %v2426_v49 = vsub.f32 %v2032_v32, %v2404_v46  ;;  %v6915_v32 = vpop.permute.xlu1 %2646 }
 0x5d7   : > { %v2434_v27 = vmul.f32 1.442695, %v2426_v49 }
 0x5d9   : > { %6166 = vpow2.f32 %v2434_v27 }
 0x5dc   : > { %v2410_v55 = vpop.xlane.xlu0 %2409 }
 0x5dd   : > { %v2428_v57 = vsub.f32 %v2136_v10, %v2410_v55 }
 0x5df   : > { %v2438_v59 = vmul.f32 1.442695, %v2428_v57 }
 0x5e1   : > { %6168 = vpow2.f32 %v2438_v59 }
 0x5e3   : > { %v6907_v63 = vpop.eup %6166 }
 0x5e4   : > { %v2450_v39 = vsel %vm1512_vm4, %v6907_v63, 0.0 }
 0x5e5   : > { %2451 = vadd.xlane.f32.xlu0 %v2450_v39 }
 0x5eb   : > { %v6911_v2 = vpop.eup %6168 }
 0x5ec   : > { %v2456_v61 = vsel %vm1512_vm4, %v6911_v2, 0.0 }
 0x5ed   : > { %2457 = vadd.xlane.f32.xlu0 %v2456_v61 }
 0x606   : > { %v2407_v1 = vpop.xlane.xlu1 %2406 }
 0x607   : > { %v2427_v11 = vsub.f32 %v2084_v36, %v2407_v1 }
 0x609   : > { %v2436_v10 = vmul.f32 1.442695, %v2427_v11 }
 0x60b   : > { %6170 = vpow2.f32 %v2436_v10 }
 0x60e   : > { %v2413_v17 = vpop.xlane.xlu0 %2412 }
 0x60f   : > { %v2429_v9 = vsub.f32 %v2188_v56, %v2413_v17 }
 0x611   : > { %v2440_v28 = vmul.f32 1.442695, %v2429_v9 }
 0x612   : > { %v2416_v29 = vpop.xlane.xlu0 %2415 }
 0x613   : > { %6172 = vpow2.f32 %v2440_v28  ;;  %v2430_v30 = vsub.f32 %v6886_v41, %v2416_v29 }
 0x615   : > { %v6918_v42 = vpop.eup %6170  ;;  %v2442_v37 = vmul.f32 1.442695, %v2430_v30 }
 0x616   : > { %v2453_v43 = vsel %vm1512_vm4, %v6918_v42, 0.0  ;;  %v2419_v41 = vpop.xlane.xlu1 %2418  ;;  %v2422_v55 = vpop.xlane.xlu0 %2421 }
 0x617   : > { %6174 = vpow2.f32 %v2442_v37  ;;  %2454 = vadd.xlane.f32.xlu1 %v2453_v43  ;;  %v2431_v27 = vsub.f32 %v2292_v54, %v2419_v41  ;;  %v2432_v57 = vsub.f32 %v6888_v31, %v2422_v55 }
 0x619   : > { %v2444_v59 = vmul.f32 1.442695, %v2431_v27  ;;  %v2446_v39 = vmul.f32 1.442695, %v2432_v57 }
 0x61a   : > { %v6945_v31 = vpop.permute.xlu1 %2744  ;;  %v2696_v54 = vpop.permute.xlu0 %2695 }
 0x61b   : > { %6176 = vpow2.f32 %v2444_v59  ;;  %v2701_v55 = vsel %vm1620_vm3, %v2696_v54, 0  ;;  %v2652_v54 = vsel %vm1620_vm3, %v6915_v32, 0  ;;  %v2750_v32 = vsel %vm1620_vm3, %v6945_v31, 0 }
 0x61c   : > { %6178 = vpow2.f32 %v2446_v39 }
 0x61d   : > { %v6922_v46 = vpop.eup %6172 }
 0x61e   : > { %v2459_v36 = vsel %vm1512_vm4, %v6922_v46, 0.0 }
 0x61f   : > { %2460 = vadd.xlane.f32.xlu1 %v2459_v36  ;;  %v2603_v36 = vsel %vm1620_vm3, %v2598_v18, 0 }
 0x621   : > { %v6926_v56 = vpop.eup %6174 }
 0x622   : > { %v2462_v49 = vsel %vm1512_vm4, %v6926_v56, 0.0 }
 0x623   : > { %2463 = vadd.xlane.f32.xlu0 %v2462_v49 }
 0x625   : > { %v6935_v61 = vpop.eup %6176 }
 0x626   : > { %v2465_v1 = vsel %vm1512_vm4, %v6935_v61, 0.0  ;;  %v6939_v11 = vpop.eup %6178 }
 0x627   : > { %v2468_v10 = vsel %vm1512_vm4, %v6939_v11, 0.0 }
 0x630   : > { %2842 = vrot.lane.b32.xlu1 %v6803_v12, %s6306_s0 }
 0x639   : > { %2793 = vrot.lane.b32.xlu0 %v6799_v6, %s6306_s0 }
 0x64b   : > { %v2425_v17 = vpop.xlane.xlu1 %2424 }
 0x64c   : > { %v2433_v9 = vsub.f32 %v6899_v8, %v2425_v17 }
 0x64e   : > { %v2448_v29 = vmul.f32 1.442695, %v2433_v9 }
 0x654   : > { %2466 = vadd.xlane.f32.xlu1 %v2465_v1 }
 0x658   : > { %2469 = vadd.xlane.f32.xlu0 %v2468_v10 }
 0x665   : > { %2942 = vrot.lane.b32.xlu1 %v6559_v22, %s6307_s30 }
 0x66e   : > { %2892 = vrot.lane.b32.xlu0 %v6557_v21, %s6307_s30 }
 0x672   : > { %v2452_v28 = vpop.xlane.xlu0 %2451  ;;  %2890 = vrot.lane.b32.xlu0 %v6579_v47, %s6307_s30 }
 0x673   : > { %6180 = vrcp.f32 %v2452_v28 }
 0x674   : > { %6182 = vpow2.f32 %v2448_v29 }
 0x676   : > { %2992 = vrot.lane.b32.xlu0 %v6576_v45, %s6307_s30 }
 0x67a   : > { %v2458_v30 = vpop.xlane.xlu0 %2457  ;;  %2990 = vrot.lane.b32.xlu0 %v6604_v62, %s6307_s30 }
 0x67b   : > { %6184 = vrcp.f32 %v2458_v30 }
 0x67d   : > { %v6181_v37 = vpop.eup %6180 }
 0x67e   : > { %3092 = vrot.lane.b32.xlu0 %v6599_v58, %s6307_s30  ;;  %v2475_v8 = vmul.f32 %v6181_v37, %v6907_v63  ;;  %v6965_v49 = vpop.eup %6182 }
 0x67f   : > { %v2471_v27 = vsel %vm1512_vm4, %v6965_v49, 0.0 }
 0x680   : > { %v2490_v43 = vpack.c.bf16 %v2475_v8, %v2475_v8 }
 0x682   : > { %5827 = vmatmul.mubr.msk.bf16.vlgmr.msra.gmra.mrb[52].mxu1 %vm1143_vm2, %v2490_v43  ;;  %3090 = vrot.lane.b32.xlu0 %v6626_v4, %s6307_s30 }
 0x683   : > { %5837 = vmatpush3.bf16.msra.mxu1 %v2603_v36  ;;  %5838 = vmatprep.mubr.msk.bf16.mxu1 %vm6305_vm1, %v7689_v53 }
 0x684   : > { %5848 = vmatprep.subr.bf16.mxu1 %v7689_v53 }
 0x685   : > { %v6185_v41 = vpop.eup %6184 }
 0x686   : > { %3192 = vrot.lane.b32.xlu0 %v6623_v3, %s6307_s30  ;;  %v2479_v63 = vmul.f32 %v6185_v41, %v6911_v2 }
 0x688   : > { %v2492_v18 = vpack.c.bf16 %v2479_v63, %v2479_v63 }
 0x689   : > { %2472 = vadd.xlane.f32.xlu1 %v2471_v27 }
 0x68a   : > { %5839 = vmatmul.mubr.msk.bf16.vlgmr.msra.gmra.mrb[56].mxu1 %vm1143_vm2, %v2492_v18  ;;  %3190 = vrot.lane.b32.xlu0 %v6648_v14, %s6307_s30 }
 0x68b   : > { %5849 = vmatpush3.bf16.msra.mxu1 %v2701_v55  ;;  %5850 = vmatprep.mubr.msk.bf16.mxu1 %vm6305_vm1, %v7689_v53 }
 0x68c   : > { %5860 = vmatprep.subr.bf16.mxu1 %v7689_v53 }
 0x68e   : > { %3386 = vrot.lane.b32.xlu0 %v6645_v13, %s6307_s30 }
 0x69a   : > { %2940 = vrot.lane.b32.xlu1 %v6583_v48, %s6307_s30 }
 0x69e   : > { %3042 = vrot.lane.b32.xlu1 %v6581_v35, %s6307_s30 }
 0x6a2   : > { %3040 = vrot.lane.b32.xlu1 %v6606_v51, %s6307_s30 }
 0x6a4   : > { %v2455_v2 = vpop.xlane.xlu1 %2454 }
 0x6a5   : > { %6186 = vrcp.f32 %v2455_v2 }
 0x6a6   : > { %3142 = vrot.lane.b32.xlu1 %v6602_v60, %s6307_s30 }
 0x6aa   : > { %3140 = vrot.lane.b32.xlu1 %v6630_v7, %s6307_s30 }
 0x6ac   : > { %v2461_v57 = vpop.xlane.xlu1 %2460 }
 0x6ad   : > { %6188 = vrcp.f32 %v2461_v57 }
 0x6ae   : > { %3242 = vrot.lane.b32.xlu1 %v6628_v5, %s6307_s30 }
 0x6af   : > { %v6187_v59 = vpop.eup %6186 }
 0x6b0   : > { %v2464_v39 = vpop.xlane.xlu0 %2463  ;;  %v2477_v1 = vmul.f32 %v6187_v59, %v6918_v42 }
 0x6b1   : > { %6190 = vrcp.f32 %v2464_v39 }
 0x6b2   : > { %3240 = vrot.lane.b32.xlu1 %v6652_v16, %s6307_s30  ;;  %v2491_v10 = vpack.c.bf16 %v2477_v1, %v2477_v1 }
 0x6b4   : > { %5833 = vmatmul.mubr.msk.bf16.vlgmr.msra.gmra.mrb[56].mxu0 %vm1143_vm2, %v2491_v10  ;;  %v2794_v30 = vpop.permute.xlu0 %2793 }
 0x6b5   : > { %5843 = vmatpush3.bf16.msra.mxu0 %v2652_v54  ;;  %5844 = vmatprep.mubr.msk.bf16.mxu0 %vm6305_vm1, %v7689_v53  ;;  %v2799_v37 = vsel %vm1620_vm3, %v2794_v30, 0 }
 0x6b6   : > { %3434 = vrot.lane.b32.xlu1 %v6650_v15, %s6307_s30  ;;  %5854 = vmatprep.subr.bf16.mxu0 %v7689_v53 }
 0x6b7   : > { %v6189_v42 = vpop.eup %6188 }
 0x6b8   : > { %v2481_v17 = vmul.f32 %v6189_v42, %v6922_v46 }
 0x6ba   : > { %3482 = vrot.lane.b32.xlu1 %v6752_v23, %s6307_s30  ;;  %v2493_v9 = vpack.c.bf16 %v2481_v17, %v2481_v17 }
 0x6bb   : > { %v6191_v28 = vpop.eup %6190 }
 0x6bc   : > { %5845 = vmatmul.mubr.msk.bf16.vlgmr.msra.gmra.mrb[60].mxu0 %vm1143_vm2, %v2493_v9  ;;  %v2483_v29 = vmul.f32 %v6191_v28, %v6926_v56  ;;  %v2843_v56 = vpop.permute.xlu1 %2842 }
 0x6bd   : > { %5855 = vmatpush3.bf16.msra.mxu0 %v2750_v32  ;;  %5856 = vmatprep.mubr.msk.bf16.mxu0 %vm6305_vm1, %v7689_v53  ;;  %v2848_v55 = vsel %vm1620_vm3, %v2843_v56, 0 }
 0x6be   : > { %3530 = vrot.lane.b32.xlu1 %v6756_v26, %s6307_s30  ;;  %v2494_v46 = vpack.c.bf16 %v2483_v29, %v2483_v29  ;;  %5866 = vmatprep.subr.bf16.mxu0 %v7689_v53 }
 0x6c0   : > { %5851 = vmatmul.mubr.msk.bf16.vlgmr.msra.gmra.mrb[60].mxu1 %vm1143_vm2, %v2494_v46 }
 0x6c1   : > { %5861 = vmatpush3.bf16.msra.mxu1 %v2799_v37  ;;  %5862 = vmatprep.mubr.msk.bf16.mxu1 %vm6305_vm1, %v7689_v53 }
 0x6c2   : > { %5872 = vmatprep.subr.bf16.mxu1 %v7689_v53 }
 0x6e1   : > { %v2467_v31 = vpop.xlane.xlu1 %2466 }
 0x6e2   : > { %6192 = vrcp.f32 %v2467_v31 }
 0x6e5   : > { %v2470_v8 = vpop.xlane.xlu0 %2469  ;;  %v2943_v28 = vpop.permute.xlu1 %2942 }
 0x6e6   : > { %6194 = vrcp.f32 %v2470_v8 }
 0x6e9   : > { %v2893_v43 = vpop.permute.xlu0 %2892 }
 0x6ea   : > { %v2898_v39 = vsel %vm1143_vm2, %v2893_v43, 0 }
 0x6ec   : > { %v6193_v36 = vpop.eup %6192 }
 0x6ed   : > { %v2891_v41 = vpop.permute.xlu0 %2890  ;;  %v2485_v63 = vmul.f32 %v6193_v36, %v6935_v61  ;;  %v2948_v36 = vsel %vm1143_vm2, %v2943_v28, 0 }
 0x6ef   : > { %v2495_v18 = vpack.c.bf16 %v2485_v63, %v2485_v63 }
 0x6f0   : > { %v6195_v27 = vpop.eup %6194 }
 0x6f1   : > { %v2993_v2 = vpop.permute.xlu0 %2992  ;;  %5857 = vmatmul.mubr.msk.bf16.vlgmr.msra.gmra.mrb[64].mxu0 %vm1143_vm2, %v2495_v18  ;;  %v2487_v57 = vmul.f32 %v6195_v27, %v6939_v11 }
 0x6f2   : > { %5867 = vmatpush3.bf16.msra.mxu0 %v2848_v55  ;;  %5868 = vmatprep.mubr.msk.bf16.mxu0 %vm6305_vm1, %v7689_v53  ;;  %v2998_v11 = vsel %vm1143_vm2, %v2993_v2, 0 }
 0x6f3   : > { %v2496_v59 = vpack.c.bf16 %v2487_v57, %v2487_v57  ;;  %5878 = vmatprep.subr.bf16.mxu0 %v7689_v53 }
 0x6f5   : > { %5863 = vmatmul.mubr.msk.bf16.vlgmr.msra.gmra.mrb[64].mxu1 %vm1143_vm2, %v2496_v59  ;;  %v2991_v61 = vpop.permute.xlu0 %2990 }
 0x6f6   : > { %5873 = vmatpush3.bf16.xpose.msra.mxu1 %v2898_v39  ;;  %5874 = vmatprep.mubr.msk.bf16.mxu1 %vm6305_vm1, %v7689_v53 }
 0x6f7   : > { %5884 = vmatprep.subr.bf16.mxu1 %v7689_v53 }
 0x6f9   : > { %v3093_v1 = vpop.permute.xlu0 %3092 }
 0x6fa   : > { %v3098_v54 = vsel %vm1143_vm2, %v3093_v1, 0 }
 0x6fd   : > { %5875 = vmatmul.mubr.msk.bf16.vlgmr.msra.gmra.mrb[68].mxu1 %vm1143_vm2, %v2891_v41  ;;  %v3091_v10 = vpop.permute.xlu0 %3090 }
 0x6fe   : > { %5885 = vmatpush3.bf16.xpose.msra.mxu1 %v2998_v11  ;;  %5886 = vmatprep.mubr.msk.bf16.mxu1 %vm6305_vm1, %v7689_v53 }
 0x6ff   : > { %5896 = vmatprep.subr.bf16.mxu1 %v7689_v53 }
 0x701   : > { %v3193_v42 = vpop.permute.xlu0 %3192 }
 0x702   : > { %v3198_v9 = vsel %vm1143_vm2, %v3193_v42, 0 }
 0x705   : > { %5887 = vmatmul.mubr.msk.bf16.vlgmr.msra.gmra.mrb[72].mxu1 %vm1143_vm2, %v2991_v61  ;;  %v3191_v17 = vpop.permute.xlu0 %3190 }
 0x706   : > { %5897 = vmatpush3.bf16.xpose.msra.mxu1 %v3098_v54  ;;  %5898 = vmatprep.mubr.msk.bf16.mxu1 %vm6305_vm1, %v7689_v53 }
 0x707   : > { %5908 = vmatprep.subr.bf16.mxu1 %v7689_v53 }
 0x709   : > { %v3387_v32 = vpop.permute.xlu0 %3386 }
 0x70a   : > { %v3392_v29 = vsel %vm1620_vm3, %v3387_v32, 0 }
 0x70d   : > { %5899 = vmatmul.mubr.msk.bf16.vlgmr.msra.gmra.mrb[76].mxu1 %vm1143_vm2, %v3091_v10 }
 0x70e   : > { %5909 = vmatpush3.bf16.xpose.msra.mxu1 %v3198_v9  ;;  %5910 = vmatprep.mubr.msk.bf16.mxu1 %vm6305_vm1, %v7689_v53 }
 0x70f   : > { %5920 = vmatprep.subr.bf16.mxu1 %v7689_v53 }
 0x715   : > { %5911 = vmatmul.mubr.msk.bf16.vlgmr.msra.gmra.mrb[80].mxu1 %vm1143_vm2, %v3191_v17 }
 0x716   : > { %5921 = vmatpush3.bf16.msra.mxu1 %v3392_v29  ;;  %v2473_v30 = vpop.xlane.xlu1 %2472  ;;  %5922 = vmatprep.mubr.msk.bf16.mxu1 %vm6305_vm1, %v7689_v53 }
 0x717   : > { %6196 = vrcp.f32 %v2473_v30  ;;  %5932 = vmatprep.subr.bf16.mxu1 %v7689_v53 }
 0x71a   : > { %v2941_v46 = vpop.permute.xlu1 %2940 }
 0x71e   : > { %v3043_v37 = vpop.permute.xlu1 %3042 }
 0x71f   : > { %v3048_v63 = vsel %vm1143_vm2, %v3043_v37, 0 }
 0x721   : > { %v6197_v56 = vpop.eup %6196 }
 0x722   : > { %v2489_v31 = vmul.f32 %v6197_v56, %v6965_v49  ;;  %v3041_v43 = vpop.permute.xlu1 %3040 }
 0x724   : > { %v2497_v8 = vpack.c.bf16 %v2489_v31, %v2489_v31 }
 0x726   : > { %5869 = vmatmul.mubr.msk.bf16.vlgmr.msra.gmra.mrb[68].mxu0 %vm1143_vm2, %v2497_v8  ;;  %v3143_v41 = vpop.permute.xlu1 %3142 }
 0x727   : > { %5879 = vmatpush3.bf16.xpose.msra.mxu0 %v2948_v36  ;;  %5880 = vmatprep.mubr.msk.bf16.mxu0 %vm6305_vm1, %v7689_v53  ;;  %v3148_v18 = vsel %vm1143_vm2, %v3143_v41, 0 }
 0x728   : > { %5890 = vmatprep.subr.bf16.mxu0 %v7689_v53 }
 0x72a   : > { %v3141_v49 = vpop.permute.xlu1 %3140 }
 0x72e   : > { %5881 = vmatmul.mubr.msk.bf16.vlgmr.msra.gmra.mrb[72].mxu0 %vm1143_vm2, %v2941_v46  ;;  %v3243_v27 = vpop.permute.xlu1 %3242 }
 0x72f   : > { %5891 = vmatpush3.bf16.xpose.msra.mxu0 %v3048_v63  ;;  %5892 = vmatprep.mubr.msk.bf16.mxu0 %vm6305_vm1, %v7689_v53  ;;  %v3248_v2 = vsel %vm1143_vm2, %v3243_v27, 0 }
 0x730   : > { %5902 = vmatprep.subr.bf16.mxu0 %v7689_v53 }
 0x732   : > { %v3241_v55 = vpop.permute.xlu1 %3240 }
 0x736   : > { %5893 = vmatmul.mubr.msk.bf16.vlgmr.msra.gmra.mrb[76].mxu0 %vm1143_vm2, %v3041_v43  ;;  %v3435_v57 = vpop.permute.xlu1 %3434 }
 0x737   : > { %5903 = vmatpush3.bf16.xpose.msra.mxu0 %v3148_v18  ;;  %5904 = vmatprep.mubr.msk.bf16.mxu0 %vm6305_vm1, %v7689_v53  ;;  %v3440_v59 = vsel %vm1620_vm3, %v3435_v57, 0 }
 0x738   : > { %5914 = vmatprep.subr.bf16.mxu0 %v7689_v53 }
 0x73e   : > { %5905 = vmatmul.mubr.msk.bf16.vlgmr.msra.gmra.mrb[80].mxu0 %vm1143_vm2, %v3141_v49 }
 0x73f   : > { %5915 = vmatpush3.bf16.xpose.msra.mxu0 %v3248_v2  ;;  %5916 = vmatprep.mubr.msk.bf16.mxu0 %vm6305_vm1, %v7689_v53 }
 0x740   : > { %5926 = vmatprep.subr.bf16.mxu0 %v7689_v53 }
 0x746   : > { %5917 = vmatmul.mubr.msk.bf16.vlgmr.msra.gmra.mrb[84].mxu0 %vm1143_vm2, %v3241_v55 }
 0x747   : > { %5927 = vmatpush3.bf16.msra.mxu0 %v3440_v59  ;;  %5928 = vmatprep.mubr.msk.bf16.mxu0 %vm6305_vm1, %v7689_v53 }
 0x748   : > { %5938 = vmatprep.subr.bf16.mxu0 %v7689_v53 }
 0x755   : > { %v7080_v39 = vpop.f32.mrb[52].mxu1 }
 0x756   : > { %v5828_v61 = vpop.f32.mrb[53].mxu1 }
 0x757   : > { %v2544_v1 = vpop.f32.mrb[54].mxu1 }
 0x758   : > { %v5829_v11 = vpop.f32.mrb[55].mxu1 }
 0x75d   : > { %v7082_v10 = vpop.f32.mrb[56].mxu1 }
 0x75e   : > { %v5840_v54 = vpop.f32.mrb[57].mxu1 }
 0x75f   : > { %v2642_v42 = vpop.f32.mrb[58].mxu1 }
 0x760   : > { %v5841_v17 = vpop.f32.mrb[59].mxu1 }
 0x787   : > { %v7084_v9 = vpop.f32.mrb[56].mxu0 }
 0x788   : > { %v5834_v28 = vpop.f32.mrb[57].mxu0 }
 0x789   : > { %v2593_v32 = vpop.f32.mrb[58].mxu0 }
 0x78a   : > { %v5835_v29 = vpop.f32.mrb[59].mxu0 }
 0x78f   : > { %v7086_v30 = vpop.f32.mrb[60].mxu0 }
 0x790   : > { %v5846_v46 = vpop.f32.mrb[61].mxu0 }
 0x791   : > { %v2691_v37 = vpop.f32.mrb[62].mxu0 }
 0x792   : > { %v5847_v56 = vpop.f32.mrb[63].mxu0 }
 0x793   : > { %v7088_v31 = vpop.f32.mrb[60].mxu1 }
 0x794   : > { %v5852_v8 = vpop.f32.mrb[61].mxu1 }
 0x795   : > { %v2740_v43 = vpop.f32.mrb[62].mxu1 }
 0x796   : > { %v5853_v36 = vpop.f32.mrb[63].mxu1 }
 0x7c4   : > { %v7090_v41 = vpop.f32.mrb[64].mxu0 }
 0x7c5   : > { %v5858_v63 = vpop.f32.mrb[65].mxu0 }
 0x7c6   : > { %v2789_v49 = vpop.f32.mrb[66].mxu0 }
 0x7c7   : > { %v5859_v18 = vpop.f32.mrb[67].mxu0 }
 0x7c8   : > { %v7092_v27 = vpop.f32.mrb[64].mxu1 }
 0x7c9   : > { %v5864_v55 = vpop.f32.mrb[65].mxu1 }
 0x7ca   : > { %v2838_v2 = vpop.f32.mrb[66].mxu1 }
 0x7cb   : > { %v5865_v57 = vpop.f32.mrb[67].mxu1 }
 0x7d0   : > { %v2934_v59 = vpop.f32.mrb[68].mxu1 }
 0x7d1   : > { %v5876_v61 = vpop.f32.mrb[69].mxu1  ;;  %v3290_v1 = vsel %vm1512_vm4, %v2934_v59, -inf }
 0x7d2   : > { %3291 = vmax.xlane.f32.xlu0 %v3290_v1  ;;  %v2937_v11 = vpop.f32.mrb[70].mxu1 }
 0x7d3   : > { %v5877_v54 = vpop.f32.mrb[71].mxu1 }
 0x7d8   : > { %v3034_v42 = vpop.f32.mrb[72].mxu1 }
 0x7d9   : > { %v5888_v17 = vpop.f32.mrb[73].mxu1  ;;  %v3296_v28 = vsel %vm1512_vm4, %v3034_v42, -inf }
 0x7da   : > { %3297 = vmax.xlane.f32.xlu0 %v3296_v28  ;;  %v3037_v32 = vpop.f32.mrb[74].mxu1 }
 0x7db   : > { %v5889_v29 = vpop.f32.mrb[75].mxu1 }
 0x7e0   : > { %v7096_v46 = vpop.f32.mrb[76].mxu1 }
 0x7e1   : > { %v5900_v37 = vpop.f32.mrb[77].mxu1 }
 0x7e2   : > { %v3137_v56 = vpop.f32.mrb[78].mxu1 }
 0x7e3   : > { %v5901_v8 = vpop.f32.mrb[79].mxu1 }
 0x7e4   : > { %v3302_v8 = vsel %vm1512_vm4, %v7096_v46, -inf }
 0x7e8   : > { %v7098_v43 = vpop.f32.mrb[80].mxu1 }
 0x7e9   : > { %v5912_v36 = vpop.f32.mrb[81].mxu1 }
 0x7ea   : > { %v3237_v63 = vpop.f32.mrb[82].mxu1 }
 0x7eb   : > { %v5913_v49 = vpop.f32.mrb[83].mxu1 }
 0x7ec   : > { %v3308_v49 = vsel %vm1512_vm4, %v7098_v43, -inf }
 0x7f9   : > { %v7100_v18 = vpop.f32.mrb[68].mxu0 }
 0x7fa   : > { %v5870_v55 = vpop.f32.mrb[69].mxu0 }
 0x7fb   : > { %v2887_v2 = vpop.f32.mrb[70].mxu0 }
 0x7fc   : > { %v5871_v57 = vpop.f32.mrb[71].mxu0 }
 0x801   : > { %v2984_v61 = vpop.f32.mrb[72].mxu0 }
 0x802   : > { %v5882_v1 = vpop.f32.mrb[73].mxu0  ;;  %v3293_v11 = vsel %vm1512_vm4, %v2984_v61, -inf }
 0x803   : > { %3294 = vmax.xlane.f32.xlu1 %v3293_v11  ;;  %v2987_v54 = vpop.f32.mrb[74].mxu0 }
 0x804   : > { %v5883_v17 = vpop.f32.mrb[75].mxu0 }
 0x809   : > { %v3084_v28 = vpop.f32.mrb[76].mxu0 }
 0x80a   : > { %v5894_v32 = vpop.f32.mrb[77].mxu0  ;;  %v3299_v29 = vsel %vm1512_vm4, %v3084_v28, -inf }
 0x80b   : > { %3300 = vmax.xlane.f32.xlu0 %v3299_v29  ;;  %v3087_v37 = vpop.f32.mrb[78].mxu0 }
 0x80c   : > { %v5895_v56 = vpop.f32.mrb[79].mxu0 }
 0x80f   : > { %3303 = vmax.xlane.f32.xlu0 %v3302_v8 }
 0x811   : > { %v3184_v36 = vpop.f32.mrb[80].mxu0 }
 0x812   : > { %v5906_v63 = vpop.f32.mrb[81].mxu0  ;;  %v3305_v55 = vsel %vm1512_vm4, %v3184_v36, -inf }
 0x813   : > { %3309 = vmax.xlane.f32.xlu0 %v3308_v49  ;;  %3306 = vmax.xlane.f32.xlu1 %v3305_v55  ;;  %v3187_v2 = vpop.f32.mrb[82].mxu0 }
 0x814   : > { %v5907_v57 = vpop.f32.mrb[83].mxu0 }
 0x819   : > { %v7109_v1 = vpop.f32.mrb[84].mxu0 }
 0x81a   : > { %v5918_v11 = vpop.f32.mrb[85].mxu0  ;;  %v3311_v32 = vsel %vm1512_vm4, %v7109_v1, -inf }
 0x81b   : > { %v3287_v54 = vpop.f32.mrb[86].mxu0 }
 0x81c   : > { %v5919_v17 = vpop.f32.mrb[87].mxu0  ;;  %v3483_v54 = vpop.permute.xlu1 %3482 }
 0x824   : > { %3626 = vrot.lane.b32.xlu1 %v6781_v44, %s6307_s30 }
 0x829   : > { %3578 = vrot.lane.b32.xlu0 %v6777_v34, %s6307_s30 }
 0x848   : > { %3312 = vmax.xlane.f32.xlu1 %v3311_v32 }
 0x85f   : > { %v3292_v29 = vpop.xlane.xlu0 %3291 }
 0x860   : > { %v3314_v37 = vsub.f32 %v2934_v59, %v3292_v29  ;;  %v7125_v59 = vpop.permute.xlu1 %3530 }
 0x862   : > { %v3322_v56 = vmul.f32 1.442695, %v3314_v37 }
 0x864   : > { %6198 = vpow2.f32 %v3322_v56 }
 0x867   : > { %v3298_v8 = vpop.xlane.xlu0 %3297 }
 0x868   : > { %v3316_v63 = vsub.f32 %v3034_v42, %v3298_v8 }
 0x86a   : > { %v3326_v49 = vmul.f32 1.442695, %v3316_v63 }
 0x86c   : > { %6200 = vpow2.f32 %v3326_v49 }
 0x86e   : > { %v7117_v55 = vpop.eup %6198 }
 0x86f   : > { %v3338_v2 = vsel %vm1512_vm4, %v7117_v55, 0.0 }
 0x870   : > { %3339 = vadd.xlane.f32.xlu0 %v3338_v2 }
 0x876   : > { %v7121_v57 = vpop.eup %6200 }
 0x877   : > { %v3344_v11 = vsel %vm1512_vm4, %v7121_v57, 0.0 }
 0x878   : > { %3345 = vadd.xlane.f32.xlu0 %v3344_v11 }
 0x890   : > { %v3295_v17 = vpop.xlane.xlu1 %3294 }
 0x891   : > { %v3315_v32 = vsub.f32 %v2984_v61, %v3295_v17 }
 0x893   : > { %v3324_v42 = vmul.f32 1.442695, %v3315_v32 }
 0x895   : > { %6202 = vpow2.f32 %v3324_v42 }
 0x898   : > { %v3301_v29 = vpop.xlane.xlu0 %3300 }
 0x899   : > { %v3317_v37 = vsub.f32 %v3084_v28, %v3301_v29 }
 0x89b   : > { %v3328_v56 = vmul.f32 1.442695, %v3317_v37 }
 0x89c   : > { %v3304_v8 = vpop.xlane.xlu0 %3303 }
 0x89d   : > { %6204 = vpow2.f32 %v3328_v56  ;;  %v3318_v63 = vsub.f32 %v7096_v46, %v3304_v8 }
 0x89f   : > { %v7128_v49 = vpop.eup %6202  ;;  %v3330_v2 = vmul.f32 1.442695, %v3318_v63 }
 0x8a0   : > { %v3341_v11 = vsel %vm1512_vm4, %v7128_v49, 0.0  ;;  %v3307_v46 = vpop.xlane.xlu1 %3306  ;;  %v3310_v42 = vpop.xlane.xlu0 %3309 }
 0x8a1   : > { %6206 = vpow2.f32 %v3330_v2  ;;  %3342 = vadd.xlane.f32.xlu1 %v3341_v11  ;;  %v3319_v32 = vsub.f32 %v3184_v36, %v3307_v46  ;;  %v3320_v29 = vsub.f32 %v7098_v43, %v3310_v42 }
 0x8a3   : > { %v3332_v37 = vmul.f32 1.442695, %v3319_v32  ;;  %v3334_v56 = vmul.f32 1.442695, %v3320_v29 }
 0x8a4   : > { %v3627_v43 = vpop.permute.xlu1 %3626  ;;  %v3579_v36 = vpop.permute.xlu0 %3578 }
 0x8a5   : > { %6208 = vpow2.f32 %v3332_v37 }
 0x8a6   : > { %6210 = vpow2.f32 %v3334_v56  ;;  %v3632_v56 = vsel %vm1620_vm3, %v3627_v43, 0 }
 0x8a7   : > { %v7132_v53 = vpop.eup %6204 }
 0x8a8   : > { %v3347_v61 = vsel %vm1512_vm4, %v7132_v53, 0.0 }
 0x8a9   : > { %3348 = vadd.xlane.f32.xlu1 %v3347_v61 }
 0x8ab   : > { %v7136_v28 = vpop.eup %6206 }
 0x8ac   : > { %v3350_v17 = vsel %vm1512_vm4, %v7136_v28, 0.0 }
 0x8ad   : > { %3351 = vadd.xlane.f32.xlu0 %v3350_v17 }
 0x8af   : > { %v7145_v8 = vpop.eup %6208 }
 0x8b0   : > { %v3353_v63 = vsel %vm1512_vm4, %v7145_v8, 0.0  ;;  %v7149_v2 = vpop.eup %6210 }
 0x8b1   : > { %v3356_v11 = vsel %vm1512_vm4, %v7149_v2, 0.0 }
 0x8ba   : > { %3722 = vrot.lane.b32.xlu1 %v6803_v12, %s6307_s30 }
 0x8c3   : > { %3674 = vrot.lane.b32.xlu0 %v6799_v6, %s6307_s30 }
 0x8d5   : > { %v3313_v61 = vpop.xlane.xlu1 %3312 }
 0x8d6   : > { %v3321_v17 = vsub.f32 %v7109_v1, %v3313_v61  ;;  %v3488_v1 = vsel %vm1620_vm3, %v3483_v54, 0  ;;  %v3584_v54 = vsel %vm1620_vm3, %v3579_v36, 0 }
 0x8d8   : > { %v3336_v32 = vmul.f32 1.442695, %v3321_v17 }
 0x8de   : > { %3354 = vadd.xlane.f32.xlu1 %v3353_v63 }
 0x8e2   : > { %3357 = vadd.xlane.f32.xlu0 %v3356_v11 }
 0x8ef   : > { %3822 = vrot.lane.b32.xlu1 %v6559_v22, %s6308_s19 }
 0x8f8   : > { %3772 = vrot.lane.b32.xlu0 %v6557_v21, %s6308_s19 }
 0x8fc   : > { %3770 = vrot.lane.b32.xlu0 %v6579_v47, %s6308_s19 }
 0x8fd   : > { %v3340_v46 = vpop.xlane.xlu0 %3339 }
 0x8fe   : > { %6212 = vrcp.f32 %v3340_v46 }
 0x8ff   : > { %6214 = vpow2.f32 %v3336_v32 }
 0x900   : > { %3872 = vrot.lane.b32.xlu0 %v6576_v45, %s6308_s19  ;;  %v7696_v45 = vmov 0.0  }
 0x904   : > { %3870 = vrot.lane.b32.xlu0 %v6604_v62, %s6308_s19 }
 0x905   : > { %v3346_v22 = vpop.xlane.xlu0 %3345 }
 0x906   : > { %6216 = vrcp.f32 %v3346_v22 }
 0x908   : > { %v6213_v21 = vpop.eup %6212  ;;  %3972 = vrot.lane.b32.xlu0 %v6599_v58, %s6308_s19 }
 0x909   : > { %v3363_v47 = vmul.f32 %v6213_v21, %v7117_v55  ;;  %v7173_v62 = vpop.eup %6214 }
 0x90b   : > { %v3378_v42 = vpack.c.bf16 %v3363_v47, %v3363_v47 }
 0x90c   : > { %3970 = vrot.lane.b32.xlu0 %v6626_v4, %s6308_s19  ;;  %v3359_v4 = vsel %vm1512_vm4, %v7173_v62, 0.0 }
 0x90d   : > { %5923 = vmatmul.mubr.msk.bf16.vlgmr.msra.gmra.mrb[84].mxu1 %vm1143_vm2, %v3378_v42 }
 0x90e   : > { %5933 = vmatpush3.bf16.msra.mxu1 %v3488_v1  ;;  %5934 = vmatprep.mubr.msk.bf16.mxu1 %vm6305_vm1, %v7696_v45 }
 0x90f   : > { %5944 = vmatprep.subr.bf16.mxu1 %v7696_v45 }
 0x910   : > { %v6217_v29 = vpop.eup %6216  ;;  %4072 = vrot.lane.b32.xlu0 %v6623_v3, %s6308_s19 }
 0x911   : > { %v3367_v58 = vmul.f32 %v6217_v29, %v7121_v57 }
 0x913   : > { %3360 = vadd.xlane.f32.xlu1 %v3359_v4  ;;  %v3380_v55 = vpack.c.bf16 %v3367_v58, %v3367_v58 }
 0x914   : > { %4070 = vrot.lane.b32.xlu0 %v6648_v14, %s6308_s19 }
 0x915   : > { %5935 = vmatmul.mubr.msk.bf16.vlgmr.msra.gmra.mrb[88].mxu1 %vm1143_vm2, %v3380_v55 }
 0x916   : > { %5945 = vmatpush3.bf16.msra.mxu1 %v3584_v54  ;;  %5946 = vmatprep.mubr.msk.bf16.mxu1 %vm6305_vm1, %v7696_v45 }
 0x917   : > { %5956 = vmatprep.subr.bf16.mxu1 %v7696_v45 }
 0x924   : > { %3820 = vrot.lane.b32.xlu1 %v6583_v48, %s6308_s19 }
 0x928   : > { %3922 = vrot.lane.b32.xlu1 %v6581_v35, %s6308_s19 }
 0x92c   : > { %3920 = vrot.lane.b32.xlu1 %v6606_v51, %s6308_s19 }
 0x92e   : > { %v3343_v3 = vpop.xlane.xlu1 %3342 }
 0x92f   : > { %6218 = vrcp.f32 %v3343_v3 }
 0x930   : > { %4022 = vrot.lane.b32.xlu1 %v6602_v60, %s6308_s19  ;;  %v3536_v60 = vsel %vm1620_vm3, %v7125_v59, 0 }
 0x934   : > { %4020 = vrot.lane.b32.xlu1 %v6630_v7, %s6308_s19 }
 0x936   : > { %v3349_v14 = vpop.xlane.xlu1 %3348 }
 0x937   : > { %6220 = vrcp.f32 %v3349_v14 }
 0x938   : > { %4122 = vrot.lane.b32.xlu1 %v6628_v5, %s6308_s19 }
 0x939   : > { %v6219_v48 = vpop.eup %6218 }
 0x93a   : > { %v3365_v57 = vmul.f32 %v6219_v48, %v7128_v49  ;;  %v3352_v35 = vpop.xlane.xlu0 %3351 }
 0x93b   : > { %6222 = vrcp.f32 %v3352_v35 }
 0x93c   : > { %4120 = vrot.lane.b32.xlu1 %v6652_v16, %s6308_s19  ;;  %v3379_v51 = vpack.c.bf16 %v3365_v57, %v3365_v57 }
 0x93e   : > { %5929 = vmatmul.mubr.msk.bf16.vlgmr.msra.gmra.mrb[88].mxu0 %vm1143_vm2, %v3379_v51  ;;  %v3675_v59 = vpop.permute.xlu0 %3674 }
 0x93f   : > { %5939 = vmatpush3.bf16.msra.mxu0 %v3536_v60  ;;  %5940 = vmatprep.mubr.msk.bf16.mxu0 %vm6305_vm1, %v7696_v45  ;;  %v3680_v11 = vsel %vm1620_vm3, %v3675_v59, 0 }
 0x940   : > { %5950 = vmatprep.subr.bf16.mxu0 %v7696_v45 }
 0x941   : > { %v6221_v5 = vpop.eup %6220 }
 0x942   : > { %v3369_v7 = vmul.f32 %v6221_v5, %v7132_v53  ;;  %v3723_v53 = vpop.permute.xlu1 %3722 }
 0x943   : > { %v3728_v21 = vsel %vm1620_vm3, %v3723_v53, 0 }
 0x944   : > { %v3381_v49 = vpack.c.bf16 %v3369_v7, %v3369_v7 }
 0x945   : > { %v6223_v37 = vpop.eup %6222 }
 0x946   : > { %v3371_v16 = vmul.f32 %v6223_v37, %v7136_v28  ;;  %5941 = vmatmul.mubr.msk.bf16.vlgmr.msra.gmra.mrb[92].mxu0 %vm1143_vm2, %v3381_v49 }
 0x947   : > { %5951 = vmatpush3.bf16.msra.mxu0 %v3632_v56  ;;  %5952 = vmatprep.mubr.msk.bf16.mxu0 %vm6305_vm1, %v7696_v45 }
 0x948   : > { %v3382_v63 = vpack.c.bf16 %v3371_v16, %v3371_v16  ;;  %5962 = vmatprep.subr.bf16.mxu0 %v7696_v45 }
 0x94a   : > { %5947 = vmatmul.mubr.msk.bf16.vlgmr.msra.gmra.mrb[92].mxu1 %vm1143_vm2, %v3382_v63 }
 0x94b   : > { %5957 = vmatpush3.bf16.msra.mxu1 %v3680_v11  ;;  %5958 = vmatprep.mubr.msk.bf16.mxu1 %vm6305_vm1, %v7696_v45 }
 0x94c   : > { %5968 = vmatprep.subr.bf16.mxu1 %v7696_v45 }
 0x96b   : > { %v3355_v28 = vpop.xlane.xlu1 %3354 }
 0x96c   : > { %6224 = vrcp.f32 %v3355_v28 }
 0x96f   : > { %v3358_v43 = vpop.xlane.xlu0 %3357  ;;  %v3823_v14 = vpop.permute.xlu1 %3822 }
 0x970   : > { %6226 = vrcp.f32 %v3358_v43  ;;  %v3828_v49 = vsel %vm1143_vm2, %v3823_v14, 0 }
 0x973   : > { %v3773_v36 = vpop.permute.xlu0 %3772 }
 0x974   : > { %v3778_v29 = vsel %vm1143_vm2, %v3773_v36, 0 }
 0x976   : > { %v6225_v61 = vpop.eup %6224 }
 0x977   : > { %v3373_v17 = vmul.f32 %v6225_v61, %v7145_v8  ;;  %v3771_v46 = vpop.permute.xlu0 %3770 }
 0x979   : > { %v3383_v32 = vpack.c.bf16 %v3373_v17, %v3373_v17 }
 0x97a   : > { %v6227_v22 = vpop.eup %6226 }
 0x97b   : > { %v3375_v47 = vmul.f32 %v6227_v22, %v7149_v2  ;;  %5953 = vmatmul.mubr.msk.bf16.vlgmr.msra.gmra.mrb[96].mxu0 %vm1143_vm2, %v3383_v32  ;;  %v3873_v42 = vpop.permute.xlu0 %3872 }
 0x97c   : > { %5963 = vmatpush3.bf16.msra.mxu0 %v3728_v21  ;;  %5964 = vmatprep.mubr.msk.bf16.mxu0 %vm6305_vm1, %v7696_v45  ;;  %v3878_v2 = vsel %vm1143_vm2, %v3873_v42, 0 }
 0x97d   : > { %v3384_v1 = vpack.c.bf16 %v3375_v47, %v3375_v47  ;;  %5974 = vmatprep.subr.bf16.mxu0 %v7696_v45 }
 0x97f   : > { %5959 = vmatmul.mubr.msk.bf16.vlgmr.msra.gmra.mrb[96].mxu1 %vm1143_vm2, %v3384_v1  ;;  %v3871_v8 = vpop.permute.xlu0 %3870 }
 0x980   : > { %5969 = vmatpush3.bf16.xpose.msra.mxu1 %v3778_v29  ;;  %5970 = vmatprep.mubr.msk.bf16.mxu1 %vm6305_vm1, %v7696_v45 }
 0x981   : > { %5980 = vmatprep.subr.bf16.mxu1 %v7696_v45 }
 0x983   : > { %v3973_v58 = vpop.permute.xlu0 %3972 }
 0x984   : > { %v3978_v55 = vsel %vm1143_vm2, %v3973_v58, 0 }
 0x987   : > { %5971 = vmatmul.mubr.msk.bf16.vlgmr.msra.gmra.mrb[100].mxu1 %vm1143_vm2, %v3771_v46  ;;  %v3971_v4 = vpop.permute.xlu0 %3970 }
 0x988   : > { %5981 = vmatpush3.bf16.xpose.msra.mxu1 %v3878_v2  ;;  %5982 = vmatprep.mubr.msk.bf16.mxu1 %vm6305_vm1, %v7696_v45 }
 0x989   : > { %5992 = vmatprep.subr.bf16.mxu1 %v7696_v45 }
 0x98b   : > { %v4073_v54 = vpop.permute.xlu0 %4072 }
 0x98c   : > { %v4078_v3 = vsel %vm1143_vm2, %v4073_v54, 0 }
 0x98f   : > { %5983 = vmatmul.mubr.msk.bf16.vlgmr.msra.gmra.mrb[104].mxu1 %vm1143_vm2, %v3871_v8  ;;  %v4071_v48 = vpop.permute.xlu0 %4070 }
 0x990   : > { %5993 = vmatpush3.bf16.xpose.msra.mxu1 %v3978_v55  ;;  %5994 = vmatprep.mubr.msk.bf16.mxu1 %vm6305_vm1, %v7696_v45 }
 0x991   : > { %6004 = vmatprep.subr.bf16.mxu1 %v7696_v45 }
 0x997   : > { %5995 = vmatmul.mubr.msk.bf16.vlgmr.msra.gmra.mrb[108].mxu1 %vm1143_vm2, %v3971_v4 }
 0x998   : > { %6005 = vmatpush3.bf16.xpose.msra.mxu1 %v4078_v3  ;;  %6006 = vmatprep.mubr.msk.bf16.mxu1 %vm6305_vm1, %v7696_v45 }
 0x999   : > { %6016 = vmatprep.subr.bf16.mxu1 %v7696_v45 }
 0x99f   : > { %6007 = vmatmul.mubr.msk.bf16.vlgmr.msra.gmra.mrb[112].mxu1 %vm1143_vm2, %v4071_v48 }
 0x9a0   : > { %v3361_v57 = vpop.xlane.xlu1 %3360  ;;  %6018 = vmatprep.mubr.msk.bf16.mxu1 %vm6305_vm1, %v7696_v45 }
 0x9a1   : > { %6228 = vrcp.f32 %v3361_v57 }
 0x9a4   : > { %v3821_v35 = vpop.permute.xlu1 %3820 }
 0x9a8   : > { %v3923_v5 = vpop.permute.xlu1 %3922 }
 0x9a9   : > { %v3928_v56 = vsel %vm1143_vm2, %v3923_v5, 0 }
 0x9ab   : > { %v6229_v51 = vpop.eup %6228 }
 0x9ac   : > { %v3377_v60 = vmul.f32 %v6229_v51, %v7173_v62  ;;  %v3921_v37 = vpop.permute.xlu1 %3920 }
 0x9ae   : > { %v3385_v7 = vpack.c.bf16 %v3377_v60, %v3377_v60 }
 0x9b0   : > { %5965 = vmatmul.mubr.msk.bf16.vlgmr.msra.gmra.mrb[100].mxu0 %vm1143_vm2, %v3385_v7  ;;  %v4023_v16 = vpop.permute.xlu1 %4022 }
 0x9b1   : > { %5975 = vmatpush3.bf16.xpose.msra.mxu0 %v3828_v49  ;;  %5976 = vmatprep.mubr.msk.bf16.mxu0 %vm6305_vm1, %v7696_v45  ;;  %v4028_v59 = vsel %vm1143_vm2, %v4023_v16, 0 }
 0x9b2   : > { %5986 = vmatprep.subr.bf16.mxu0 %v7696_v45 }
 0x9b4   : > { %v4021_v62 = vpop.permute.xlu1 %4020 }
 0x9b8   : > { %5977 = vmatmul.mubr.msk.bf16.vlgmr.msra.gmra.mrb[104].mxu0 %vm1143_vm2, %v3821_v35  ;;  %v4123_v63 = vpop.permute.xlu1 %4122 }
 0x9b9   : > { %5987 = vmatpush3.bf16.xpose.msra.mxu0 %v3928_v56  ;;  %5988 = vmatprep.mubr.msk.bf16.mxu0 %vm6305_vm1, %v7696_v45  ;;  %v4128_v11 = vsel %vm1143_vm2, %v4123_v63, 0 }
 0x9ba   : > { %5998 = vmatprep.subr.bf16.mxu0 %v7696_v45 }
 0x9bc   : > { %v4121_v53 = vpop.permute.xlu1 %4120 }
 0x9c0   : > { %5989 = vmatmul.mubr.msk.bf16.vlgmr.msra.gmra.mrb[108].mxu0 %vm1143_vm2, %v3921_v37 }
 0x9c1   : > { %5999 = vmatpush3.bf16.xpose.msra.mxu0 %v4028_v59  ;;  %6000 = vmatprep.mubr.msk.bf16.mxu0 %vm6305_vm1, %v7696_v45 }
 0x9c2   : > { %6010 = vmatprep.subr.bf16.mxu0 %v7696_v45 }
 0x9c8   : > { %6001 = vmatmul.mubr.msk.bf16.vlgmr.msra.gmra.mrb[112].mxu0 %vm1143_vm2, %v4021_v62 }
 0x9c9   : > { %6011 = vmatpush3.bf16.xpose.msra.mxu0 %v4128_v11  ;;  %6012 = vmatprep.mubr.msk.bf16.mxu0 %vm6305_vm1, %v7696_v45 }
 0x9ca   : > { %6022 = vmatprep.subr.bf16.mxu0 %v7696_v45 }
 0x9d0   : > { %6013 = vmatmul.mubr.msk.bf16.vlgmr.msra.gmra.mrb[116].mxu0 %vm1143_vm2, %v4121_v53 }
 0x9d1   : > { %6024 = vmatprep.mubr.msk.bf16.mxu0 %vm6305_vm1, %v7696_v45 }
 0x9e0   : > { %v7275_v28 = vpop.f32.mrb[84].mxu1 }
 0x9e1   : > { %v5924_v43 = vpop.f32.mrb[85].mxu1 }
 0x9e2   : > { %v3431_v36 = vpop.f32.mrb[86].mxu1 }
 0x9e3   : > { %v5925_v61 = vpop.f32.mrb[87].mxu1 }
 0x9e8   : > { %v7277_v17 = vpop.f32.mrb[88].mxu1 }
 0x9e9   : > { %v5936_v46 = vpop.f32.mrb[89].mxu1 }
 0x9ea   : > { %v3527_v32 = vpop.f32.mrb[90].mxu1 }
 0x9eb   : > { %v5937_v22 = vpop.f32.mrb[91].mxu1 }
 0xa11   : > { %v7279_v21 = vpop.f32.mrb[88].mxu0 }
 0xa12   : > { %v5930_v47 = vpop.f32.mrb[89].mxu0 }
 0xa13   : > { %v3479_v42 = vpop.f32.mrb[90].mxu0 }
 0xa14   : > { %v5931_v1 = vpop.f32.mrb[91].mxu0 }
 0xa19   : > { %v7281_v29 = vpop.f32.mrb[92].mxu0 }
 0xa1a   : > { %v5942_v8 = vpop.f32.mrb[93].mxu0 }
 0xa1b   : > { %v3575_v2 = vpop.f32.mrb[94].mxu0 }
 0xa1c   : > { %v5943_v58 = vpop.f32.mrb[95].mxu0 }
 0xa1d   : > { %v7283_v4 = vpop.f32.mrb[92].mxu1 }
 0xa1e   : > { %v5948_v55 = vpop.f32.mrb[93].mxu1 }
 0xa1f   : > { %v3623_v54 = vpop.f32.mrb[94].mxu1 }
 0xa20   : > { %v5949_v3 = vpop.f32.mrb[95].mxu1 }
 0xa4e   : > { %v7285_v14 = vpop.f32.mrb[96].mxu0 }
 0xa4f   : > { %v5954_v48 = vpop.f32.mrb[97].mxu0 }
 0xa50   : > { %v3671_v57 = vpop.f32.mrb[98].mxu0 }
 0xa51   : > { %v5955_v35 = vpop.f32.mrb[99].mxu0 }
 0xa52   : > { %v7287_v51 = vpop.f32.mrb[96].mxu1 }
 0xa53   : > { %v5960_v60 = vpop.f32.mrb[97].mxu1 }
 0xa54   : > { %v3719_v5 = vpop.f32.mrb[98].mxu1 }
 0xa55   : > { %v5961_v7 = vpop.f32.mrb[99].mxu1 }
 0xa5a   : > { %v3814_v49 = vpop.f32.mrb[100].mxu1 }
 0xa5b   : > { %v5972_v37 = vpop.f32.mrb[101].mxu1  ;;  %v4170_v56 = vsel %vm1512_vm4, %v3814_v49, -inf }
 0xa5c   : > { %4171 = vmax.xlane.f32.xlu0 %v4170_v56  ;;  %v3817_v16 = vpop.f32.mrb[102].mxu1 }
 0xa5d   : > { %v5973_v62 = vpop.f32.mrb[103].mxu1 }
 0xa62   : > { %v3914_v59 = vpop.f32.mrb[104].mxu1 }
 0xa63   : > { %v5984_v63 = vpop.f32.mrb[105].mxu1  ;;  %v4176_v11 = vsel %vm1512_vm4, %v3914_v59, -inf }
 0xa64   : > { %4177 = vmax.xlane.f32.xlu0 %v4176_v11  ;;  %v3917_v53 = vpop.f32.mrb[106].mxu1 }
 0xa65   : > { %v5985_v43 = vpop.f32.mrb[107].mxu1 }
 0xa6a   : > { %v7291_v36 = vpop.f32.mrb[108].mxu1 }
 0xa6b   : > { %v5996_v61 = vpop.f32.mrb[109].mxu1  ;;  %v4182_v16 = vsel %vm1512_vm4, %v7291_v36, -inf }
 0xa6c   : > { %v4017_v46 = vpop.f32.mrb[110].mxu1 }
 0xa6d   : > { %v5997_v32 = vpop.f32.mrb[111].mxu1 }
 0xa72   : > { %v7293_v22 = vpop.f32.mrb[112].mxu1 }
 0xa73   : > { %v6008_v47 = vpop.f32.mrb[113].mxu1  ;;  %v4188_v11 = vsel %vm1512_vm4, %v7293_v22, -inf }
 0xa74   : > { %v4117_v42 = vpop.f32.mrb[114].mxu1 }
 0xa75   : > { %v6009_v1 = vpop.f32.mrb[115].mxu1 }
 0xa83   : > { %v7295_v8 = vpop.f32.mrb[100].mxu0 }
 0xa84   : > { %v5966_v2 = vpop.f32.mrb[101].mxu0 }
 0xa85   : > { %v3767_v58 = vpop.f32.mrb[102].mxu0 }
 0xa86   : > { %v5967_v55 = vpop.f32.mrb[103].mxu0 }
 0xa8b   : > { %v3864_v54 = vpop.f32.mrb[104].mxu0 }
 0xa8c   : > { %v5978_v3 = vpop.f32.mrb[105].mxu0  ;;  %v4173_v48 = vsel %vm1512_vm4, %v3864_v54, -inf }
 0xa8d   : > { %4174 = vmax.xlane.f32.xlu1 %v4173_v48  ;;  %v3867_v57 = vpop.f32.mrb[106].mxu0 }
 0xa8e   : > { %v5979_v35 = vpop.f32.mrb[107].mxu0 }
 0xa93   : > { %v7298_v60 = vpop.f32.mrb[108].mxu0 }
 0xa94   : > { %v5990_v5 = vpop.f32.mrb[109].mxu0  ;;  %v4179_v7 = vsel %vm1512_vm4, %v7298_v60, -inf }
 0xa95   : > { %4180 = vmax.xlane.f32.xlu0 %v4179_v7  ;;  %v3967_v37 = vpop.f32.mrb[110].mxu0 }
 0xa96   : > { %v5991_v56 = vpop.f32.mrb[111].mxu0 }
 0xa99   : > { %4183 = vmax.xlane.f32.xlu0 %v4182_v16 }
 0xa9b   : > { %v7304_v62 = vpop.f32.mrb[112].mxu0 }
 0xa9c   : > { %v6002_v63 = vpop.f32.mrb[113].mxu0  ;;  %v4185_v53 = vsel %vm1512_vm4, %v7304_v62, -inf }
 0xa9d   : > { %4189 = vmax.xlane.f32.xlu0 %v4188_v11  ;;  %4186 = vmax.xlane.f32.xlu1 %v4185_v53  ;;  %v4067_v43 = vpop.f32.mrb[114].mxu0 }
 0xa9e   : > { %v6003_v61 = vpop.f32.mrb[115].mxu0 }
 0xaa3   : > { %v7310_v46 = vpop.f32.mrb[116].mxu0 }
 0xaa4   : > { %v6014_v32 = vpop.f32.mrb[117].mxu0  ;;  %v4191_v1 = vsel %vm1512_vm4, %v7310_v46, -inf }
 0xaa5   : > { %v4167_v47 = vpop.f32.mrb[118].mxu0 }
 0xaa6   : > { %v6015_v42 = vpop.f32.mrb[119].mxu0 }
 0xaae   : > { %4314 = vrot.lane.b32.xlu1 %v6650_v15, %s6308_s19 }
 0xab2   : > { %4362 = vrot.lane.b32.xlu1 %v6752_v23, %s6308_s19 }
 0xab3   : > { %4266 = vrot.lane.b32.xlu0 %v6645_v13, %s6308_s19 }
 0xad6   : > { %4192 = vmax.xlane.f32.xlu1 %v4191_v1 }
 0xae7   : > { %4410 = vrot.lane.b32.xlu1 %v6756_v26, %s6308_s19 }
 0xae9   : > { %v4172_v2 = vpop.xlane.xlu0 %4171 }
 0xaea   : > { %v4194_v58 = vsub.f32 %v3814_v49, %v4172_v2 }
 0xaec   : > { %v4202_v55 = vmul.f32 1.442695, %v4194_v58 }
 0xaee   : > { %6230 = vpow2.f32 %v4202_v55 }
 0xaf1   : > { %v4178_v3 = vpop.xlane.xlu0 %4177 }
 0xaf2   : > { %v4196_v48 = vsub.f32 %v3914_v59, %v4178_v3 }
 0xaf4   : > { %v4206_v15 = vmul.f32 1.442695, %v4196_v48 }
 0xaf6   : > { %6232 = vpow2.f32 %v4206_v15 }
 0xaf8   : > { %v7322_v57 = vpop.eup %6230 }
 0xaf9   : > { %v4218_v13 = vsel %vm1512_vm4, %v7322_v57, 0.0 }
 0xafa   : > { %4219 = vadd.xlane.f32.xlu0 %v4218_v13 }
 0xb00   : > { %v7326_v23 = vpop.eup %6232 }
 0xb01   : > { %v4224_v35 = vsel %vm1512_vm4, %v7326_v23, 0.0 }
 0xb02   : > { %4225 = vadd.xlane.f32.xlu0 %v4224_v35 }
 0xb18   : > { %4458 = vrot.lane.b32.xlu0 %v6777_v34, %s6308_s19 }
 0xb1a   : > { %v4175_v26 = vpop.xlane.xlu1 %4174 }
 0xb1b   : > { %v4195_v49 = vsub.f32 %v3864_v54, %v4175_v26 }
 0xb1d   : > { %v4204_v59 = vmul.f32 1.442695, %v4195_v49 }
 0xb1f   : > { %6234 = vpow2.f32 %v4204_v59 }
 0xb22   : > { %v4181_v5 = vpop.xlane.xlu0 %4180 }
 0xb23   : > { %v4197_v2 = vsub.f32 %v7298_v60, %v4181_v5 }
 0xb25   : > { %v4208_v58 = vmul.f32 1.442695, %v4197_v2 }
 0xb26   : > { %v4184_v7 = vpop.xlane.xlu0 %4183 }
 0xb27   : > { %v4198_v37 = vsub.f32 %v7291_v36, %v4184_v7 }
 0xb29   : > { %v7333_v56 = vpop.eup %6234  ;;  %v4210_v16 = vmul.f32 1.442695, %v4198_v37 }
 0xb2a   : > { %v4190_v63 = vpop.xlane.xlu0 %4189  ;;  %v4187_v11 = vpop.xlane.xlu1 %4186  ;;  %v4221_v53 = vsel %vm1512_vm4, %v7333_v56, 0.0 }
 0xb2b   : > { %6236 = vpow2.f32 %v4210_v16  ;;  %v4200_v43 = vsub.f32 %v7293_v22, %v4190_v63  ;;  %4222 = vadd.xlane.f32.xlu1 %v4221_v53  ;;  %v4199_v55 = vsub.f32 %v7304_v62, %v4187_v11 }
 0xb2d   : > { %v4214_v34 = vmul.f32 1.442695, %v4200_v43  ;;  %v4212_v3 = vmul.f32 1.442695, %v4199_v55 }
 0xb2e   : > { %v4267_v54 = vpop.permute.xlu0 %4266  ;;  %v4315_v61 = vpop.permute.xlu1 %4314 }
 0xb2f   : > { %6238 = vpow2.f32 %v4214_v34  ;;  %v4272_v32 = vsel %vm1620_vm3, %v4267_v54, 0  ;;  %v4320_v36 = vsel %vm1620_vm3, %v4315_v61, 0 }
 0xb30   : > { %6017 = vmatpush3.bf16.msra.mxu1 %v4272_v32  ;;  %6023 = vmatpush3.bf16.msra.mxu0 %v4320_v36  ;;  %6240 = vpow2.f32 %v4208_v58 }
 0xb31   : > { %6028 = vmatprep.subr.bf16.mxu1 %v7696_v45  ;;  %6034 = vmatprep.subr.bf16.mxu0 %v7696_v45  ;;  %6242 = vpow2.f32 %v4212_v3 }
 0xb35   : > { %v7342_v47 = vpop.eup %6236 }
 0xb36   : > { %v4230_v22 = vsel %vm1512_vm4, %v7342_v47, 0.0 }
 0xb37   : > { %4231 = vadd.xlane.f32.xlu0 %v4230_v22 }
 0xb39   : > { %v7346_v42 = vpop.eup %6238 }
 0xb3a   : > { %v4236_v1 = vsel %vm1512_vm4, %v7346_v42, 0.0  ;;  %v7360_v48 = vpop.eup %6240 }
 0xb3b   : > { %4237 = vadd.xlane.f32.xlu0 %v4236_v1  ;;  %v4227_v60 = vsel %vm1512_vm4, %v7360_v48, 0.0 }
 0xb3c   : > { %4506 = vrot.lane.b32.xlu1 %v6781_v44, %s6308_s19  ;;  %v4363_v44 = vpop.permute.xlu1 %4362 }
 0xb3d   : > { %v4368_v15 = vsel %vm1620_vm3, %v4363_v44, 0 }
 0xb51   : > { %4554 = vrot.lane.b32.xlu0 %v6799_v6, %s6308_s19  ;;  %v7366_v6 = vpop.eup %6242 }
 0xb52   : > { %v4233_v62 = vsel %vm1512_vm4, %v7366_v6, 0.0 }
 0xb55   : > { %4658 = vrot.lane.b32.xlu0 %v7080_v39, %s6309_s1 }
 0xb59   : > { %4662 = vrot.lane.b32.xlu0 %v7082_v10, %s6309_s1 }
 0xb5d   : > { %4666 = vrot.lane.b32.xlu0 %v7088_v31, %s6309_s1 }
 0xb60   : > { %4228 = vadd.xlane.f32.xlu1 %v4227_v60 }
 0xb61   : > { %4670 = vrot.lane.b32.xlu0 %v7092_v27, %s6309_s1 }
 0xb63   : > { %v4193_v39 = vpop.xlane.xlu1 %4192 }
 0xb64   : > { %v4201_v10 = vsub.f32 %v7310_v46, %v4193_v39  ;;  %4234 = vadd.xlane.f32.xlu1 %v4233_v62 }
 0xb65   : > { %4690 = vrot.lane.b32.xlu0 %v7275_v28, %s6310_s21 }
 0xb66   : > { %v4216_v31 = vmul.f32 1.442695, %v4201_v10 }
 0xb68   : > { %6244 = vpow2.f32 %v4216_v31 }
 0xb69   : > { %4694 = vrot.lane.b32.xlu0 %v7277_v17, %s6310_s21 }
 0xb6d   : > { %4698 = vrot.lane.b32.xlu0 %v7283_v4, %s6310_s21 }
 0xb71   : > { %4702 = vrot.lane.b32.xlu0 %v7287_v51, %s6310_s21 }
 0xb72   : > { %v7381_v27 = vpop.eup %6244 }
 0xb73   : > { %v4239_v46 = vsel %vm1512_vm4, %v7381_v27, 0.0 }
 0xb74   : > { %4240 = vadd.xlane.f32.xlu1 %v4239_v46 }
 0xb85   : > { %4602 = vrot.lane.b32.xlu1 %v6803_v12, %s6308_s19  ;;  %s7697_s19 = sshll.u32 %s7703_s24, 5 }
 0xb87   : > { %v4220_v28 = vpop.xlane.xlu0 %4219 }
 0xb88   : > { %6246 = vrcp.f32 %v4220_v28 }
 0xb89   : > { %4660 = vrot.lane.b32.xlu1 %v7084_v9, %s6309_s1 }
 0xb8d   : > { %4664 = vrot.lane.b32.xlu1 %v7086_v30, %s6309_s1 }
 0xb8f   : > { %v4226_v17 = vpop.xlane.xlu0 %4225 }
 0xb90   : > { %6248 = vrcp.f32 %v4226_v17 }
 0xb91   : > { %4668 = vrot.lane.b32.xlu1 %v7090_v41, %s6309_s1 }
 0xb92   : > { %v6247_v4 = vpop.eup %6246 }
 0xb93   : > { %v4243_v51 = vmul.f32 %v6247_v4, %v7322_v57  ;;  %v4459_v41 = vpop.permute.xlu0 %4458 }
 0xb94   : > { %v4464_v57 = vsel %vm1620_vm3, %v4459_v41, 0 }
 0xb95   : > { %4672 = vrot.lane.b32.xlu1 %v7100_v18, %s6309_s1  ;;  %v4258_v12 = vpack.c.bf16 %v4243_v51, %v4243_v51 }
 0xb97   : > { %6019 = vmatmul.mubr.msk.bf16.vlgmr.msra.gmra.mrb[116].mxu1 %vm1143_vm2, %v4258_v12 }
 0xb98   : > { %6029 = vmatpush3.bf16.msra.mxu1 %v4368_v15  ;;  %6030 = vmatprep.mubr.msk.bf16.mxu1 %vm6305_vm1, %v7696_v45 }
 0xb99   : > { %4692 = vrot.lane.b32.xlu1 %v7279_v21, %s6310_s21  ;;  %6040 = vmatprep.subr.bf16.mxu1 %v7696_v45  ;;  %v4411_v21 = vpop.permute.xlu1 %4410 }
 0xb9a   : > { %v6249_v9 = vpop.eup %6248  ;;  %v4416_v49 = vsel %vm1620_vm3, %v4411_v21, 0 }
 0xb9b   : > { %v4247_v30 = vmul.f32 %v6249_v9, %v7326_v23 }
 0xb9d   : > { %4696 = vrot.lane.b32.xlu1 %v7281_v29, %s6310_s21  ;;  %v4260_v18 = vpack.c.bf16 %v4247_v30, %v4247_v30 }
 0xb9f   : > { %6031 = vmatmul.mubr.msk.bf16.vlgmr.msra.gmra.mrb[120].mxu1 %vm1143_vm2, %v4260_v18  ;;  %v606_v18 = vld [vmem:[%s7677_s7] sm:$0xff] }
 0xba0   : > { %6041 = vmatpush3.bf16.msra.mxu1 %v4464_v57  ;;  %6042 = vmatprep.mubr.msk.bf16.mxu1 %vm6305_vm1, %v7696_v45  ;;  %v607_v57 = vld [vmem:[%s7677_s7 + $0x8] sm:$0xff] }
 0xba1   : > { %4700 = vrot.lane.b32.xlu1 %v7285_v14, %s6310_s21  ;;  %6052 = vmatprep.subr.bf16.mxu1 %v7696_v45  ;;  %v4790_v21 = vpack.c.bf16 %v607_v57, %v606_v18 }
 0xba5   : > { %4704 = vrot.lane.b32.xlu1 %v7295_v8, %s6310_s21  ;;  %s586_s21 = scalar_lea.vmem %s7687_s17, %s7697_s19 }
 0xbb8   : > { %v4223_v13 = vpop.xlane.xlu1 %4222 }
 0xbb9   : > { %6250 = vrcp.f32 %v4223_v13 }
 0xbbc   : > { %v4507_v11 = vpop.permute.xlu1 %4506 }
 0xbbd   : > { %v4512_v36 = vsel %vm1620_vm3, %v4507_v11, 0 }
 0xbc3   : > { %v6251_v29 = vpop.eup %6250 }
 0xbc4   : > { %v4245_v23 = vmul.f32 %v6251_v29, %v7333_v56  ;;  %v4232_v35 = vpop.xlane.xlu0 %4231 }
 0xbc5   : > { %6252 = vrcp.f32 %v4232_v35 }
 0xbc6   : > { %v4259_v26 = vpack.c.bf16 %v4245_v23, %v4245_v23 }
 0xbc8   : > { %v4238_v59 = vpop.xlane.xlu0 %4237  ;;  %6025 = vmatmul.mubr.msk.bf16.vlgmr.msra.gmra.mrb[120].mxu0 %vm1143_vm2, %v4259_v26 }
 0xbc9   : > { %6254 = vrcp.f32 %v4238_v59  ;;  %6035 = vmatpush3.bf16.msra.mxu0 %v4416_v49  ;;  %6036 = vmatprep.mubr.msk.bf16.mxu0 %vm6305_vm1, %v7696_v45 }
 0xbca   : > { %6046 = vmatprep.subr.bf16.mxu0 %v7696_v45 }
 0xbcc   : > { %v4555_v5 = vpop.permute.xlu0 %4554 }
 0xbcd   : > { %v4560_v56 = vsel %vm1620_vm3, %v4555_v5, 0 }
 0xbcf   : > { %v6253_v14 = vpop.eup %6252 }
 0xbd0   : > { %v4251_v8 = vmul.f32 %v6253_v14, %v7342_v47 }
 0xbd2   : > { %v4262_v7 = vpack.c.bf16 %v4251_v8, %v4251_v8  ;;  %v4659_v8 = vpop.permute.xlu0 %4658 }
 0xbd3   : > { %v6255_v37 = vpop.eup %6254 }
 0xbd4   : > { %6043 = vmatmul.mubr.msk.bf16.vlgmr.msra.gmra.mrb[124].mxu1 %vm1143_vm2, %v4262_v7  ;;  %v4255_v16 = vmul.f32 %v6255_v37, %v7346_v42 }
 0xbd5   : > { %6053 = vmatpush3.bf16.msra.mxu1 %v4560_v56  ;;  %6054 = vmatprep.mubr.msk.bf16.mxu1 %vm6305_vm1, %v7696_v45 }
 0xbd6   : > { %v4264_v63 = vpack.c.bf16 %v4255_v16, %v4255_v16  ;;  %6064 = vmatprep.subr.bf16.mxu1 %v4790_v21  ;;  %v4663_v7 = vpop.permute.xlu0 %4662 }
 0xbdc   : > { %6055 = vmatmul.mubr.msk.bf16.vlgmr.msra.gmra.mrb[128].mxu1 %vm1143_vm2, %v4264_v63 }
 0xbdd   : > { %6065 = vmatpush3.bf16.msra.mxu1 %v4790_v21 }
 0xbed   : > { %v4229_v53 = vpop.xlane.xlu1 %4228 }
 0xbee   : > { %6256 = vrcp.f32 %v4229_v53  ;;  %v4667_v53 = vpop.permute.xlu0 %4666 }
 0xbf1   : > { %v4235_v43 = vpop.xlane.xlu1 %4234 }
 0xbf2   : > { %6258 = vrcp.f32 %v4235_v43 }
 0xbf8   : > { %v6257_v34 = vpop.eup %6256 }
 0xbf9   : > { %v4249_v54 = vmul.f32 %v6257_v34, %v7360_v48  ;;  %v4671_v34 = vpop.permute.xlu0 %4670 }
 0xbfa   : > { %v4752_v21 = vsel %vm1143_vm2, %v6882_v0, %v4671_v34  ;;  %v5500_v0 = vld [vmem:[%s7678_s8] ss:$0 sm:$0xff] }
 0xbfb   : > { %v4261_v61 = vpack.c.bf16 %v4249_v54, %v4249_v54 }
 0xbfc   : > { %v6259_v32 = vpop.eup %6258 }
 0xbfd   : > { %6037 = vmatmul.mubr.msk.bf16.vlgmr.msra.gmra.mrb[124].mxu0 %vm1143_vm2, %v4261_v61  ;;  %v4253_v47 = vmul.f32 %v6259_v32, %v7366_v6  ;;  %v4691_v61 = vpop.permute.xlu0 %4690 }
 0xbfe   : > { %6047 = vmatpush3.bf16.msra.mxu0 %v4512_v36  ;;  %6048 = vmatprep.mubr.msk.bf16.mxu0 %vm6305_vm1, %v7696_v45 }
 0xbff   : > { %6058 = vmatprep.subr.bf16.mxu0 %v7696_v45  ;;  %v4263_v42 = vpack.c.bf16 %v4253_v47, %v4253_v47 }
 0xc01   : > { %v4241_v22 = vpop.xlane.xlu1 %4240  ;;  %v4695_v36 = vpop.permute.xlu0 %4694 }
 0xc02   : > { %6260 = vrcp.f32 %v4241_v22 }
 0xc05   : > { %6049 = vmatmul.mubr.msk.bf16.vlgmr.msra.gmra.mrb[128].mxu0 %vm1143_vm2, %v4263_v42  ;;  %v4603_v1 = vpop.permute.xlu1 %4602  ;;  %v4699_v22 = vpop.permute.xlu0 %4698 }
 0xc06   : > { %v4608_v2 = vsel %vm1620_vm3, %v4603_v1, 0  ;;  %6060 = vmatprep.mubr.msk.bf16.mxu0 %vm6305_vm1, %v7696_v45 }
 0xc07   : > { %6059 = vmatpush3.bf16.msra.mxu0 %v4608_v2 }
 0xc09   : > { %v4661_v5 = vpop.permute.xlu1 %4660  ;;  %v4703_v1 = vpop.permute.xlu0 %4702 }
 0xc0c   : > { %v6261_v58 = vpop.eup %6260 }
 0xc0d   : > { %v4257_v55 = vmul.f32 %v6261_v58, %v7381_v27  ;;  %v4665_v16 = vpop.permute.xlu1 %4664 }
 0xc0f   : > { %v4265_v3 = vpack.c.bf16 %v4257_v55, %v4257_v55  ;;  %v4746_v55 = vsel %vm1143_vm2, %v6870_v20, %v4659_v8  ;;  %v4749_v20 = vsel %vm1143_vm2, %v6876_v38, %v4665_v16  ;;  %v4872_v8 = vcombine.high %v5500_v0, %v5500_v0  ;;  %v6271_v16 = vld [vmem:[%s6428_s18 + $0x10] sm:$0xf] }
 0xc11   : > { %6061 = vmatmul.mubr.msk.bf16.vlgmr.msra.gmra.mrb[132].mxu0 %vm1143_vm2, %v4265_v3  ;;  %v4669_v43 = vpop.permute.xlu1 %4668  ;;  %v4747_v3 = vsel %vm1143_vm2, %v6872_v50, %v4661_v5 }
 0xc12   : > { %v4751_v38 = vsel %vm1143_vm2, %v6880_v52, %v4669_v43  ;;  %v4761_v52 = vsel %vm4754_vm5, %v4752_v21, %v4703_v1 }
 0xc15   : > { %v4673_v54 = vpop.permute.xlu1 %4672 }
 0xc19   : > { %v4693_v32 = vpop.permute.xlu1 %4692 }
 0xc1d   : > { %v4697_v47 = vpop.permute.xlu1 %4696 }
 0xc1e   : > { %v4758_v50 = vsel %vm4754_vm5, %v4749_v20, %v4697_v47 }
 0xc21   : > { %v4701_v42 = vpop.permute.xlu1 %4700 }
 0xc25   : > { %v4705_v2 = vpop.permute.xlu1 %4704 }
 0xc6a   : > { %v4308_v48 = vpop.f32.mrb[116].mxu1 }
 0xc6b   : > { %4722 = vrot.lane.b32.xlu0 %v4308_v48, %s6311_s22  ;;  %v6020_v44 = vpop.f32.mrb[117].mxu1  ;;  %v4755_v48 = vsel %vm4754_vm5, %v4746_v55, %v4691_v61  ;;  %v6276_v55 = vld [vmem:[%s6428_s18 + $0xc] sm:$0xf] }
 0xc6c   : > { %v4311_v60 = vpop.f32.mrb[118].mxu1  ;;  %v4756_v44 = vsel %vm4754_vm5, %v4747_v3, %v4693_v32 }
 0xc6d   : > { %v6021_v6 = vpop.f32.mrb[119].mxu1 }
 0xc72   : > { %v4404_v39 = vpop.f32.mrb[120].mxu1 }
 0xc73   : > { %4726 = vrot.lane.b32.xlu0 %v4404_v39, %s6311_s22  ;;  %v6032_v62 = vpop.f32.mrb[121].mxu1 }
 0xc74   : > { %v4407_v10 = vpop.f32.mrb[122].mxu1 }
 0xc75   : > { %v6033_v45 = vpop.f32.mrb[123].mxu1 }
 0xc76   : > { %v4748_v45 = vsel %vm1143_vm2, %v6874_v33, %v4663_v7  ;;  %v4750_v33 = vsel %vm1143_vm2, %v6878_v19, %v4667_v53  ;;  %v4753_v19 = vsel %vm1143_vm2, %v6890_v40, %v4673_v54  ;;  %v6270_v7 = vld [vmem:[%s6428_s18] sm:$0xf]  ;;  %v6273_v54 = vld [vmem:[%s6428_s18 + $0x4] sm:$0xf] }
 0xc9b   : > { %v4356_v31 = vpop.f32.mrb[120].mxu0 }
 0xc9c   : > { %4724 = vrot.lane.b32.xlu1 %v4356_v31, %s6311_s22  ;;  %v6026_v27 = vpop.f32.mrb[121].mxu0  ;;  %v4757_v31 = vsel %vm4754_vm5, %v4748_v45, %v4695_v36  ;;  %v6274_v36 = vld [vmem:[%s6428_s18 + $0x8] sm:$0xf] }
 0xc9d   : > { %v4359_v46 = vpop.f32.mrb[122].mxu0 }
 0xc9e   : > { %v6027_v28 = vpop.f32.mrb[123].mxu0 }
 0xca7   : > { %v4500_v17 = vpop.f32.mrb[124].mxu1 }
 0xca8   : > { %4730 = vrot.lane.b32.xlu0 %v4500_v17, %s6311_s22  ;;  %v6044_v4 = vpop.f32.mrb[125].mxu1 }
 0xca9   : > { %v4503_v51 = vpop.f32.mrb[126].mxu1 }
 0xcaa   : > { %v6045_v12 = vpop.f32.mrb[127].mxu1 }
 0xcab   : > { %v4759_v12 = vsel %vm4754_vm5, %v4750_v33, %v4699_v22 }
 0xcaf   : > { %v4596_v15 = vpop.f32.mrb[128].mxu1 }
 0xcb0   : > { %4734 = vrot.lane.b32.xlu0 %v4596_v15, %s6311_s22  ;;  %v6056_v9 = vpop.f32.mrb[129].mxu1  ;;  %v4760_v15 = vsel %vm4754_vm5, %v4751_v38, %v4701_v42 }
 0xcb1   : > { %v4599_v30 = vpop.f32.mrb[130].mxu1 }
 0xcb2   : > { %v6057_v41 = vpop.f32.mrb[131].mxu1 }
 0xcd0   : > { %v4452_v13 = vpop.f32.mrb[124].mxu0 }
 0xcd1   : > { %4728 = vrot.lane.b32.xlu1 %v4452_v13, %s6311_s22  ;;  %v6038_v29 = vpop.f32.mrb[125].mxu0  ;;  %v4762_v13 = vsel %vm4754_vm5, %v4753_v19, %v4705_v2  ;;  %v6275_v2 = vld [vmem:[%s6428_s18 + $0x1c] sm:$0xf] }
 0xcd2   : > { %v4455_v23 = vpop.f32.mrb[126].mxu0 }
 0xcd3   : > { %v6039_v35 = vpop.f32.mrb[127].mxu0 }
 0xcd8   : > { %v4548_v26 = vpop.f32.mrb[128].mxu0 }
 0xcd9   : > { %4732 = vrot.lane.b32.xlu1 %v4548_v26, %s6311_s22  ;;  %v6050_v49 = vpop.f32.mrb[129].mxu0 }
 0xcda   : > { %v4551_v59 = vpop.f32.mrb[130].mxu0 }
 0xcdb   : > { %v6051_v14 = vpop.f32.mrb[131].mxu0 }
 0xcdd   : > { %v4723_v58 = vpop.permute.xlu0 %4722 }
 0xcde   : > { %v4764_v6 = vsel %vm4763_vm6, %v4755_v48, %v4723_v58 }
 0xce4   : > { %v4644_v37 = vpop.f32.mrb[132].mxu0 }
 0xce5   : > { %4736 = vrot.lane.b32.xlu1 %v4644_v37, %s6311_s22  ;;  %v6062_v56 = vpop.f32.mrb[133].mxu0  ;;  %v4727_v10 = vpop.permute.xlu0 %4726 }
 0xce6   : > { %v4647_v63 = vpop.f32.mrb[134].mxu0  ;;  %v4766_v46 = vsel %vm4763_vm6, %v4757_v31, %v4727_v10 }
 0xce7   : > { %v6063_v11 = vpop.f32.mrb[135].mxu0 }
 0xce8   : > { %v6272_v11 = vld [vmem:[%s6428_s18 + $0x14] sm:$0xf] }
 0xd0e   : > { %v4725_v60 = vpop.permute.xlu1 %4724 }
 0xd0f   : > { %v4765_v39 = vsel %vm4763_vm6, %v4756_v44, %v4725_v60  ;;  %v6277_v44 = vld [vmem:[%s6428_s18 + $0x18] sm:$0xf] }
 0xd10   : > { %v4780_v62 = vcombine.low %v4764_v6, %v4765_v39 }
 0xd1a   : > { %v4731_v51 = vpop.permute.xlu0 %4730 }
 0xd1b   : > { %v4768_v30 = vsel %vm4763_vm6, %v4759_v12, %v4731_v51 }
 0xd22   : > { %v4735_v57 = vpop.permute.xlu0 %4734 }
 0xd23   : > { %v4770_v23 = vsel %vm4763_vm6, %v4761_v52, %v4735_v57 }
 0xd43   : > { %v4729_v27 = vpop.permute.xlu1 %4728 }
 0xd44   : > { %v4767_v28 = vsel %vm4763_vm6, %v4758_v50, %v4729_v27 }
 0xd45   : > { %v4781_v17 = vcombine.low %v4766_v46, %v4767_v28 }
 0xd47   : > { %v4788_v4 = vpack.c.bf16 %v4781_v17, %v4780_v62 }
 0xd49   : > { %6066 = vmatprep.mubr.msk.bf16.mxu1 %vm641_vm0, %v4788_v4 }
 0xd4b   : > { %v4733_v9 = vpop.permute.xlu1 %4732 }
 0xd4c   : > { %v4769_v41 = vsel %vm4763_vm6, %v4760_v15, %v4733_v9 }
 0xd4d   : > { %v4782_v18 = vcombine.low %v4768_v30, %v4769_v41 }
 0xd57   : > { %v4737_v29 = vpop.permute.xlu1 %4736 }
 0xd58   : > { %v4771_v35 = vsel %vm4763_vm6, %v4762_v13, %v4737_v29 }
 0xd59   : > { %v4783_v26 = vcombine.low %v4770_v23, %v4771_v35 }
 0xd5b   : > { %v4789_v49 = vpack.c.bf16 %v4783_v26, %v4782_v18 }
 0xd5d   : > { %6067 = vmatmul.mubr.msk.bf16.vlgmr.msra.gmra.mrb[132].mxu1 %vm641_vm0, %v4789_v49 }
 0xe30   : > { %v6068_v40 = vpop.f32.mrb[132].mxu1 }
 0xe31   : > { %v4852_v59 = vcombine.high %v6068_v40, %v6068_v40  ;;  %v4831_v14 = vpop.f32.mrb[133].mxu1  ;;  %v4862_v63 = vadd.f32 %v6271_v16, %v6068_v40 }
 0xe32   : > { %v4850_v5 = vcombine.high %v4831_v14, %v4831_v14  ;;  %v4858_v37 = vadd.f32 %v6270_v7, %v4831_v14  ;;  %v6069_v56 = vpop.f32.mrb[134].mxu1 }
 0xe33   : > { %v4863_v53 = vadd.f32 %v6272_v11, %v4852_v59  ;;  %v4853_v43 = vcombine.high %v6069_v56, %v6069_v56  ;;  %v4834_v34 = vpop.f32.mrb[135].mxu1  ;;  %v7505_v48 = vadd.f32 %v5500_v0, %v4862_v63  ;;  %v4864_v60 = vadd.f32 %v6277_v44, %v6069_v56  ;;  %v617_v44 = vld [vmem:[%s7685_s15 + $0x8] sm:$0xff] }
 0xe34   : > { %v4859_v61 = vadd.f32 %v6273_v54, %v4850_v5  ;;  %v4851_v32 = vcombine.high %v4834_v34, %v4834_v34  ;;  %v4860_v47 = vadd.f32 %v6274_v36, %v4834_v34  ;;  %v7497_v22 = vadd.f32 %v5500_v0, %v4858_v37 }
 0xe35   : > { %v7499_v42 = vadd.f32 %v4872_v8, %v4863_v53  ;;  %v4865_v58 = vadd.f32 %v6275_v2, %v4853_v43  ;;  %v7521_v50 = vadd.f32 %v5500_v0, %v4864_v60  ;;  %v613_v2 = vld [vmem:[%s7683_s13] sm:$0xff]  ;;  %v618_v60 = vld [vmem:[%s7685_s15 + $0x10] sm:$0xff] }
 0xe36   : > { %v7501_v1 = vadd.f32 %v4872_v8, %v4859_v61  ;;  %v4861_v3 = vadd.f32 %v6276_v55, %v4851_v32  ;;  %v7508_v6 = vadd.f32 %v5500_v0, %v4860_v47 }
 0xe37   : > { %v7514_v10 = vadd.f32 %v4872_v8, %v4865_v58  ;;  %v4892_v31 = vcombine.low %v7505_v48, %v7499_v42  ;;  %v614_v58 = vld [vmem:[%s7683_s13 + $0x8] sm:$0xff] }
 0xe38   : > { %v7510_v39 = vadd.f32 %v4872_v8, %v4861_v3  ;;  %v4890_v62 = vcombine.low %v7497_v22, %v7501_v1  ;;  %v5164_v55 = vpack.c.bf16 %v614_v58, %v613_v2  ;;  %v616_v3 = vld [vmem:[%s7685_s15] sm:$0xff] }
 0xe39   : > { %v4904_v46 = vsel %vm641_vm0, %v4892_v31, 0.0  ;;  %v4893_v28 = vcombine.low %v7521_v50, %v7514_v10 }
 0xe3a   : > { %v4898_v45 = vsel %vm641_vm0, %v4890_v62, 0.0  ;;  %v4891_v20 = vcombine.low %v7508_v6, %v7510_v39  ;;  %6070 = vmatprep.subr.bf16.mxu0 %v5164_v55  ;;  %v5232_v62 = vpack.c.bf16 %v617_v44, %v616_v3 }
 0xe3b   : > { %4899 = vadd.xlane.f32.xlu0 %v4898_v45  ;;  %v4907_v17 = vsel %vm641_vm0, %v4893_v28, 0.0  ;;  %6071 = vmatpush3.bf16.msra.mxu0 %v5164_v55  ;;  %v619_v45 = vld [vmem:[%s7685_s15 + $0x18] sm:$0xff] }
 0xe3c   : > { %v4901_v27 = vsel %vm641_vm0, %v4891_v20, 0.0  ;;  %v5233_v20 = vpack.c.bf16 %v619_v45, %v618_v60  ;;  %6076 = vmatprep.subr.bf16.mxu1 %v5232_v62 }
 0xe3d   : > { %4902 = vadd.xlane.f32.xlu1 %v4901_v27  ;;  %6077 = vmatpush3.bf16.msra.mxu1 %v5232_v62 }
 0xe3e   : > { %6078 = vmatprep.subr.bf16.mxu1 %v5233_v20 }
 0xe3f   : > { %4905 = vadd.xlane.f32.xlu0 %v4904_v46 }
 0xe41   : > { %6079 = vmatpush3.bf16.msra.mxu1 %v5233_v20 }
 0xe43   : > { %4908 = vadd.xlane.f32.xlu0 %v4907_v17 }
 0xec8   : > { %v4900_v4 = vpop.xlane.xlu0 %4899 }
 0xec9   : > { %v4910_v51 = vmul.f32 0.0625, %v4900_v4 }
 0xeca   : > { %v4903_v33 = vpop.xlane.xlu1 %4902 }
 0xecb   : > { %v4924_v38 = vrot.slane %v4910_v51, %v6442_v24  ;;  %v4931_v12 = vrot.slane %v4910_v51, %v6444_v25  ;;  %v4911_v15 = vmul.f32 0.0625, %v4903_v33 }
 0xecc   : > { %v4906_v9 = vpop.xlane.xlu0 %4905 }
 0xecd   : > { %v7531_v30 = vsub.f32 %v7497_v22, %v4924_v38  ;;  %v7534_v41 = vsub.f32 %v7501_v1, %v4931_v12  ;;  %v4938_v18 = vrot.slane %v4911_v15, %v6442_v24  ;;  %v4945_v57 = vrot.slane %v4911_v15, %v6444_v25 }
 0xece   : > { %v4912_v21 = vmul.f32 0.0625, %v4906_v9 }
 0xecf   : > { %v7539_v19 = vsub.f32 %v7508_v6, %v4938_v18  ;;  %v7542_v52 = vsub.f32 %v7510_v39, %v4945_v57  ;;  %v4990_v13 = vmul.f32 %v7531_v30, %v7531_v30  ;;  %v4991_v29 = vmul.f32 %v7534_v41, %v7534_v41  ;;  %v5501_v18 = vld [vmem:[%s7681_s11] ss:$0 sm:$0xff] }
 0xed0   : > { %v4952_v23 = vrot.slane %v4912_v21, %v6442_v24  ;;  %v4959_v35 = vrot.slane %v4912_v21, %v6444_v25  ;;  %v4909_v26 = vpop.xlane.xlu0 %4908  ;;  %v5502_v57 = vld [vmem:[%s7682_s12] ss:$0 sm:$0xff] }
 0xed1   : > { %v4913_v49 = vmul.f32 0.0625, %v4909_v26  ;;  %v5006_v0 = vcombine.low %v4990_v13, %v4991_v29  ;;  %v4992_v40 = vmul.f32 %v7539_v19, %v7539_v19  ;;  %v4993_v59 = vmul.f32 %v7542_v52, %v7542_v52 }
 0xed2   : > { %v7555_v14 = vsub.f32 %v7505_v48, %v4952_v23  ;;  %v7558_v8 = vsub.f32 %v7499_v42, %v4959_v35  ;;  %v5120_v23 = vcombine.high %v5501_v18, %v5501_v18  ;;  %v5136_v26 = vcombine.high %v5502_v57, %v5502_v57 }
 0xed3   : > { %v4966_v5 = vrot.slane %v4913_v49, %v6442_v24  ;;  %v4973_v7 = vrot.slane %v4913_v49, %v6444_v25  ;;  %v5014_v37 = vsel %vm641_vm0, %v5006_v0, 0.0  ;;  %v5007_v56 = vcombine.low %v4992_v40, %v4993_v59 }
 0xed4   : > { %5015 = vadd.xlane.f32.xlu0 %v5014_v37  ;;  %v4994_v16 = vmul.f32 %v7555_v14, %v7555_v14  ;;  %v4995_v63 = vmul.f32 %v7558_v8, %v7558_v8 }
 0xed5   : > { %v7568_v11 = vsub.f32 %v7521_v50, %v4966_v5  ;;  %v7571_v53 = vsub.f32 %v7514_v10, %v4973_v7  ;;  %v5017_v43 = vsel %vm641_vm0, %v5007_v56, 0.0 }
 0xed6   : > { %5018 = vadd.xlane.f32.xlu1 %v5017_v43  ;;  %v5008_v34 = vcombine.low %v4994_v16, %v4995_v63 }
 0xed7   : > { %v4996_v54 = vmul.f32 %v7568_v11, %v7568_v11  ;;  %v4997_v61 = vmul.f32 %v7571_v53, %v7571_v53 }
 0xed8   : > { %v5020_v32 = vsel %vm641_vm0, %v5008_v34, 0.0 }
 0xed9   : > { %5021 = vadd.xlane.f32.xlu0 %v5020_v32  ;;  %v5009_v36 = vcombine.low %v4996_v54, %v4997_v61 }
 0xedb   : > { %v5023_v47 = vsel %vm641_vm0, %v5009_v36, 0.0 }
 0xedc   : > { %5024 = vadd.xlane.f32.xlu1 %v5023_v47 }
 0xf61   : > { %v5016_v31 = vpop.xlane.xlu0 %5015 }
 0xf62   : > { %v5026_v27 = vmul.f32 0.0625, %v5016_v31 }
 0xf63   : > { %v5019_v46 = vpop.xlane.xlu1 %5018 }
 0xf64   : > { %v5030_v28 = vadd.f32 1e-05, %v5026_v27  ;;  %v5027_v17 = vmul.f32 0.0625, %v5019_v46 }
 0xf66   : > { %6262 = vrsqrt.f32 %v5030_v28  ;;  %v5031_v4 = vadd.f32 1e-05, %v5027_v17  ;;  %v5022_v51 = vpop.xlane.xlu0 %5021 }
 0xf67   : > { %v5028_v33 = vmul.f32 0.0625, %v5022_v51  ;;  %v623_v51 = vld [vmem:[%s7685_s15 + $0x38] sm:$0xff] }
 0xf68   : > { %6264 = vrsqrt.f32 %v5031_v4  ;;  %v622_v4 = vld [vmem:[%s7685_s15 + $0x30] sm:$0xff] }
 0xf69   : > { %v5032_v38 = vadd.f32 1e-05, %v5028_v33  ;;  %v5025_v12 = vpop.xlane.xlu1 %5024  ;;  %v5235_v33 = vpack.c.bf16 %v623_v51, %v622_v4 }
 0xf6a   : > { %v5029_v15 = vmul.f32 0.0625, %v5025_v12 }
 0xf6b   : > { %6266 = vrsqrt.f32 %v5032_v38  ;;  %v5503_v38 = vld [vmem:[%s7684_s14] ss:$0 sm:$0xff] }
 0xf6c   : > { %v5033_v9 = vadd.f32 1e-05, %v5029_v15 }
 0xf6e   : > { %6268 = vrsqrt.f32 %v5033_v9 }
 0xf70   : > { %v6263_v21 = vpop.eup %6262 }
 0xf71   : > { %v5048_v13 = vrot.slane %v6263_v21, %v6442_v24  ;;  %v5055_v29 = vrot.slane %v6263_v21, %v6444_v25 }
 0xf72   : > { %v6265_v35 = vpop.eup %6264 }
 0xf73   : > { %v5106_v49 = vmul.f32 %v5048_v13, %v7531_v30  ;;  %v5107_v0 = vmul.f32 %v5055_v29, %v7534_v41  ;;  %v5062_v40 = vrot.slane %v6265_v35, %v6442_v24  ;;  %v5069_v59 = vrot.slane %v6265_v35, %v6444_v25 }
 0xf75   : > { %v6267_v5 = vpop.eup %6266  ;;  %v5108_v7 = vmul.f32 %v5062_v40, %v7539_v19  ;;  %v5109_v37 = vmul.f32 %v5069_v59, %v7542_v52  ;;  %v5122_v56 = vmul.f32 %v5501_v18, %v5106_v49  ;;  %v5123_v16 = vmul.f32 %v5120_v23, %v5107_v0  ;;  %v5506_v59 = vld [vmem:[%s7686_s16] ss:$0 sm:$0xff] }
 0xf76   : > { %v5076_v63 = vrot.slane %v6267_v5, %v6442_v24  ;;  %v5083_v43 = vrot.slane %v6267_v5, %v6444_v25 }
 0xf77   : > { %v5124_v34 = vmul.f32 %v5501_v18, %v5108_v7  ;;  %v5125_v54 = vmul.f32 %v5120_v23, %v5109_v37  ;;  %v5138_v30 = vadd.f32 %v5502_v57, %v5122_v56  ;;  %v5139_v61 = vadd.f32 %v5136_v26, %v5123_v16 }
 0xf78   : > { %v6269_v41 = vpop.eup %6268  ;;  %v5110_v32 = vmul.f32 %v5076_v63, %v7555_v14  ;;  %v5111_v36 = vmul.f32 %v5083_v43, %v7558_v8 }
 0xf79   : > { %v5090_v47 = vrot.slane %v6269_v41, %v6442_v24  ;;  %v5097_v19 = vrot.slane %v6269_v41, %v6444_v25  ;;  %v5140_v52 = vadd.f32 %v5502_v57, %v5124_v34  ;;  %v5141_v2 = vadd.f32 %v5136_v26, %v5125_v54 }
 0xf7a   : > { %v5126_v58 = vmul.f32 %v5501_v18, %v5110_v32  ;;  %v5127_v55 = vmul.f32 %v5120_v23, %v5111_v36  ;;  %v5154_v60 = vcombine.low %v5138_v30, %v5139_v61 }
 0xf7b   : > { %v5112_v3 = vmul.f32 %v5090_v47, %v7568_v11  ;;  %v5113_v44 = vmul.f32 %v5097_v19, %v7571_v53  ;;  %v5155_v62 = vcombine.low %v5140_v52, %v5141_v2  ;;  %v620_v11 = vld [vmem:[%s7685_s15 + $0x20] sm:$0xff]  ;;  %v621_v53 = vld [vmem:[%s7685_s15 + $0x28] sm:$0xff] }
 0xf7c   : > { %v5142_v45 = vadd.f32 %v5502_v57, %v5126_v58  ;;  %v5143_v27 = vadd.f32 %v5136_v26, %v5127_v55  ;;  %v5234_v17 = vpack.c.bf16 %v621_v53, %v620_v11 }
 0xf7d   : > { %v5128_v20 = vmul.f32 %v5501_v18, %v5112_v3  ;;  %v5129_v31 = vmul.f32 %v5120_v23, %v5113_v44  ;;  %v5162_v14 = vpack.c.bf16 %v5155_v62, %v5154_v60 }
 0xf7e   : > { %v5156_v25 = vcombine.low %v5142_v45, %v5143_v27  ;;  %6080 = vmatprep.subr.bf16.mxu1 %v5234_v17 }
 0xf7f   : > { %6072 = vmatprep.mubr.msk.bf16.mxu0 %vm641_vm0, %v5162_v14  ;;  %v5144_v24 = vadd.f32 %v5502_v57, %v5128_v20  ;;  %v5145_v8 = vadd.f32 %v5136_v26, %v5129_v31  ;;  %6081 = vmatpush3.bf16.msra.mxu1 %v5234_v17 }
 0xf80   : > { %6082 = vmatprep.subr.bf16.mxu1 %v5235_v33 }
 0xf81   : > { %v5157_v46 = vcombine.low %v5144_v24, %v5145_v8 }
 0xf83   : > { %v5163_v28 = vpack.c.bf16 %v5157_v46, %v5156_v25  ;;  %6083 = vmatpush3.bf16.msra.mxu1 %v5235_v33 }
 0xf85   : > { %6073 = vmatmul.mubr.msk.bf16.vlgmr.msra.gmra.mrb[136].mxu0 %vm641_vm0, %v5163_v28 }
0x1058   : > { %v6074_v12 = vpop.f32.mrb[136].mxu0 }
0x1059   : > { %v5220_v15 = vadd.f32 %v6074_v12, %v5503_v38  ;;  %v5211_v9 = vpop.f32.mrb[137].mxu0 }
0x105a   : > { %v5212_v18 = vadd.f32 %v5503_v38, %v5211_v9  ;;  %v6075_v57 = vpop.f32.mrb[138].mxu0 }
0x105b   : > { %v5223_v21 = vadd.f32 %v6075_v57, %v5503_v38  ;;  %v5214_v13 = vpop.f32.mrb[139].mxu0  ;;  %v5228_v23 = vmax.f32 %v5220_v15, 0.0 }
0x105c   : > { %v5215_v29 = vadd.f32 %v5503_v38, %v5214_v13  ;;  %v5226_v26 = vmax.f32 %v5212_v18, 0.0 }
0x105d   : > { %v5229_v35 = vmax.f32 %v5223_v21, 0.0 }
0x105e   : > { %v5227_v49 = vmax.f32 %v5215_v29, 0.0 }
0x105f   : > { %v5231_v0 = vpack.c.bf16 %v5229_v35, %v5228_v23 }
0x1060   : > { %v5230_v40 = vpack.c.bf16 %v5227_v49, %v5226_v26 }
0x1062   : > { %6084 = vmatprep.mubr.msk.bf16.mxu1 %vm5242_vm7, %v5230_v40 }
0x1063   : > { %6085 = vmatmul.mubr.msk.bf16.vlgmr.msra.gmra.mrb[136].mxu1 %vm5242_vm7, %v5231_v0 }
0x1136   : > { %v6086_v5 = vpop.f32.mrb[136].mxu1 }
0x1137   : > { %v5292_v7 = vadd.f32 %v6086_v5, %v5506_v59  ;;  %v5283_v37 = vpop.f32.mrb[137].mxu1 }
0x1138   : > { %v5284_v56 = vadd.f32 %v5506_v59, %v5283_v37  ;;  %v6087_v16 = vpop.f32.mrb[138].mxu1 }
0x1139   : > { %v5304_v63 = vcombine.high %v5292_v7, %v5292_v7  ;;  %v5314_v43 = vadd.f32 %v5292_v7, %v7505_v48  ;;  %v5295_v34 = vadd.f32 %v6087_v16, %v5506_v59  ;;  %v5286_v54 = vpop.f32.mrb[139].mxu1 }
0x113a   : > { %v5302_v30 = vcombine.high %v5284_v56, %v5284_v56  ;;  %v5310_v61 = vadd.f32 %v5284_v56, %v7497_v22  ;;  %v5287_v41 = vadd.f32 %v5506_v59, %v5286_v54 }
0x113b   : > { %v5315_v32 = vadd.f32 %v5304_v63, %v7499_v42  ;;  %5323 = vst.msk [vmem:[%s586_s21 + $0x10] sm:$0xf] %vm5318_vm8, %v5314_v43  ;;  %v5305_v36 = vcombine.high %v5295_v34, %v5295_v34  ;;  %v5316_v47 = vadd.f32 %v5295_v34, %v7521_v50 }
0x113c   : > { %v5311_v19 = vadd.f32 %v5302_v30, %v7501_v1  ;;  %5319 = vst.msk [vmem:[%s586_s21] sm:$0xf] %vm5318_vm8, %v5310_v61  ;;  %v5303_v52 = vcombine.high %v5287_v41, %v5287_v41  ;;  %v5312_v48 = vadd.f32 %v5287_v41, %v7508_v6 }
0x113d   : > { %5324 = vst.msk [vmem:[%s586_s21 + $0x14] sm:$0xf] %vm5318_vm8, %v5315_v32  ;;  %v5317_v2 = vadd.f32 %v5305_v36, %v7514_v10  ;;  %5325 = vst.msk [vmem:[%s586_s21 + $0x18] sm:$0xf] %vm5318_vm8, %v5316_v47 }
0x113e   : > { %5320 = vst.msk [vmem:[%s586_s21 + $0x4] sm:$0xf] %vm5318_vm8, %v5311_v19  ;;  %v5313_v22 = vadd.f32 %v5303_v52, %v7510_v39  ;;  %5321 = vst.msk [vmem:[%s586_s21 + $0x8] sm:$0xf] %vm5318_vm8, %v5312_v48 }
0x113f   : > { %5326 = vst.msk [vmem:[%s586_s21 + $0x1c] sm:$0xf] %vm5318_vm8, %v5317_v2 }
0x1140   : > { %5322 = vst.msk [vmem:[%s586_s21 + $0xc] sm:$0xf] %vm5318_vm8, %v5313_v22 }
0x1141 PF: > { %s27_s26 = sadd.s32 1, %s6300_s26   ;;  %s7698_s24 = smov %s6296_s25 }
0x1142   : > { %p24_p5 = scmp.ge.s32.totalorder %s27_s26, 4   ;;  %s7699_s25 = smov %s7701_s27 }
0x1144   :  { %26 = sbr.rel (!%p24_p5) target bundleno = 3 (0x3), region = 118 }

</bundles_post_ra>
